<compile_context>
chip_gen: v7x
topology: tpu7x:2x2x1
jax: 0.10.0
libtpu: 0.0.40
codegen_flags: <defaults>
</compile_context>

<pallas_src>
import numpy as np
import jax
import jax.numpy as jnp
from jax.experimental import pallas as pl
from jax.experimental.pallas import tpu as pltpu


def _round_up(x, m):
    return ((x + m - 1) // m) * m


def _rbf_kernel(gamma, d_ref, c_ref, o_ref):
    # d_ref: (TE, 1)  tile of edge distances
    # c_ref: (1, C)   full row of centers, resident every step (tiny)
    # o_ref: (TE, C)  output tile (exact width, no pad columns)
    radial = d_ref[...] - c_ref[...]                 # (TE,1)-(1,C) -> (TE,C)
    o_ref[...] = jnp.exp((-gamma) * (radial * radial)).astype(o_ref.dtype)


def rbf_expansion(edge_dists, centers, gamma, *, tile_e=4096, out_dtype=jnp.float32):
    """edge_dists: (E, 1) f32, centers: (C,) f32 -> (E, C) out_dtype.

    gamma is a compile-time Python float (a fixed hyper-parameter in the
    PyTorch module).  out_dtype defaults to float32 to match the module; pass
    jnp.bfloat16 to halve HBM writeback if the consumer tolerates it.
    """
    E = int(edge_dists.shape[0])
    C = int(centers.shape[0])

    centers_2d = centers.astype(jnp.float32).reshape(1, C)
    d2d = edge_dists.reshape(E, 1).astype(jnp.float32)

    # Large edge tiles amortize the ~0.35 us per-grid-step overhead; clamp so a
    # small E never asks for a block bigger than the (sublane-padded) array,
    # and keep the block sublane-aligned.
    te = _round_up(max(8, min(int(tile_e), _round_up(E, 8))), 8)
    grid = (pl.cdiv(E, te),)   # ragged last block handled by Pallas

    # Explicit VMEM budget from the actual footprint (Mosaic pads the last dim
    # of each VMEM buffer to a multiple of 128 lanes, and the (te, 1) distance
    # block blows up to (te, 128) f32 in VMEM):
    #   2x double-buffered output tiles + 2x distance tiles + centers + slack.
    out_bytes = jnp.dtype(out_dtype).itemsize
    c_vmem = _round_up(C, 128)
    footprint = (2 * te * c_vmem * out_bytes      # output double buffer
                 + 2 * te * 128 * 4               # distance double buffer
                 + 2 * 8 * c_vmem * 4)            # centers double buffer
    vmem_limit = footprint + (4 << 20)            # slack for compiler scratch

    gamma_f = float(gamma)     # baked in as a compile-time constant
    kernel = lambda d_ref, c_ref, o_ref: _rbf_kernel(gamma_f, d_ref, c_ref, o_ref)

    cost = pl.CostEstimate(
        flops=3 * E * C,                # sub + mul + mul per element
        transcendentals=E * C,          # one exp per element
        bytes_accessed=E * C * out_bytes + E * 4 + C * 4,
    )

    return pl.pallas_call(
        kernel,
        out_shape=jax.ShapeDtypeStruct((E, C), out_dtype),
        grid_spec=pltpu.PrefetchScalarGridSpec(
            num_scalar_prefetch=0,
            grid=grid,
            in_specs=[
                pl.BlockSpec((te, 1), lambda i: (i, 0)),    # edge-distance tile
                pl.BlockSpec((1, C), lambda i: (0, 0)),     # full centers row
            ],
            out_specs=pl.BlockSpec((te, C), lambda i: (i, 0)),
        ),
        compiler_params=pltpu.CompilerParams(
            dimension_semantics=("parallel",),
            vmem_limit_bytes=vmem_limit,
        ),
        cost_estimate=cost,
    )(d2d, centers_2d)


if __name__ == "__main__":
    # Module parameters (deterministic, as in __init__): low=0, high=30, gap=0.1
    low, high, gap = 0.0, 30.0, 0.1
    num_centers = int(np.ceil((high - low) / gap))            # 300
    centers = jnp.asarray(np.linspace(low, high, num_centers), dtype=jnp.float32)
    gamma = 1.0 / gap                                          # 10.0

    # Small deterministic input: E edges, shape (E, 1) as in the PyTorch forward.
    E = 2000
    key = jax.random.PRNGKey(0)
    edge_dists = jax.random.uniform(
        key, (E, 1), dtype=jnp.float32, minval=0.0, maxval=high
    )

    # Reference in plain JAX (same math as the PyTorch module).
    ref = jnp.exp(-gamma * (edge_dists - centers[None, :]) ** 2)

    # Default tile (single block covers all of E here).
    out = rbf_expansion(edge_dists, centers, gamma)
    out = jax.block_until_ready(out)
    assert out.shape == (E, num_centers), out.shape
    np.testing.assert_allclose(np.asarray(out), np.asarray(ref), rtol=1e-5, atol=1e-6)

    # Smaller tile: exercises multiple grid steps + a ragged last block.
    out_small = rbf_expansion(edge_dists, centers, gamma, tile_e=512)
    out_small = jax.block_until_ready(out_small)
    np.testing.assert_allclose(np.asarray(out_small), np.asarray(ref), rtol=1e-5, atol=1e-6)

    print("KERNEL_OK")
</pallas_src>

<mosaic_0001>
module attributes {stable_mosaic.version = 11 : i64} {
  func.func @_lambda_(%arg0: i32, %arg1: memref<2000x1xf32, #tpu.memory_space<vmem>>, %arg2: memref<1x300xf32, #tpu.memory_space<vmem>>, %arg3: memref<2000x300xf32, #tpu.memory_space<vmem>>) attributes {dimension_semantics = [#tpu.dimension_semantics<parallel>], iteration_bounds = array<i64: 1>, scalar_prefetch = 0 : i64, scratch_operands = 0 : i64, tpu.core_type = #tpu.core_type<tc>, window_params = [{transform_indices = @transform_0, window_bounds = array<i64: 2000, 1>}, {pipeline_mode = #tpu.pipeline_mode<synchronous>, transform_indices = @transform_1, window_bounds = array<i64: 1, 300>}, {transform_indices = @transform_2, window_bounds = array<i64: 2000, 300>}]} {
    %c0 = arith.constant 0 : index
    %c0_0 = arith.constant 0 : index
    %0 = vector.load %arg1[%c0, %c0_0] : memref<2000x1xf32, #tpu.memory_space<vmem>>, vector<2000x1xf32>
    %c0_1 = arith.constant 0 : index
    %c0_2 = arith.constant 0 : index
    %1 = vector.load %arg2[%c0_1, %c0_2] : memref<1x300xf32, #tpu.memory_space<vmem>>, vector<1x300xf32>
    %2 = vector.broadcast %0 : vector<2000x1xf32> to vector<2000x300xf32>
    %3 = vector.broadcast %1 : vector<1x300xf32> to vector<2000x300xf32>
    %4 = arith.subf %2, %3 : vector<2000x300xf32>
    %5 = arith.mulf %4, %4 : vector<2000x300xf32>
    %cst = arith.constant -1.000000e+01 : f32
    %6 = vector.broadcast %cst : f32 to vector<2000x300xf32>
    %7 = arith.mulf %6, %5 : vector<2000x300xf32>
    %8 = math.exp %7 : vector<2000x300xf32>
    %c0_3 = arith.constant 0 : index
    %c0_4 = arith.constant 0 : index
    %9 = vector.load %arg3[%c0_3, %c0_4] : memref<2000x300xf32, #tpu.memory_space<vmem>>, vector<2000x300xf32>
    tpu.vector_store %arg3[%c0_3, %c0_4], %8 {strides = array<i32>} : memref<2000x300xf32, #tpu.memory_space<vmem>>, vector<2000x300xf32>,
    return
  }
  func.func @transform_0(%arg0: i32) -> (i32, i32) {
    %c0_i32 = arith.constant 0 : i32
    %c0_i32_0 = arith.constant 0 : i32
    return %arg0, %c0_i32 : i32, i32
  }
  func.func @transform_1(%arg0: i32) -> (i32, i32) {
    %c0_i32 = arith.constant 0 : i32
    %c0_i32_0 = arith.constant 0 : i32
    %c0_i32_1 = arith.constant 0 : i32
    return %c0_i32, %c0_i32_0 : i32, i32
  }
  func.func @transform_2(%arg0: i32) -> (i32, i32) {
    %c0_i32 = arith.constant 0 : i32
    %c0_i32_0 = arith.constant 0 : i32
    return %arg0, %c0_i32 : i32, i32
  }
}

</mosaic_0001>

<bundles_post_ra>
// kernel: tpu_custom_call.1
= control target key start
LH: loop header
LB: loop body
LE: loop exit
PB: predicated region body
PF: predicated region fallthrough
CT: control target
= control target key end

     0   :  { %7 = vsyncpa [#allocation3], 0  ;;  %s7574_s9 = smov [#allocation2]   ;;  %s11609_s0 = inlined_call_operand.vmem [shape: f32[2000,1], index: 0, kind: input, shape index: {}]   ;;  %s11610_s1 = inlined_call_operand.hbm [shape: f32[1,300], index: 1, kind: input, shape index: {}]   ;;  %s11611_s2 = inlined_call_operand.vmem [shape: f32[2000,300], index: 2, kind: output, shape index: {}]  }
   0x1   :  { %s16_s10 = sshll.u32 %s7574_s9, 4  ;;  %s7550_s13 = scalar_lea.hbm %s11610_s1, 48  ;;  %s17_s10 = int_to_ptr.vmem [resolvable:$true] %s16_s10 }
   0x2   :  { %p7551_p0 = scmp.ne.s32.totalorder %s11610_s1, %s7550_s13  ;;  %p7554_p1 = scmp.lt.u32.totalorder %s7550_s13, %s11610_s1 }
   0x4   :  { %p7556_p2 = pnand %p7554_p1, %p7551_p0 }
   0x6   :  { %7559 = shalt.err (!%p7556_p2)
}
   0x7   :  { %s7560_s18 = scalar_lea.vmem %s17_s10, 48  ;;  %s7564_s19 = scalar_lea.vmem %s17_s10, 64 }
   0x8   :  { %p7561_p3 = scmp.ne.s32.totalorder %s17_s10, %s7560_s18  ;;  %p7565_p4 = scmp.lt.s32.totalorder %s17_s10, %s17_s10 }
   0x9   :  { %p7566_p5 = scmp.lt.s32.totalorder %s7564_s19, %s7560_s18 }
   0xb   :  { %p7567_p6 = por %p7566_p5, %p7565_p4 }
   0xd   :  { %p7568_p7 = pnand %p7567_p6, %p7561_p3 }
   0xf   :  { %7571 = shalt.err (!%p7568_p7)
}
  0x10   :  { %19 = dma.hbm_to_vmem [thread:$0]  %s11610_s1, 48, %s17_s10, [#allocation3]  }
  0x11   :  { %7572 = dma.done.wait [#allocation3], 48  }
  0x12   :  { %7573 = vsyncadd [#allocation3], 4294967248  ;;  %v7575_v0 = vmov 0   ;;  %v25_v1 = vld [vmem:[%s11609_s0 + $0x10] sm:$0xff]  ;;  %v23_v2 = vld [vmem:[%s11609_s0] sm:$0xff]  ;;  %v1525_v59 = vlaneseq  ;;  %vm5292_vm0 = vcmask 359424  }
  0x13   :  { %6049 = vset.pattern.permute.xlu1 %v7575_v0  ;;  %6048 = vset.pattern.permute.xlu0 %v7575_v0  ;;  %v26_v3 = vld [vmem:[%s11609_s0 + $0x18] sm:$0xff]  ;;  %v24_v4 = vld [vmem:[%s11609_s0 + $0x8] sm:$0xff]  ;;  %v27_v6 = vld [vmem:[%s11609_s0 + $0x20] sm:$0xff] }
  0x14   :  { %286 = vperm.xlu1 %6049, %v25_v1   ;;  %276 = vperm.xlu0 %6048, %v23_v2   ;;  %v28_v5 = vld [vmem:[%s11609_s0 + $0x28] sm:$0xff]  ;;  %v30_v7 = vld [vmem:[%s11609_s0 + $0x38] sm:$0xff]  ;;  %v29_v8 = vld [vmem:[%s11609_s0 + $0x30] sm:$0xff]  ;;  %v1526_v62 = vshrl.u32 %v1525_v59, 7 }
  0x15   :  { %v32_v9 = vld [vmem:[%s11609_s0 + $0x48] sm:$0xff]  ;;  %v31_v10 = vld [vmem:[%s11609_s0 + $0x40] sm:$0xff]  ;;  %v34_v11 = vld [vmem:[%s11609_s0 + $0x58] sm:$0xff] }
  0x16   :  { %v33_v12 = vld [vmem:[%s11609_s0 + $0x50] sm:$0xff]  ;;  %v36_v13 = vld [vmem:[%s11609_s0 + $0x68] sm:$0xff]  ;;  %v35_v14 = vld [vmem:[%s11609_s0 + $0x60] sm:$0xff]  ;;  %v1527_v1 = vsub.s32 0, %v1526_v62  ;;  %v1531_v2 = vsub.s32 1, %v1526_v62 }
  0x17   :  { %v38_v15 = vld [vmem:[%s11609_s0 + $0x78] sm:$0xff]  ;;  %v37_v16 = vld [vmem:[%s11609_s0 + $0x70] sm:$0xff]  ;;  %v40_v17 = vld [vmem:[%s11609_s0 + $0x88] sm:$0xff] }
  0x18   :  { %291 = vperm.xlu1 %6049, %v26_v3   ;;  %281 = vperm.xlu0 %6048, %v24_v4   ;;  %v39_v18 = vld [vmem:[%s11609_s0 + $0x80] sm:$0xff]  ;;  %v42_v19 = vld [vmem:[%s11609_s0 + $0x98] sm:$0xff]  ;;  %v41_v20 = vld [vmem:[%s11609_s0 + $0x90] sm:$0xff]  ;;  %v1535_v3 = vsub.s32 2, %v1526_v62 }
  0x19   :  { %v44_v21 = vld [vmem:[%s11609_s0 + $0xa8] sm:$0xff]  ;;  %v43_v22 = vld [vmem:[%s11609_s0 + $0xa0] sm:$0xff]  ;;  %v46_v23 = vld [vmem:[%s11609_s0 + $0xb8] sm:$0xff] }
  0x1a   :  { %v45_v24 = vld [vmem:[%s11609_s0 + $0xb0] sm:$0xff]  ;;  %v48_v25 = vld [vmem:[%s11609_s0 + $0xc8] sm:$0xff]  ;;  %v47_v26 = vld [vmem:[%s11609_s0 + $0xc0] sm:$0xff] }
  0x1b   :  { %v50_v27 = vld [vmem:[%s11609_s0 + $0xd8] sm:$0xff]  ;;  %v49_v28 = vld [vmem:[%s11609_s0 + $0xd0] sm:$0xff]  ;;  %v52_v29 = vld [vmem:[%s11609_s0 + $0xe8] sm:$0xff] }
  0x1c   :  { %301 = vperm.xlu1 %6049, %v28_v5   ;;  %296 = vperm.xlu0 %6048, %v27_v6   ;;  %v51_v30 = vld [vmem:[%s11609_s0 + $0xe0] sm:$0xff]  ;;  %v54_v31 = vld [vmem:[%s11609_s0 + $0xf8] sm:$0xff]  ;;  %v53_v32 = vld [vmem:[%s11609_s0 + $0xf0] sm:$0xff] }
  0x1d   :  { %v56_v33 = vld [vmem:[%s11609_s0 + $0x108] sm:$0xff]  ;;  %v55_v34 = vld [vmem:[%s11609_s0 + $0x100] sm:$0xff]  ;;  %v58_v35 = vld [vmem:[%s11609_s0 + $0x118] sm:$0xff] }
  0x1e   :  { %v57_v36 = vld [vmem:[%s11609_s0 + $0x110] sm:$0xff]  ;;  %v60_v37 = vld [vmem:[%s11609_s0 + $0x128] sm:$0xff]  ;;  %v59_v38 = vld [vmem:[%s11609_s0 + $0x120] sm:$0xff] }
  0x1f   :  { %v62_v39 = vld [vmem:[%s11609_s0 + $0x138] sm:$0xff]  ;;  %v61_v40 = vld [vmem:[%s11609_s0 + $0x130] sm:$0xff]  ;;  %v64_v41 = vld [vmem:[%s11609_s0 + $0x148] sm:$0xff] }
  0x20   :  { %311 = vperm.xlu1 %6049, %v30_v7   ;;  %306 = vperm.xlu0 %6048, %v29_v8   ;;  %v63_v42 = vld [vmem:[%s11609_s0 + $0x140] sm:$0xff]  ;;  %v66_v43 = vld [vmem:[%s11609_s0 + $0x158] sm:$0xff]  ;;  %v65_v44 = vld [vmem:[%s11609_s0 + $0x150] sm:$0xff] }
  0x21   :  { %v68_v45 = vld [vmem:[%s11609_s0 + $0x168] sm:$0xff]  ;;  %v67_v46 = vld [vmem:[%s11609_s0 + $0x160] sm:$0xff]  ;;  %v70_v47 = vld [vmem:[%s11609_s0 + $0x178] sm:$0xff] }
  0x22   :  { %v69_v48 = vld [vmem:[%s11609_s0 + $0x170] sm:$0xff]  ;;  %v72_v49 = vld [vmem:[%s11609_s0 + $0x188] sm:$0xff]  ;;  %v71_v50 = vld [vmem:[%s11609_s0 + $0x180] sm:$0xff] }
  0x23   :  { %v74_v51 = vld [vmem:[%s11609_s0 + $0x198] sm:$0xff]  ;;  %v73_v52 = vld [vmem:[%s11609_s0 + $0x190] sm:$0xff]  ;;  %v76_v53 = vld [vmem:[%s11609_s0 + $0x1a8] sm:$0xff] }
  0x24   :  { %321 = vperm.xlu1 %6049, %v32_v9   ;;  %316 = vperm.xlu0 %6048, %v31_v10   ;;  %v75_v54 = vld [vmem:[%s11609_s0 + $0x1a0] sm:$0xff]  ;;  %v78_v55 = vld [vmem:[%s11609_s0 + $0x1b8] sm:$0xff]  ;;  %v77_v56 = vld [vmem:[%s11609_s0 + $0x1b0] sm:$0xff] }
  0x25   :  { %v80_v57 = vld [vmem:[%s11609_s0 + $0x1c8] sm:$0xff]  ;;  %v79_v58 = vld [vmem:[%s11609_s0 + $0x1c0] sm:$0xff]  ;;  %v82_v60 = vld [vmem:[%s11609_s0 + $0x1d8] sm:$0xff] }
  0x26   :  { %v81_v61 = vld [vmem:[%s11609_s0 + $0x1d0] sm:$0xff]  ;;  %v84_v63 = vld [vmem:[%s11609_s0 + $0x1e8] sm:$0xff]  ;;  %v83_v0 = vld [vmem:[%s11609_s0 + $0x1e0] sm:$0xff] }
  0x27   :  { %v86_v4 = vld [vmem:[%s11609_s0 + $0x1f8] sm:$0xff]  ;;  %v85_v5 = vld [vmem:[%s11609_s0 + $0x1f0] sm:$0xff]  ;;  %v273_v6 = vld [vmem:[#allocation2] sm:$0x7] }
  0x28   :  { %331 = vperm.xlu1 %6049, %v34_v11   ;;  %326 = vperm.xlu0 %6048, %v33_v12   ;;  %v7795_v7 = vrot.slane %v273_v6, %v1527_v1  ;;  %v7797_v8 = vrot.slane %v273_v6, %v1531_v2  ;;  %v7799_v9 = vrot.slane %v273_v6, %v1535_v3  ;;  %v88_v10 = vld [vmem:[%s11609_s0 + $0x208] sm:$0xff]  ;;  %v87_v11 = vld [vmem:[%s11609_s0 + $0x200] sm:$0xff]  ;;  %v93_v59 = vld [vmem:[%s11609_s0 + $0x230] sm:$0xff] }
  0x29   :  { %v96_v6 = vld [vmem:[%s11609_s0 + $0x248] sm:$0xff] }
  0x2c   :  { %341 = vperm.xlu1 %6049, %v36_v13   ;;  %336 = vperm.xlu0 %6048, %v35_v14  }
  0x30   :  { %351 = vperm.xlu1 %6049, %v38_v15   ;;  %346 = vperm.xlu0 %6048, %v37_v16  }
  0x34   :  { %361 = vperm.xlu1 %6049, %v40_v17   ;;  %356 = vperm.xlu0 %6048, %v39_v18  }
  0x38   :  { %371 = vperm.xlu1 %6049, %v42_v19   ;;  %366 = vperm.xlu0 %6048, %v41_v20   ;;  %v90_v20 = vld [vmem:[%s11609_s0 + $0x218] sm:$0xff] }
  0x3c   :  { %381 = vperm.xlu1 %6049, %v44_v21   ;;  %376 = vperm.xlu0 %6048, %v43_v22  }
  0x40   :  { %391 = vperm.xlu1 %6049, %v46_v23   ;;  %386 = vperm.xlu0 %6048, %v45_v24  }
  0x44   :  { %401 = vperm.xlu1 %6049, %v48_v25   ;;  %396 = vperm.xlu0 %6048, %v47_v26   ;;  %v89_v25 = vld [vmem:[%s11609_s0 + $0x210] sm:$0xff] }
  0x48   :  { %411 = vperm.xlu1 %6049, %v50_v27   ;;  %406 = vperm.xlu0 %6048, %v49_v28  }
  0x4c   :  { %421 = vperm.xlu1 %6049, %v52_v29   ;;  %416 = vperm.xlu0 %6048, %v51_v30  }
  0x50   :  { %431 = vperm.xlu1 %6049, %v54_v31   ;;  %426 = vperm.xlu0 %6048, %v53_v32  }
  0x54   :  { %441 = vperm.xlu1 %6049, %v56_v33   ;;  %436 = vperm.xlu0 %6048, %v55_v34  }
  0x58   :  { %451 = vperm.xlu1 %6049, %v58_v35   ;;  %446 = vperm.xlu0 %6048, %v57_v36  }
  0x5c   :  { %461 = vperm.xlu1 %6049, %v60_v37   ;;  %456 = vperm.xlu0 %6048, %v59_v38   ;;  %v92_v38 = vld [vmem:[%s11609_s0 + $0x228] sm:$0xff] }
  0x60   :  { %471 = vperm.xlu1 %6049, %v62_v39   ;;  %466 = vperm.xlu0 %6048, %v61_v40   ;;  %v91_v39 = vld [vmem:[%s11609_s0 + $0x220] sm:$0xff] }
  0x64   :  { %481 = vperm.xlu1 %6049, %v64_v41   ;;  %476 = vperm.xlu0 %6048, %v63_v42  }
  0x68   :  { %491 = vperm.xlu1 %6049, %v66_v43   ;;  %486 = vperm.xlu0 %6048, %v65_v44  }
  0x6c   :  { %501 = vperm.xlu1 %6049, %v68_v45   ;;  %496 = vperm.xlu0 %6048, %v67_v46  }
  0x70   :  { %511 = vperm.xlu1 %6049, %v70_v47   ;;  %506 = vperm.xlu0 %6048, %v69_v48  }
  0x74   :  { %521 = vperm.xlu1 %6049, %v72_v49   ;;  %516 = vperm.xlu0 %6048, %v71_v50  }
  0x78   :  { %531 = vperm.xlu1 %6049, %v74_v51   ;;  %526 = vperm.xlu0 %6048, %v73_v52  }
  0x7c   :  { %541 = vperm.xlu1 %6049, %v76_v53   ;;  %536 = vperm.xlu0 %6048, %v75_v54   ;;  %v94_v54 = vld [vmem:[%s11609_s0 + $0x238] sm:$0xff] }
  0x80   :  { %551 = vperm.xlu1 %6049, %v78_v55   ;;  %546 = vperm.xlu0 %6048, %v77_v56  }
  0x84   :  { %561 = vperm.xlu1 %6049, %v80_v57   ;;  %556 = vperm.xlu0 %6048, %v79_v58  }
  0x88   :  { %571 = vperm.xlu1 %6049, %v82_v60   ;;  %566 = vperm.xlu0 %6048, %v81_v61  }
  0x8c   :  { %581 = vperm.xlu1 %6049, %v84_v63   ;;  %576 = vperm.xlu0 %6048, %v83_v0  }
  0x90   :  { %591 = vperm.xlu1 %6049, %v86_v4   ;;  %586 = vperm.xlu0 %6048, %v85_v5  }
  0x93   :  { %v287_v12 = vpop.permute.xlu1 %286  ;;  %v277_v13 = vpop.permute.xlu0 %276 }
  0x94   :  { %v1546_v14 = vsub.f32 %v287_v12, %v7795_v7  ;;  %v1547_v15 = vsub.f32 %v287_v12, %v7797_v8  ;;  %v1548_v16 = vsub.f32 %v287_v12, %v7799_v9  ;;  %v1540_v17 = vsub.f32 %v277_v13, %v7795_v7  ;;  %601 = vperm.xlu1 %6049, %v88_v10  }
  0x95   :  { %v1541_v18 = vsub.f32 %v277_v13, %v7797_v8  ;;  %v1542_v19 = vsub.f32 %v277_v13, %v7799_v9  ;;  %596 = vperm.xlu0 %6048, %v87_v11   ;;  %v95_v13 = vld [vmem:[%s11609_s0 + $0x240] sm:$0xff] }
  0x96   :  { %v2296_v21 = vmul.f32 %v1546_v14, %v1546_v14  ;;  %v2297_v22 = vmul.f32 %v1547_v15, %v1547_v15  ;;  %v2298_v23 = vmul.f32 %v1548_v16, %v1548_v16  ;;  %v2290_v24 = vmul.f32 %v1540_v17, %v1540_v17 }
  0x97   :  { %v2291_v26 = vmul.f32 %v1541_v18, %v1541_v18  ;;  %v2292_v27 = vmul.f32 %v1542_v19, %v1542_v19  ;;  %v292_v28 = vpop.permute.xlu1 %291  ;;  %v282_v37 = vpop.permute.xlu0 %281 }
  0x98   :  { %v3046_v29 = vmul.f32 -10.0, %v2296_v21  ;;  %v3047_v30 = vmul.f32 -10.0, %v2297_v22  ;;  %v3048_v31 = vmul.f32 -10.0, %v2298_v23  ;;  %v3040_v32 = vmul.f32 -10.0, %v2290_v24  ;;  %611 = vperm.xlu1 %6049, %v90_v20   ;;  %v98_v24 = vld [vmem:[%s11609_s0 + $0x258] sm:$0xff] }
  0x99   :  { %v3041_v33 = vmul.f32 -10.0, %v2291_v26  ;;  %v3042_v34 = vmul.f32 -10.0, %v2292_v27  ;;  %v1549_v35 = vsub.f32 %v292_v28, %v7795_v7  ;;  %v1550_v36 = vsub.f32 %v292_v28, %v7797_v8  ;;  %606 = vperm.xlu0 %6048, %v89_v25  }
  0x9a   :  { %v3802_v40 = vmul.f32 1.442695, %v3046_v29  ;;  %v3804_v41 = vmul.f32 1.442695, %v3047_v30  ;;  %v3806_v42 = vmul.f32 1.442695, %v3048_v31  ;;  %v1551_v43 = vsub.f32 %v292_v28, %v7799_v9 }
  0x9b   :  { %v3790_v44 = vmul.f32 1.442695, %v3040_v32  ;;  %v3792_v45 = vmul.f32 1.442695, %v3041_v33  ;;  %v3794_v46 = vmul.f32 1.442695, %v3042_v34  ;;  %v2299_v47 = vmul.f32 %v1549_v35, %v1549_v35  ;;  %v302_v58 = vpop.permute.xlu1 %301  ;;  %v297_v5 = vpop.permute.xlu0 %296 }
  0x9c   :  { %6050 = vpow2.f32 %v3802_v40  ;;  %v2300_v48 = vmul.f32 %v1550_v36, %v1550_v36  ;;  %v2301_v49 = vmul.f32 %v1551_v43, %v1551_v43  ;;  %v1543_v50 = vsub.f32 %v282_v37, %v7795_v7  ;;  %621 = vperm.xlu1 %6049, %v92_v38   ;;  %v97_v29 = vld [vmem:[%s11609_s0 + $0x250] sm:$0xff] }
  0x9d   :  { %6052 = vpow2.f32 %v3804_v41  ;;  %v3049_v51 = vmul.f32 -10.0, %v2299_v47  ;;  %v1544_v52 = vsub.f32 %v282_v37, %v7797_v8  ;;  %v1545_v53 = vsub.f32 %v282_v37, %v7799_v9  ;;  %616 = vperm.xlu0 %6048, %v91_v39  }
  0x9e   :  { %6054 = vpow2.f32 %v3806_v42  ;;  %v3050_v55 = vmul.f32 -10.0, %v2300_v48  ;;  %v3051_v56 = vmul.f32 -10.0, %v2301_v49  ;;  %v2293_v57 = vmul.f32 %v1543_v50, %v1543_v50  ;;  %v99_v49 = vld [vmem:[%s11609_s0 + $0x260] sm:$0xff] }
  0x9f   :  { %6056 = vpow2.f32 %v3790_v44  ;;  %v3808_v60 = vmul.f32 1.442695, %v3049_v51  ;;  %v2294_v61 = vmul.f32 %v1544_v52, %v1544_v52  ;;  %v2295_v62 = vmul.f32 %v1545_v53, %v1545_v53  ;;  %v312_v23 = vpop.permute.xlu1 %311  ;;  %v307_v43 = vpop.permute.xlu0 %306  ;;  %v100_v44 = vld [vmem:[%s11609_s0 + $0x268] sm:$0xff] }
  0xa0   :  { %6058 = vpow2.f32 %v3792_v45  ;;  %v3810_v63 = vmul.f32 1.442695, %v3050_v55  ;;  %v3812_v0 = vmul.f32 1.442695, %v3051_v56  ;;  %v3043_v1 = vmul.f32 -10.0, %v2293_v57  ;;  %631 = vperm.xlu1 %6049, %v94_v54  }
  0xa1   :  { %6060 = vpow2.f32 %v3794_v46  ;;  %v3044_v2 = vmul.f32 -10.0, %v2294_v61  ;;  %v3045_v3 = vmul.f32 -10.0, %v2295_v62  ;;  %v1555_v4 = vsub.f32 %v302_v58, %v7795_v7  ;;  %626 = vperm.xlu0 %6048, %v93_v59  }
  0xa2   :  { %6062 = vpow2.f32 %v3808_v60  ;;  %v3796_v10 = vmul.f32 1.442695, %v3043_v1  ;;  %v1556_v11 = vsub.f32 %v302_v58, %v7797_v8  ;;  %v1557_v12 = vsub.f32 %v302_v58, %v7799_v9 }
  0xa3   :  { %6064 = vpow2.f32 %v3810_v63  ;;  %v3798_v14 = vmul.f32 1.442695, %v3044_v2  ;;  %v3800_v15 = vmul.f32 1.442695, %v3045_v3  ;;  %v2305_v16 = vmul.f32 %v1555_v4, %v1555_v4  ;;  %v322_v58 = vpop.permute.xlu1 %321  ;;  %v102_v63 = vld [vmem:[%s11609_s0 + $0x278] sm:$0xff]  ;;  %v101_v4 = vld [vmem:[%s11609_s0 + $0x270] sm:$0xff] }
  0xa4   :  { %6066 = vpow2.f32 %v3812_v0  ;;  %v2306_v17 = vmul.f32 %v1556_v11, %v1556_v11  ;;  %v2307_v18 = vmul.f32 %v1557_v12, %v1557_v12  ;;  %v1552_v19 = vsub.f32 %v297_v5, %v7795_v7  ;;  %641 = vperm.xlu1 %6049, %v96_v6  }
  0xa5   :  { %6068 = vpow2.f32 %v3796_v10  ;;  %v3055_v20 = vmul.f32 -10.0, %v2305_v16  ;;  %v1553_v21 = vsub.f32 %v297_v5, %v7797_v8  ;;  %v1554_v22 = vsub.f32 %v297_v5, %v7799_v9  ;;  %636 = vperm.xlu0 %6048, %v95_v13  }
  0xa6   :  { %v6051_v25 = vpop.eup %6050  ;;  %6070 = vpow2.f32 %v3798_v14  ;;  %v3056_v26 = vmul.f32 -10.0, %v2306_v17  ;;  %v3057_v27 = vmul.f32 -10.0, %v2307_v18  ;;  %v2302_v28 = vmul.f32 %v1552_v19, %v1552_v19  ;;  %v317_v17 = vpop.permute.xlu0 %316 }
  0xa7   :  { %v6053_v30 = vpop.eup %6052  ;;  %5297 = vst [vmem:[%s11611_s2 + $0x30] sm:$0xff] %v6051_v25  ;;  %6072 = vpow2.f32 %v3800_v15  ;;  %v3820_v31 = vmul.f32 1.442695, %v3055_v20  ;;  %v2303_v32 = vmul.f32 %v1553_v21, %v1553_v21  ;;  %v2304_v33 = vmul.f32 %v1554_v22, %v1554_v22  ;;  %v104_v22 = vld [vmem:[%s11609_s0 + $0x288] sm:$0xff] }
  0xa8   :  { %v6055_v34 = vpop.eup %6054  ;;  %5298 = vst [vmem:[%s11611_s2 + $0x38] sm:$0xff] %v6053_v30  ;;  %v3822_v35 = vmul.f32 1.442695, %v3056_v26  ;;  %v3824_v36 = vmul.f32 1.442695, %v3057_v27  ;;  %v3052_v37 = vmul.f32 -10.0, %v2302_v28  ;;  %v1561_v38 = vsub.f32 %v312_v23, %v7795_v7  ;;  %651 = vperm.xlu1 %6049, %v98_v24  }
  0xa9   :  { %v6057_v39 = vpop.eup %6056  ;;  %5299 = vst.msk [vmem:[%s11611_s2 + $0x40] sm:$0xff] %vm5292_vm0, %v6055_v34  ;;  %6074 = vpow2.f32 %v3820_v31  ;;  %v3053_v40 = vmul.f32 -10.0, %v2303_v32  ;;  %v3054_v41 = vmul.f32 -10.0, %v2304_v33  ;;  %v1562_v42 = vsub.f32 %v312_v23, %v7797_v8  ;;  %646 = vperm.xlu0 %6048, %v97_v29   ;;  %v103_v26 = vld [vmem:[%s11609_s0 + $0x280] sm:$0xff] }
  0xaa   :  { %v6059_v45 = vpop.eup %6058  ;;  %5290 = vst [vmem:[%s11611_s2] sm:$0xff] %v6057_v39  ;;  %6076 = vpow2.f32 %v3822_v35  ;;  %v3814_v46 = vmul.f32 1.442695, %v3052_v37  ;;  %v1563_v47 = vsub.f32 %v312_v23, %v7799_v9  ;;  %v2311_v48 = vmul.f32 %v1561_v38, %v1561_v38 }
  0xab   :  { %v6061_v50 = vpop.eup %6060  ;;  %5291 = vst [vmem:[%s11611_s2 + $0x8] sm:$0xff] %v6059_v45  ;;  %6078 = vpow2.f32 %v3824_v36  ;;  %v3816_v51 = vmul.f32 1.442695, %v3053_v40  ;;  %v3818_v52 = vmul.f32 1.442695, %v3054_v41  ;;  %v2312_v53 = vmul.f32 %v1562_v42, %v1562_v42  ;;  %v332_v36 = vpop.permute.xlu1 %331  ;;  %v106_v41 = vld [vmem:[%s11609_s0 + $0x298] sm:$0xff] }
  0xac   :  { %v6063_v54 = vpop.eup %6062  ;;  %5293 = vst.msk [vmem:[%s11611_s2 + $0x10] sm:$0xff] %vm5292_vm0, %v6061_v50  ;;  %6080 = vpow2.f32 %v3814_v46  ;;  %v2313_v55 = vmul.f32 %v1563_v47, %v1563_v47  ;;  %v3061_v56 = vmul.f32 -10.0, %v2311_v48  ;;  %v1558_v57 = vsub.f32 %v307_v43, %v7795_v7  ;;  %661 = vperm.xlu1 %6049, %v100_v44   ;;  %v105_v46 = vld [vmem:[%s11609_s0 + $0x290] sm:$0xff] }
  0xad   :  { %v6065_v59 = vpop.eup %6064  ;;  %5300 = vst [vmem:[%s11611_s2 + $0x48] sm:$0xff] %v6063_v54  ;;  %6082 = vpow2.f32 %v3816_v51  ;;  %v3062_v60 = vmul.f32 -10.0, %v2312_v53  ;;  %v1559_v61 = vsub.f32 %v307_v43, %v7797_v8  ;;  %v1560_v62 = vsub.f32 %v307_v43, %v7799_v9  ;;  %656 = vperm.xlu0 %6048, %v99_v49  }
  0xae   :  { %v6067_v0 = vpop.eup %6066  ;;  %5301 = vst [vmem:[%s11611_s2 + $0x50] sm:$0xff] %v6065_v59  ;;  %6084 = vpow2.f32 %v3818_v52  ;;  %v3063_v1 = vmul.f32 -10.0, %v2313_v55  ;;  %v3832_v2 = vmul.f32 1.442695, %v3061_v56  ;;  %v2308_v3 = vmul.f32 %v1558_v57, %v1558_v57  ;;  %v327_v56 = vpop.permute.xlu0 %326 }
  0xaf   :  { %v6069_v5 = vpop.eup %6068  ;;  %5302 = vst.msk [vmem:[%s11611_s2 + $0x58] sm:$0xff] %vm5292_vm0, %v6067_v0  ;;  %v3834_v6 = vmul.f32 1.442695, %v3062_v60  ;;  %v2309_v10 = vmul.f32 %v1559_v61, %v1559_v61  ;;  %v2310_v11 = vmul.f32 %v1560_v62, %v1560_v62  ;;  %v1567_v12 = vsub.f32 %v322_v58, %v7795_v7  ;;  %v108_v60 = vld [vmem:[%s11609_s0 + $0x2a8] sm:$0xff] }
  0xb0   :  { %v6071_v13 = vpop.eup %6070  ;;  %5294 = vst [vmem:[%s11611_s2 + $0x18] sm:$0xff] %v6069_v5  ;;  %6086 = vpow2.f32 %v3832_v2  ;;  %v3836_v14 = vmul.f32 1.442695, %v3063_v1  ;;  %v3058_v15 = vmul.f32 -10.0, %v2308_v3  ;;  %v1568_v16 = vsub.f32 %v322_v58, %v7797_v8  ;;  %671 = vperm.xlu1 %6049, %v102_v63   ;;  %v107_v1 = vld [vmem:[%s11609_s0 + $0x2a0] sm:$0xff] }
  0xb1   :  { %v6073_v18 = vpop.eup %6072  ;;  %5295 = vst [vmem:[%s11611_s2 + $0x20] sm:$0xff] %v6071_v13  ;;  %6088 = vpow2.f32 %v3834_v6  ;;  %v3059_v19 = vmul.f32 -10.0, %v2309_v10  ;;  %v3060_v20 = vmul.f32 -10.0, %v2310_v11  ;;  %v1569_v21 = vsub.f32 %v322_v58, %v7799_v9  ;;  %666 = vperm.xlu0 %6048, %v101_v4   ;;  %v342_v6 = vpop.permute.xlu1 %341 }
  0xb2   :  { %5296 = vst.msk [vmem:[%s11611_s2 + $0x28] sm:$0xff] %vm5292_vm0, %v6073_v18  ;;  %6090 = vpow2.f32 %v3836_v14  ;;  %v3826_v23 = vmul.f32 1.442695, %v3058_v15  ;;  %v2317_v24 = vmul.f32 %v1567_v12, %v1567_v12  ;;  %v2318_v25 = vmul.f32 %v1568_v16, %v1568_v16 }
  0xb3   :  { %v6075_v27 = vpop.eup %6074  ;;  %v3828_v28 = vmul.f32 1.442695, %v3059_v19  ;;  %v3830_v29 = vmul.f32 1.442695, %v3060_v20  ;;  %v2319_v30 = vmul.f32 %v1569_v21, %v1569_v21  ;;  %v1564_v31 = vsub.f32 %v317_v17, %v7795_v7 }
  0xb4   :  { %v6077_v32 = vpop.eup %6076  ;;  %5306 = vst [vmem:[%s11611_s2 + $0x78] sm:$0xff] %v6075_v27  ;;  %6092 = vpow2.f32 %v3826_v23  ;;  %v3067_v33 = vmul.f32 -10.0, %v2317_v24  ;;  %v3068_v34 = vmul.f32 -10.0, %v2318_v25  ;;  %v1565_v35 = vsub.f32 %v317_v17, %v7797_v8  ;;  %681 = vperm.xlu1 %6049, %v104_v22   ;;  %v109_v23 = vld [vmem:[%s11609_s0 + $0x2b0] sm:$0xff] }
  0xb5   :  { %v6079_v37 = vpop.eup %6078  ;;  %5307 = vst [vmem:[%s11611_s2 + $0x80] sm:$0xff] %v6077_v32  ;;  %6094 = vpow2.f32 %v3828_v28  ;;  %v3069_v38 = vmul.f32 -10.0, %v2319_v30  ;;  %v1566_v39 = vsub.f32 %v317_v17, %v7799_v9  ;;  %v2314_v40 = vmul.f32 %v1564_v31, %v1564_v31  ;;  %676 = vperm.xlu0 %6048, %v103_v26   ;;  %v110_v17 = vld [vmem:[%s11609_s0 + $0x2b8] sm:$0xff]  ;;  %v337_v28 = vpop.permute.xlu0 %336 }
  0xb6   :  { %v6081_v42 = vpop.eup %6080  ;;  %5308 = vst.msk [vmem:[%s11611_s2 + $0x88] sm:$0xff] %vm5292_vm0, %v6079_v37  ;;  %6096 = vpow2.f32 %v3830_v29  ;;  %v3844_v43 = vmul.f32 1.442695, %v3067_v33  ;;  %v3846_v44 = vmul.f32 1.442695, %v3068_v34  ;;  %v2315_v45 = vmul.f32 %v1565_v35, %v1565_v35 }
  0xb7   :  { %v6083_v47 = vpop.eup %6082  ;;  %5303 = vst [vmem:[%s11611_s2 + $0x60] sm:$0xff] %v6081_v42  ;;  %v3848_v48 = vmul.f32 1.442695, %v3069_v38  ;;  %v2316_v49 = vmul.f32 %v1566_v39, %v1566_v39  ;;  %v3064_v50 = vmul.f32 -10.0, %v2314_v40  ;;  %v1573_v51 = vsub.f32 %v332_v36, %v7795_v7  ;;  %v111_v42 = vld [vmem:[%s11609_s0 + $0x2c0] sm:$0xff] }
  0xb8   :  { %v6085_v52 = vpop.eup %6084  ;;  %5304 = vst [vmem:[%s11611_s2 + $0x68] sm:$0xff] %v6083_v47  ;;  %6098 = vpow2.f32 %v3844_v43  ;;  %v3065_v53 = vmul.f32 -10.0, %v2315_v45  ;;  %v1574_v54 = vsub.f32 %v332_v36, %v7797_v8  ;;  %v1575_v55 = vsub.f32 %v332_v36, %v7799_v9  ;;  %691 = vperm.xlu1 %6049, %v106_v41   ;;  %v112_v36 = vld [vmem:[%s11609_s0 + $0x2c8] sm:$0xff]  ;;  %v352_v47 = vpop.permute.xlu1 %351 }
  0xb9   :  { %5305 = vst.msk [vmem:[%s11611_s2 + $0x70] sm:$0xff] %vm5292_vm0, %v6085_v52  ;;  %6100 = vpow2.f32 %v3846_v44  ;;  %v3066_v57 = vmul.f32 -10.0, %v2316_v49  ;;  %v3838_v58 = vmul.f32 1.442695, %v3064_v50  ;;  %v2323_v59 = vmul.f32 %v1573_v51, %v1573_v51  ;;  %686 = vperm.xlu0 %6048, %v105_v46  }
  0xba   :  { %v6087_v61 = vpop.eup %6086  ;;  %6102 = vpow2.f32 %v3848_v48  ;;  %v3840_v62 = vmul.f32 1.442695, %v3065_v53  ;;  %v2324_v63 = vmul.f32 %v1574_v54, %v1574_v54  ;;  %v2325_v0 = vmul.f32 %v1575_v55, %v1575_v55 }
  0xbb   :  { %v6089_v2 = vpop.eup %6088  ;;  %5312 = vst [vmem:[%s11611_s2 + $0xa8] sm:$0xff] %v6087_v61  ;;  %6104 = vpow2.f32 %v3838_v58  ;;  %v3842_v3 = vmul.f32 1.442695, %v3066_v57  ;;  %v3073_v4 = vmul.f32 -10.0, %v2323_v59  ;;  %v1570_v5 = vsub.f32 %v327_v56, %v7795_v7  ;;  %v347_v61 = vpop.permute.xlu0 %346 }
  0xbc   :  { %v6091_v10 = vpop.eup %6090  ;;  %5313 = vst [vmem:[%s11611_s2 + $0xb0] sm:$0xff] %v6089_v2  ;;  %6106 = vpow2.f32 %v3840_v62  ;;  %v3074_v11 = vmul.f32 -10.0, %v2324_v63  ;;  %v3075_v12 = vmul.f32 -10.0, %v2325_v0  ;;  %v1571_v13 = vsub.f32 %v327_v56, %v7797_v8  ;;  %701 = vperm.xlu1 %6049, %v108_v60   ;;  %v113_v62 = vld [vmem:[%s11609_s0 + $0x2d0] sm:$0xff] }
  0xbd   :  { %5314 = vst.msk [vmem:[%s11611_s2 + $0xb8] sm:$0xff] %vm5292_vm0, %v6091_v10  ;;  %6108 = vpow2.f32 %v3842_v3  ;;  %v3856_v14 = vmul.f32 1.442695, %v3073_v4  ;;  %v1572_v15 = vsub.f32 %v327_v56, %v7799_v9  ;;  %v2320_v16 = vmul.f32 %v1570_v5, %v1570_v5  ;;  %696 = vperm.xlu0 %6048, %v107_v1   ;;  %v114_v56 = vld [vmem:[%s11609_s0 + $0x2d8] sm:$0xff] }
  0xbe   :  { %v6093_v18 = vpop.eup %6092  ;;  %v3858_v19 = vmul.f32 1.442695, %v3074_v11  ;;  %v3860_v20 = vmul.f32 1.442695, %v3075_v12  ;;  %v2321_v21 = vmul.f32 %v1571_v13, %v1571_v13  ;;  %v1579_v22 = vsub.f32 %v342_v6, %v7795_v7 }
  0xbf   :  { %v6095_v24 = vpop.eup %6094  ;;  %5309 = vst [vmem:[%s11611_s2 + $0x90] sm:$0xff] %v6093_v18  ;;  %6110 = vpow2.f32 %v3856_v14  ;;  %v2322_v25 = vmul.f32 %v1572_v15, %v1572_v15  ;;  %v3070_v26 = vmul.f32 -10.0, %v2320_v16  ;;  %v1580_v27 = vsub.f32 %v342_v6, %v7797_v8  ;;  %v116_v14 = vld [vmem:[%s11609_s0 + $0x2e8] sm:$0xff] }
  0xc0   :  { %v6097_v29 = vpop.eup %6096  ;;  %5310 = vst [vmem:[%s11611_s2 + $0x98] sm:$0xff] %v6095_v24  ;;  %6112 = vpow2.f32 %v3858_v19  ;;  %v3071_v30 = vmul.f32 -10.0, %v2321_v21  ;;  %v1581_v31 = vsub.f32 %v342_v6, %v7799_v9  ;;  %v2329_v32 = vmul.f32 %v1579_v22, %v1579_v22  ;;  %711 = vperm.xlu1 %6049, %v110_v17  }
  0xc1   :  { %5311 = vst.msk [vmem:[%s11611_s2 + $0xa0] sm:$0xff] %vm5292_vm0, %v6097_v29  ;;  %6114 = vpow2.f32 %v3860_v20  ;;  %v3072_v33 = vmul.f32 -10.0, %v2322_v25  ;;  %v3850_v34 = vmul.f32 1.442695, %v3070_v26  ;;  %v2330_v35 = vmul.f32 %v1580_v27, %v1580_v27  ;;  %706 = vperm.xlu0 %6048, %v109_v23   ;;  %v115_v20 = vld [vmem:[%s11609_s0 + $0x2e0] sm:$0xff]  ;;  %v362_v25 = vpop.permute.xlu1 %361 }
  0xc2   :  { %v6099_v37 = vpop.eup %6098  ;;  %v3852_v38 = vmul.f32 1.442695, %v3071_v30  ;;  %v2331_v39 = vmul.f32 %v1581_v31, %v1581_v31  ;;  %v3079_v40 = vmul.f32 -10.0, %v2329_v32  ;;  %v1576_v41 = vsub.f32 %v337_v28, %v7795_v7 }
  0xc3   :  { %v6101_v43 = vpop.eup %6100  ;;  %5318 = vst [vmem:[%s11611_s2 + $0xd8] sm:$0xff] %v6099_v37  ;;  %6116 = vpow2.f32 %v3850_v34  ;;  %v3854_v44 = vmul.f32 1.442695, %v3072_v33  ;;  %v3080_v45 = vmul.f32 -10.0, %v2330_v35  ;;  %v1577_v46 = vsub.f32 %v337_v28, %v7797_v8  ;;  %v118_v33 = vld [vmem:[%s11609_s0 + $0x2f8] sm:$0xff] }
  0xc4   :  { %v6103_v48 = vpop.eup %6102  ;;  %5319 = vst [vmem:[%s11611_s2 + $0xe0] sm:$0xff] %v6101_v43  ;;  %6118 = vpow2.f32 %v3852_v38  ;;  %v3081_v49 = vmul.f32 -10.0, %v2331_v39  ;;  %v3868_v50 = vmul.f32 1.442695, %v3079_v40  ;;  %v1578_v51 = vsub.f32 %v337_v28, %v7799_v9  ;;  %721 = vperm.xlu1 %6049, %v112_v36   ;;  %v357_v38 = vpop.permute.xlu0 %356  ;;  %v117_v39 = vld [vmem:[%s11609_s0 + $0x2f0] sm:$0xff] }
  0xc5   :  { %v6105_v52 = vpop.eup %6104  ;;  %5320 = vst.msk [vmem:[%s11611_s2 + $0xe8] sm:$0xff] %vm5292_vm0, %v6103_v48  ;;  %6120 = vpow2.f32 %v3854_v44  ;;  %v3870_v53 = vmul.f32 1.442695, %v3080_v45  ;;  %v2326_v54 = vmul.f32 %v1576_v41, %v1576_v41  ;;  %v2327_v55 = vmul.f32 %v1577_v46, %v1577_v46  ;;  %716 = vperm.xlu0 %6048, %v111_v42  }
  0xc6   :  { %v6107_v57 = vpop.eup %6106  ;;  %5315 = vst [vmem:[%s11611_s2 + $0xc0] sm:$0xff] %v6105_v52  ;;  %6122 = vpow2.f32 %v3868_v50  ;;  %v3872_v58 = vmul.f32 1.442695, %v3081_v49  ;;  %v2328_v59 = vmul.f32 %v1578_v51, %v1578_v51  ;;  %v1585_v60 = vsub.f32 %v352_v47, %v7795_v7  ;;  %v372_v52 = vpop.permute.xlu1 %371 }
  0xc7   :  { %v6109_v63 = vpop.eup %6108  ;;  %5316 = vst [vmem:[%s11611_s2 + $0xc8] sm:$0xff] %v6107_v57  ;;  %6124 = vpow2.f32 %v3870_v53  ;;  %v3076_v0 = vmul.f32 -10.0, %v2326_v54  ;;  %v3077_v1 = vmul.f32 -10.0, %v2327_v55  ;;  %v1586_v2 = vsub.f32 %v352_v47, %v7797_v8  ;;  %v120_v53 = vld [vmem:[%s11609_s0 + $0x308] sm:$0xff] }
  0xc8   :  { %5317 = vst.msk [vmem:[%s11611_s2 + $0xd0] sm:$0xff] %vm5292_vm0, %v6109_v63  ;;  %6126 = vpow2.f32 %v3872_v58  ;;  %v3078_v3 = vmul.f32 -10.0, %v2328_v59  ;;  %v1587_v4 = vsub.f32 %v352_v47, %v7799_v9  ;;  %v2335_v5 = vmul.f32 %v1585_v60, %v1585_v60  ;;  %731 = vperm.xlu1 %6049, %v114_v56   ;;  %v119_v58 = vld [vmem:[%s11609_s0 + $0x300] sm:$0xff] }
  0xc9   :  { %v6111_v6 = vpop.eup %6110  ;;  %v3862_v10 = vmul.f32 1.442695, %v3076_v0  ;;  %v3864_v11 = vmul.f32 1.442695, %v3077_v1  ;;  %v2336_v12 = vmul.f32 %v1586_v2, %v1586_v2  ;;  %v1582_v13 = vsub.f32 %v347_v61, %v7795_v7  ;;  %726 = vperm.xlu0 %6048, %v113_v62  }
  0xca   :  { %v6113_v15 = vpop.eup %6112  ;;  %5324 = vst [vmem:[%s11611_s2 + $0x108] sm:$0xff] %v6111_v6  ;;  %v3866_v16 = vmul.f32 1.442695, %v3078_v3  ;;  %v2337_v17 = vmul.f32 %v1587_v4, %v1587_v4  ;;  %v3085_v18 = vmul.f32 -10.0, %v2335_v5  ;;  %v1583_v19 = vsub.f32 %v347_v61, %v7797_v8 }
  0xcb   :  { %v6115_v21 = vpop.eup %6114  ;;  %5325 = vst [vmem:[%s11611_s2 + $0x110] sm:$0xff] %v6113_v15  ;;  %6128 = vpow2.f32 %v3862_v10  ;;  %v3086_v22 = vmul.f32 -10.0, %v2336_v12  ;;  %v1584_v23 = vsub.f32 %v347_v61, %v7799_v9  ;;  %v2332_v24 = vmul.f32 %v1582_v13, %v1582_v13  ;;  %v122_v10 = vld [vmem:[%s11609_s0 + $0x318] sm:$0xff]  ;;  %v367_v15 = vpop.permute.xlu0 %366 }
  0xcc   :  { %5326 = vst.msk [vmem:[%s11611_s2 + $0x118] sm:$0xff] %vm5292_vm0, %v6115_v21  ;;  %6130 = vpow2.f32 %v3864_v11  ;;  %v3087_v26 = vmul.f32 -10.0, %v2337_v17  ;;  %v3880_v27 = vmul.f32 1.442695, %v3085_v18  ;;  %v2333_v28 = vmul.f32 %v1583_v19, %v1583_v19  ;;  %741 = vperm.xlu1 %6049, %v116_v14  }
  0xcd   :  { %v6117_v29 = vpop.eup %6116  ;;  %6132 = vpow2.f32 %v3866_v16  ;;  %v3882_v30 = vmul.f32 1.442695, %v3086_v22  ;;  %v2334_v31 = vmul.f32 %v1584_v23, %v1584_v23  ;;  %v3082_v32 = vmul.f32 -10.0, %v2332_v24  ;;  %736 = vperm.xlu0 %6048, %v115_v20   ;;  %v121_v16 = vld [vmem:[%s11609_s0 + $0x310] sm:$0xff] }
  0xce   :  { %v6119_v34 = vpop.eup %6118  ;;  %5321 = vst [vmem:[%s11611_s2 + $0xf0] sm:$0xff] %v6117_v29  ;;  %6134 = vpow2.f32 %v3880_v27  ;;  %v3884_v35 = vmul.f32 1.442695, %v3087_v26  ;;  %v3083_v36 = vmul.f32 -10.0, %v2333_v28  ;;  %v1591_v37 = vsub.f32 %v362_v25, %v7795_v7  ;;  %v382_v29 = vpop.permute.xlu1 %381 }
  0xcf   :  { %v6121_v40 = vpop.eup %6120  ;;  %5322 = vst [vmem:[%s11611_s2 + $0xf8] sm:$0xff] %v6119_v34  ;;  %6136 = vpow2.f32 %v3882_v30  ;;  %v3084_v41 = vmul.f32 -10.0, %v2334_v31  ;;  %v3874_v42 = vmul.f32 1.442695, %v3082_v32  ;;  %v1592_v43 = vsub.f32 %v362_v25, %v7797_v8  ;;  %v124_v30 = vld [vmem:[%s11609_s0 + $0x328] sm:$0xff] }
  0xd0   :  { %v6123_v44 = vpop.eup %6122  ;;  %5323 = vst.msk [vmem:[%s11611_s2 + $0x100] sm:$0xff] %vm5292_vm0, %v6121_v40  ;;  %6138 = vpow2.f32 %v3884_v35  ;;  %v3876_v45 = vmul.f32 1.442695, %v3083_v36  ;;  %v1593_v46 = vsub.f32 %v362_v25, %v7799_v9  ;;  %v2341_v47 = vmul.f32 %v1591_v37, %v1591_v37  ;;  %751 = vperm.xlu1 %6049, %v118_v33   ;;  %v123_v35 = vld [vmem:[%s11609_s0 + $0x320] sm:$0xff] }
  0xd1   :  { %v6125_v48 = vpop.eup %6124  ;;  %5330 = vst [vmem:[%s11611_s2 + $0x138] sm:$0xff] %v6123_v44  ;;  %6140 = vpow2.f32 %v3874_v42  ;;  %v3878_v49 = vmul.f32 1.442695, %v3084_v41  ;;  %v2342_v50 = vmul.f32 %v1592_v43, %v1592_v43  ;;  %v1588_v51 = vsub.f32 %v357_v38, %v7795_v7  ;;  %746 = vperm.xlu0 %6048, %v117_v39  }
  0xd2   :  { %v6127_v54 = vpop.eup %6126  ;;  %5331 = vst [vmem:[%s11611_s2 + $0x140] sm:$0xff] %v6125_v48  ;;  %6142 = vpow2.f32 %v3876_v45  ;;  %v2343_v55 = vmul.f32 %v1593_v46, %v1593_v46  ;;  %v3091_v56 = vmul.f32 -10.0, %v2341_v47  ;;  %v1589_v57 = vsub.f32 %v357_v38, %v7797_v8 }
  0xd3   :  { %5332 = vst.msk [vmem:[%s11611_s2 + $0x148] sm:$0xff] %vm5292_vm0, %v6127_v54  ;;  %6144 = vpow2.f32 %v3878_v49  ;;  %v3092_v59 = vmul.f32 -10.0, %v2342_v50  ;;  %v1590_v60 = vsub.f32 %v357_v38, %v7799_v9  ;;  %v2338_v61 = vmul.f32 %v1588_v51, %v1588_v51  ;;  %v377_v49 = vpop.permute.xlu0 %376  ;;  %v126_v50 = vld [vmem:[%s11609_s0 + $0x338] sm:$0xff]  ;;  %v125_v54 = vld [vmem:[%s11609_s0 + $0x330] sm:$0xff] }
  0xd4   :  { %v3093_v62 = vmul.f32 -10.0, %v2343_v55  ;;  %v3892_v63 = vmul.f32 1.442695, %v3091_v56  ;;  %v2339_v0 = vmul.f32 %v1589_v57, %v1589_v57  ;;  %v1597_v1 = vsub.f32 %v372_v52, %v7795_v7  ;;  %761 = vperm.xlu1 %6049, %v120_v53  }
  0xd5   :  { %v6129_v2 = vpop.eup %6128  ;;  %v3894_v3 = vmul.f32 1.442695, %v3092_v59  ;;  %v2340_v4 = vmul.f32 %v1590_v60, %v1590_v60  ;;  %v3088_v5 = vmul.f32 -10.0, %v2338_v61  ;;  %v1598_v6 = vsub.f32 %v372_v52, %v7797_v8  ;;  %756 = vperm.xlu0 %6048, %v119_v58  }
  0xd6   :  { %v6131_v11 = vpop.eup %6130  ;;  %5327 = vst [vmem:[%s11611_s2 + $0x120] sm:$0xff] %v6129_v2  ;;  %6146 = vpow2.f32 %v3892_v63  ;;  %v3896_v12 = vmul.f32 1.442695, %v3093_v62  ;;  %v3089_v13 = vmul.f32 -10.0, %v2339_v0  ;;  %v1599_v14 = vsub.f32 %v372_v52, %v7799_v9 }
  0xd7   :  { %v6133_v17 = vpop.eup %6132  ;;  %5328 = vst [vmem:[%s11611_s2 + $0x128] sm:$0xff] %v6131_v11  ;;  %6148 = vpow2.f32 %v3894_v3  ;;  %v3090_v18 = vmul.f32 -10.0, %v2340_v4  ;;  %v3886_v19 = vmul.f32 1.442695, %v3088_v5  ;;  %v2347_v20 = vmul.f32 %v1597_v1, %v1597_v1  ;;  %v392_v3 = vpop.permute.xlu1 %391  ;;  %v128_v4 = vld [vmem:[%s11609_s0 + $0x348] sm:$0xff] }
  0xd8   :  { %v6135_v21 = vpop.eup %6134  ;;  %5329 = vst.msk [vmem:[%s11611_s2 + $0x130] sm:$0xff] %vm5292_vm0, %v6133_v17  ;;  %6150 = vpow2.f32 %v3896_v12  ;;  %v3888_v22 = vmul.f32 1.442695, %v3089_v13  ;;  %v2348_v23 = vmul.f32 %v1598_v6, %v1598_v6  ;;  %v2349_v24 = vmul.f32 %v1599_v14, %v1599_v14  ;;  %771 = vperm.xlu1 %6049, %v122_v10   ;;  %v127_v12 = vld [vmem:[%s11609_s0 + $0x340] sm:$0xff] }
  0xd9   :  { %v6137_v25 = vpop.eup %6136  ;;  %5336 = vst [vmem:[%s11611_s2 + $0x168] sm:$0xff] %v6135_v21  ;;  %6152 = vpow2.f32 %v3886_v19  ;;  %v3890_v26 = vmul.f32 1.442695, %v3090_v18  ;;  %v3097_v27 = vmul.f32 -10.0, %v2347_v20  ;;  %v1594_v28 = vsub.f32 %v367_v15, %v7795_v7  ;;  %766 = vperm.xlu0 %6048, %v121_v16   ;;  %v387_v21 = vpop.permute.xlu0 %386 }
  0xda   :  { %v6139_v31 = vpop.eup %6138  ;;  %5337 = vst [vmem:[%s11611_s2 + $0x170] sm:$0xff] %v6137_v25  ;;  %6154 = vpow2.f32 %v3888_v22  ;;  %v3098_v32 = vmul.f32 -10.0, %v2348_v23  ;;  %v3099_v33 = vmul.f32 -10.0, %v2349_v24  ;;  %v1595_v34 = vsub.f32 %v367_v15, %v7797_v8 }
  0xdb   :  { %v6141_v36 = vpop.eup %6140  ;;  %5338 = vst.msk [vmem:[%s11611_s2 + $0x178] sm:$0xff] %vm5292_vm0, %v6139_v31  ;;  %6156 = vpow2.f32 %v3890_v26  ;;  %v3904_v37 = vmul.f32 1.442695, %v3097_v27  ;;  %v1596_v38 = vsub.f32 %v367_v15, %v7799_v9  ;;  %v2344_v39 = vmul.f32 %v1594_v28, %v1594_v28  ;;  %v130_v26 = vld [vmem:[%s11609_s0 + $0x358] sm:$0xff] }
  0xdc   :  { %v6143_v40 = vpop.eup %6142  ;;  %5333 = vst [vmem:[%s11611_s2 + $0x150] sm:$0xff] %v6141_v36  ;;  %v3906_v41 = vmul.f32 1.442695, %v3098_v32  ;;  %v3908_v42 = vmul.f32 1.442695, %v3099_v33  ;;  %v2345_v43 = vmul.f32 %v1595_v34, %v1595_v34  ;;  %v1603_v44 = vsub.f32 %v382_v29, %v7795_v7  ;;  %781 = vperm.xlu1 %6049, %v124_v30   ;;  %v129_v30 = vld [vmem:[%s11609_s0 + $0x350] sm:$0xff] }
  0xdd   :  { %v6145_v45 = vpop.eup %6144  ;;  %5334 = vst [vmem:[%s11611_s2 + $0x158] sm:$0xff] %v6143_v40  ;;  %6158 = vpow2.f32 %v3904_v37  ;;  %v2346_v46 = vmul.f32 %v1596_v38, %v1596_v38  ;;  %v3094_v47 = vmul.f32 -10.0, %v2344_v39  ;;  %v1604_v48 = vsub.f32 %v382_v29, %v7797_v8  ;;  %776 = vperm.xlu0 %6048, %v123_v35  }
  0xde   :  { %5335 = vst.msk [vmem:[%s11611_s2 + $0x160] sm:$0xff] %vm5292_vm0, %v6145_v45  ;;  %6160 = vpow2.f32 %v3906_v41  ;;  %v3095_v51 = vmul.f32 -10.0, %v2345_v43  ;;  %v1605_v52 = vsub.f32 %v382_v29, %v7799_v9  ;;  %v2353_v53 = vmul.f32 %v1603_v44, %v1603_v44  ;;  %v402_v45 = vpop.permute.xlu1 %401 }
  0xdf   :  { %6162 = vpow2.f32 %v3908_v42  ;;  %v3096_v55 = vmul.f32 -10.0, %v2346_v46  ;;  %v3898_v56 = vmul.f32 1.442695, %v3094_v47  ;;  %v2354_v57 = vmul.f32 %v1604_v48, %v1604_v48  ;;  %v132_v46 = vld [vmem:[%s11609_s0 + $0x368] sm:$0xff] }
  0xe0   :  { %v6147_v58 = vpop.eup %6146  ;;  %v3900_v59 = vmul.f32 1.442695, %v3095_v51  ;;  %v2355_v60 = vmul.f32 %v1605_v52, %v1605_v52  ;;  %v3103_v61 = vmul.f32 -10.0, %v2353_v53  ;;  %v1600_v62 = vsub.f32 %v377_v49, %v7795_v7  ;;  %791 = vperm.xlu1 %6049, %v126_v50   ;;  %v131_v50 = vld [vmem:[%s11609_s0 + $0x360] sm:$0xff] }
  0xe1   :  { %v6149_v63 = vpop.eup %6148  ;;  %5342 = vst [vmem:[%s11611_s2 + $0x198] sm:$0xff] %v6147_v58  ;;  %6164 = vpow2.f32 %v3898_v56  ;;  %v3902_v0 = vmul.f32 1.442695, %v3096_v55  ;;  %v3104_v1 = vmul.f32 -10.0, %v2354_v57  ;;  %v1601_v2 = vsub.f32 %v377_v49, %v7797_v8  ;;  %786 = vperm.xlu0 %6048, %v125_v54  }
  0xe2   :  { %v6151_v5 = vpop.eup %6150  ;;  %5343 = vst [vmem:[%s11611_s2 + $0x1a0] sm:$0xff] %v6149_v63  ;;  %6166 = vpow2.f32 %v3900_v59  ;;  %v3105_v6 = vmul.f32 -10.0, %v2355_v60  ;;  %v3916_v10 = vmul.f32 1.442695, %v3103_v61  ;;  %v1602_v11 = vsub.f32 %v377_v49, %v7799_v9  ;;  %v397_v59 = vpop.permute.xlu0 %396 }
  0xe3   :  { %v6153_v13 = vpop.eup %6152  ;;  %5344 = vst.msk [vmem:[%s11611_s2 + $0x1a8] sm:$0xff] %vm5292_vm0, %v6151_v5  ;;  %6168 = vpow2.f32 %v3902_v0  ;;  %v3918_v14 = vmul.f32 1.442695, %v3104_v1  ;;  %v2350_v15 = vmul.f32 %v1600_v62, %v1600_v62  ;;  %v2351_v16 = vmul.f32 %v1601_v2, %v1601_v2  ;;  %v134_v0 = vld [vmem:[%s11609_s0 + $0x378] sm:$0xff]  ;;  %v133_v5 = vld [vmem:[%s11609_s0 + $0x370] sm:$0xff] }
  0xe4   :  { %v6155_v17 = vpop.eup %6154  ;;  %5339 = vst [vmem:[%s11611_s2 + $0x180] sm:$0xff] %v6153_v13  ;;  %6170 = vpow2.f32 %v3916_v10  ;;  %v3920_v18 = vmul.f32 1.442695, %v3105_v6  ;;  %v2352_v19 = vmul.f32 %v1602_v11, %v1602_v11  ;;  %v1609_v20 = vsub.f32 %v392_v3, %v7795_v7  ;;  %801 = vperm.xlu1 %6049, %v128_v4   ;;  %v412_v13 = vpop.permute.xlu1 %411 }
  0xe5   :  { %v6157_v22 = vpop.eup %6156  ;;  %5340 = vst [vmem:[%s11611_s2 + $0x188] sm:$0xff] %v6155_v17  ;;  %6172 = vpow2.f32 %v3918_v14  ;;  %v3100_v23 = vmul.f32 -10.0, %v2350_v15  ;;  %v3101_v24 = vmul.f32 -10.0, %v2351_v16  ;;  %v1610_v25 = vsub.f32 %v392_v3, %v7797_v8  ;;  %796 = vperm.xlu0 %6048, %v127_v12  }
  0xe6   :  { %5341 = vst.msk [vmem:[%s11611_s2 + $0x190] sm:$0xff] %vm5292_vm0, %v6157_v22  ;;  %6174 = vpow2.f32 %v3920_v18  ;;  %v3102_v27 = vmul.f32 -10.0, %v2352_v19  ;;  %v1611_v28 = vsub.f32 %v392_v3, %v7799_v9  ;;  %v2359_v29 = vmul.f32 %v1609_v20, %v1609_v20 }
  0xe7   :  { %v6159_v31 = vpop.eup %6158  ;;  %v3910_v32 = vmul.f32 1.442695, %v3100_v23  ;;  %v3912_v33 = vmul.f32 1.442695, %v3101_v24  ;;  %v2360_v34 = vmul.f32 %v1610_v25, %v1610_v25  ;;  %v1606_v35 = vsub.f32 %v387_v21, %v7795_v7 }
  0xe8   :  { %v6161_v36 = vpop.eup %6160  ;;  %5348 = vst [vmem:[%s11611_s2 + $0x1c8] sm:$0xff] %v6159_v31  ;;  %v3914_v37 = vmul.f32 1.442695, %v3102_v27  ;;  %v2361_v38 = vmul.f32 %v1611_v28, %v1611_v28  ;;  %v3109_v39 = vmul.f32 -10.0, %v2359_v29  ;;  %v1607_v40 = vsub.f32 %v387_v21, %v7797_v8  ;;  %811 = vperm.xlu1 %6049, %v130_v26   ;;  %v135_v26 = vld [vmem:[%s11609_s0 + $0x380] sm:$0xff] }
  0xe9   :  { %v6163_v41 = vpop.eup %6162  ;;  %5349 = vst [vmem:[%s11611_s2 + $0x1d0] sm:$0xff] %v6161_v36  ;;  %6176 = vpow2.f32 %v3910_v32  ;;  %v3110_v42 = vmul.f32 -10.0, %v2360_v34  ;;  %v1608_v43 = vsub.f32 %v387_v21, %v7799_v9  ;;  %v2356_v44 = vmul.f32 %v1606_v35, %v1606_v35  ;;  %806 = vperm.xlu0 %6048, %v129_v30   ;;  %v136_v21 = vld [vmem:[%s11609_s0 + $0x388] sm:$0xff]  ;;  %v407_v36 = vpop.permute.xlu0 %406 }
  0xea   :  { %5350 = vst.msk [vmem:[%s11611_s2 + $0x1d8] sm:$0xff] %vm5292_vm0, %v6163_v41  ;;  %6178 = vpow2.f32 %v3912_v33  ;;  %v3111_v47 = vmul.f32 -10.0, %v2361_v38  ;;  %v3928_v48 = vmul.f32 1.442695, %v3109_v39  ;;  %v2357_v49 = vmul.f32 %v1607_v40, %v1607_v40  ;;  %v138_v41 = vld [vmem:[%s11609_s0 + $0x398] sm:$0xff] }
  0xeb   :  { %v6165_v51 = vpop.eup %6164  ;;  %6180 = vpow2.f32 %v3914_v37  ;;  %v3930_v52 = vmul.f32 1.442695, %v3110_v42  ;;  %v2358_v53 = vmul.f32 %v1608_v43, %v1608_v43  ;;  %v3106_v54 = vmul.f32 -10.0, %v2356_v44 }
  0xec   :  { %v6167_v55 = vpop.eup %6166  ;;  %5345 = vst [vmem:[%s11611_s2 + $0x1b0] sm:$0xff] %v6165_v51  ;;  %6182 = vpow2.f32 %v3928_v48  ;;  %v3932_v56 = vmul.f32 1.442695, %v3111_v47  ;;  %v3107_v57 = vmul.f32 -10.0, %v2357_v49  ;;  %v1615_v58 = vsub.f32 %v402_v45, %v7795_v7  ;;  %821 = vperm.xlu1 %6049, %v132_v46   ;;  %v137_v46 = vld [vmem:[%s11609_s0 + $0x390] sm:$0xff]  ;;  %v422_v51 = vpop.permute.xlu1 %421 }
  0xed   :  { %v6169_v60 = vpop.eup %6168  ;;  %5346 = vst [vmem:[%s11611_s2 + $0x1b8] sm:$0xff] %v6167_v55  ;;  %6184 = vpow2.f32 %v3930_v52  ;;  %v3108_v61 = vmul.f32 -10.0, %v2358_v53  ;;  %v3922_v62 = vmul.f32 1.442695, %v3106_v54  ;;  %v1616_v63 = vsub.f32 %v402_v45, %v7797_v8  ;;  %816 = vperm.xlu0 %6048, %v131_v50  }
  0xee   :  { %v6171_v1 = vpop.eup %6170  ;;  %5347 = vst.msk [vmem:[%s11611_s2 + $0x1c0] sm:$0xff] %vm5292_vm0, %v6169_v60  ;;  %6186 = vpow2.f32 %v3932_v56  ;;  %v3924_v2 = vmul.f32 1.442695, %v3107_v57  ;;  %v1617_v3 = vsub.f32 %v402_v45, %v7799_v9  ;;  %v2365_v4 = vmul.f32 %v1615_v58, %v1615_v58  ;;  %v140_v60 = vld [vmem:[%s11609_s0 + $0x3a8] sm:$0xff] }
  0xef   :  { %v6173_v6 = vpop.eup %6172  ;;  %5354 = vst [vmem:[%s11611_s2 + $0x1f8] sm:$0xff] %v6171_v1  ;;  %6188 = vpow2.f32 %v3922_v62  ;;  %v3926_v10 = vmul.f32 1.442695, %v3108_v61  ;;  %v2366_v11 = vmul.f32 %v1616_v63, %v1616_v63  ;;  %v1612_v12 = vsub.f32 %v397_v59, %v7795_v7 }
  0xf0   :  { %v6175_v14 = vpop.eup %6174  ;;  %5355 = vst [vmem:[%s11611_s2 + $0x200] sm:$0xff] %v6173_v6  ;;  %6190 = vpow2.f32 %v3924_v2  ;;  %v2367_v15 = vmul.f32 %v1617_v3, %v1617_v3  ;;  %v3115_v16 = vmul.f32 -10.0, %v2365_v4  ;;  %v1613_v17 = vsub.f32 %v397_v59, %v7797_v8  ;;  %831 = vperm.xlu1 %6049, %v134_v0   ;;  %v139_v2 = vld [vmem:[%s11609_s0 + $0x3a0] sm:$0xff] }
  0xf1   :  { %5356 = vst.msk [vmem:[%s11611_s2 + $0x208] sm:$0xff] %vm5292_vm0, %v6175_v14  ;;  %6192 = vpow2.f32 %v3926_v10  ;;  %v3116_v18 = vmul.f32 -10.0, %v2366_v11  ;;  %v1614_v19 = vsub.f32 %v397_v59, %v7799_v9  ;;  %v2362_v20 = vmul.f32 %v1612_v12, %v1612_v12  ;;  %826 = vperm.xlu0 %6048, %v133_v5   ;;  %v417_v10 = vpop.permute.xlu0 %416 }
  0xf2   :  { %v3117_v22 = vmul.f32 -10.0, %v2367_v15  ;;  %v3940_v23 = vmul.f32 1.442695, %v3115_v16  ;;  %v2363_v24 = vmul.f32 %v1613_v17, %v1613_v17  ;;  %v1621_v25 = vsub.f32 %v412_v13, %v7795_v7  ;;  %v142_v17 = vld [vmem:[%s11609_s0 + $0x3b8] sm:$0xff] }
  0xf3   :  { %v6177_v27 = vpop.eup %6176  ;;  %v3942_v28 = vmul.f32 1.442695, %v3116_v18  ;;  %v2364_v29 = vmul.f32 %v1614_v19, %v1614_v19  ;;  %v3112_v30 = vmul.f32 -10.0, %v2362_v20  ;;  %v1622_v31 = vsub.f32 %v412_v13, %v7797_v8 }
  0xf4   :  { %v6179_v32 = vpop.eup %6178  ;;  %5351 = vst [vmem:[%s11611_s2 + $0x1e0] sm:$0xff] %v6177_v27  ;;  %6194 = vpow2.f32 %v3940_v23  ;;  %v3944_v33 = vmul.f32 1.442695, %v3117_v22  ;;  %v3113_v34 = vmul.f32 -10.0, %v2363_v24  ;;  %v1623_v35 = vsub.f32 %v412_v13, %v7799_v9  ;;  %841 = vperm.xlu1 %6049, %v136_v21   ;;  %v141_v23 = vld [vmem:[%s11609_s0 + $0x3b0] sm:$0xff] }
  0xf5   :  { %v6181_v37 = vpop.eup %6180  ;;  %5352 = vst [vmem:[%s11611_s2 + $0x1e8] sm:$0xff] %v6179_v32  ;;  %6196 = vpow2.f32 %v3942_v28  ;;  %v3114_v38 = vmul.f32 -10.0, %v2364_v29  ;;  %v3934_v39 = vmul.f32 1.442695, %v3112_v30  ;;  %v2371_v40 = vmul.f32 %v1621_v25, %v1621_v25  ;;  %836 = vperm.xlu0 %6048, %v135_v26   ;;  %v432_v28 = vpop.permute.xlu1 %431 }
  0xf6   :  { %v6183_v42 = vpop.eup %6182  ;;  %5353 = vst.msk [vmem:[%s11611_s2 + $0x1f0] sm:$0xff] %vm5292_vm0, %v6181_v37  ;;  %6198 = vpow2.f32 %v3944_v33  ;;  %v3936_v43 = vmul.f32 1.442695, %v3113_v34  ;;  %v2372_v44 = vmul.f32 %v1622_v31, %v1622_v31  ;;  %v2373_v45 = vmul.f32 %v1623_v35, %v1623_v35  ;;  %v144_v37 = vld [vmem:[%s11609_s0 + $0x3c8] sm:$0xff] }
  0xf7   :  { %v6185_v47 = vpop.eup %6184  ;;  %5360 = vst [vmem:[%s11611_s2 + $0x228] sm:$0xff] %v6183_v42  ;;  %6200 = vpow2.f32 %v3934_v39  ;;  %v3938_v48 = vmul.f32 1.442695, %v3114_v38  ;;  %v3121_v49 = vmul.f32 -10.0, %v2371_v40  ;;  %v1618_v50 = vsub.f32 %v407_v36, %v7795_v7  ;;  %v427_v42 = vpop.permute.xlu0 %426 }
  0xf8   :  { %v6187_v52 = vpop.eup %6186  ;;  %5361 = vst [vmem:[%s11611_s2 + $0x230] sm:$0xff] %v6185_v47  ;;  %6202 = vpow2.f32 %v3936_v43  ;;  %v3122_v53 = vmul.f32 -10.0, %v2372_v44  ;;  %v3123_v54 = vmul.f32 -10.0, %v2373_v45  ;;  %v1619_v55 = vsub.f32 %v407_v36, %v7797_v8  ;;  %851 = vperm.xlu1 %6049, %v138_v41   ;;  %v143_v43 = vld [vmem:[%s11609_s0 + $0x3c0] sm:$0xff] }
  0xf9   :  { %v6189_v56 = vpop.eup %6188  ;;  %5362 = vst.msk [vmem:[%s11611_s2 + $0x238] sm:$0xff] %vm5292_vm0, %v6187_v52  ;;  %6204 = vpow2.f32 %v3938_v48  ;;  %v3952_v57 = vmul.f32 1.442695, %v3121_v49  ;;  %v1620_v58 = vsub.f32 %v407_v36, %v7799_v9  ;;  %v2368_v59 = vmul.f32 %v1618_v50, %v1618_v50  ;;  %846 = vperm.xlu0 %6048, %v137_v46  }
  0xfa   :  { %v6191_v61 = vpop.eup %6190  ;;  %5357 = vst [vmem:[%s11611_s2 + $0x210] sm:$0xff] %v6189_v56  ;;  %v3954_v62 = vmul.f32 1.442695, %v3122_v53  ;;  %v3956_v63 = vmul.f32 1.442695, %v3123_v54  ;;  %v2369_v0 = vmul.f32 %v1619_v55, %v1619_v55  ;;  %v1627_v1 = vsub.f32 %v422_v51, %v7795_v7  ;;  %v146_v56 = vld [vmem:[%s11609_s0 + $0x3d8] sm:$0xff] }
  0xfb   :  { %v6193_v3 = vpop.eup %6192  ;;  %5358 = vst [vmem:[%s11611_s2 + $0x218] sm:$0xff] %v6191_v61  ;;  %6206 = vpow2.f32 %v3952_v57  ;;  %v2370_v4 = vmul.f32 %v1620_v58, %v1620_v58  ;;  %v3118_v5 = vmul.f32 -10.0, %v2368_v59  ;;  %v1628_v6 = vsub.f32 %v422_v51, %v7797_v8 }
  0xfc   :  { %5359 = vst.msk [vmem:[%s11611_s2 + $0x220] sm:$0xff] %vm5292_vm0, %v6193_v3  ;;  %6208 = vpow2.f32 %v3954_v62  ;;  %v3119_v11 = vmul.f32 -10.0, %v2369_v0  ;;  %v1629_v12 = vsub.f32 %v422_v51, %v7799_v9  ;;  %v2377_v13 = vmul.f32 %v1627_v1, %v1627_v1  ;;  %861 = vperm.xlu1 %6049, %v140_v60   ;;  %v145_v62 = vld [vmem:[%s11609_s0 + $0x3d0] sm:$0xff]  ;;  %v442_v3 = vpop.permute.xlu1 %441 }
  0xfd   :  { %6210 = vpow2.f32 %v3956_v63  ;;  %v3120_v14 = vmul.f32 -10.0, %v2370_v4  ;;  %v3946_v15 = vmul.f32 1.442695, %v3118_v5  ;;  %v2378_v16 = vmul.f32 %v1628_v6, %v1628_v6  ;;  %856 = vperm.xlu0 %6048, %v139_v2  }
  0xfe   :  { %v6195_v18 = vpop.eup %6194  ;;  %v3948_v19 = vmul.f32 1.442695, %v3119_v11  ;;  %v2379_v20 = vmul.f32 %v1629_v12, %v1629_v12  ;;  %v3127_v21 = vmul.f32 -10.0, %v2377_v13  ;;  %v1624_v22 = vsub.f32 %v417_v10, %v7795_v7 }
  0xff   :  { %v6197_v24 = vpop.eup %6196  ;;  %5366 = vst [vmem:[%s11611_s2 + $0x258] sm:$0xff] %v6195_v18  ;;  %6212 = vpow2.f32 %v3946_v15  ;;  %v3950_v25 = vmul.f32 1.442695, %v3120_v14  ;;  %v3128_v26 = vmul.f32 -10.0, %v2378_v16  ;;  %v1625_v27 = vsub.f32 %v417_v10, %v7797_v8  ;;  %v148_v14 = vld [vmem:[%s11609_s0 + $0x3e8] sm:$0xff] }
 0x100   :  { %v6199_v29 = vpop.eup %6198  ;;  %5367 = vst [vmem:[%s11611_s2 + $0x260] sm:$0xff] %v6197_v24  ;;  %6214 = vpow2.f32 %v3948_v19  ;;  %v3129_v30 = vmul.f32 -10.0, %v2379_v20  ;;  %v3964_v31 = vmul.f32 1.442695, %v3127_v21  ;;  %v1626_v32 = vsub.f32 %v417_v10, %v7799_v9  ;;  %871 = vperm.xlu1 %6049, %v142_v17   ;;  %v437_v19 = vpop.permute.xlu0 %436  ;;  %v147_v20 = vld [vmem:[%s11609_s0 + $0x3e0] sm:$0xff] }
 0x101   :  { %v6201_v33 = vpop.eup %6200  ;;  %5368 = vst.msk [vmem:[%s11611_s2 + $0x268] sm:$0xff] %vm5292_vm0, %v6199_v29  ;;  %6216 = vpow2.f32 %v3950_v25  ;;  %v3966_v34 = vmul.f32 1.442695, %v3128_v26  ;;  %v2374_v35 = vmul.f32 %v1624_v22, %v1624_v22  ;;  %v2375_v36 = vmul.f32 %v1625_v27, %v1625_v27  ;;  %866 = vperm.xlu0 %6048, %v141_v23  }
 0x102   :  { %v6203_v38 = vpop.eup %6202  ;;  %5363 = vst [vmem:[%s11611_s2 + $0x240] sm:$0xff] %v6201_v33  ;;  %6218 = vpow2.f32 %v3964_v31  ;;  %v3968_v39 = vmul.f32 1.442695, %v3129_v30  ;;  %v2376_v40 = vmul.f32 %v1626_v32, %v1626_v32  ;;  %v1633_v41 = vsub.f32 %v432_v28, %v7795_v7  ;;  %v452_v33 = vpop.permute.xlu1 %451 }
 0x103   :  { %v6205_v44 = vpop.eup %6204  ;;  %5364 = vst [vmem:[%s11611_s2 + $0x248] sm:$0xff] %v6203_v38  ;;  %6220 = vpow2.f32 %v3966_v34  ;;  %v3124_v45 = vmul.f32 -10.0, %v2374_v35  ;;  %v3125_v46 = vmul.f32 -10.0, %v2375_v36  ;;  %v1634_v47 = vsub.f32 %v432_v28, %v7797_v8  ;;  %v150_v34 = vld [vmem:[%s11609_s0 + $0x3f8] sm:$0xff] }
 0x104   :  { %5365 = vst.msk [vmem:[%s11611_s2 + $0x250] sm:$0xff] %vm5292_vm0, %v6205_v44  ;;  %6222 = vpow2.f32 %v3968_v39  ;;  %v3126_v48 = vmul.f32 -10.0, %v2376_v40  ;;  %v1635_v49 = vsub.f32 %v432_v28, %v7799_v9  ;;  %v2383_v50 = vmul.f32 %v1633_v41, %v1633_v41  ;;  %881 = vperm.xlu1 %6049, %v144_v37   ;;  %v149_v39 = vld [vmem:[%s11609_s0 + $0x3f0] sm:$0xff] }
 0x105   :  { %v6207_v51 = vpop.eup %6206  ;;  %v3958_v52 = vmul.f32 1.442695, %v3124_v45  ;;  %v3960_v53 = vmul.f32 1.442695, %v3125_v46  ;;  %v2384_v54 = vmul.f32 %v1634_v47, %v1634_v47  ;;  %v1630_v55 = vsub.f32 %v427_v42, %v7795_v7  ;;  %876 = vperm.xlu0 %6048, %v143_v43  }
 0x106   :  { %v6209_v57 = vpop.eup %6208  ;;  %5372 = vst [vmem:[%s11611_s2 + $0x288] sm:$0xff] %v6207_v51  ;;  %v3962_v58 = vmul.f32 1.442695, %v3126_v48  ;;  %v2385_v59 = vmul.f32 %v1635_v49, %v1635_v49  ;;  %v3133_v60 = vmul.f32 -10.0, %v2383_v50  ;;  %v1631_v61 = vsub.f32 %v427_v42, %v7797_v8 }
 0x107   :  { %v6211_v63 = vpop.eup %6210  ;;  %5373 = vst [vmem:[%s11611_s2 + $0x290] sm:$0xff] %v6209_v57  ;;  %6224 = vpow2.f32 %v3958_v52  ;;  %v3134_v0 = vmul.f32 -10.0, %v2384_v54  ;;  %v1632_v1 = vsub.f32 %v427_v42, %v7799_v9  ;;  %v2380_v2 = vmul.f32 %v1630_v55, %v1630_v55  ;;  %v152_v52 = vld [vmem:[%s11609_s0 + $0x408] sm:$0xff]  ;;  %v447_v57 = vpop.permute.xlu0 %446 }
 0x108   :  { %5374 = vst.msk [vmem:[%s11611_s2 + $0x298] sm:$0xff] %vm5292_vm0, %v6211_v63  ;;  %6226 = vpow2.f32 %v3960_v53  ;;  %v3135_v4 = vmul.f32 -10.0, %v2385_v59  ;;  %v3976_v5 = vmul.f32 1.442695, %v3133_v60  ;;  %v2381_v6 = vmul.f32 %v1631_v61, %v1631_v61  ;;  %891 = vperm.xlu1 %6049, %v146_v56  }
 0x109   :  { %v6213_v10 = vpop.eup %6212  ;;  %6228 = vpow2.f32 %v3962_v58  ;;  %v3978_v11 = vmul.f32 1.442695, %v3134_v0  ;;  %v2382_v12 = vmul.f32 %v1632_v1, %v1632_v1  ;;  %v3130_v13 = vmul.f32 -10.0, %v2380_v2  ;;  %886 = vperm.xlu0 %6048, %v145_v62   ;;  %v151_v58 = vld [vmem:[%s11609_s0 + $0x400] sm:$0xff] }
 0x10a   :  { %v6215_v15 = vpop.eup %6214  ;;  %5369 = vst [vmem:[%s11611_s2 + $0x270] sm:$0xff] %v6213_v10  ;;  %6230 = vpow2.f32 %v3976_v5  ;;  %v3980_v16 = vmul.f32 1.442695, %v3135_v4  ;;  %v3131_v17 = vmul.f32 -10.0, %v2381_v6  ;;  %v1639_v18 = vsub.f32 %v442_v3, %v7795_v7  ;;  %v462_v10 = vpop.permute.xlu1 %461 }
 0x10b   :  { %v6217_v21 = vpop.eup %6216  ;;  %5370 = vst [vmem:[%s11611_s2 + $0x278] sm:$0xff] %v6215_v15  ;;  %6232 = vpow2.f32 %v3978_v11  ;;  %v3132_v22 = vmul.f32 -10.0, %v2382_v12  ;;  %v3970_v23 = vmul.f32 1.442695, %v3130_v13  ;;  %v1640_v24 = vsub.f32 %v442_v3, %v7797_v8  ;;  %v154_v11 = vld [vmem:[%s11609_s0 + $0x418] sm:$0xff] }
 0x10c   :  { %v6219_v25 = vpop.eup %6218  ;;  %5371 = vst.msk [vmem:[%s11611_s2 + $0x280] sm:$0xff] %vm5292_vm0, %v6217_v21  ;;  %6234 = vpow2.f32 %v3980_v16  ;;  %v3972_v26 = vmul.f32 1.442695, %v3131_v17  ;;  %v1641_v27 = vsub.f32 %v442_v3, %v7799_v9  ;;  %v2389_v28 = vmul.f32 %v1639_v18, %v1639_v18  ;;  %901 = vperm.xlu1 %6049, %v148_v14   ;;  %v153_v16 = vld [vmem:[%s11609_s0 + $0x410] sm:$0xff] }
 0x10d   :  { %v6221_v29 = vpop.eup %6220  ;;  %5378 = vst [vmem:[%s11611_s2 + $0x2b8] sm:$0xff] %v6219_v25  ;;  %6236 = vpow2.f32 %v3970_v23  ;;  %v3974_v30 = vmul.f32 1.442695, %v3132_v22  ;;  %v2390_v31 = vmul.f32 %v1640_v24, %v1640_v24  ;;  %v1636_v32 = vsub.f32 %v437_v19, %v7795_v7  ;;  %896 = vperm.xlu0 %6048, %v147_v20  }
 0x10e   :  { %v6223_v35 = vpop.eup %6222  ;;  %5379 = vst [vmem:[%s11611_s2 + $0x2c0] sm:$0xff] %v6221_v29  ;;  %6238 = vpow2.f32 %v3972_v26  ;;  %v2391_v36 = vmul.f32 %v1641_v27, %v1641_v27  ;;  %v3139_v37 = vmul.f32 -10.0, %v2389_v28  ;;  %v1637_v38 = vsub.f32 %v437_v19, %v7797_v8 }
 0x10f   :  { %5380 = vst.msk [vmem:[%s11611_s2 + $0x2c8] sm:$0xff] %vm5292_vm0, %v6223_v35  ;;  %6240 = vpow2.f32 %v3974_v30  ;;  %v3140_v40 = vmul.f32 -10.0, %v2390_v31  ;;  %v1638_v41 = vsub.f32 %v437_v19, %v7799_v9  ;;  %v2386_v42 = vmul.f32 %v1636_v32, %v1636_v32  ;;  %v457_v30 = vpop.permute.xlu0 %456  ;;  %v156_v31 = vld [vmem:[%s11609_s0 + $0x428] sm:$0xff]  ;;  %v155_v35 = vld [vmem:[%s11609_s0 + $0x420] sm:$0xff] }
 0x110   :  { %v3141_v43 = vmul.f32 -10.0, %v2391_v36  ;;  %v3988_v44 = vmul.f32 1.442695, %v3139_v37  ;;  %v2387_v45 = vmul.f32 %v1637_v38, %v1637_v38  ;;  %v1645_v46 = vsub.f32 %v452_v33, %v7795_v7  ;;  %911 = vperm.xlu1 %6049, %v150_v34  }
 0x111   :  { %v6225_v47 = vpop.eup %6224  ;;  %v3990_v48 = vmul.f32 1.442695, %v3140_v40  ;;  %v2388_v49 = vmul.f32 %v1638_v41, %v1638_v41  ;;  %v3136_v50 = vmul.f32 -10.0, %v2386_v42  ;;  %v1646_v51 = vsub.f32 %v452_v33, %v7797_v8  ;;  %906 = vperm.xlu0 %6048, %v149_v39  }
 0x112   :  { %v6227_v53 = vpop.eup %6226  ;;  %5375 = vst [vmem:[%s11611_s2 + $0x2a0] sm:$0xff] %v6225_v47  ;;  %6242 = vpow2.f32 %v3988_v44  ;;  %v3992_v54 = vmul.f32 1.442695, %v3141_v43  ;;  %v3137_v55 = vmul.f32 -10.0, %v2387_v45  ;;  %v1647_v56 = vsub.f32 %v452_v33, %v7799_v9 }
 0x113   :  { %v6229_v59 = vpop.eup %6228  ;;  %5376 = vst [vmem:[%s11611_s2 + $0x2a8] sm:$0xff] %v6227_v53  ;;  %6244 = vpow2.f32 %v3990_v48  ;;  %v3138_v60 = vmul.f32 -10.0, %v2388_v49  ;;  %v3982_v61 = vmul.f32 1.442695, %v3136_v50  ;;  %v2395_v62 = vmul.f32 %v1645_v46, %v1645_v46  ;;  %v472_v48 = vpop.permute.xlu1 %471  ;;  %v158_v49 = vld [vmem:[%s11609_s0 + $0x438] sm:$0xff] }
 0x114   :  { %v6231_v63 = vpop.eup %6230  ;;  %5377 = vst.msk [vmem:[%s11611_s2 + $0x2b0] sm:$0xff] %vm5292_vm0, %v6229_v59  ;;  %6246 = vpow2.f32 %v3992_v54  ;;  %v3984_v0 = vmul.f32 1.442695, %v3137_v55  ;;  %v2396_v1 = vmul.f32 %v1646_v51, %v1646_v51  ;;  %v2397_v2 = vmul.f32 %v1647_v56, %v1647_v56  ;;  %921 = vperm.xlu1 %6049, %v152_v52   ;;  %v157_v54 = vld [vmem:[%s11609_s0 + $0x430] sm:$0xff] }
 0x115   :  { %v6233_v3 = vpop.eup %6232  ;;  %5384 = vst [vmem:[%s11611_s2 + $0x2e8] sm:$0xff] %v6231_v63  ;;  %6248 = vpow2.f32 %v3982_v61  ;;  %v3986_v4 = vmul.f32 1.442695, %v3138_v60  ;;  %v3145_v5 = vmul.f32 -10.0, %v2395_v62  ;;  %v1642_v6 = vsub.f32 %v447_v57, %v7795_v7  ;;  %916 = vperm.xlu0 %6048, %v151_v58   ;;  %v467_v63 = vpop.permute.xlu0 %466 }
 0x116   :  { %v6235_v12 = vpop.eup %6234  ;;  %5385 = vst [vmem:[%s11611_s2 + $0x2f0] sm:$0xff] %v6233_v3  ;;  %6250 = vpow2.f32 %v3984_v0  ;;  %v3146_v13 = vmul.f32 -10.0, %v2396_v1  ;;  %v3147_v14 = vmul.f32 -10.0, %v2397_v2  ;;  %v1643_v15 = vsub.f32 %v447_v57, %v7797_v8 }
 0x117   :  { %v6237_v17 = vpop.eup %6236  ;;  %5386 = vst.msk [vmem:[%s11611_s2 + $0x2f8] sm:$0xff] %vm5292_vm0, %v6235_v12  ;;  %6252 = vpow2.f32 %v3986_v4  ;;  %v4000_v18 = vmul.f32 1.442695, %v3145_v5  ;;  %v1644_v19 = vsub.f32 %v447_v57, %v7799_v9  ;;  %v2392_v20 = vmul.f32 %v1642_v6, %v1642_v6 }
 0x118   :  { %v6239_v21 = vpop.eup %6238  ;;  %5381 = vst [vmem:[%s11611_s2 + $0x2d0] sm:$0xff] %v6237_v17  ;;  %v4002_v22 = vmul.f32 1.442695, %v3146_v13  ;;  %v4004_v23 = vmul.f32 1.442695, %v3147_v14  ;;  %v2393_v24 = vmul.f32 %v1643_v15, %v1643_v15  ;;  %v1651_v25 = vsub.f32 %v462_v10, %v7795_v7  ;;  %931 = vperm.xlu1 %6049, %v154_v11  }
 0x119   :  { %v6241_v26 = vpop.eup %6240  ;;  %5382 = vst [vmem:[%s11611_s2 + $0x2d8] sm:$0xff] %v6239_v21  ;;  %6254 = vpow2.f32 %v4000_v18  ;;  %v2394_v27 = vmul.f32 %v1644_v19, %v1644_v19  ;;  %v3142_v28 = vmul.f32 -10.0, %v2392_v20  ;;  %v1652_v29 = vsub.f32 %v462_v10, %v7797_v8  ;;  %926 = vperm.xlu0 %6048, %v153_v16   ;;  %v160_v20 = vld [vmem:[%s11609_s0 + $0x448] sm:$0xff]  ;;  %v159_v21 = vld [vmem:[%s11609_s0 + $0x440] sm:$0xff] }
 0x11a   :  { %5383 = vst.msk [vmem:[%s11611_s2 + $0x2e0] sm:$0xff] %vm5292_vm0, %v6241_v26  ;;  %6256 = vpow2.f32 %v4002_v22  ;;  %v3143_v32 = vmul.f32 -10.0, %v2393_v24  ;;  %v1653_v33 = vsub.f32 %v462_v10, %v7799_v9  ;;  %v2401_v34 = vmul.f32 %v1651_v25, %v1651_v25  ;;  %v482_v26 = vpop.permute.xlu1 %481 }
 0x11b   :  { %6258 = vpow2.f32 %v4004_v23  ;;  %v3144_v36 = vmul.f32 -10.0, %v2394_v27  ;;  %v3994_v37 = vmul.f32 1.442695, %v3142_v28  ;;  %v2402_v38 = vmul.f32 %v1652_v29, %v1652_v29 }
 0x11c   :  { %v6243_v39 = vpop.eup %6242  ;;  %v3996_v40 = vmul.f32 1.442695, %v3143_v32  ;;  %v2403_v41 = vmul.f32 %v1653_v33, %v1653_v33  ;;  %v3151_v42 = vmul.f32 -10.0, %v2401_v34  ;;  %v1648_v43 = vsub.f32 %v457_v30, %v7795_v7  ;;  %941 = vperm.xlu1 %6049, %v156_v31  }
 0x11d   :  { %v6245_v44 = vpop.eup %6244  ;;  %5390 = vst [vmem:[%s11611_s2 + $0x318] sm:$0xff] %v6243_v39  ;;  %6260 = vpow2.f32 %v3994_v37  ;;  %v3998_v45 = vmul.f32 1.442695, %v3144_v36  ;;  %v3152_v46 = vmul.f32 -10.0, %v2402_v38  ;;  %v1649_v47 = vsub.f32 %v457_v30, %v7797_v8  ;;  %936 = vperm.xlu0 %6048, %v155_v35   ;;  %v477_v38 = vpop.permute.xlu0 %476 }
 0x11e   :  { %v6247_v50 = vpop.eup %6246  ;;  %5391 = vst [vmem:[%s11611_s2 + $0x320] sm:$0xff] %v6245_v44  ;;  %6262 = vpow2.f32 %v3996_v40  ;;  %v3153_v51 = vmul.f32 -10.0, %v2403_v41  ;;  %v4012_v52 = vmul.f32 1.442695, %v3151_v42  ;;  %v1650_v53 = vsub.f32 %v457_v30, %v7799_v9 }
 0x11f   :  { %v6249_v55 = vpop.eup %6248  ;;  %5392 = vst.msk [vmem:[%s11611_s2 + $0x328] sm:$0xff] %vm5292_vm0, %v6247_v50  ;;  %6264 = vpow2.f32 %v3998_v45  ;;  %v4014_v56 = vmul.f32 1.442695, %v3152_v46  ;;  %v2398_v57 = vmul.f32 %v1648_v43, %v1648_v43  ;;  %v2399_v58 = vmul.f32 %v1649_v47, %v1649_v47 }
 0x120   :  { %v6251_v59 = vpop.eup %6250  ;;  %5387 = vst [vmem:[%s11611_s2 + $0x300] sm:$0xff] %v6249_v55  ;;  %6266 = vpow2.f32 %v4012_v52  ;;  %v4016_v60 = vmul.f32 1.442695, %v3153_v51  ;;  %v2400_v61 = vmul.f32 %v1650_v53, %v1650_v53  ;;  %v1657_v62 = vsub.f32 %v472_v48, %v7795_v7  ;;  %951 = vperm.xlu1 %6049, %v158_v49   ;;  %v492_v51 = vpop.permute.xlu1 %491 }
 0x121   :  { %v6253_v0 = vpop.eup %6252  ;;  %5388 = vst [vmem:[%s11611_s2 + $0x308] sm:$0xff] %v6251_v59  ;;  %6268 = vpow2.f32 %v4014_v56  ;;  %v3148_v1 = vmul.f32 -10.0, %v2398_v57  ;;  %v3149_v2 = vmul.f32 -10.0, %v2399_v58  ;;  %v1658_v3 = vsub.f32 %v472_v48, %v7797_v8  ;;  %946 = vperm.xlu0 %6048, %v157_v54   ;;  %v162_v56 = vld [vmem:[%s11609_s0 + $0x458] sm:$0xff]  ;;  %v161_v57 = vld [vmem:[%s11609_s0 + $0x450] sm:$0xff] }
 0x122   :  { %5389 = vst.msk [vmem:[%s11611_s2 + $0x310] sm:$0xff] %vm5292_vm0, %v6253_v0  ;;  %6270 = vpow2.f32 %v4016_v60  ;;  %v3150_v4 = vmul.f32 -10.0, %v2400_v61  ;;  %v1659_v5 = vsub.f32 %v472_v48, %v7799_v9  ;;  %v2407_v6 = vmul.f32 %v1657_v62, %v1657_v62 }
 0x123   :  { %v6255_v10 = vpop.eup %6254  ;;  %v4006_v11 = vmul.f32 1.442695, %v3148_v1  ;;  %v4008_v12 = vmul.f32 1.442695, %v3149_v2  ;;  %v2408_v13 = vmul.f32 %v1658_v3, %v1658_v3  ;;  %v1654_v14 = vsub.f32 %v467_v63, %v7795_v7 }
 0x124   :  { %v6257_v15 = vpop.eup %6256  ;;  %5396 = vst [vmem:[%s11611_s2 + $0x348] sm:$0xff] %v6255_v10  ;;  %v4010_v16 = vmul.f32 1.442695, %v3150_v4  ;;  %v2409_v17 = vmul.f32 %v1659_v5, %v1659_v5  ;;  %v3157_v18 = vmul.f32 -10.0, %v2407_v6  ;;  %v1655_v19 = vsub.f32 %v467_v63, %v7797_v8  ;;  %961 = vperm.xlu1 %6049, %v160_v20  }
 0x125   :  { %v6259_v22 = vpop.eup %6258  ;;  %5397 = vst [vmem:[%s11611_s2 + $0x350] sm:$0xff] %v6257_v15  ;;  %6272 = vpow2.f32 %v4006_v11  ;;  %v3158_v23 = vmul.f32 -10.0, %v2408_v13  ;;  %v1656_v24 = vsub.f32 %v467_v63, %v7799_v9  ;;  %v2404_v25 = vmul.f32 %v1654_v14, %v1654_v14  ;;  %956 = vperm.xlu0 %6048, %v159_v21   ;;  %v487_v13 = vpop.permute.xlu0 %486 }
 0x126   :  { %5398 = vst.msk [vmem:[%s11611_s2 + $0x358] sm:$0xff] %vm5292_vm0, %v6259_v22  ;;  %6274 = vpow2.f32 %v4008_v12  ;;  %v3159_v27 = vmul.f32 -10.0, %v2409_v17  ;;  %v4024_v28 = vmul.f32 1.442695, %v3157_v18  ;;  %v2405_v29 = vmul.f32 %v1655_v19, %v1655_v19 }
 0x127   :  { %v6261_v30 = vpop.eup %6260  ;;  %6276 = vpow2.f32 %v4010_v16  ;;  %v4026_v31 = vmul.f32 1.442695, %v3158_v23  ;;  %v2406_v32 = vmul.f32 %v1656_v24, %v1656_v24  ;;  %v3154_v33 = vmul.f32 -10.0, %v2404_v25 }
 0x128   :  { %v6263_v34 = vpop.eup %6262  ;;  %5393 = vst [vmem:[%s11611_s2 + $0x330] sm:$0xff] %v6261_v30  ;;  %6278 = vpow2.f32 %v4024_v28  ;;  %v4028_v35 = vmul.f32 1.442695, %v3159_v27  ;;  %v3155_v36 = vmul.f32 -10.0, %v2405_v29  ;;  %v1663_v37 = vsub.f32 %v482_v26, %v7795_v7  ;;  %971 = vperm.xlu1 %6049, %v162_v56  }
 0x129   :  { %v6265_v39 = vpop.eup %6264  ;;  %5394 = vst [vmem:[%s11611_s2 + $0x338] sm:$0xff] %v6263_v34  ;;  %6280 = vpow2.f32 %v4026_v31  ;;  %v3156_v40 = vmul.f32 -10.0, %v2406_v32  ;;  %v4018_v41 = vmul.f32 1.442695, %v3154_v33  ;;  %v1664_v42 = vsub.f32 %v482_v26, %v7797_v8  ;;  %966 = vperm.xlu0 %6048, %v161_v57   ;;  %v164_v31 = vld [vmem:[%s11609_s0 + $0x468] sm:$0xff]  ;;  %v163_v32 = vld [vmem:[%s11609_s0 + $0x460] sm:$0xff] }
 0x12a   :  { %v6267_v43 = vpop.eup %6266  ;;  %5395 = vst.msk [vmem:[%s11611_s2 + $0x340] sm:$0xff] %vm5292_vm0, %v6265_v39  ;;  %6282 = vpow2.f32 %v4028_v35  ;;  %v4020_v44 = vmul.f32 1.442695, %v3155_v36  ;;  %v1665_v45 = vsub.f32 %v482_v26, %v7799_v9  ;;  %v2413_v46 = vmul.f32 %v1663_v37, %v1663_v37  ;;  %v502_v26 = vpop.permute.xlu1 %501 }
 0x12b   :  { %v6269_v47 = vpop.eup %6268  ;;  %5402 = vst [vmem:[%s11611_s2 + $0x378] sm:$0xff] %v6267_v43  ;;  %6284 = vpow2.f32 %v4018_v41  ;;  %v4022_v48 = vmul.f32 1.442695, %v3156_v40  ;;  %v2414_v49 = vmul.f32 %v1664_v42, %v1664_v42  ;;  %v1660_v50 = vsub.f32 %v477_v38, %v7795_v7 }
 0x12c   :  { %v6271_v52 = vpop.eup %6270  ;;  %5403 = vst [vmem:[%s11611_s2 + $0x380] sm:$0xff] %v6269_v47  ;;  %6286 = vpow2.f32 %v4020_v44  ;;  %v2415_v53 = vmul.f32 %v1665_v45, %v1665_v45  ;;  %v3163_v54 = vmul.f32 -10.0, %v2413_v46  ;;  %v1661_v55 = vsub.f32 %v477_v38, %v7797_v8  ;;  %981 = vperm.xlu1 %6049, %v164_v31   ;;  %v497_v46 = vpop.permute.xlu0 %496 }
 0x12d   :  { %5404 = vst.msk [vmem:[%s11611_s2 + $0x388] sm:$0xff] %vm5292_vm0, %v6271_v52  ;;  %6288 = vpow2.f32 %v4022_v48  ;;  %v3164_v58 = vmul.f32 -10.0, %v2414_v49  ;;  %v1662_v59 = vsub.f32 %v477_v38, %v7799_v9  ;;  %v2410_v60 = vmul.f32 %v1660_v50, %v1660_v50  ;;  %976 = vperm.xlu0 %6048, %v163_v32  }
 0x12e   :  { %v3165_v61 = vmul.f32 -10.0, %v2415_v53  ;;  %v4036_v62 = vmul.f32 1.442695, %v3163_v54  ;;  %v2411_v63 = vmul.f32 %v1661_v55, %v1661_v55  ;;  %v1669_v0 = vsub.f32 %v492_v51, %v7795_v7 }
 0x12f   :  { %v6273_v1 = vpop.eup %6272  ;;  %v4038_v2 = vmul.f32 1.442695, %v3164_v58  ;;  %v2412_v3 = vmul.f32 %v1662_v59, %v1662_v59  ;;  %v3160_v4 = vmul.f32 -10.0, %v2410_v60  ;;  %v1670_v5 = vsub.f32 %v492_v51, %v7797_v8  ;;  %v166_v58 = vld [vmem:[%s11609_s0 + $0x478] sm:$0xff]  ;;  %v165_v59 = vld [vmem:[%s11609_s0 + $0x470] sm:$0xff] }
 0x130   :  { %v6275_v6 = vpop.eup %6274  ;;  %5399 = vst [vmem:[%s11611_s2 + $0x360] sm:$0xff] %v6273_v1  ;;  %6290 = vpow2.f32 %v4036_v62  ;;  %v4040_v10 = vmul.f32 1.442695, %v3165_v61  ;;  %v3161_v11 = vmul.f32 -10.0, %v2411_v63  ;;  %v1671_v12 = vsub.f32 %v492_v51, %v7799_v9  ;;  %991 = vperm.xlu1 %6049, %v166_v58  }
 0x131   :  { %v6277_v14 = vpop.eup %6276  ;;  %5400 = vst [vmem:[%s11611_s2 + $0x368] sm:$0xff] %v6275_v6  ;;  %6292 = vpow2.f32 %v4038_v2  ;;  %v3162_v15 = vmul.f32 -10.0, %v2412_v3  ;;  %v4030_v16 = vmul.f32 1.442695, %v3160_v4  ;;  %v2419_v17 = vmul.f32 %v1669_v0, %v1669_v0  ;;  %v512_v0 = vpop.permute.xlu1 %511  ;;  %986 = vperm.xlu0 %6048, %v165_v59  }
 0x132   :  { %v6279_v18 = vpop.eup %6278  ;;  %5401 = vst.msk [vmem:[%s11611_s2 + $0x370] sm:$0xff] %vm5292_vm0, %v6277_v14  ;;  %6294 = vpow2.f32 %v4040_v10  ;;  %v4032_v19 = vmul.f32 1.442695, %v3161_v11  ;;  %v2420_v20 = vmul.f32 %v1670_v5, %v1670_v5  ;;  %v2421_v21 = vmul.f32 %v1671_v12, %v1671_v12 }
 0x133   :  { %v6281_v22 = vpop.eup %6280  ;;  %5408 = vst [vmem:[%s11611_s2 + $0x3a8] sm:$0xff] %v6279_v18  ;;  %6296 = vpow2.f32 %v4030_v16  ;;  %v4034_v23 = vmul.f32 1.442695, %v3162_v15  ;;  %v3169_v24 = vmul.f32 -10.0, %v2419_v17  ;;  %v1666_v25 = vsub.f32 %v487_v13, %v7795_v7  ;;  %v507_v16 = vpop.permute.xlu0 %506 }
 0x134   :  { %v6283_v27 = vpop.eup %6282  ;;  %5409 = vst [vmem:[%s11611_s2 + $0x3b0] sm:$0xff] %v6281_v22  ;;  %6298 = vpow2.f32 %v4032_v19  ;;  %v3170_v28 = vmul.f32 -10.0, %v2420_v20  ;;  %v3171_v29 = vmul.f32 -10.0, %v2421_v21  ;;  %v1667_v30 = vsub.f32 %v487_v13, %v7797_v8 }
 0x135   :  { %v6285_v33 = vpop.eup %6284  ;;  %5410 = vst.msk [vmem:[%s11611_s2 + $0x3b8] sm:$0xff] %vm5292_vm0, %v6283_v27  ;;  %6300 = vpow2.f32 %v4034_v23  ;;  %v4048_v34 = vmul.f32 1.442695, %v3169_v24  ;;  %v1668_v35 = vsub.f32 %v487_v13, %v7799_v9  ;;  %v2416_v36 = vmul.f32 %v1666_v25, %v1666_v25 }
 0x136   :  { %v6287_v37 = vpop.eup %6286  ;;  %5405 = vst [vmem:[%s11611_s2 + $0x390] sm:$0xff] %v6285_v33  ;;  %v4050_v38 = vmul.f32 1.442695, %v3170_v28  ;;  %v4052_v39 = vmul.f32 1.442695, %v3171_v29  ;;  %v2417_v40 = vmul.f32 %v1667_v30, %v1667_v30  ;;  %v1675_v41 = vsub.f32 %v502_v26, %v7795_v7 }
 0x137   :  { %v6289_v42 = vpop.eup %6288  ;;  %5406 = vst [vmem:[%s11611_s2 + $0x398] sm:$0xff] %v6287_v37  ;;  %6302 = vpow2.f32 %v4048_v34  ;;  %v2418_v43 = vmul.f32 %v1668_v35, %v1668_v35  ;;  %v3166_v44 = vmul.f32 -10.0, %v2416_v36  ;;  %v1676_v45 = vsub.f32 %v502_v26, %v7797_v8  ;;  %v168_v34 = vld [vmem:[%s11609_s0 + $0x488] sm:$0xff]  ;;  %v167_v35 = vld [vmem:[%s11609_s0 + $0x480] sm:$0xff] }
 0x138   :  { %5407 = vst.msk [vmem:[%s11611_s2 + $0x3a0] sm:$0xff] %vm5292_vm0, %v6289_v42  ;;  %6304 = vpow2.f32 %v4050_v38  ;;  %v3167_v47 = vmul.f32 -10.0, %v2417_v40  ;;  %v1677_v48 = vsub.f32 %v502_v26, %v7799_v9  ;;  %v2425_v49 = vmul.f32 %v1675_v41, %v1675_v41  ;;  %v522_v40 = vpop.permute.xlu1 %521  ;;  %1001 = vperm.xlu1 %6049, %v168_v34   ;;  %996 = vperm.xlu0 %6048, %v167_v35  }
 0x139   :  { %6306 = vpow2.f32 %v4052_v39  ;;  %v3168_v50 = vmul.f32 -10.0, %v2418_v43  ;;  %v4042_v51 = vmul.f32 1.442695, %v3166_v44  ;;  %v2426_v52 = vmul.f32 %v1676_v45, %v1676_v45 }
 0x13a   :  { %v6291_v53 = vpop.eup %6290  ;;  %v4044_v54 = vmul.f32 1.442695, %v3167_v47  ;;  %v2427_v55 = vmul.f32 %v1677_v48, %v1677_v48  ;;  %v3175_v56 = vmul.f32 -10.0, %v2425_v49  ;;  %v1672_v57 = vsub.f32 %v497_v46, %v7795_v7 }
 0x13b   :  { %v6293_v60 = vpop.eup %6292  ;;  %5414 = vst [vmem:[%s11611_s2 + $0x3d8] sm:$0xff] %v6291_v53  ;;  %6308 = vpow2.f32 %v4042_v51  ;;  %v4046_v61 = vmul.f32 1.442695, %v3168_v50  ;;  %v3176_v62 = vmul.f32 -10.0, %v2426_v52  ;;  %v1673_v63 = vsub.f32 %v497_v46, %v7797_v8  ;;  %v517_v52 = vpop.permute.xlu0 %516 }
 0x13c   :  { %v6295_v1 = vpop.eup %6294  ;;  %5415 = vst [vmem:[%s11611_s2 + $0x3e0] sm:$0xff] %v6293_v60  ;;  %6310 = vpow2.f32 %v4044_v54  ;;  %v3177_v2 = vmul.f32 -10.0, %v2427_v55  ;;  %v4060_v3 = vmul.f32 1.442695, %v3175_v56  ;;  %v1674_v4 = vsub.f32 %v497_v46, %v7799_v9 }
 0x13d   :  { %v6297_v5 = vpop.eup %6296  ;;  %5416 = vst.msk [vmem:[%s11611_s2 + $0x3e8] sm:$0xff] %vm5292_vm0, %v6295_v1  ;;  %6312 = vpow2.f32 %v4046_v61  ;;  %v4062_v6 = vmul.f32 1.442695, %v3176_v62  ;;  %v2422_v10 = vmul.f32 %v1672_v57, %v1672_v57  ;;  %v2423_v11 = vmul.f32 %v1673_v63, %v1673_v63  ;;  %v532_v1 = vpop.permute.xlu1 %531 }
 0x13e   :  { %v6299_v12 = vpop.eup %6298  ;;  %5411 = vst [vmem:[%s11611_s2 + $0x3c0] sm:$0xff] %v6297_v5  ;;  %6314 = vpow2.f32 %v4060_v3  ;;  %v4064_v13 = vmul.f32 1.442695, %v3177_v2  ;;  %v2424_v14 = vmul.f32 %v1674_v4, %v1674_v4  ;;  %v1681_v15 = vsub.f32 %v512_v0, %v7795_v7 }
 0x13f   :  { %v6301_v17 = vpop.eup %6300  ;;  %5412 = vst [vmem:[%s11611_s2 + $0x3c8] sm:$0xff] %v6299_v12  ;;  %6316 = vpow2.f32 %v4062_v6  ;;  %v3172_v18 = vmul.f32 -10.0, %v2422_v10  ;;  %v3173_v19 = vmul.f32 -10.0, %v2423_v11  ;;  %v1682_v20 = vsub.f32 %v512_v0, %v7797_v8  ;;  %v170_v6 = vld [vmem:[%s11609_s0 + $0x498] sm:$0xff]  ;;  %v169_v10 = vld [vmem:[%s11609_s0 + $0x490] sm:$0xff] }
 0x140   :  { %5413 = vst.msk [vmem:[%s11611_s2 + $0x3d0] sm:$0xff] %vm5292_vm0, %v6301_v17  ;;  %6318 = vpow2.f32 %v4064_v13  ;;  %v3174_v21 = vmul.f32 -10.0, %v2424_v14  ;;  %v1683_v22 = vsub.f32 %v512_v0, %v7799_v9  ;;  %v2431_v23 = vmul.f32 %v1681_v15, %v1681_v15  ;;  %1011 = vperm.xlu1 %6049, %v170_v6   ;;  %1006 = vperm.xlu0 %6048, %v169_v10  }
 0x141   :  { %v6303_v24 = vpop.eup %6302  ;;  %v4054_v25 = vmul.f32 1.442695, %v3172_v18  ;;  %v4056_v26 = vmul.f32 1.442695, %v3173_v19  ;;  %v2432_v27 = vmul.f32 %v1682_v20, %v1682_v20  ;;  %v1678_v28 = vsub.f32 %v507_v16, %v7795_v7 }
 0x142   :  { %v6305_v29 = vpop.eup %6304  ;;  %5420 = vst [vmem:[%s11611_s2 + $0x408] sm:$0xff] %v6303_v24  ;;  %v4058_v30 = vmul.f32 1.442695, %v3174_v21  ;;  %v2433_v31 = vmul.f32 %v1683_v22, %v1683_v22  ;;  %v3181_v32 = vmul.f32 -10.0, %v2431_v23  ;;  %v1679_v33 = vsub.f32 %v507_v16, %v7797_v8 }
 0x143   :  { %v6307_v36 = vpop.eup %6306  ;;  %5421 = vst [vmem:[%s11611_s2 + $0x410] sm:$0xff] %v6305_v29  ;;  %6320 = vpow2.f32 %v4054_v25  ;;  %v3182_v37 = vmul.f32 -10.0, %v2432_v27  ;;  %v1680_v38 = vsub.f32 %v507_v16, %v7799_v9  ;;  %v2428_v39 = vmul.f32 %v1678_v28, %v1678_v28  ;;  %v527_v27 = vpop.permute.xlu0 %526 }
 0x144   :  { %5422 = vst.msk [vmem:[%s11611_s2 + $0x418] sm:$0xff] %vm5292_vm0, %v6307_v36  ;;  %6322 = vpow2.f32 %v4056_v26  ;;  %v3183_v41 = vmul.f32 -10.0, %v2433_v31  ;;  %v4072_v42 = vmul.f32 1.442695, %v3181_v32  ;;  %v2429_v43 = vmul.f32 %v1679_v33, %v1679_v33 }
 0x145   :  { %v6309_v44 = vpop.eup %6308  ;;  %6324 = vpow2.f32 %v4058_v30  ;;  %v4074_v45 = vmul.f32 1.442695, %v3182_v37  ;;  %v2430_v46 = vmul.f32 %v1680_v38, %v1680_v38  ;;  %v3178_v47 = vmul.f32 -10.0, %v2428_v39 }
 0x146   :  { %v6311_v48 = vpop.eup %6310  ;;  %5417 = vst [vmem:[%s11611_s2 + $0x3f0] sm:$0xff] %v6309_v44  ;;  %6326 = vpow2.f32 %v4072_v42  ;;  %v4076_v49 = vmul.f32 1.442695, %v3183_v41  ;;  %v3179_v50 = vmul.f32 -10.0, %v2429_v43  ;;  %v1687_v51 = vsub.f32 %v522_v40, %v7795_v7 }
 0x147   :  { %v6313_v53 = vpop.eup %6312  ;;  %5418 = vst [vmem:[%s11611_s2 + $0x3f8] sm:$0xff] %v6311_v48  ;;  %6328 = vpow2.f32 %v4074_v45  ;;  %v3180_v54 = vmul.f32 -10.0, %v2430_v46  ;;  %v4066_v55 = vmul.f32 1.442695, %v3178_v47  ;;  %v1688_v56 = vsub.f32 %v522_v40, %v7797_v8  ;;  %v172_v45 = vld [vmem:[%s11609_s0 + $0x4a8] sm:$0xff]  ;;  %v171_v46 = vld [vmem:[%s11609_s0 + $0x4a0] sm:$0xff] }
 0x148   :  { %v6315_v57 = vpop.eup %6314  ;;  %5419 = vst.msk [vmem:[%s11611_s2 + $0x400] sm:$0xff] %vm5292_vm0, %v6313_v53  ;;  %6330 = vpow2.f32 %v4076_v49  ;;  %v4068_v58 = vmul.f32 1.442695, %v3179_v50  ;;  %v1689_v59 = vsub.f32 %v522_v40, %v7799_v9  ;;  %v2437_v60 = vmul.f32 %v1687_v51, %v1687_v51  ;;  %v542_v40 = vpop.permute.xlu1 %541  ;;  %1021 = vperm.xlu1 %6049, %v172_v45   ;;  %1016 = vperm.xlu0 %6048, %v171_v46  }
 0x149   :  { %v6317_v61 = vpop.eup %6316  ;;  %5426 = vst [vmem:[%s11611_s2 + $0x438] sm:$0xff] %v6315_v57  ;;  %6332 = vpow2.f32 %v4066_v55  ;;  %v4070_v62 = vmul.f32 1.442695, %v3180_v54  ;;  %v2438_v63 = vmul.f32 %v1688_v56, %v1688_v56  ;;  %v1684_v0 = vsub.f32 %v517_v52, %v7795_v7 }
 0x14a   :  { %v6319_v2 = vpop.eup %6318  ;;  %5427 = vst [vmem:[%s11611_s2 + $0x440] sm:$0xff] %v6317_v61  ;;  %6334 = vpow2.f32 %v4068_v58  ;;  %v2439_v3 = vmul.f32 %v1689_v59, %v1689_v59  ;;  %v3187_v4 = vmul.f32 -10.0, %v2437_v60  ;;  %v1685_v5 = vsub.f32 %v517_v52, %v7797_v8  ;;  %v537_v60 = vpop.permute.xlu0 %536 }
 0x14b   :  { %5428 = vst.msk [vmem:[%s11611_s2 + $0x448] sm:$0xff] %vm5292_vm0, %v6319_v2  ;;  %6336 = vpow2.f32 %v4070_v62  ;;  %v3188_v11 = vmul.f32 -10.0, %v2438_v63  ;;  %v1686_v12 = vsub.f32 %v517_v52, %v7799_v9  ;;  %v2434_v13 = vmul.f32 %v1684_v0, %v1684_v0 }
 0x14c   :  { %v3189_v14 = vmul.f32 -10.0, %v2439_v3  ;;  %v4084_v15 = vmul.f32 1.442695, %v3187_v4  ;;  %v2435_v16 = vmul.f32 %v1685_v5, %v1685_v5  ;;  %v1693_v17 = vsub.f32 %v532_v1, %v7795_v7 }
 0x14d   :  { %v6321_v18 = vpop.eup %6320  ;;  %v4086_v19 = vmul.f32 1.442695, %v3188_v11  ;;  %v2436_v20 = vmul.f32 %v1686_v12, %v1686_v12  ;;  %v3184_v21 = vmul.f32 -10.0, %v2434_v13  ;;  %v1694_v22 = vsub.f32 %v532_v1, %v7797_v8  ;;  %v174_v11 = vld [vmem:[%s11609_s0 + $0x4b8] sm:$0xff]  ;;  %v173_v12 = vld [vmem:[%s11609_s0 + $0x4b0] sm:$0xff] }
 0x14e   :  { %v6323_v23 = vpop.eup %6322  ;;  %5423 = vst [vmem:[%s11611_s2 + $0x420] sm:$0xff] %v6321_v18  ;;  %6338 = vpow2.f32 %v4084_v15  ;;  %v4088_v24 = vmul.f32 1.442695, %v3189_v14  ;;  %v3185_v25 = vmul.f32 -10.0, %v2435_v16  ;;  %v1695_v26 = vsub.f32 %v532_v1, %v7799_v9  ;;  %1031 = vperm.xlu1 %6049, %v174_v11   ;;  %1026 = vperm.xlu0 %6048, %v173_v12  }
 0x14f   :  { %v6325_v28 = vpop.eup %6324  ;;  %5424 = vst [vmem:[%s11611_s2 + $0x428] sm:$0xff] %v6323_v23  ;;  %6340 = vpow2.f32 %v4086_v19  ;;  %v3186_v29 = vmul.f32 -10.0, %v2436_v20  ;;  %v4078_v30 = vmul.f32 1.442695, %v3184_v21  ;;  %v2443_v31 = vmul.f32 %v1693_v17, %v1693_v17  ;;  %v552_v17 = vpop.permute.xlu1 %551 }
 0x150   :  { %v6327_v32 = vpop.eup %6326  ;;  %5425 = vst.msk [vmem:[%s11611_s2 + $0x430] sm:$0xff] %vm5292_vm0, %v6325_v28  ;;  %6342 = vpow2.f32 %v4088_v24  ;;  %v4080_v33 = vmul.f32 1.442695, %v3185_v25  ;;  %v2444_v34 = vmul.f32 %v1694_v22, %v1694_v22  ;;  %v2445_v35 = vmul.f32 %v1695_v26, %v1695_v26 }
 0x151   :  { %v6329_v36 = vpop.eup %6328  ;;  %5432 = vst [vmem:[%s11611_s2 + $0x468] sm:$0xff] %v6327_v32  ;;  %6344 = vpow2.f32 %v4078_v30  ;;  %v4082_v37 = vmul.f32 1.442695, %v3186_v29  ;;  %v3193_v38 = vmul.f32 -10.0, %v2443_v31  ;;  %v1690_v39 = vsub.f32 %v527_v27, %v7795_v7  ;;  %v547_v30 = vpop.permute.xlu0 %546 }
 0x152   :  { %v6331_v41 = vpop.eup %6330  ;;  %5433 = vst [vmem:[%s11611_s2 + $0x470] sm:$0xff] %v6329_v36  ;;  %6346 = vpow2.f32 %v4080_v33  ;;  %v3194_v42 = vmul.f32 -10.0, %v2444_v34  ;;  %v3195_v43 = vmul.f32 -10.0, %v2445_v35  ;;  %v1691_v44 = vsub.f32 %v527_v27, %v7797_v8 }
 0x153   :  { %v6333_v47 = vpop.eup %6332  ;;  %5434 = vst.msk [vmem:[%s11611_s2 + $0x478] sm:$0xff] %vm5292_vm0, %v6331_v41  ;;  %6348 = vpow2.f32 %v4082_v37  ;;  %v4096_v48 = vmul.f32 1.442695, %v3193_v38  ;;  %v1692_v49 = vsub.f32 %v527_v27, %v7799_v9  ;;  %v2440_v50 = vmul.f32 %v1690_v39, %v1690_v39 }
 0x154   :  { %v6335_v51 = vpop.eup %6334  ;;  %5429 = vst [vmem:[%s11611_s2 + $0x450] sm:$0xff] %v6333_v47  ;;  %v4098_v52 = vmul.f32 1.442695, %v3194_v42  ;;  %v4100_v53 = vmul.f32 1.442695, %v3195_v43  ;;  %v2441_v54 = vmul.f32 %v1691_v44, %v1691_v44  ;;  %v1699_v55 = vsub.f32 %v542_v40, %v7795_v7 }
 0x155   :  { %v6337_v56 = vpop.eup %6336  ;;  %5430 = vst [vmem:[%s11611_s2 + $0x458] sm:$0xff] %v6335_v51  ;;  %6350 = vpow2.f32 %v4096_v48  ;;  %v2442_v57 = vmul.f32 %v1692_v49, %v1692_v49  ;;  %v3190_v58 = vmul.f32 -10.0, %v2440_v50  ;;  %v1700_v59 = vsub.f32 %v542_v40, %v7797_v8  ;;  %v176_v48 = vld [vmem:[%s11609_s0 + $0x4c8] sm:$0xff]  ;;  %v175_v49 = vld [vmem:[%s11609_s0 + $0x4c0] sm:$0xff] }
 0x156   :  { %5431 = vst.msk [vmem:[%s11611_s2 + $0x460] sm:$0xff] %vm5292_vm0, %v6337_v56  ;;  %6352 = vpow2.f32 %v4098_v52  ;;  %v3191_v61 = vmul.f32 -10.0, %v2441_v54  ;;  %v1701_v62 = vsub.f32 %v542_v40, %v7799_v9  ;;  %v2449_v63 = vmul.f32 %v1699_v55, %v1699_v55  ;;  %v562_v54 = vpop.permute.xlu1 %561  ;;  %1041 = vperm.xlu1 %6049, %v176_v48   ;;  %1036 = vperm.xlu0 %6048, %v175_v49  }
 0x157   :  { %6354 = vpow2.f32 %v4100_v53  ;;  %v3192_v0 = vmul.f32 -10.0, %v2442_v57  ;;  %v4090_v1 = vmul.f32 1.442695, %v3190_v58  ;;  %v2450_v2 = vmul.f32 %v1700_v59, %v1700_v59 }
 0x158   :  { %v6339_v3 = vpop.eup %6338  ;;  %v4092_v4 = vmul.f32 1.442695, %v3191_v61  ;;  %v2451_v5 = vmul.f32 %v1701_v62, %v1701_v62  ;;  %v3199_v6 = vmul.f32 -10.0, %v2449_v63  ;;  %v1696_v10 = vsub.f32 %v537_v60, %v7795_v7 }
 0x159   :  { %v6341_v13 = vpop.eup %6340  ;;  %5438 = vst [vmem:[%s11611_s2 + $0x498] sm:$0xff] %v6339_v3  ;;  %6356 = vpow2.f32 %v4090_v1  ;;  %v4094_v14 = vmul.f32 1.442695, %v3192_v0  ;;  %v3200_v15 = vmul.f32 -10.0, %v2450_v2  ;;  %v1697_v16 = vsub.f32 %v537_v60, %v7797_v8  ;;  %v557_v2 = vpop.permute.xlu0 %556 }
 0x15a   :  { %v6343_v18 = vpop.eup %6342  ;;  %5439 = vst [vmem:[%s11611_s2 + $0x4a0] sm:$0xff] %v6341_v13  ;;  %6358 = vpow2.f32 %v4092_v4  ;;  %v3201_v19 = vmul.f32 -10.0, %v2451_v5  ;;  %v4108_v20 = vmul.f32 1.442695, %v3199_v6  ;;  %v1698_v21 = vsub.f32 %v537_v60, %v7799_v9 }
 0x15b   :  { %v6345_v22 = vpop.eup %6344  ;;  %5440 = vst.msk [vmem:[%s11611_s2 + $0x4a8] sm:$0xff] %vm5292_vm0, %v6343_v18  ;;  %6360 = vpow2.f32 %v4094_v14  ;;  %v4110_v23 = vmul.f32 1.442695, %v3200_v15  ;;  %v2446_v24 = vmul.f32 %v1696_v10, %v1696_v10  ;;  %v2447_v25 = vmul.f32 %v1697_v16, %v1697_v16  ;;  %v572_v18 = vpop.permute.xlu1 %571 }
 0x15c   :  { %v6347_v26 = vpop.eup %6346  ;;  %5435 = vst [vmem:[%s11611_s2 + $0x480] sm:$0xff] %v6345_v22  ;;  %6362 = vpow2.f32 %v4108_v20  ;;  %v4112_v27 = vmul.f32 1.442695, %v3201_v19  ;;  %v2448_v28 = vmul.f32 %v1698_v21, %v1698_v21  ;;  %v1705_v29 = vsub.f32 %v552_v17, %v7795_v7 }
 0x15d   :  { %v6349_v31 = vpop.eup %6348  ;;  %5436 = vst [vmem:[%s11611_s2 + $0x488] sm:$0xff] %v6347_v26  ;;  %6364 = vpow2.f32 %v4110_v23  ;;  %v3196_v32 = vmul.f32 -10.0, %v2446_v24  ;;  %v3197_v33 = vmul.f32 -10.0, %v2447_v25  ;;  %v1706_v34 = vsub.f32 %v552_v17, %v7797_v8  ;;  %v178_v23 = vld [vmem:[%s11609_s0 + $0x4d8] sm:$0xff]  ;;  %v177_v24 = vld [vmem:[%s11609_s0 + $0x4d0] sm:$0xff] }
 0x15e   :  { %5437 = vst.msk [vmem:[%s11611_s2 + $0x490] sm:$0xff] %vm5292_vm0, %v6349_v31  ;;  %6366 = vpow2.f32 %v4112_v27  ;;  %v3198_v35 = vmul.f32 -10.0, %v2448_v28  ;;  %v1707_v36 = vsub.f32 %v552_v17, %v7799_v9  ;;  %v2455_v37 = vmul.f32 %v1705_v29, %v1705_v29  ;;  %1051 = vperm.xlu1 %6049, %v178_v23   ;;  %1046 = vperm.xlu0 %6048, %v177_v24  }
 0x15f   :  { %v6351_v38 = vpop.eup %6350  ;;  %v4102_v39 = vmul.f32 1.442695, %v3196_v32  ;;  %v4104_v40 = vmul.f32 1.442695, %v3197_v33  ;;  %v2456_v41 = vmul.f32 %v1706_v34, %v1706_v34  ;;  %v1702_v42 = vsub.f32 %v547_v30, %v7795_v7 }
 0x160   :  { %v6353_v43 = vpop.eup %6352  ;;  %5444 = vst [vmem:[%s11611_s2 + $0x4c8] sm:$0xff] %v6351_v38  ;;  %v4106_v44 = vmul.f32 1.442695, %v3198_v35  ;;  %v2457_v45 = vmul.f32 %v1707_v36, %v1707_v36  ;;  %v3205_v46 = vmul.f32 -10.0, %v2455_v37  ;;  %v1703_v47 = vsub.f32 %v547_v30, %v7797_v8 }
 0x161   :  { %v6355_v50 = vpop.eup %6354  ;;  %5445 = vst [vmem:[%s11611_s2 + $0x4d0] sm:$0xff] %v6353_v43  ;;  %6368 = vpow2.f32 %v4102_v39  ;;  %v3206_v51 = vmul.f32 -10.0, %v2456_v41  ;;  %v1704_v52 = vsub.f32 %v547_v30, %v7799_v9  ;;  %v2452_v53 = vmul.f32 %v1702_v42, %v1702_v42  ;;  %v567_v41 = vpop.permute.xlu0 %566 }
 0x162   :  { %5446 = vst.msk [vmem:[%s11611_s2 + $0x4d8] sm:$0xff] %vm5292_vm0, %v6355_v50  ;;  %6370 = vpow2.f32 %v4104_v40  ;;  %v3207_v55 = vmul.f32 -10.0, %v2457_v45  ;;  %v4120_v56 = vmul.f32 1.442695, %v3205_v46  ;;  %v2453_v57 = vmul.f32 %v1703_v47, %v1703_v47 }
 0x163   :  { %v6357_v58 = vpop.eup %6356  ;;  %6372 = vpow2.f32 %v4106_v44  ;;  %v4122_v59 = vmul.f32 1.442695, %v3206_v51  ;;  %v2454_v60 = vmul.f32 %v1704_v52, %v1704_v52  ;;  %v3202_v61 = vmul.f32 -10.0, %v2452_v53 }
 0x164   :  { %v6359_v62 = vpop.eup %6358  ;;  %5441 = vst [vmem:[%s11611_s2 + $0x4b0] sm:$0xff] %v6357_v58  ;;  %6374 = vpow2.f32 %v4120_v56  ;;  %v4124_v63 = vmul.f32 1.442695, %v3207_v55  ;;  %v3203_v0 = vmul.f32 -10.0, %v2453_v57  ;;  %v1711_v1 = vsub.f32 %v562_v54, %v7795_v7 }
 0x165   :  { %v6361_v3 = vpop.eup %6360  ;;  %5442 = vst [vmem:[%s11611_s2 + $0x4b8] sm:$0xff] %v6359_v62  ;;  %6376 = vpow2.f32 %v4122_v59  ;;  %v3204_v4 = vmul.f32 -10.0, %v2454_v60  ;;  %v4114_v5 = vmul.f32 1.442695, %v3202_v61  ;;  %v1712_v6 = vsub.f32 %v562_v54, %v7797_v8  ;;  %v180_v59 = vld [vmem:[%s11609_s0 + $0x4e8] sm:$0xff]  ;;  %v179_v60 = vld [vmem:[%s11609_s0 + $0x4e0] sm:$0xff] }
 0x166   :  { %v6363_v10 = vpop.eup %6362  ;;  %5443 = vst.msk [vmem:[%s11611_s2 + $0x4c0] sm:$0xff] %vm5292_vm0, %v6361_v3  ;;  %6378 = vpow2.f32 %v4124_v63  ;;  %v4116_v11 = vmul.f32 1.442695, %v3203_v0  ;;  %v1713_v12 = vsub.f32 %v562_v54, %v7799_v9  ;;  %v2461_v13 = vmul.f32 %v1711_v1, %v1711_v1  ;;  %v582_v54 = vpop.permute.xlu1 %581  ;;  %1061 = vperm.xlu1 %6049, %v180_v59   ;;  %1056 = vperm.xlu0 %6048, %v179_v60  }
 0x167   :  { %v6365_v14 = vpop.eup %6364  ;;  %5450 = vst [vmem:[%s11611_s2 + $0x4f8] sm:$0xff] %v6363_v10  ;;  %6380 = vpow2.f32 %v4114_v5  ;;  %v4118_v15 = vmul.f32 1.442695, %v3204_v4  ;;  %v2462_v16 = vmul.f32 %v1712_v6, %v1712_v6  ;;  %v1708_v17 = vsub.f32 %v557_v2, %v7795_v7 }
 0x168   :  { %v6367_v19 = vpop.eup %6366  ;;  %5451 = vst [vmem:[%s11611_s2 + $0x500] sm:$0xff] %v6365_v14  ;;  %6382 = vpow2.f32 %v4116_v11  ;;  %v2463_v20 = vmul.f32 %v1713_v12, %v1713_v12  ;;  %v3211_v21 = vmul.f32 -10.0, %v2461_v13  ;;  %v1709_v22 = vsub.f32 %v557_v2, %v7797_v8  ;;  %v577_v13 = vpop.permute.xlu0 %576 }
 0x169   :  { %5452 = vst.msk [vmem:[%s11611_s2 + $0x508] sm:$0xff] %vm5292_vm0, %v6367_v19  ;;  %6384 = vpow2.f32 %v4118_v15  ;;  %v3212_v25 = vmul.f32 -10.0, %v2462_v16  ;;  %v1710_v26 = vsub.f32 %v557_v2, %v7799_v9  ;;  %v2458_v27 = vmul.f32 %v1708_v17, %v1708_v17 }
 0x16a   :  { %v3213_v28 = vmul.f32 -10.0, %v2463_v20  ;;  %v4132_v29 = vmul.f32 1.442695, %v3211_v21  ;;  %v2459_v30 = vmul.f32 %v1709_v22, %v1709_v22  ;;  %v1717_v31 = vsub.f32 %v572_v18, %v7795_v7 }
 0x16b   :  { %v6369_v32 = vpop.eup %6368  ;;  %v4134_v33 = vmul.f32 1.442695, %v3212_v25  ;;  %v2460_v34 = vmul.f32 %v1710_v26, %v1710_v26  ;;  %v3208_v35 = vmul.f32 -10.0, %v2458_v27  ;;  %v1718_v36 = vsub.f32 %v572_v18, %v7797_v8  ;;  %v182_v25 = vld [vmem:[%s11609_s0 + $0x4f8] sm:$0xff]  ;;  %v181_v26 = vld [vmem:[%s11609_s0 + $0x4f0] sm:$0xff] }
 0x16c   :  { %v6371_v37 = vpop.eup %6370  ;;  %5447 = vst [vmem:[%s11611_s2 + $0x4e0] sm:$0xff] %v6369_v32  ;;  %6386 = vpow2.f32 %v4132_v29  ;;  %v4136_v38 = vmul.f32 1.442695, %v3213_v28  ;;  %v3209_v39 = vmul.f32 -10.0, %v2459_v30  ;;  %v1719_v40 = vsub.f32 %v572_v18, %v7799_v9  ;;  %1071 = vperm.xlu1 %6049, %v182_v25   ;;  %1066 = vperm.xlu0 %6048, %v181_v26  }
 0x16d   :  { %v6373_v42 = vpop.eup %6372  ;;  %5448 = vst [vmem:[%s11611_s2 + $0x4e8] sm:$0xff] %v6371_v37  ;;  %6388 = vpow2.f32 %v4134_v33  ;;  %v3210_v43 = vmul.f32 -10.0, %v2460_v34  ;;  %v4126_v44 = vmul.f32 1.442695, %v3208_v35  ;;  %v2467_v45 = vmul.f32 %v1717_v31, %v1717_v31  ;;  %v592_v31 = vpop.permute.xlu1 %591 }
 0x16e   :  { %v6375_v46 = vpop.eup %6374  ;;  %5449 = vst.msk [vmem:[%s11611_s2 + $0x4f0] sm:$0xff] %vm5292_vm0, %v6373_v42  ;;  %6390 = vpow2.f32 %v4136_v38  ;;  %v4128_v47 = vmul.f32 1.442695, %v3209_v39  ;;  %v2468_v48 = vmul.f32 %v1718_v36, %v1718_v36  ;;  %v2469_v49 = vmul.f32 %v1719_v40, %v1719_v40 }
 0x16f   :  { %v6377_v50 = vpop.eup %6376  ;;  %5456 = vst [vmem:[%s11611_s2 + $0x528] sm:$0xff] %v6375_v46  ;;  %6392 = vpow2.f32 %v4126_v44  ;;  %v4130_v51 = vmul.f32 1.442695, %v3210_v43  ;;  %v3217_v52 = vmul.f32 -10.0, %v2467_v45  ;;  %v1714_v53 = vsub.f32 %v567_v41, %v7795_v7  ;;  %v587_v44 = vpop.permute.xlu0 %586 }
 0x170   :  { %v6379_v55 = vpop.eup %6378  ;;  %5457 = vst [vmem:[%s11611_s2 + $0x530] sm:$0xff] %v6377_v50  ;;  %6394 = vpow2.f32 %v4128_v47  ;;  %v3218_v56 = vmul.f32 -10.0, %v2468_v48  ;;  %v3219_v57 = vmul.f32 -10.0, %v2469_v49  ;;  %v1715_v58 = vsub.f32 %v567_v41, %v7797_v8 }
 0x171   :  { %v6381_v61 = vpop.eup %6380  ;;  %5458 = vst.msk [vmem:[%s11611_s2 + $0x538] sm:$0xff] %vm5292_vm0, %v6379_v55  ;;  %6396 = vpow2.f32 %v4130_v51  ;;  %v4144_v62 = vmul.f32 1.442695, %v3217_v52  ;;  %v1716_v63 = vsub.f32 %v567_v41, %v7799_v9  ;;  %v2464_v0 = vmul.f32 %v1714_v53, %v1714_v53 }
 0x172   :  { %v6383_v1 = vpop.eup %6382  ;;  %5453 = vst [vmem:[%s11611_s2 + $0x510] sm:$0xff] %v6381_v61  ;;  %v4146_v2 = vmul.f32 1.442695, %v3218_v56  ;;  %v4148_v3 = vmul.f32 1.442695, %v3219_v57  ;;  %v2465_v4 = vmul.f32 %v1715_v58, %v1715_v58  ;;  %v1723_v5 = vsub.f32 %v582_v54, %v7795_v7 }
 0x173   :  { %v6385_v6 = vpop.eup %6384  ;;  %5454 = vst [vmem:[%s11611_s2 + $0x518] sm:$0xff] %v6383_v1  ;;  %6398 = vpow2.f32 %v4144_v62  ;;  %v2466_v10 = vmul.f32 %v1716_v63, %v1716_v63  ;;  %v3214_v11 = vmul.f32 -10.0, %v2464_v0  ;;  %v1724_v12 = vsub.f32 %v582_v54, %v7797_v8  ;;  %v184_v62 = vld [vmem:[%s11609_s0 + $0x508] sm:$0xff]  ;;  %v183_v63 = vld [vmem:[%s11609_s0 + $0x500] sm:$0xff] }
 0x174   :  { %5455 = vst.msk [vmem:[%s11611_s2 + $0x520] sm:$0xff] %vm5292_vm0, %v6385_v6  ;;  %6400 = vpow2.f32 %v4146_v2  ;;  %v3215_v14 = vmul.f32 -10.0, %v2465_v4  ;;  %v1725_v15 = vsub.f32 %v582_v54, %v7799_v9  ;;  %v2473_v16 = vmul.f32 %v1723_v5, %v1723_v5  ;;  %v602_v4 = vpop.permute.xlu1 %601  ;;  %1081 = vperm.xlu1 %6049, %v184_v62   ;;  %1076 = vperm.xlu0 %6048, %v183_v63  }
 0x175   :  { %6402 = vpow2.f32 %v4148_v3  ;;  %v3216_v17 = vmul.f32 -10.0, %v2466_v10  ;;  %v4138_v18 = vmul.f32 1.442695, %v3214_v11  ;;  %v2474_v19 = vmul.f32 %v1724_v12, %v1724_v12 }
 0x176   :  { %v6387_v20 = vpop.eup %6386  ;;  %v4140_v21 = vmul.f32 1.442695, %v3215_v14  ;;  %v2475_v22 = vmul.f32 %v1725_v15, %v1725_v15  ;;  %v3223_v23 = vmul.f32 -10.0, %v2473_v16  ;;  %v1720_v24 = vsub.f32 %v577_v13, %v7795_v7 }
 0x177   :  { %v6389_v27 = vpop.eup %6388  ;;  %5462 = vst [vmem:[%s11611_s2 + $0x558] sm:$0xff] %v6387_v20  ;;  %6404 = vpow2.f32 %v4138_v18  ;;  %v4142_v28 = vmul.f32 1.442695, %v3216_v17  ;;  %v3224_v29 = vmul.f32 -10.0, %v2474_v19  ;;  %v1721_v30 = vsub.f32 %v577_v13, %v7797_v8  ;;  %v597_v19 = vpop.permute.xlu0 %596 }
 0x178   :  { %v6391_v32 = vpop.eup %6390  ;;  %5463 = vst [vmem:[%s11611_s2 + $0x560] sm:$0xff] %v6389_v27  ;;  %6406 = vpow2.f32 %v4140_v21  ;;  %v3225_v33 = vmul.f32 -10.0, %v2475_v22  ;;  %v4156_v34 = vmul.f32 1.442695, %v3223_v23  ;;  %v1722_v35 = vsub.f32 %v577_v13, %v7799_v9 }
 0x179   :  { %v6393_v36 = vpop.eup %6392  ;;  %5464 = vst.msk [vmem:[%s11611_s2 + $0x568] sm:$0xff] %vm5292_vm0, %v6391_v32  ;;  %6408 = vpow2.f32 %v4142_v28  ;;  %v4158_v37 = vmul.f32 1.442695, %v3224_v29  ;;  %v2470_v38 = vmul.f32 %v1720_v24, %v1720_v24  ;;  %v2471_v39 = vmul.f32 %v1721_v30, %v1721_v30  ;;  %v612_v32 = vpop.permute.xlu1 %611 }
 0x17a   :  { %v6395_v40 = vpop.eup %6394  ;;  %5459 = vst [vmem:[%s11611_s2 + $0x540] sm:$0xff] %v6393_v36  ;;  %6410 = vpow2.f32 %v4156_v34  ;;  %v4160_v41 = vmul.f32 1.442695, %v3225_v33  ;;  %v2472_v42 = vmul.f32 %v1722_v35, %v1722_v35  ;;  %v1729_v43 = vsub.f32 %v592_v31, %v7795_v7 }
 0x17b   :  { %v6397_v45 = vpop.eup %6396  ;;  %5460 = vst [vmem:[%s11611_s2 + $0x548] sm:$0xff] %v6395_v40  ;;  %6412 = vpow2.f32 %v4158_v37  ;;  %v3220_v46 = vmul.f32 -10.0, %v2470_v38  ;;  %v3221_v47 = vmul.f32 -10.0, %v2471_v39  ;;  %v1730_v48 = vsub.f32 %v592_v31, %v7797_v8  ;;  %v186_v37 = vld [vmem:[%s11609_s0 + $0x518] sm:$0xff]  ;;  %v185_v38 = vld [vmem:[%s11609_s0 + $0x510] sm:$0xff] }
 0x17c   :  { %5461 = vst.msk [vmem:[%s11611_s2 + $0x550] sm:$0xff] %vm5292_vm0, %v6397_v45  ;;  %6414 = vpow2.f32 %v4160_v41  ;;  %v3222_v49 = vmul.f32 -10.0, %v2472_v42  ;;  %v1731_v50 = vsub.f32 %v592_v31, %v7799_v9  ;;  %v2479_v51 = vmul.f32 %v1729_v43, %v1729_v43  ;;  %1091 = vperm.xlu1 %6049, %v186_v37   ;;  %1086 = vperm.xlu0 %6048, %v185_v38  }
 0x17d   :  { %v6399_v52 = vpop.eup %6398  ;;  %v4150_v53 = vmul.f32 1.442695, %v3220_v46  ;;  %v4152_v54 = vmul.f32 1.442695, %v3221_v47  ;;  %v2480_v55 = vmul.f32 %v1730_v48, %v1730_v48  ;;  %v1726_v56 = vsub.f32 %v587_v44, %v7795_v7 }
 0x17e   :  { %v6401_v57 = vpop.eup %6400  ;;  %5468 = vst [vmem:[%s11611_s2 + $0x588] sm:$0xff] %v6399_v52  ;;  %v4154_v58 = vmul.f32 1.442695, %v3222_v49  ;;  %v2481_v59 = vmul.f32 %v1731_v50, %v1731_v50  ;;  %v3229_v60 = vmul.f32 -10.0, %v2479_v51  ;;  %v1727_v61 = vsub.f32 %v587_v44, %v7797_v8 }
 0x17f   :  { %v6403_v0 = vpop.eup %6402  ;;  %5469 = vst [vmem:[%s11611_s2 + $0x590] sm:$0xff] %v6401_v57  ;;  %6416 = vpow2.f32 %v4150_v53  ;;  %v3230_v1 = vmul.f32 -10.0, %v2480_v55  ;;  %v1728_v2 = vsub.f32 %v587_v44, %v7799_v9  ;;  %v2476_v3 = vmul.f32 %v1726_v56, %v1726_v56  ;;  %v607_v55 = vpop.permute.xlu0 %606 }
 0x180   :  { %5470 = vst.msk [vmem:[%s11611_s2 + $0x598] sm:$0xff] %vm5292_vm0, %v6403_v0  ;;  %6418 = vpow2.f32 %v4152_v54  ;;  %v3231_v5 = vmul.f32 -10.0, %v2481_v59  ;;  %v4168_v6 = vmul.f32 1.442695, %v3229_v60  ;;  %v2477_v10 = vmul.f32 %v1727_v61, %v1727_v61 }
 0x181   :  { %v6405_v11 = vpop.eup %6404  ;;  %6420 = vpow2.f32 %v4154_v58  ;;  %v4170_v12 = vmul.f32 1.442695, %v3230_v1  ;;  %v2478_v13 = vmul.f32 %v1728_v2, %v1728_v2  ;;  %v3226_v14 = vmul.f32 -10.0, %v2476_v3 }
 0x182   :  { %v6407_v15 = vpop.eup %6406  ;;  %5465 = vst [vmem:[%s11611_s2 + $0x570] sm:$0xff] %v6405_v11  ;;  %6422 = vpow2.f32 %v4168_v6  ;;  %v4172_v16 = vmul.f32 1.442695, %v3231_v5  ;;  %v3227_v17 = vmul.f32 -10.0, %v2477_v10  ;;  %v1735_v18 = vsub.f32 %v602_v4, %v7795_v7 }
 0x183   :  { %v6409_v20 = vpop.eup %6408  ;;  %5466 = vst [vmem:[%s11611_s2 + $0x578] sm:$0xff] %v6407_v15  ;;  %6424 = vpow2.f32 %v4170_v12  ;;  %v3228_v21 = vmul.f32 -10.0, %v2478_v13  ;;  %v4162_v22 = vmul.f32 1.442695, %v3226_v14  ;;  %v1736_v23 = vsub.f32 %v602_v4, %v7797_v8  ;;  %v188_v12 = vld [vmem:[%s11609_s0 + $0x528] sm:$0xff]  ;;  %v187_v13 = vld [vmem:[%s11609_s0 + $0x520] sm:$0xff] }
 0x184   :  { %v6411_v24 = vpop.eup %6410  ;;  %5467 = vst.msk [vmem:[%s11611_s2 + $0x580] sm:$0xff] %vm5292_vm0, %v6409_v20  ;;  %6426 = vpow2.f32 %v4172_v16  ;;  %v4164_v25 = vmul.f32 1.442695, %v3227_v17  ;;  %v1737_v26 = vsub.f32 %v602_v4, %v7799_v9  ;;  %v2485_v27 = vmul.f32 %v1735_v18, %v1735_v18  ;;  %v622_v4 = vpop.permute.xlu1 %621  ;;  %1101 = vperm.xlu1 %6049, %v188_v12   ;;  %1096 = vperm.xlu0 %6048, %v187_v13  }
 0x185   :  { %v6413_v28 = vpop.eup %6412  ;;  %5474 = vst [vmem:[%s11611_s2 + $0x5b8] sm:$0xff] %v6411_v24  ;;  %6428 = vpow2.f32 %v4162_v22  ;;  %v4166_v29 = vmul.f32 1.442695, %v3228_v21  ;;  %v2486_v30 = vmul.f32 %v1736_v23, %v1736_v23  ;;  %v1732_v31 = vsub.f32 %v597_v19, %v7795_v7 }
 0x186   :  { %v6415_v33 = vpop.eup %6414  ;;  %5475 = vst [vmem:[%s11611_s2 + $0x5c0] sm:$0xff] %v6413_v28  ;;  %6430 = vpow2.f32 %v4164_v25  ;;  %v2487_v34 = vmul.f32 %v1737_v26, %v1737_v26  ;;  %v3235_v35 = vmul.f32 -10.0, %v2485_v27  ;;  %v1733_v36 = vsub.f32 %v597_v19, %v7797_v8  ;;  %v617_v27 = vpop.permute.xlu0 %616 }
 0x187   :  { %5476 = vst.msk [vmem:[%s11611_s2 + $0x5c8] sm:$0xff] %vm5292_vm0, %v6415_v33  ;;  %6432 = vpow2.f32 %v4166_v29  ;;  %v3236_v39 = vmul.f32 -10.0, %v2486_v30  ;;  %v1734_v40 = vsub.f32 %v597_v19, %v7799_v9  ;;  %v2482_v41 = vmul.f32 %v1732_v31, %v1732_v31 }
 0x188   :  { %v3237_v42 = vmul.f32 -10.0, %v2487_v34  ;;  %v4180_v43 = vmul.f32 1.442695, %v3235_v35  ;;  %v2483_v44 = vmul.f32 %v1733_v36, %v1733_v36  ;;  %v1741_v45 = vsub.f32 %v612_v32, %v7795_v7 }
 0x189   :  { %v6417_v46 = vpop.eup %6416  ;;  %v4182_v47 = vmul.f32 1.442695, %v3236_v39  ;;  %v2484_v48 = vmul.f32 %v1734_v40, %v1734_v40  ;;  %v3232_v49 = vmul.f32 -10.0, %v2482_v41  ;;  %v1742_v50 = vsub.f32 %v612_v32, %v7797_v8  ;;  %v190_v39 = vld [vmem:[%s11609_s0 + $0x538] sm:$0xff]  ;;  %v189_v40 = vld [vmem:[%s11609_s0 + $0x530] sm:$0xff] }
 0x18a   :  { %v6419_v51 = vpop.eup %6418  ;;  %5471 = vst [vmem:[%s11611_s2 + $0x5a0] sm:$0xff] %v6417_v46  ;;  %6434 = vpow2.f32 %v4180_v43  ;;  %v4184_v52 = vmul.f32 1.442695, %v3237_v42  ;;  %v3233_v53 = vmul.f32 -10.0, %v2483_v44  ;;  %v1743_v54 = vsub.f32 %v612_v32, %v7799_v9  ;;  %1111 = vperm.xlu1 %6049, %v190_v39   ;;  %1106 = vperm.xlu0 %6048, %v189_v40  }
 0x18b   :  { %v6421_v56 = vpop.eup %6420  ;;  %5472 = vst [vmem:[%s11611_s2 + $0x5a8] sm:$0xff] %v6419_v51  ;;  %6436 = vpow2.f32 %v4182_v47  ;;  %v3234_v57 = vmul.f32 -10.0, %v2484_v48  ;;  %v4174_v58 = vmul.f32 1.442695, %v3232_v49  ;;  %v2491_v59 = vmul.f32 %v1741_v45, %v1741_v45  ;;  %v632_v45 = vpop.permute.xlu1 %631 }
 0x18c   :  { %v6423_v60 = vpop.eup %6422  ;;  %5473 = vst.msk [vmem:[%s11611_s2 + $0x5b0] sm:$0xff] %vm5292_vm0, %v6421_v56  ;;  %6438 = vpow2.f32 %v4184_v52  ;;  %v4176_v61 = vmul.f32 1.442695, %v3233_v53  ;;  %v2492_v62 = vmul.f32 %v1742_v50, %v1742_v50  ;;  %v2493_v63 = vmul.f32 %v1743_v54, %v1743_v54 }
 0x18d   :  { %v6425_v0 = vpop.eup %6424  ;;  %5480 = vst [vmem:[%s11611_s2 + $0x5e8] sm:$0xff] %v6423_v60  ;;  %6440 = vpow2.f32 %v4174_v58  ;;  %v4178_v1 = vmul.f32 1.442695, %v3234_v57  ;;  %v3241_v2 = vmul.f32 -10.0, %v2491_v59  ;;  %v1738_v3 = vsub.f32 %v607_v55, %v7795_v7  ;;  %v627_v58 = vpop.permute.xlu0 %626 }
 0x18e   :  { %v6427_v5 = vpop.eup %6426  ;;  %5481 = vst [vmem:[%s11611_s2 + $0x5f0] sm:$0xff] %v6425_v0  ;;  %6442 = vpow2.f32 %v4176_v61  ;;  %v3242_v6 = vmul.f32 -10.0, %v2492_v62  ;;  %v3243_v10 = vmul.f32 -10.0, %v2493_v63  ;;  %v1739_v11 = vsub.f32 %v607_v55, %v7797_v8 }
 0x18f   :  { %v6429_v14 = vpop.eup %6428  ;;  %5482 = vst.msk [vmem:[%s11611_s2 + $0x5f8] sm:$0xff] %vm5292_vm0, %v6427_v5  ;;  %6444 = vpow2.f32 %v4178_v1  ;;  %v4192_v15 = vmul.f32 1.442695, %v3241_v2  ;;  %v1740_v16 = vsub.f32 %v607_v55, %v7799_v9  ;;  %v2488_v17 = vmul.f32 %v1738_v3, %v1738_v3 }
 0x190   :  { %v6431_v18 = vpop.eup %6430  ;;  %5477 = vst [vmem:[%s11611_s2 + $0x5d0] sm:$0xff] %v6429_v14  ;;  %v4194_v19 = vmul.f32 1.442695, %v3242_v6  ;;  %v4196_v20 = vmul.f32 1.442695, %v3243_v10  ;;  %v2489_v21 = vmul.f32 %v1739_v11, %v1739_v11  ;;  %v1747_v22 = vsub.f32 %v622_v4, %v7795_v7 }
 0x191   :  { %v6433_v23 = vpop.eup %6432  ;;  %5478 = vst [vmem:[%s11611_s2 + $0x5d8] sm:$0xff] %v6431_v18  ;;  %6446 = vpow2.f32 %v4192_v15  ;;  %v2490_v24 = vmul.f32 %v1740_v16, %v1740_v16  ;;  %v3238_v25 = vmul.f32 -10.0, %v2488_v17  ;;  %v1748_v26 = vsub.f32 %v622_v4, %v7797_v8  ;;  %v192_v15 = vld [vmem:[%s11609_s0 + $0x548] sm:$0xff]  ;;  %v191_v16 = vld [vmem:[%s11609_s0 + $0x540] sm:$0xff] }
 0x192   :  { %5479 = vst.msk [vmem:[%s11611_s2 + $0x5e0] sm:$0xff] %vm5292_vm0, %v6433_v23  ;;  %6448 = vpow2.f32 %v4194_v19  ;;  %v3239_v28 = vmul.f32 -10.0, %v2489_v21  ;;  %v1749_v29 = vsub.f32 %v622_v4, %v7799_v9  ;;  %v2497_v30 = vmul.f32 %v1747_v22, %v1747_v22  ;;  %v642_v21 = vpop.permute.xlu1 %641  ;;  %1121 = vperm.xlu1 %6049, %v192_v15   ;;  %1116 = vperm.xlu0 %6048, %v191_v16  }
 0x193   :  { %6450 = vpow2.f32 %v4196_v20  ;;  %v3240_v31 = vmul.f32 -10.0, %v2490_v24  ;;  %v4186_v32 = vmul.f32 1.442695, %v3238_v25  ;;  %v2498_v33 = vmul.f32 %v1748_v26, %v1748_v26 }
 0x194   :  { %v6435_v34 = vpop.eup %6434  ;;  %v4188_v35 = vmul.f32 1.442695, %v3239_v28  ;;  %v2499_v36 = vmul.f32 %v1749_v29, %v1749_v29  ;;  %v3247_v37 = vmul.f32 -10.0, %v2497_v30  ;;  %v1744_v38 = vsub.f32 %v617_v27, %v7795_v7 }
 0x195   :  { %v6437_v41 = vpop.eup %6436  ;;  %5486 = vst [vmem:[%s11611_s2 + $0x618] sm:$0xff] %v6435_v34  ;;  %6452 = vpow2.f32 %v4186_v32  ;;  %v4190_v42 = vmul.f32 1.442695, %v3240_v31  ;;  %v3248_v43 = vmul.f32 -10.0, %v2498_v33  ;;  %v1745_v44 = vsub.f32 %v617_v27, %v7797_v8  ;;  %v637_v33 = vpop.permute.xlu0 %636 }
 0x196   :  { %v6439_v46 = vpop.eup %6438  ;;  %5487 = vst [vmem:[%s11611_s2 + $0x620] sm:$0xff] %v6437_v41  ;;  %6454 = vpow2.f32 %v4188_v35  ;;  %v3249_v47 = vmul.f32 -10.0, %v2499_v36  ;;  %v4204_v48 = vmul.f32 1.442695, %v3247_v37  ;;  %v1746_v49 = vsub.f32 %v617_v27, %v7799_v9 }
 0x197   :  { %v6441_v50 = vpop.eup %6440  ;;  %5488 = vst.msk [vmem:[%s11611_s2 + $0x628] sm:$0xff] %vm5292_vm0, %v6439_v46  ;;  %6456 = vpow2.f32 %v4190_v42  ;;  %v4206_v51 = vmul.f32 1.442695, %v3248_v43  ;;  %v2494_v52 = vmul.f32 %v1744_v38, %v1744_v38  ;;  %v2495_v53 = vmul.f32 %v1745_v44, %v1745_v44  ;;  %v652_v46 = vpop.permute.xlu1 %651 }
 0x198   :  { %v6443_v54 = vpop.eup %6442  ;;  %5483 = vst [vmem:[%s11611_s2 + $0x600] sm:$0xff] %v6441_v50  ;;  %6458 = vpow2.f32 %v4204_v48  ;;  %v4208_v55 = vmul.f32 1.442695, %v3249_v47  ;;  %v2496_v56 = vmul.f32 %v1746_v49, %v1746_v49  ;;  %v1753_v57 = vsub.f32 %v632_v45, %v7795_v7 }
 0x199   :  { %v6445_v59 = vpop.eup %6444  ;;  %5484 = vst [vmem:[%s11611_s2 + $0x608] sm:$0xff] %v6443_v54  ;;  %6460 = vpow2.f32 %v4206_v51  ;;  %v3244_v60 = vmul.f32 -10.0, %v2494_v52  ;;  %v3245_v61 = vmul.f32 -10.0, %v2495_v53  ;;  %v1754_v62 = vsub.f32 %v632_v45, %v7797_v8  ;;  %v194_v51 = vld [vmem:[%s11609_s0 + $0x558] sm:$0xff]  ;;  %v193_v52 = vld [vmem:[%s11609_s0 + $0x550] sm:$0xff] }
 0x19a   :  { %5485 = vst.msk [vmem:[%s11611_s2 + $0x610] sm:$0xff] %vm5292_vm0, %v6445_v59  ;;  %6462 = vpow2.f32 %v4208_v55  ;;  %v3246_v63 = vmul.f32 -10.0, %v2496_v56  ;;  %v1755_v0 = vsub.f32 %v632_v45, %v7799_v9  ;;  %v2503_v1 = vmul.f32 %v1753_v57, %v1753_v57  ;;  %1131 = vperm.xlu1 %6049, %v194_v51   ;;  %1126 = vperm.xlu0 %6048, %v193_v52  }
 0x19b   :  { %v6447_v2 = vpop.eup %6446  ;;  %v4198_v3 = vmul.f32 1.442695, %v3244_v60  ;;  %v4200_v4 = vmul.f32 1.442695, %v3245_v61  ;;  %v2504_v5 = vmul.f32 %v1754_v62, %v1754_v62  ;;  %v1750_v6 = vsub.f32 %v627_v58, %v7795_v7 }
 0x19c   :  { %v6449_v10 = vpop.eup %6448  ;;  %5492 = vst [vmem:[%s11611_s2 + $0x648] sm:$0xff] %v6447_v2  ;;  %v4202_v11 = vmul.f32 1.442695, %v3246_v63  ;;  %v2505_v12 = vmul.f32 %v1755_v0, %v1755_v0  ;;  %v3253_v13 = vmul.f32 -10.0, %v2503_v1  ;;  %v1751_v14 = vsub.f32 %v627_v58, %v7797_v8 }
 0x19d   :  { %v6451_v17 = vpop.eup %6450  ;;  %5493 = vst [vmem:[%s11611_s2 + $0x650] sm:$0xff] %v6449_v10  ;;  %6464 = vpow2.f32 %v4198_v3  ;;  %v3254_v18 = vmul.f32 -10.0, %v2504_v5  ;;  %v1752_v19 = vsub.f32 %v627_v58, %v7799_v9  ;;  %v2500_v20 = vmul.f32 %v1750_v6, %v1750_v6  ;;  %v647_v5 = vpop.permute.xlu0 %646 }
 0x19e   :  { %5494 = vst.msk [vmem:[%s11611_s2 + $0x658] sm:$0xff] %vm5292_vm0, %v6451_v17  ;;  %6466 = vpow2.f32 %v4200_v4  ;;  %v3255_v22 = vmul.f32 -10.0, %v2505_v12  ;;  %v4216_v23 = vmul.f32 1.442695, %v3253_v13  ;;  %v2501_v24 = vmul.f32 %v1751_v14, %v1751_v14 }
 0x19f   :  { %v6453_v25 = vpop.eup %6452  ;;  %6468 = vpow2.f32 %v4202_v11  ;;  %v4218_v26 = vmul.f32 1.442695, %v3254_v18  ;;  %v2502_v27 = vmul.f32 %v1752_v19, %v1752_v19  ;;  %v3250_v28 = vmul.f32 -10.0, %v2500_v20 }
 0x1a0   :  { %v6455_v29 = vpop.eup %6454  ;;  %5489 = vst [vmem:[%s11611_s2 + $0x630] sm:$0xff] %v6453_v25  ;;  %6470 = vpow2.f32 %v4216_v23  ;;  %v4220_v30 = vmul.f32 1.442695, %v3255_v22  ;;  %v3251_v31 = vmul.f32 -10.0, %v2501_v24  ;;  %v1759_v32 = vsub.f32 %v642_v21, %v7795_v7 }
 0x1a1   :  { %v6457_v34 = vpop.eup %6456  ;;  %5490 = vst [vmem:[%s11611_s2 + $0x638] sm:$0xff] %v6455_v29  ;;  %6472 = vpow2.f32 %v4218_v26  ;;  %v3252_v35 = vmul.f32 -10.0, %v2502_v27  ;;  %v4210_v36 = vmul.f32 1.442695, %v3250_v28  ;;  %v1760_v37 = vsub.f32 %v642_v21, %v7797_v8  ;;  %v196_v26 = vld [vmem:[%s11609_s0 + $0x568] sm:$0xff]  ;;  %v195_v27 = vld [vmem:[%s11609_s0 + $0x560] sm:$0xff] }
 0x1a2   :  { %v6459_v38 = vpop.eup %6458  ;;  %5491 = vst.msk [vmem:[%s11611_s2 + $0x640] sm:$0xff] %vm5292_vm0, %v6457_v34  ;;  %6474 = vpow2.f32 %v4220_v30  ;;  %v4212_v39 = vmul.f32 1.442695, %v3251_v31  ;;  %v1761_v40 = vsub.f32 %v642_v21, %v7799_v9  ;;  %v2509_v41 = vmul.f32 %v1759_v32, %v1759_v32  ;;  %v662_v21 = vpop.permute.xlu1 %661  ;;  %1141 = vperm.xlu1 %6049, %v196_v26   ;;  %1136 = vperm.xlu0 %6048, %v195_v27  }
 0x1a3   :  { %v6461_v42 = vpop.eup %6460  ;;  %5498 = vst [vmem:[%s11611_s2 + $0x678] sm:$0xff] %v6459_v38  ;;  %6476 = vpow2.f32 %v4210_v36  ;;  %v4214_v43 = vmul.f32 1.442695, %v3252_v35  ;;  %v2510_v44 = vmul.f32 %v1760_v37, %v1760_v37  ;;  %v1756_v45 = vsub.f32 %v637_v33, %v7795_v7 }
 0x1a4   :  { %v6463_v47 = vpop.eup %6462  ;;  %5499 = vst [vmem:[%s11611_s2 + $0x680] sm:$0xff] %v6461_v42  ;;  %6478 = vpow2.f32 %v4212_v39  ;;  %v2511_v48 = vmul.f32 %v1761_v40, %v1761_v40  ;;  %v3259_v49 = vmul.f32 -10.0, %v2509_v41  ;;  %v1757_v50 = vsub.f32 %v637_v33, %v7797_v8  ;;  %v657_v41 = vpop.permute.xlu0 %656 }
 0x1a5   :  { %5500 = vst.msk [vmem:[%s11611_s2 + $0x688] sm:$0xff] %vm5292_vm0, %v6463_v47  ;;  %6480 = vpow2.f32 %v4214_v43  ;;  %v3260_v53 = vmul.f32 -10.0, %v2510_v44  ;;  %v1758_v54 = vsub.f32 %v637_v33, %v7799_v9  ;;  %v2506_v55 = vmul.f32 %v1756_v45, %v1756_v45 }
 0x1a6   :  { %v3261_v56 = vmul.f32 -10.0, %v2511_v48  ;;  %v4228_v57 = vmul.f32 1.442695, %v3259_v49  ;;  %v2507_v58 = vmul.f32 %v1757_v50, %v1757_v50  ;;  %v1765_v59 = vsub.f32 %v652_v46, %v7795_v7 }
 0x1a7   :  { %v6465_v60 = vpop.eup %6464  ;;  %v4230_v61 = vmul.f32 1.442695, %v3260_v53  ;;  %v2508_v62 = vmul.f32 %v1758_v54, %v1758_v54  ;;  %v3256_v63 = vmul.f32 -10.0, %v2506_v55  ;;  %v1766_v0 = vsub.f32 %v652_v46, %v7797_v8  ;;  %v198_v53 = vld [vmem:[%s11609_s0 + $0x578] sm:$0xff]  ;;  %v197_v54 = vld [vmem:[%s11609_s0 + $0x570] sm:$0xff] }
 0x1a8   :  { %v6467_v1 = vpop.eup %6466  ;;  %5495 = vst [vmem:[%s11611_s2 + $0x660] sm:$0xff] %v6465_v60  ;;  %6482 = vpow2.f32 %v4228_v57  ;;  %v4232_v2 = vmul.f32 1.442695, %v3261_v56  ;;  %v3257_v3 = vmul.f32 -10.0, %v2507_v58  ;;  %v1767_v4 = vsub.f32 %v652_v46, %v7799_v9  ;;  %1151 = vperm.xlu1 %6049, %v198_v53   ;;  %1146 = vperm.xlu0 %6048, %v197_v54  }
 0x1a9   :  { %v6469_v6 = vpop.eup %6468  ;;  %5496 = vst [vmem:[%s11611_s2 + $0x668] sm:$0xff] %v6467_v1  ;;  %6484 = vpow2.f32 %v4230_v61  ;;  %v3258_v10 = vmul.f32 -10.0, %v2508_v62  ;;  %v4222_v11 = vmul.f32 1.442695, %v3256_v63  ;;  %v2515_v12 = vmul.f32 %v1765_v59, %v1765_v59  ;;  %v672_v59 = vpop.permute.xlu1 %671 }
 0x1aa   :  { %v6471_v13 = vpop.eup %6470  ;;  %5497 = vst.msk [vmem:[%s11611_s2 + $0x670] sm:$0xff] %vm5292_vm0, %v6469_v6  ;;  %6486 = vpow2.f32 %v4232_v2  ;;  %v4224_v14 = vmul.f32 1.442695, %v3257_v3  ;;  %v2516_v15 = vmul.f32 %v1766_v0, %v1766_v0  ;;  %v2517_v16 = vmul.f32 %v1767_v4, %v1767_v4 }
 0x1ab   :  { %v6473_v17 = vpop.eup %6472  ;;  %5504 = vst [vmem:[%s11611_s2 + $0x6a8] sm:$0xff] %v6471_v13  ;;  %6488 = vpow2.f32 %v4222_v11  ;;  %v4226_v18 = vmul.f32 1.442695, %v3258_v10  ;;  %v3265_v19 = vmul.f32 -10.0, %v2515_v12  ;;  %v1762_v20 = vsub.f32 %v647_v5, %v7795_v7  ;;  %v667_v11 = vpop.permute.xlu0 %666 }
 0x1ac   :  { %v6475_v22 = vpop.eup %6474  ;;  %5505 = vst [vmem:[%s11611_s2 + $0x6b0] sm:$0xff] %v6473_v17  ;;  %6490 = vpow2.f32 %v4224_v14  ;;  %v3266_v23 = vmul.f32 -10.0, %v2516_v15  ;;  %v3267_v24 = vmul.f32 -10.0, %v2517_v16  ;;  %v1763_v25 = vsub.f32 %v647_v5, %v7797_v8 }
 0x1ad   :  { %v6477_v28 = vpop.eup %6476  ;;  %5506 = vst.msk [vmem:[%s11611_s2 + $0x6b8] sm:$0xff] %vm5292_vm0, %v6475_v22  ;;  %6492 = vpow2.f32 %v4226_v18  ;;  %v4240_v29 = vmul.f32 1.442695, %v3265_v19  ;;  %v1764_v30 = vsub.f32 %v647_v5, %v7799_v9  ;;  %v2512_v31 = vmul.f32 %v1762_v20, %v1762_v20 }
 0x1ae   :  { %v6479_v32 = vpop.eup %6478  ;;  %5501 = vst [vmem:[%s11611_s2 + $0x690] sm:$0xff] %v6477_v28  ;;  %v4242_v33 = vmul.f32 1.442695, %v3266_v23  ;;  %v4244_v34 = vmul.f32 1.442695, %v3267_v24  ;;  %v2513_v35 = vmul.f32 %v1763_v25, %v1763_v25  ;;  %v1771_v36 = vsub.f32 %v662_v21, %v7795_v7 }
 0x1af   :  { %v6481_v37 = vpop.eup %6480  ;;  %5502 = vst [vmem:[%s11611_s2 + $0x698] sm:$0xff] %v6479_v32  ;;  %6494 = vpow2.f32 %v4240_v29  ;;  %v2514_v38 = vmul.f32 %v1764_v30, %v1764_v30  ;;  %v3262_v39 = vmul.f32 -10.0, %v2512_v31  ;;  %v1772_v40 = vsub.f32 %v662_v21, %v7797_v8  ;;  %v200_v29 = vld [vmem:[%s11609_s0 + $0x588] sm:$0xff]  ;;  %v199_v30 = vld [vmem:[%s11609_s0 + $0x580] sm:$0xff] }
 0x1b0   :  { %5503 = vst.msk [vmem:[%s11611_s2 + $0x6a0] sm:$0xff] %vm5292_vm0, %v6481_v37  ;;  %6496 = vpow2.f32 %v4242_v33  ;;  %v3263_v42 = vmul.f32 -10.0, %v2513_v35  ;;  %v1773_v43 = vsub.f32 %v662_v21, %v7799_v9  ;;  %v2521_v44 = vmul.f32 %v1771_v36, %v1771_v36  ;;  %v682_v35 = vpop.permute.xlu1 %681  ;;  %1161 = vperm.xlu1 %6049, %v200_v29   ;;  %1156 = vperm.xlu0 %6048, %v199_v30  }
 0x1b1   :  { %6498 = vpow2.f32 %v4244_v34  ;;  %v3264_v45 = vmul.f32 -10.0, %v2514_v38  ;;  %v4234_v46 = vmul.f32 1.442695, %v3262_v39  ;;  %v2522_v47 = vmul.f32 %v1772_v40, %v1772_v40 }
 0x1b2   :  { %v6483_v48 = vpop.eup %6482  ;;  %v4236_v49 = vmul.f32 1.442695, %v3263_v42  ;;  %v2523_v50 = vmul.f32 %v1773_v43, %v1773_v43  ;;  %v3271_v51 = vmul.f32 -10.0, %v2521_v44  ;;  %v1768_v52 = vsub.f32 %v657_v41, %v7795_v7 }
 0x1b3   :  { %v6485_v55 = vpop.eup %6484  ;;  %5510 = vst [vmem:[%s11611_s2 + $0x6d8] sm:$0xff] %v6483_v48  ;;  %6500 = vpow2.f32 %v4234_v46  ;;  %v4238_v56 = vmul.f32 1.442695, %v3264_v45  ;;  %v3272_v57 = vmul.f32 -10.0, %v2522_v47  ;;  %v1769_v58 = vsub.f32 %v657_v41, %v7797_v8  ;;  %v677_v47 = vpop.permute.xlu0 %676 }
 0x1b4   :  { %v6487_v60 = vpop.eup %6486  ;;  %5511 = vst [vmem:[%s11611_s2 + $0x6e0] sm:$0xff] %v6485_v55  ;;  %6502 = vpow2.f32 %v4236_v49  ;;  %v3273_v61 = vmul.f32 -10.0, %v2523_v50  ;;  %v4252_v62 = vmul.f32 1.442695, %v3271_v51  ;;  %v1770_v63 = vsub.f32 %v657_v41, %v7799_v9 }
 0x1b5   :  { %v6489_v0 = vpop.eup %6488  ;;  %5512 = vst.msk [vmem:[%s11611_s2 + $0x6e8] sm:$0xff] %vm5292_vm0, %v6487_v60  ;;  %6504 = vpow2.f32 %v4238_v56  ;;  %v4254_v1 = vmul.f32 1.442695, %v3272_v57  ;;  %v2518_v2 = vmul.f32 %v1768_v52, %v1768_v52  ;;  %v2519_v3 = vmul.f32 %v1769_v58, %v1769_v58  ;;  %v692_v60 = vpop.permute.xlu1 %691 }
 0x1b6   :  { %v6491_v4 = vpop.eup %6490  ;;  %5507 = vst [vmem:[%s11611_s2 + $0x6c0] sm:$0xff] %v6489_v0  ;;  %6506 = vpow2.f32 %v4252_v62  ;;  %v4256_v5 = vmul.f32 1.442695, %v3273_v61  ;;  %v2520_v6 = vmul.f32 %v1770_v63, %v1770_v63  ;;  %v1777_v10 = vsub.f32 %v672_v59, %v7795_v7 }
 0x1b7   :  { %v6493_v12 = vpop.eup %6492  ;;  %5508 = vst [vmem:[%s11611_s2 + $0x6c8] sm:$0xff] %v6491_v4  ;;  %6508 = vpow2.f32 %v4254_v1  ;;  %v3268_v13 = vmul.f32 -10.0, %v2518_v2  ;;  %v3269_v14 = vmul.f32 -10.0, %v2519_v3  ;;  %v1778_v15 = vsub.f32 %v672_v59, %v7797_v8  ;;  %v202_v1 = vld [vmem:[%s11609_s0 + $0x598] sm:$0xff]  ;;  %v201_v2 = vld [vmem:[%s11609_s0 + $0x590] sm:$0xff] }
 0x1b8   :  { %5509 = vst.msk [vmem:[%s11611_s2 + $0x6d0] sm:$0xff] %vm5292_vm0, %v6493_v12  ;;  %6510 = vpow2.f32 %v4256_v5  ;;  %v3270_v16 = vmul.f32 -10.0, %v2520_v6  ;;  %v1779_v17 = vsub.f32 %v672_v59, %v7799_v9  ;;  %v2527_v18 = vmul.f32 %v1777_v10, %v1777_v10  ;;  %1171 = vperm.xlu1 %6049, %v202_v1   ;;  %1166 = vperm.xlu0 %6048, %v201_v2  }
 0x1b9   :  { %v6495_v19 = vpop.eup %6494  ;;  %v4246_v20 = vmul.f32 1.442695, %v3268_v13  ;;  %v4248_v21 = vmul.f32 1.442695, %v3269_v14  ;;  %v2528_v22 = vmul.f32 %v1778_v15, %v1778_v15  ;;  %v1774_v23 = vsub.f32 %v667_v11, %v7795_v7 }
 0x1ba   :  { %v6497_v24 = vpop.eup %6496  ;;  %5516 = vst [vmem:[%s11611_s2 + $0x708] sm:$0xff] %v6495_v19  ;;  %v4250_v25 = vmul.f32 1.442695, %v3270_v16  ;;  %v2529_v26 = vmul.f32 %v1779_v17, %v1779_v17  ;;  %v3277_v27 = vmul.f32 -10.0, %v2527_v18  ;;  %v1775_v28 = vsub.f32 %v667_v11, %v7797_v8 }
 0x1bb   :  { %v6499_v31 = vpop.eup %6498  ;;  %5517 = vst [vmem:[%s11611_s2 + $0x710] sm:$0xff] %v6497_v24  ;;  %6512 = vpow2.f32 %v4246_v20  ;;  %v3278_v32 = vmul.f32 -10.0, %v2528_v22  ;;  %v1776_v33 = vsub.f32 %v667_v11, %v7799_v9  ;;  %v2524_v34 = vmul.f32 %v1774_v23, %v1774_v23  ;;  %v687_v22 = vpop.permute.xlu0 %686 }
 0x1bc   :  { %5518 = vst.msk [vmem:[%s11611_s2 + $0x718] sm:$0xff] %vm5292_vm0, %v6499_v31  ;;  %6514 = vpow2.f32 %v4248_v21  ;;  %v3279_v36 = vmul.f32 -10.0, %v2529_v26  ;;  %v4264_v37 = vmul.f32 1.442695, %v3277_v27  ;;  %v2525_v38 = vmul.f32 %v1775_v28, %v1775_v28 }
 0x1bd   :  { %v6501_v39 = vpop.eup %6500  ;;  %6516 = vpow2.f32 %v4250_v25  ;;  %v4266_v40 = vmul.f32 1.442695, %v3278_v32  ;;  %v2526_v41 = vmul.f32 %v1776_v33, %v1776_v33  ;;  %v3274_v42 = vmul.f32 -10.0, %v2524_v34 }
 0x1be   :  { %v6503_v43 = vpop.eup %6502  ;;  %5513 = vst [vmem:[%s11611_s2 + $0x6f0] sm:$0xff] %v6501_v39  ;;  %6518 = vpow2.f32 %v4264_v37  ;;  %v4268_v44 = vmul.f32 1.442695, %v3279_v36  ;;  %v3275_v45 = vmul.f32 -10.0, %v2525_v38  ;;  %v1783_v46 = vsub.f32 %v682_v35, %v7795_v7 }
 0x1bf   :  { %v6505_v48 = vpop.eup %6504  ;;  %5514 = vst [vmem:[%s11611_s2 + $0x6f8] sm:$0xff] %v6503_v43  ;;  %6520 = vpow2.f32 %v4266_v40  ;;  %v3276_v49 = vmul.f32 -10.0, %v2526_v41  ;;  %v4258_v50 = vmul.f32 1.442695, %v3274_v42  ;;  %v1784_v51 = vsub.f32 %v682_v35, %v7797_v8  ;;  %v204_v40 = vld [vmem:[%s11609_s0 + $0x5a8] sm:$0xff]  ;;  %v203_v41 = vld [vmem:[%s11609_s0 + $0x5a0] sm:$0xff] }
 0x1c0   :  { %v6507_v52 = vpop.eup %6506  ;;  %5515 = vst.msk [vmem:[%s11611_s2 + $0x700] sm:$0xff] %vm5292_vm0, %v6505_v48  ;;  %6522 = vpow2.f32 %v4268_v44  ;;  %v4260_v53 = vmul.f32 1.442695, %v3275_v45  ;;  %v1785_v54 = vsub.f32 %v682_v35, %v7799_v9  ;;  %v2533_v55 = vmul.f32 %v1783_v46, %v1783_v46  ;;  %v702_v35 = vpop.permute.xlu1 %701  ;;  %1181 = vperm.xlu1 %6049, %v204_v40   ;;  %1176 = vperm.xlu0 %6048, %v203_v41  }
 0x1c1   :  { %v6509_v56 = vpop.eup %6508  ;;  %5522 = vst [vmem:[%s11611_s2 + $0x738] sm:$0xff] %v6507_v52  ;;  %6524 = vpow2.f32 %v4258_v50  ;;  %v4262_v57 = vmul.f32 1.442695, %v3276_v49  ;;  %v2534_v58 = vmul.f32 %v1784_v51, %v1784_v51  ;;  %v1780_v59 = vsub.f32 %v677_v47, %v7795_v7 }
 0x1c2   :  { %v6511_v61 = vpop.eup %6510  ;;  %5523 = vst [vmem:[%s11611_s2 + $0x740] sm:$0xff] %v6509_v56  ;;  %6526 = vpow2.f32 %v4260_v53  ;;  %v2535_v62 = vmul.f32 %v1785_v54, %v1785_v54  ;;  %v3283_v63 = vmul.f32 -10.0, %v2533_v55  ;;  %v1781_v0 = vsub.f32 %v677_v47, %v7797_v8  ;;  %v697_v55 = vpop.permute.xlu0 %696 }
 0x1c3   :  { %5524 = vst.msk [vmem:[%s11611_s2 + $0x748] sm:$0xff] %vm5292_vm0, %v6511_v61  ;;  %6528 = vpow2.f32 %v4262_v57  ;;  %v3284_v3 = vmul.f32 -10.0, %v2534_v58  ;;  %v1782_v4 = vsub.f32 %v677_v47, %v7799_v9  ;;  %v2530_v5 = vmul.f32 %v1780_v59, %v1780_v59 }
 0x1c4   :  { %v3285_v6 = vmul.f32 -10.0, %v2535_v62  ;;  %v4276_v10 = vmul.f32 1.442695, %v3283_v63  ;;  %v2531_v11 = vmul.f32 %v1781_v0, %v1781_v0  ;;  %v1789_v12 = vsub.f32 %v692_v60, %v7795_v7 }
 0x1c5   :  { %v6513_v13 = vpop.eup %6512  ;;  %v4278_v14 = vmul.f32 1.442695, %v3284_v3  ;;  %v2532_v15 = vmul.f32 %v1782_v4, %v1782_v4  ;;  %v3280_v16 = vmul.f32 -10.0, %v2530_v5  ;;  %v1790_v17 = vsub.f32 %v692_v60, %v7797_v8  ;;  %v206_v3 = vld [vmem:[%s11609_s0 + $0x5b8] sm:$0xff]  ;;  %v205_v4 = vld [vmem:[%s11609_s0 + $0x5b0] sm:$0xff] }
 0x1c6   :  { %v6515_v18 = vpop.eup %6514  ;;  %5519 = vst [vmem:[%s11611_s2 + $0x720] sm:$0xff] %v6513_v13  ;;  %6530 = vpow2.f32 %v4276_v10  ;;  %v4280_v19 = vmul.f32 1.442695, %v3285_v6  ;;  %v3281_v20 = vmul.f32 -10.0, %v2531_v11  ;;  %v1791_v21 = vsub.f32 %v692_v60, %v7799_v9  ;;  %1191 = vperm.xlu1 %6049, %v206_v3   ;;  %1186 = vperm.xlu0 %6048, %v205_v4  }
 0x1c7   :  { %v6517_v23 = vpop.eup %6516  ;;  %5520 = vst [vmem:[%s11611_s2 + $0x728] sm:$0xff] %v6515_v18  ;;  %6532 = vpow2.f32 %v4278_v14  ;;  %v3282_v24 = vmul.f32 -10.0, %v2532_v15  ;;  %v4270_v25 = vmul.f32 1.442695, %v3280_v16  ;;  %v2539_v26 = vmul.f32 %v1789_v12, %v1789_v12  ;;  %v712_v12 = vpop.permute.xlu1 %711 }
 0x1c8   :  { %v6519_v27 = vpop.eup %6518  ;;  %5521 = vst.msk [vmem:[%s11611_s2 + $0x730] sm:$0xff] %vm5292_vm0, %v6517_v23  ;;  %6534 = vpow2.f32 %v4280_v19  ;;  %v4272_v28 = vmul.f32 1.442695, %v3281_v20  ;;  %v2540_v29 = vmul.f32 %v1790_v17, %v1790_v17  ;;  %v2541_v30 = vmul.f32 %v1791_v21, %v1791_v21 }
 0x1c9   :  { %v6521_v31 = vpop.eup %6520  ;;  %5528 = vst [vmem:[%s11611_s2 + $0x768] sm:$0xff] %v6519_v27  ;;  %6536 = vpow2.f32 %v4270_v25  ;;  %v4274_v32 = vmul.f32 1.442695, %v3282_v24  ;;  %v3289_v33 = vmul.f32 -10.0, %v2539_v26  ;;  %v1786_v34 = vsub.f32 %v687_v22, %v7795_v7  ;;  %v707_v25 = vpop.permute.xlu0 %706 }
 0x1ca   :  { %v6523_v36 = vpop.eup %6522  ;;  %5529 = vst [vmem:[%s11611_s2 + $0x770] sm:$0xff] %v6521_v31  ;;  %6538 = vpow2.f32 %v4272_v28  ;;  %v3290_v37 = vmul.f32 -10.0, %v2540_v29  ;;  %v3291_v38 = vmul.f32 -10.0, %v2541_v30  ;;  %v1787_v39 = vsub.f32 %v687_v22, %v7797_v8 }
 0x1cb   :  { %v6525_v42 = vpop.eup %6524  ;;  %5530 = vst.msk [vmem:[%s11611_s2 + $0x778] sm:$0xff] %vm5292_vm0, %v6523_v36  ;;  %6540 = vpow2.f32 %v4274_v32  ;;  %v4288_v43 = vmul.f32 1.442695, %v3289_v33  ;;  %v1788_v44 = vsub.f32 %v687_v22, %v7799_v9  ;;  %v2536_v45 = vmul.f32 %v1786_v34, %v1786_v34 }
 0x1cc   :  { %v6527_v46 = vpop.eup %6526  ;;  %5525 = vst [vmem:[%s11611_s2 + $0x750] sm:$0xff] %v6525_v42  ;;  %v4290_v47 = vmul.f32 1.442695, %v3290_v37  ;;  %v4292_v48 = vmul.f32 1.442695, %v3291_v38  ;;  %v2537_v49 = vmul.f32 %v1787_v39, %v1787_v39  ;;  %v1795_v50 = vsub.f32 %v702_v35, %v7795_v7 }
 0x1cd   :  { %v6529_v51 = vpop.eup %6528  ;;  %5526 = vst [vmem:[%s11611_s2 + $0x758] sm:$0xff] %v6527_v46  ;;  %6542 = vpow2.f32 %v4288_v43  ;;  %v2538_v52 = vmul.f32 %v1788_v44, %v1788_v44  ;;  %v3286_v53 = vmul.f32 -10.0, %v2536_v45  ;;  %v1796_v54 = vsub.f32 %v702_v35, %v7797_v8  ;;  %v208_v43 = vld [vmem:[%s11609_s0 + $0x5c8] sm:$0xff]  ;;  %v207_v44 = vld [vmem:[%s11609_s0 + $0x5c0] sm:$0xff] }
 0x1ce   :  { %5527 = vst.msk [vmem:[%s11611_s2 + $0x760] sm:$0xff] %vm5292_vm0, %v6529_v51  ;;  %6544 = vpow2.f32 %v4290_v47  ;;  %v3287_v56 = vmul.f32 -10.0, %v2537_v49  ;;  %v1797_v57 = vsub.f32 %v702_v35, %v7799_v9  ;;  %v2545_v58 = vmul.f32 %v1795_v50, %v1795_v50  ;;  %v722_v49 = vpop.permute.xlu1 %721  ;;  %1201 = vperm.xlu1 %6049, %v208_v43   ;;  %1196 = vperm.xlu0 %6048, %v207_v44  }
 0x1cf   :  { %6546 = vpow2.f32 %v4292_v48  ;;  %v3288_v59 = vmul.f32 -10.0, %v2538_v52  ;;  %v4282_v60 = vmul.f32 1.442695, %v3286_v53  ;;  %v2546_v61 = vmul.f32 %v1796_v54, %v1796_v54 }
 0x1d0   :  { %v6531_v62 = vpop.eup %6530  ;;  %v4284_v63 = vmul.f32 1.442695, %v3287_v56  ;;  %v2547_v0 = vmul.f32 %v1797_v57, %v1797_v57  ;;  %v3295_v1 = vmul.f32 -10.0, %v2545_v58  ;;  %v1792_v2 = vsub.f32 %v697_v55, %v7795_v7 }
 0x1d1   :  { %v6533_v5 = vpop.eup %6532  ;;  %5534 = vst [vmem:[%s11611_s2 + $0x798] sm:$0xff] %v6531_v62  ;;  %6548 = vpow2.f32 %v4282_v60  ;;  %v4286_v6 = vmul.f32 1.442695, %v3288_v59  ;;  %v3296_v10 = vmul.f32 -10.0, %v2546_v61  ;;  %v1793_v11 = vsub.f32 %v697_v55, %v7797_v8  ;;  %v717_v61 = vpop.permute.xlu0 %716 }
 0x1d2   :  { %v6535_v13 = vpop.eup %6534  ;;  %5535 = vst [vmem:[%s11611_s2 + $0x7a0] sm:$0xff] %v6533_v5  ;;  %6550 = vpow2.f32 %v4284_v63  ;;  %v3297_v14 = vmul.f32 -10.0, %v2547_v0  ;;  %v4300_v15 = vmul.f32 1.442695, %v3295_v1  ;;  %v1794_v16 = vsub.f32 %v697_v55, %v7799_v9 }
 0x1d3   :  { %v6537_v17 = vpop.eup %6536  ;;  %5536 = vst.msk [vmem:[%s11611_s2 + $0x7a8] sm:$0xff] %vm5292_vm0, %v6535_v13  ;;  %6552 = vpow2.f32 %v4286_v6  ;;  %v4302_v18 = vmul.f32 1.442695, %v3296_v10  ;;  %v2542_v19 = vmul.f32 %v1792_v2, %v1792_v2  ;;  %v2543_v20 = vmul.f32 %v1793_v11, %v1793_v11  ;;  %v732_v13 = vpop.permute.xlu1 %731 }
 0x1d4   :  { %v6539_v21 = vpop.eup %6538  ;;  %5531 = vst [vmem:[%s11611_s2 + $0x780] sm:$0xff] %v6537_v17  ;;  %6554 = vpow2.f32 %v4300_v15  ;;  %v4304_v22 = vmul.f32 1.442695, %v3297_v14  ;;  %v2544_v23 = vmul.f32 %v1794_v16, %v1794_v16  ;;  %v1801_v24 = vsub.f32 %v712_v12, %v7795_v7 }
 0x1d5   :  { %v6541_v26 = vpop.eup %6540  ;;  %5532 = vst [vmem:[%s11611_s2 + $0x788] sm:$0xff] %v6539_v21  ;;  %6556 = vpow2.f32 %v4302_v18  ;;  %v3292_v27 = vmul.f32 -10.0, %v2542_v19  ;;  %v3293_v28 = vmul.f32 -10.0, %v2543_v20  ;;  %v1802_v29 = vsub.f32 %v712_v12, %v7797_v8  ;;  %v210_v18 = vld [vmem:[%s11609_s0 + $0x5d8] sm:$0xff]  ;;  %v209_v19 = vld [vmem:[%s11609_s0 + $0x5d0] sm:$0xff] }
 0x1d6   :  { %5533 = vst.msk [vmem:[%s11611_s2 + $0x790] sm:$0xff] %vm5292_vm0, %v6541_v26  ;;  %6558 = vpow2.f32 %v4304_v22  ;;  %v3294_v30 = vmul.f32 -10.0, %v2544_v23  ;;  %v1803_v31 = vsub.f32 %v712_v12, %v7799_v9  ;;  %v2551_v32 = vmul.f32 %v1801_v24, %v1801_v24  ;;  %1211 = vperm.xlu1 %6049, %v210_v18   ;;  %1206 = vperm.xlu0 %6048, %v209_v19  }
 0x1d7   :  { %v6543_v33 = vpop.eup %6542  ;;  %v4294_v34 = vmul.f32 1.442695, %v3292_v27  ;;  %v4296_v35 = vmul.f32 1.442695, %v3293_v28  ;;  %v2552_v36 = vmul.f32 %v1802_v29, %v1802_v29  ;;  %v1798_v37 = vsub.f32 %v707_v25, %v7795_v7 }
 0x1d8   :  { %v6545_v38 = vpop.eup %6544  ;;  %5540 = vst [vmem:[%s11611_s2 + $0x7c8] sm:$0xff] %v6543_v33  ;;  %v4298_v39 = vmul.f32 1.442695, %v3294_v30  ;;  %v2553_v40 = vmul.f32 %v1803_v31, %v1803_v31  ;;  %v3301_v41 = vmul.f32 -10.0, %v2551_v32  ;;  %v1799_v42 = vsub.f32 %v707_v25, %v7797_v8 }
 0x1d9   :  { %v6547_v45 = vpop.eup %6546  ;;  %5541 = vst [vmem:[%s11611_s2 + $0x7d0] sm:$0xff] %v6545_v38  ;;  %6560 = vpow2.f32 %v4294_v34  ;;  %v3302_v46 = vmul.f32 -10.0, %v2552_v36  ;;  %v1800_v47 = vsub.f32 %v707_v25, %v7799_v9  ;;  %v2548_v48 = vmul.f32 %v1798_v37, %v1798_v37  ;;  %v727_v36 = vpop.permute.xlu0 %726 }
 0x1da   :  { %5542 = vst.msk [vmem:[%s11611_s2 + $0x7d8] sm:$0xff] %vm5292_vm0, %v6547_v45  ;;  %6562 = vpow2.f32 %v4296_v35  ;;  %v3303_v50 = vmul.f32 -10.0, %v2553_v40  ;;  %v4312_v51 = vmul.f32 1.442695, %v3301_v41  ;;  %v2549_v52 = vmul.f32 %v1799_v42, %v1799_v42 }
 0x1db   :  { %v6549_v53 = vpop.eup %6548  ;;  %6564 = vpow2.f32 %v4298_v39  ;;  %v4314_v54 = vmul.f32 1.442695, %v3302_v46  ;;  %v2550_v55 = vmul.f32 %v1800_v47, %v1800_v47  ;;  %v3298_v56 = vmul.f32 -10.0, %v2548_v48 }
 0x1dc   :  { %v6551_v57 = vpop.eup %6550  ;;  %5537 = vst [vmem:[%s11611_s2 + $0x7b0] sm:$0xff] %v6549_v53  ;;  %6566 = vpow2.f32 %v4312_v51  ;;  %v4316_v58 = vmul.f32 1.442695, %v3303_v50  ;;  %v3299_v59 = vmul.f32 -10.0, %v2549_v52  ;;  %v1807_v60 = vsub.f32 %v722_v49, %v7795_v7 }
 0x1dd   :  { %v6553_v62 = vpop.eup %6552  ;;  %5538 = vst [vmem:[%s11611_s2 + $0x7b8] sm:$0xff] %v6551_v57  ;;  %6568 = vpow2.f32 %v4314_v54  ;;  %v3300_v63 = vmul.f32 -10.0, %v2550_v55  ;;  %v4306_v0 = vmul.f32 1.442695, %v3298_v56  ;;  %v1808_v1 = vsub.f32 %v722_v49, %v7797_v8  ;;  %v212_v54 = vld [vmem:[%s11609_s0 + $0x5e8] sm:$0xff]  ;;  %v211_v55 = vld [vmem:[%s11609_s0 + $0x5e0] sm:$0xff] }
 0x1de   :  { %v6555_v2 = vpop.eup %6554  ;;  %5539 = vst.msk [vmem:[%s11611_s2 + $0x7c0] sm:$0xff] %vm5292_vm0, %v6553_v62  ;;  %6570 = vpow2.f32 %v4316_v58  ;;  %v4308_v3 = vmul.f32 1.442695, %v3299_v59  ;;  %v1809_v4 = vsub.f32 %v722_v49, %v7799_v9  ;;  %v2557_v5 = vmul.f32 %v1807_v60, %v1807_v60  ;;  %v742_v49 = vpop.permute.xlu1 %741  ;;  %1221 = vperm.xlu1 %6049, %v212_v54   ;;  %1216 = vperm.xlu0 %6048, %v211_v55  }
 0x1df   :  { %v6557_v6 = vpop.eup %6556  ;;  %5546 = vst [vmem:[%s11611_s2 + $0x7f8] sm:$0xff] %v6555_v2  ;;  %6572 = vpow2.f32 %v4306_v0  ;;  %v4310_v10 = vmul.f32 1.442695, %v3300_v63  ;;  %v2558_v11 = vmul.f32 %v1808_v1, %v1808_v1  ;;  %v1804_v12 = vsub.f32 %v717_v61, %v7795_v7 }
 0x1e0   :  { %v6559_v14 = vpop.eup %6558  ;;  %5547 = vst [vmem:[%s11611_s2 + $0x800] sm:$0xff] %v6557_v6  ;;  %6574 = vpow2.f32 %v4308_v3  ;;  %v2559_v15 = vmul.f32 %v1809_v4, %v1809_v4  ;;  %v3307_v16 = vmul.f32 -10.0, %v2557_v5  ;;  %v1805_v17 = vsub.f32 %v717_v61, %v7797_v8  ;;  %v737_v5 = vpop.permute.xlu0 %736 }
 0x1e1   :  { %5548 = vst.msk [vmem:[%s11611_s2 + $0x808] sm:$0xff] %vm5292_vm0, %v6559_v14  ;;  %6576 = vpow2.f32 %v4310_v10  ;;  %v3308_v20 = vmul.f32 -10.0, %v2558_v11  ;;  %v1806_v21 = vsub.f32 %v717_v61, %v7799_v9  ;;  %v2554_v22 = vmul.f32 %v1804_v12, %v1804_v12 }
 0x1e2   :  { %v3309_v23 = vmul.f32 -10.0, %v2559_v15  ;;  %v4324_v24 = vmul.f32 1.442695, %v3307_v16  ;;  %v2555_v25 = vmul.f32 %v1805_v17, %v1805_v17  ;;  %v1813_v26 = vsub.f32 %v732_v13, %v7795_v7 }
 0x1e3   :  { %v6561_v27 = vpop.eup %6560  ;;  %v4326_v28 = vmul.f32 1.442695, %v3308_v20  ;;  %v2556_v29 = vmul.f32 %v1806_v21, %v1806_v21  ;;  %v3304_v30 = vmul.f32 -10.0, %v2554_v22  ;;  %v1814_v31 = vsub.f32 %v732_v13, %v7797_v8  ;;  %v214_v20 = vld [vmem:[%s11609_s0 + $0x5f8] sm:$0xff]  ;;  %v213_v21 = vld [vmem:[%s11609_s0 + $0x5f0] sm:$0xff] }
 0x1e4   :  { %v6563_v32 = vpop.eup %6562  ;;  %5543 = vst [vmem:[%s11611_s2 + $0x7e0] sm:$0xff] %v6561_v27  ;;  %6578 = vpow2.f32 %v4324_v24  ;;  %v4328_v33 = vmul.f32 1.442695, %v3309_v23  ;;  %v3305_v34 = vmul.f32 -10.0, %v2555_v25  ;;  %v1815_v35 = vsub.f32 %v732_v13, %v7799_v9  ;;  %1231 = vperm.xlu1 %6049, %v214_v20   ;;  %1226 = vperm.xlu0 %6048, %v213_v21  }
 0x1e5   :  { %v6565_v37 = vpop.eup %6564  ;;  %5544 = vst [vmem:[%s11611_s2 + $0x7e8] sm:$0xff] %v6563_v32  ;;  %6580 = vpow2.f32 %v4326_v28  ;;  %v3306_v38 = vmul.f32 -10.0, %v2556_v29  ;;  %v4318_v39 = vmul.f32 1.442695, %v3304_v30  ;;  %v2563_v40 = vmul.f32 %v1813_v26, %v1813_v26  ;;  %v752_v26 = vpop.permute.xlu1 %751 }
 0x1e6   :  { %v6567_v41 = vpop.eup %6566  ;;  %5545 = vst.msk [vmem:[%s11611_s2 + $0x7f0] sm:$0xff] %vm5292_vm0, %v6565_v37  ;;  %6582 = vpow2.f32 %v4328_v33  ;;  %v4320_v42 = vmul.f32 1.442695, %v3305_v34  ;;  %v2564_v43 = vmul.f32 %v1814_v31, %v1814_v31  ;;  %v2565_v44 = vmul.f32 %v1815_v35, %v1815_v35 }
 0x1e7   :  { %v6569_v45 = vpop.eup %6568  ;;  %5552 = vst [vmem:[%s11611_s2 + $0x828] sm:$0xff] %v6567_v41  ;;  %6584 = vpow2.f32 %v4318_v39  ;;  %v4322_v46 = vmul.f32 1.442695, %v3306_v38  ;;  %v3313_v47 = vmul.f32 -10.0, %v2563_v40  ;;  %v1810_v48 = vsub.f32 %v727_v36, %v7795_v7  ;;  %v747_v39 = vpop.permute.xlu0 %746 }
 0x1e8   :  { %v6571_v50 = vpop.eup %6570  ;;  %5553 = vst [vmem:[%s11611_s2 + $0x830] sm:$0xff] %v6569_v45  ;;  %6586 = vpow2.f32 %v4320_v42  ;;  %v3314_v51 = vmul.f32 -10.0, %v2564_v43  ;;  %v3315_v52 = vmul.f32 -10.0, %v2565_v44  ;;  %v1811_v53 = vsub.f32 %v727_v36, %v7797_v8 }
 0x1e9   :  { %v6573_v56 = vpop.eup %6572  ;;  %5554 = vst.msk [vmem:[%s11611_s2 + $0x838] sm:$0xff] %vm5292_vm0, %v6571_v50  ;;  %6588 = vpow2.f32 %v4322_v46  ;;  %v4336_v57 = vmul.f32 1.442695, %v3313_v47  ;;  %v1812_v58 = vsub.f32 %v727_v36, %v7799_v9  ;;  %v2560_v59 = vmul.f32 %v1810_v48, %v1810_v48 }
 0x1ea   :  { %v6575_v60 = vpop.eup %6574  ;;  %5549 = vst [vmem:[%s11611_s2 + $0x810] sm:$0xff] %v6573_v56  ;;  %v4338_v61 = vmul.f32 1.442695, %v3314_v51  ;;  %v4340_v62 = vmul.f32 1.442695, %v3315_v52  ;;  %v2561_v63 = vmul.f32 %v1811_v53, %v1811_v53  ;;  %v1819_v0 = vsub.f32 %v742_v49, %v7795_v7 }
 0x1eb   :  { %v6577_v1 = vpop.eup %6576  ;;  %5550 = vst [vmem:[%s11611_s2 + $0x818] sm:$0xff] %v6575_v60  ;;  %6590 = vpow2.f32 %v4336_v57  ;;  %v2562_v2 = vmul.f32 %v1812_v58, %v1812_v58  ;;  %v3310_v3 = vmul.f32 -10.0, %v2560_v59  ;;  %v1820_v4 = vsub.f32 %v742_v49, %v7797_v8  ;;  %v216_v57 = vld [vmem:[%s11609_s0 + $0x608] sm:$0xff]  ;;  %v215_v58 = vld [vmem:[%s11609_s0 + $0x600] sm:$0xff] }
 0x1ec   :  { %5551 = vst.msk [vmem:[%s11611_s2 + $0x820] sm:$0xff] %vm5292_vm0, %v6577_v1  ;;  %6592 = vpow2.f32 %v4338_v61  ;;  %v3311_v6 = vmul.f32 -10.0, %v2561_v63  ;;  %v1821_v10 = vsub.f32 %v742_v49, %v7799_v9  ;;  %v2569_v11 = vmul.f32 %v1819_v0, %v1819_v0  ;;  %v762_v63 = vpop.permute.xlu1 %761  ;;  %1241 = vperm.xlu1 %6049, %v216_v57   ;;  %1236 = vperm.xlu0 %6048, %v215_v58  }
 0x1ed   :  { %6594 = vpow2.f32 %v4340_v62  ;;  %v3312_v12 = vmul.f32 -10.0, %v2562_v2  ;;  %v4330_v13 = vmul.f32 1.442695, %v3310_v3  ;;  %v2570_v14 = vmul.f32 %v1820_v4, %v1820_v4 }
 0x1ee   :  { %v6579_v15 = vpop.eup %6578  ;;  %v4332_v16 = vmul.f32 1.442695, %v3311_v6  ;;  %v2571_v17 = vmul.f32 %v1821_v10, %v1821_v10  ;;  %v3319_v18 = vmul.f32 -10.0, %v2569_v11  ;;  %v1816_v19 = vsub.f32 %v737_v5, %v7795_v7 }
 0x1ef   :  { %v6581_v22 = vpop.eup %6580  ;;  %5558 = vst [vmem:[%s11611_s2 + $0x858] sm:$0xff] %v6579_v15  ;;  %6596 = vpow2.f32 %v4330_v13  ;;  %v4334_v23 = vmul.f32 1.442695, %v3312_v12  ;;  %v3320_v24 = vmul.f32 -10.0, %v2570_v14  ;;  %v1817_v25 = vsub.f32 %v737_v5, %v7797_v8  ;;  %v757_v14 = vpop.permute.xlu0 %756 }
 0x1f0   :  { %v6583_v27 = vpop.eup %6582  ;;  %5559 = vst [vmem:[%s11611_s2 + $0x860] sm:$0xff] %v6581_v22  ;;  %6598 = vpow2.f32 %v4332_v16  ;;  %v3321_v28 = vmul.f32 -10.0, %v2571_v17  ;;  %v4348_v29 = vmul.f32 1.442695, %v3319_v18  ;;  %v1818_v30 = vsub.f32 %v737_v5, %v7799_v9 }
 0x1f1   :  { %v6585_v31 = vpop.eup %6584  ;;  %5560 = vst.msk [vmem:[%s11611_s2 + $0x868] sm:$0xff] %vm5292_vm0, %v6583_v27  ;;  %6600 = vpow2.f32 %v4334_v23  ;;  %v4350_v32 = vmul.f32 1.442695, %v3320_v24  ;;  %v2566_v33 = vmul.f32 %v1816_v19, %v1816_v19  ;;  %v2567_v34 = vmul.f32 %v1817_v25, %v1817_v25  ;;  %v772_v27 = vpop.permute.xlu1 %771 }
 0x1f2   :  { %v6587_v35 = vpop.eup %6586  ;;  %5555 = vst [vmem:[%s11611_s2 + $0x840] sm:$0xff] %v6585_v31  ;;  %6602 = vpow2.f32 %v4348_v29  ;;  %v4352_v36 = vmul.f32 1.442695, %v3321_v28  ;;  %v2568_v37 = vmul.f32 %v1818_v30, %v1818_v30  ;;  %v1825_v38 = vsub.f32 %v752_v26, %v7795_v7 }
 0x1f3   :  { %v6589_v40 = vpop.eup %6588  ;;  %5556 = vst [vmem:[%s11611_s2 + $0x848] sm:$0xff] %v6587_v35  ;;  %6604 = vpow2.f32 %v4350_v32  ;;  %v3316_v41 = vmul.f32 -10.0, %v2566_v33  ;;  %v3317_v42 = vmul.f32 -10.0, %v2567_v34  ;;  %v1826_v43 = vsub.f32 %v752_v26, %v7797_v8  ;;  %v218_v32 = vld [vmem:[%s11609_s0 + $0x618] sm:$0xff]  ;;  %v217_v33 = vld [vmem:[%s11609_s0 + $0x610] sm:$0xff] }
 0x1f4   :  { %5557 = vst.msk [vmem:[%s11611_s2 + $0x850] sm:$0xff] %vm5292_vm0, %v6589_v40  ;;  %6606 = vpow2.f32 %v4352_v36  ;;  %v3318_v44 = vmul.f32 -10.0, %v2568_v37  ;;  %v1827_v45 = vsub.f32 %v752_v26, %v7799_v9  ;;  %v2575_v46 = vmul.f32 %v1825_v38, %v1825_v38  ;;  %1251 = vperm.xlu1 %6049, %v218_v32   ;;  %1246 = vperm.xlu0 %6048, %v217_v33  }
 0x1f5   :  { %v6591_v47 = vpop.eup %6590  ;;  %v4342_v48 = vmul.f32 1.442695, %v3316_v41  ;;  %v4344_v49 = vmul.f32 1.442695, %v3317_v42  ;;  %v2576_v50 = vmul.f32 %v1826_v43, %v1826_v43  ;;  %v1822_v51 = vsub.f32 %v747_v39, %v7795_v7 }
 0x1f6   :  { %v6593_v52 = vpop.eup %6592  ;;  %5564 = vst [vmem:[%s11611_s2 + $0x888] sm:$0xff] %v6591_v47  ;;  %v4346_v53 = vmul.f32 1.442695, %v3318_v44  ;;  %v2577_v54 = vmul.f32 %v1827_v45, %v1827_v45  ;;  %v3325_v55 = vmul.f32 -10.0, %v2575_v46  ;;  %v1823_v56 = vsub.f32 %v747_v39, %v7797_v8 }
 0x1f7   :  { %v6595_v59 = vpop.eup %6594  ;;  %5565 = vst [vmem:[%s11611_s2 + $0x890] sm:$0xff] %v6593_v52  ;;  %6608 = vpow2.f32 %v4342_v48  ;;  %v3326_v60 = vmul.f32 -10.0, %v2576_v50  ;;  %v1824_v61 = vsub.f32 %v747_v39, %v7799_v9  ;;  %v2572_v62 = vmul.f32 %v1822_v51, %v1822_v51  ;;  %v767_v50 = vpop.permute.xlu0 %766 }
 0x1f8   :  { %5566 = vst.msk [vmem:[%s11611_s2 + $0x898] sm:$0xff] %vm5292_vm0, %v6595_v59  ;;  %6610 = vpow2.f32 %v4344_v49  ;;  %v3327_v0 = vmul.f32 -10.0, %v2577_v54  ;;  %v4360_v1 = vmul.f32 1.442695, %v3325_v55  ;;  %v2573_v2 = vmul.f32 %v1823_v56, %v1823_v56 }
 0x1f9   :  { %v6597_v3 = vpop.eup %6596  ;;  %6612 = vpow2.f32 %v4346_v53  ;;  %v4362_v4 = vmul.f32 1.442695, %v3326_v60  ;;  %v2574_v5 = vmul.f32 %v1824_v61, %v1824_v61  ;;  %v3322_v6 = vmul.f32 -10.0, %v2572_v62 }
 0x1fa   :  { %v6599_v10 = vpop.eup %6598  ;;  %5561 = vst [vmem:[%s11611_s2 + $0x870] sm:$0xff] %v6597_v3  ;;  %6614 = vpow2.f32 %v4360_v1  ;;  %v4364_v11 = vmul.f32 1.442695, %v3327_v0  ;;  %v3323_v12 = vmul.f32 -10.0, %v2573_v2  ;;  %v1831_v13 = vsub.f32 %v762_v63, %v7795_v7 }
 0x1fb   :  { %v6601_v15 = vpop.eup %6600  ;;  %5562 = vst [vmem:[%s11611_s2 + $0x878] sm:$0xff] %v6599_v10  ;;  %6616 = vpow2.f32 %v4362_v4  ;;  %v3324_v16 = vmul.f32 -10.0, %v2574_v5  ;;  %v4354_v17 = vmul.f32 1.442695, %v3322_v6  ;;  %v1832_v18 = vsub.f32 %v762_v63, %v7797_v8  ;;  %v220_v4 = vld [vmem:[%s11609_s0 + $0x628] sm:$0xff]  ;;  %v219_v5 = vld [vmem:[%s11609_s0 + $0x620] sm:$0xff] }
 0x1fc   :  { %v6603_v19 = vpop.eup %6602  ;;  %5563 = vst.msk [vmem:[%s11611_s2 + $0x880] sm:$0xff] %vm5292_vm0, %v6601_v15  ;;  %6618 = vpow2.f32 %v4364_v11  ;;  %v4356_v20 = vmul.f32 1.442695, %v3323_v12  ;;  %v1833_v21 = vsub.f32 %v762_v63, %v7799_v9  ;;  %v2581_v22 = vmul.f32 %v1831_v13, %v1831_v13  ;;  %v782_v63 = vpop.permute.xlu1 %781  ;;  %1261 = vperm.xlu1 %6049, %v220_v4   ;;  %1256 = vperm.xlu0 %6048, %v219_v5  }
 0x1fd   :  { %v6605_v23 = vpop.eup %6604  ;;  %5570 = vst [vmem:[%s11611_s2 + $0x8b8] sm:$0xff] %v6603_v19  ;;  %6620 = vpow2.f32 %v4354_v17  ;;  %v4358_v24 = vmul.f32 1.442695, %v3324_v16  ;;  %v2582_v25 = vmul.f32 %v1832_v18, %v1832_v18  ;;  %v1828_v26 = vsub.f32 %v757_v14, %v7795_v7 }
 0x1fe   :  { %v6607_v28 = vpop.eup %6606  ;;  %5571 = vst [vmem:[%s11611_s2 + $0x8c0] sm:$0xff] %v6605_v23  ;;  %6622 = vpow2.f32 %v4356_v20  ;;  %v2583_v29 = vmul.f32 %v1833_v21, %v1833_v21  ;;  %v3331_v30 = vmul.f32 -10.0, %v2581_v22  ;;  %v1829_v31 = vsub.f32 %v757_v14, %v7797_v8  ;;  %v777_v22 = vpop.permute.xlu0 %776 }
 0x1ff   :  { %5572 = vst.msk [vmem:[%s11611_s2 + $0x8c8] sm:$0xff] %vm5292_vm0, %v6607_v28  ;;  %6624 = vpow2.f32 %v4358_v24  ;;  %v3332_v34 = vmul.f32 -10.0, %v2582_v25  ;;  %v1830_v35 = vsub.f32 %v757_v14, %v7799_v9  ;;  %v2578_v36 = vmul.f32 %v1828_v26, %v1828_v26 }
 0x200   :  { %v3333_v37 = vmul.f32 -10.0, %v2583_v29  ;;  %v4372_v38 = vmul.f32 1.442695, %v3331_v30  ;;  %v2579_v39 = vmul.f32 %v1829_v31, %v1829_v31  ;;  %v1837_v40 = vsub.f32 %v772_v27, %v7795_v7 }
 0x201   :  { %v6609_v41 = vpop.eup %6608  ;;  %v4374_v42 = vmul.f32 1.442695, %v3332_v34  ;;  %v2580_v43 = vmul.f32 %v1830_v35, %v1830_v35  ;;  %v3328_v44 = vmul.f32 -10.0, %v2578_v36  ;;  %v1838_v45 = vsub.f32 %v772_v27, %v7797_v8  ;;  %v222_v34 = vld [vmem:[%s11609_s0 + $0x638] sm:$0xff]  ;;  %v221_v35 = vld [vmem:[%s11609_s0 + $0x630] sm:$0xff] }
 0x202   :  { %v6611_v46 = vpop.eup %6610  ;;  %5567 = vst [vmem:[%s11611_s2 + $0x8a0] sm:$0xff] %v6609_v41  ;;  %6626 = vpow2.f32 %v4372_v38  ;;  %v4376_v47 = vmul.f32 1.442695, %v3333_v37  ;;  %v3329_v48 = vmul.f32 -10.0, %v2579_v39  ;;  %v1839_v49 = vsub.f32 %v772_v27, %v7799_v9  ;;  %1271 = vperm.xlu1 %6049, %v222_v34   ;;  %1266 = vperm.xlu0 %6048, %v221_v35  }
 0x203   :  { %v6613_v51 = vpop.eup %6612  ;;  %5568 = vst [vmem:[%s11611_s2 + $0x8a8] sm:$0xff] %v6611_v46  ;;  %6628 = vpow2.f32 %v4374_v42  ;;  %v3330_v52 = vmul.f32 -10.0, %v2580_v43  ;;  %v4366_v53 = vmul.f32 1.442695, %v3328_v44  ;;  %v2587_v54 = vmul.f32 %v1837_v40, %v1837_v40  ;;  %v792_v40 = vpop.permute.xlu1 %791 }
 0x204   :  { %v6615_v55 = vpop.eup %6614  ;;  %5569 = vst.msk [vmem:[%s11611_s2 + $0x8b0] sm:$0xff] %vm5292_vm0, %v6613_v51  ;;  %6630 = vpow2.f32 %v4376_v47  ;;  %v4368_v56 = vmul.f32 1.442695, %v3329_v48  ;;  %v2588_v57 = vmul.f32 %v1838_v45, %v1838_v45  ;;  %v2589_v58 = vmul.f32 %v1839_v49, %v1839_v49 }
 0x205   :  { %v6617_v59 = vpop.eup %6616  ;;  %5576 = vst [vmem:[%s11611_s2 + $0x8e8] sm:$0xff] %v6615_v55  ;;  %6632 = vpow2.f32 %v4366_v53  ;;  %v4370_v60 = vmul.f32 1.442695, %v3330_v52  ;;  %v3337_v61 = vmul.f32 -10.0, %v2587_v54  ;;  %v1834_v62 = vsub.f32 %v767_v50, %v7795_v7  ;;  %v787_v53 = vpop.permute.xlu0 %786 }
 0x206   :  { %v6619_v0 = vpop.eup %6618  ;;  %5577 = vst [vmem:[%s11611_s2 + $0x8f0] sm:$0xff] %v6617_v59  ;;  %6634 = vpow2.f32 %v4368_v56  ;;  %v3338_v1 = vmul.f32 -10.0, %v2588_v57  ;;  %v3339_v2 = vmul.f32 -10.0, %v2589_v58  ;;  %v1835_v3 = vsub.f32 %v767_v50, %v7797_v8 }
 0x207   :  { %v6621_v6 = vpop.eup %6620  ;;  %5578 = vst.msk [vmem:[%s11611_s2 + $0x8f8] sm:$0xff] %vm5292_vm0, %v6619_v0  ;;  %6636 = vpow2.f32 %v4370_v60  ;;  %v4384_v10 = vmul.f32 1.442695, %v3337_v61  ;;  %v1836_v11 = vsub.f32 %v767_v50, %v7799_v9  ;;  %v2584_v12 = vmul.f32 %v1834_v62, %v1834_v62 }
 0x208   :  { %v6623_v13 = vpop.eup %6622  ;;  %5573 = vst [vmem:[%s11611_s2 + $0x8d0] sm:$0xff] %v6621_v6  ;;  %v4386_v14 = vmul.f32 1.442695, %v3338_v1  ;;  %v4388_v15 = vmul.f32 1.442695, %v3339_v2  ;;  %v2585_v16 = vmul.f32 %v1835_v3, %v1835_v3  ;;  %v1843_v17 = vsub.f32 %v782_v63, %v7795_v7 }
 0x209   :  { %v6625_v18 = vpop.eup %6624  ;;  %5574 = vst [vmem:[%s11611_s2 + $0x8d8] sm:$0xff] %v6623_v13  ;;  %6638 = vpow2.f32 %v4384_v10  ;;  %v2586_v19 = vmul.f32 %v1836_v11, %v1836_v11  ;;  %v3334_v20 = vmul.f32 -10.0, %v2584_v12  ;;  %v1844_v21 = vsub.f32 %v782_v63, %v7797_v8  ;;  %v224_v10 = vld [vmem:[%s11609_s0 + $0x648] sm:$0xff]  ;;  %v223_v11 = vld [vmem:[%s11609_s0 + $0x640] sm:$0xff] }
 0x20a   :  { %5575 = vst.msk [vmem:[%s11611_s2 + $0x8e0] sm:$0xff] %vm5292_vm0, %v6625_v18  ;;  %6640 = vpow2.f32 %v4386_v14  ;;  %v3335_v23 = vmul.f32 -10.0, %v2585_v16  ;;  %v1845_v24 = vsub.f32 %v782_v63, %v7799_v9  ;;  %v2593_v25 = vmul.f32 %v1843_v17, %v1843_v17  ;;  %v802_v16 = vpop.permute.xlu1 %801  ;;  %1281 = vperm.xlu1 %6049, %v224_v10   ;;  %1276 = vperm.xlu0 %6048, %v223_v11  }
 0x20b   :  { %6642 = vpow2.f32 %v4388_v15  ;;  %v3336_v26 = vmul.f32 -10.0, %v2586_v19  ;;  %v4378_v27 = vmul.f32 1.442695, %v3334_v20  ;;  %v2594_v28 = vmul.f32 %v1844_v21, %v1844_v21 }
 0x20c   :  { %v6627_v29 = vpop.eup %6626  ;;  %v4380_v30 = vmul.f32 1.442695, %v3335_v23  ;;  %v2595_v31 = vmul.f32 %v1845_v24, %v1845_v24  ;;  %v3343_v32 = vmul.f32 -10.0, %v2593_v25  ;;  %v1840_v33 = vsub.f32 %v777_v22, %v7795_v7 }
 0x20d   :  { %v6629_v36 = vpop.eup %6628  ;;  %5582 = vst [vmem:[%s11611_s2 + $0x918] sm:$0xff] %v6627_v29  ;;  %6644 = vpow2.f32 %v4378_v27  ;;  %v4382_v37 = vmul.f32 1.442695, %v3336_v26  ;;  %v3344_v38 = vmul.f32 -10.0, %v2594_v28  ;;  %v1841_v39 = vsub.f32 %v777_v22, %v7797_v8  ;;  %v797_v28 = vpop.permute.xlu0 %796 }
 0x20e   :  { %v6631_v41 = vpop.eup %6630  ;;  %5583 = vst [vmem:[%s11611_s2 + $0x920] sm:$0xff] %v6629_v36  ;;  %6646 = vpow2.f32 %v4380_v30  ;;  %v3345_v42 = vmul.f32 -10.0, %v2595_v31  ;;  %v4396_v43 = vmul.f32 1.442695, %v3343_v32  ;;  %v1842_v44 = vsub.f32 %v777_v22, %v7799_v9 }
 0x20f   :  { %v6633_v45 = vpop.eup %6632  ;;  %5584 = vst.msk [vmem:[%s11611_s2 + $0x928] sm:$0xff] %vm5292_vm0, %v6631_v41  ;;  %6648 = vpow2.f32 %v4382_v37  ;;  %v4398_v46 = vmul.f32 1.442695, %v3344_v38  ;;  %v2590_v47 = vmul.f32 %v1840_v33, %v1840_v33  ;;  %v2591_v48 = vmul.f32 %v1841_v39, %v1841_v39  ;;  %v812_v41 = vpop.permute.xlu1 %811 }
 0x210   :  { %v6635_v49 = vpop.eup %6634  ;;  %5579 = vst [vmem:[%s11611_s2 + $0x900] sm:$0xff] %v6633_v45  ;;  %6650 = vpow2.f32 %v4396_v43  ;;  %v4400_v50 = vmul.f32 1.442695, %v3345_v42  ;;  %v2592_v51 = vmul.f32 %v1842_v44, %v1842_v44  ;;  %v1849_v52 = vsub.f32 %v792_v40, %v7795_v7 }
 0x211   :  { %v6637_v54 = vpop.eup %6636  ;;  %5580 = vst [vmem:[%s11611_s2 + $0x908] sm:$0xff] %v6635_v49  ;;  %6652 = vpow2.f32 %v4398_v46  ;;  %v3340_v55 = vmul.f32 -10.0, %v2590_v47  ;;  %v3341_v56 = vmul.f32 -10.0, %v2591_v48  ;;  %v1850_v57 = vsub.f32 %v792_v40, %v7797_v8  ;;  %v226_v46 = vld [vmem:[%s11609_s0 + $0x658] sm:$0xff]  ;;  %v225_v47 = vld [vmem:[%s11609_s0 + $0x650] sm:$0xff] }
 0x212   :  { %5581 = vst.msk [vmem:[%s11611_s2 + $0x910] sm:$0xff] %vm5292_vm0, %v6637_v54  ;;  %6654 = vpow2.f32 %v4400_v50  ;;  %v3342_v58 = vmul.f32 -10.0, %v2592_v51  ;;  %v1851_v59 = vsub.f32 %v792_v40, %v7799_v9  ;;  %v2599_v60 = vmul.f32 %v1849_v52, %v1849_v52  ;;  %1291 = vperm.xlu1 %6049, %v226_v46   ;;  %1286 = vperm.xlu0 %6048, %v225_v47  }
 0x213   :  { %v6639_v61 = vpop.eup %6638  ;;  %v4390_v62 = vmul.f32 1.442695, %v3340_v55  ;;  %v4392_v63 = vmul.f32 1.442695, %v3341_v56  ;;  %v2600_v0 = vmul.f32 %v1850_v57, %v1850_v57  ;;  %v1846_v1 = vsub.f32 %v787_v53, %v7795_v7 }
 0x214   :  { %v6641_v2 = vpop.eup %6640  ;;  %5588 = vst [vmem:[%s11611_s2 + $0x948] sm:$0xff] %v6639_v61  ;;  %v4394_v3 = vmul.f32 1.442695, %v3342_v58  ;;  %v2601_v4 = vmul.f32 %v1851_v59, %v1851_v59  ;;  %v3349_v5 = vmul.f32 -10.0, %v2599_v60  ;;  %v1847_v6 = vsub.f32 %v787_v53, %v7797_v8 }
 0x215   :  { %v6643_v12 = vpop.eup %6642  ;;  %5589 = vst [vmem:[%s11611_s2 + $0x950] sm:$0xff] %v6641_v2  ;;  %6656 = vpow2.f32 %v4390_v62  ;;  %v3350_v13 = vmul.f32 -10.0, %v2600_v0  ;;  %v1848_v14 = vsub.f32 %v787_v53, %v7799_v9  ;;  %v2596_v15 = vmul.f32 %v1846_v1, %v1846_v1  ;;  %v807_v0 = vpop.permute.xlu0 %806 }
 0x216   :  { %5590 = vst.msk [vmem:[%s11611_s2 + $0x958] sm:$0xff] %vm5292_vm0, %v6643_v12  ;;  %6658 = vpow2.f32 %v4392_v63  ;;  %v3351_v17 = vmul.f32 -10.0, %v2601_v4  ;;  %v4408_v18 = vmul.f32 1.442695, %v3349_v5  ;;  %v2597_v19 = vmul.f32 %v1847_v6, %v1847_v6 }
 0x217   :  { %v6645_v20 = vpop.eup %6644  ;;  %6660 = vpow2.f32 %v4394_v3  ;;  %v4410_v21 = vmul.f32 1.442695, %v3350_v13  ;;  %v2598_v22 = vmul.f32 %v1848_v14, %v1848_v14  ;;  %v3346_v23 = vmul.f32 -10.0, %v2596_v15 }
 0x218   :  { %v6647_v24 = vpop.eup %6646  ;;  %5585 = vst [vmem:[%s11611_s2 + $0x930] sm:$0xff] %v6645_v20  ;;  %6662 = vpow2.f32 %v4408_v18  ;;  %v4412_v25 = vmul.f32 1.442695, %v3351_v17  ;;  %v3347_v26 = vmul.f32 -10.0, %v2597_v19  ;;  %v1855_v27 = vsub.f32 %v802_v16, %v7795_v7 }
 0x219   :  { %v6649_v29 = vpop.eup %6648  ;;  %5586 = vst [vmem:[%s11611_s2 + $0x938] sm:$0xff] %v6647_v24  ;;  %6664 = vpow2.f32 %v4410_v21  ;;  %v3348_v30 = vmul.f32 -10.0, %v2598_v22  ;;  %v4402_v31 = vmul.f32 1.442695, %v3346_v23  ;;  %v1856_v32 = vsub.f32 %v802_v16, %v7797_v8  ;;  %v228_v21 = vld [vmem:[%s11609_s0 + $0x668] sm:$0xff]  ;;  %v227_v22 = vld [vmem:[%s11609_s0 + $0x660] sm:$0xff] }
 0x21a   :  { %v6651_v33 = vpop.eup %6650  ;;  %5587 = vst.msk [vmem:[%s11611_s2 + $0x940] sm:$0xff] %vm5292_vm0, %v6649_v29  ;;  %6666 = vpow2.f32 %v4412_v25  ;;  %v4404_v34 = vmul.f32 1.442695, %v3347_v26  ;;  %v1857_v35 = vsub.f32 %v802_v16, %v7799_v9  ;;  %v2605_v36 = vmul.f32 %v1855_v27, %v1855_v27  ;;  %v822_v16 = vpop.permute.xlu1 %821  ;;  %1301 = vperm.xlu1 %6049, %v228_v21   ;;  %1296 = vperm.xlu0 %6048, %v227_v22  }
 0x21b   :  { %v6653_v37 = vpop.eup %6652  ;;  %5594 = vst [vmem:[%s11611_s2 + $0x978] sm:$0xff] %v6651_v33  ;;  %6668 = vpow2.f32 %v4402_v31  ;;  %v4406_v38 = vmul.f32 1.442695, %v3348_v30  ;;  %v2606_v39 = vmul.f32 %v1856_v32, %v1856_v32  ;;  %v1852_v40 = vsub.f32 %v797_v28, %v7795_v7 }
 0x21c   :  { %v6655_v42 = vpop.eup %6654  ;;  %5595 = vst [vmem:[%s11611_s2 + $0x980] sm:$0xff] %v6653_v37  ;;  %6670 = vpow2.f32 %v4404_v34  ;;  %v2607_v43 = vmul.f32 %v1857_v35, %v1857_v35  ;;  %v3355_v44 = vmul.f32 -10.0, %v2605_v36  ;;  %v1853_v45 = vsub.f32 %v797_v28, %v7797_v8  ;;  %v817_v36 = vpop.permute.xlu0 %816 }
 0x21d   :  { %5596 = vst.msk [vmem:[%s11611_s2 + $0x988] sm:$0xff] %vm5292_vm0, %v6655_v42  ;;  %6672 = vpow2.f32 %v4406_v38  ;;  %v3356_v48 = vmul.f32 -10.0, %v2606_v39  ;;  %v1854_v49 = vsub.f32 %v797_v28, %v7799_v9  ;;  %v2602_v50 = vmul.f32 %v1852_v40, %v1852_v40 }
 0x21e   :  { %v3357_v51 = vmul.f32 -10.0, %v2607_v43  ;;  %v4420_v52 = vmul.f32 1.442695, %v3355_v44  ;;  %v2603_v53 = vmul.f32 %v1853_v45, %v1853_v45  ;;  %v1861_v54 = vsub.f32 %v812_v41, %v7795_v7 }
 0x21f   :  { %v6657_v55 = vpop.eup %6656  ;;  %v4422_v56 = vmul.f32 1.442695, %v3356_v48  ;;  %v2604_v57 = vmul.f32 %v1854_v49, %v1854_v49  ;;  %v3352_v58 = vmul.f32 -10.0, %v2602_v50  ;;  %v1862_v59 = vsub.f32 %v812_v41, %v7797_v8  ;;  %v230_v48 = vld [vmem:[%s11609_s0 + $0x678] sm:$0xff]  ;;  %v229_v49 = vld [vmem:[%s11609_s0 + $0x670] sm:$0xff] }
 0x220   :  { %v6659_v60 = vpop.eup %6658  ;;  %5591 = vst [vmem:[%s11611_s2 + $0x960] sm:$0xff] %v6657_v55  ;;  %6674 = vpow2.f32 %v4420_v52  ;;  %v4424_v61 = vmul.f32 1.442695, %v3357_v51  ;;  %v3353_v62 = vmul.f32 -10.0, %v2603_v53  ;;  %v1863_v63 = vsub.f32 %v812_v41, %v7799_v9  ;;  %1311 = vperm.xlu1 %6049, %v230_v48   ;;  %1306 = vperm.xlu0 %6048, %v229_v49  }
 0x221   :  { %v6661_v1 = vpop.eup %6660  ;;  %5592 = vst [vmem:[%s11611_s2 + $0x968] sm:$0xff] %v6659_v60  ;;  %6676 = vpow2.f32 %v4422_v56  ;;  %v3354_v2 = vmul.f32 -10.0, %v2604_v57  ;;  %v4414_v3 = vmul.f32 1.442695, %v3352_v58  ;;  %v2611_v4 = vmul.f32 %v1861_v54, %v1861_v54  ;;  %v832_v54 = vpop.permute.xlu1 %831 }
 0x222   :  { %v6663_v5 = vpop.eup %6662  ;;  %5593 = vst.msk [vmem:[%s11611_s2 + $0x970] sm:$0xff] %vm5292_vm0, %v6661_v1  ;;  %6678 = vpow2.f32 %v4424_v61  ;;  %v4416_v6 = vmul.f32 1.442695, %v3353_v62  ;;  %v2612_v10 = vmul.f32 %v1862_v59, %v1862_v59  ;;  %v2613_v11 = vmul.f32 %v1863_v63, %v1863_v63 }
 0x223   :  { %v6665_v12 = vpop.eup %6664  ;;  %5600 = vst [vmem:[%s11611_s2 + $0x9a8] sm:$0xff] %v6663_v5  ;;  %6680 = vpow2.f32 %v4414_v3  ;;  %v4418_v13 = vmul.f32 1.442695, %v3354_v2  ;;  %v3361_v14 = vmul.f32 -10.0, %v2611_v4  ;;  %v1858_v15 = vsub.f32 %v807_v0, %v7795_v7  ;;  %v827_v3 = vpop.permute.xlu0 %826 }
 0x224   :  { %v6667_v17 = vpop.eup %6666  ;;  %5601 = vst [vmem:[%s11611_s2 + $0x9b0] sm:$0xff] %v6665_v12  ;;  %6682 = vpow2.f32 %v4416_v6  ;;  %v3362_v18 = vmul.f32 -10.0, %v2612_v10  ;;  %v3363_v19 = vmul.f32 -10.0, %v2613_v11  ;;  %v1859_v20 = vsub.f32 %v807_v0, %v7797_v8 }
 0x225   :  { %v6669_v23 = vpop.eup %6668  ;;  %5602 = vst.msk [vmem:[%s11611_s2 + $0x9b8] sm:$0xff] %vm5292_vm0, %v6667_v17  ;;  %6684 = vpow2.f32 %v4418_v13  ;;  %v4432_v24 = vmul.f32 1.442695, %v3361_v14  ;;  %v1860_v25 = vsub.f32 %v807_v0, %v7799_v9  ;;  %v2608_v26 = vmul.f32 %v1858_v15, %v1858_v15 }
 0x226   :  { %v6671_v27 = vpop.eup %6670  ;;  %5597 = vst [vmem:[%s11611_s2 + $0x990] sm:$0xff] %v6669_v23  ;;  %v4434_v28 = vmul.f32 1.442695, %v3362_v18  ;;  %v4436_v29 = vmul.f32 1.442695, %v3363_v19  ;;  %v2609_v30 = vmul.f32 %v1859_v20, %v1859_v20  ;;  %v1867_v31 = vsub.f32 %v822_v16, %v7795_v7 }
 0x227   :  { %v6673_v32 = vpop.eup %6672  ;;  %5598 = vst [vmem:[%s11611_s2 + $0x998] sm:$0xff] %v6671_v27  ;;  %6686 = vpow2.f32 %v4432_v24  ;;  %v2610_v33 = vmul.f32 %v1860_v25, %v1860_v25  ;;  %v3358_v34 = vmul.f32 -10.0, %v2608_v26  ;;  %v1868_v35 = vsub.f32 %v822_v16, %v7797_v8  ;;  %v232_v24 = vld [vmem:[%s11609_s0 + $0x688] sm:$0xff]  ;;  %v231_v25 = vld [vmem:[%s11609_s0 + $0x680] sm:$0xff] }
 0x228   :  { %5599 = vst.msk [vmem:[%s11611_s2 + $0x9a0] sm:$0xff] %vm5292_vm0, %v6673_v32  ;;  %6688 = vpow2.f32 %v4434_v28  ;;  %v3359_v37 = vmul.f32 -10.0, %v2609_v30  ;;  %v1869_v38 = vsub.f32 %v822_v16, %v7799_v9  ;;  %v2617_v39 = vmul.f32 %v1867_v31, %v1867_v31  ;;  %v842_v30 = vpop.permute.xlu1 %841  ;;  %1321 = vperm.xlu1 %6049, %v232_v24   ;;  %1316 = vperm.xlu0 %6048, %v231_v25  }
 0x229   :  { %6690 = vpow2.f32 %v4436_v29  ;;  %v3360_v40 = vmul.f32 -10.0, %v2610_v33  ;;  %v4426_v41 = vmul.f32 1.442695, %v3358_v34  ;;  %v2618_v42 = vmul.f32 %v1868_v35, %v1868_v35 }
 0x22a   :  { %v6675_v43 = vpop.eup %6674  ;;  %v4428_v44 = vmul.f32 1.442695, %v3359_v37  ;;  %v2619_v45 = vmul.f32 %v1869_v38, %v1869_v38  ;;  %v3367_v46 = vmul.f32 -10.0, %v2617_v39  ;;  %v1864_v47 = vsub.f32 %v817_v36, %v7795_v7 }
 0x22b   :  { %v6677_v50 = vpop.eup %6676  ;;  %5606 = vst [vmem:[%s11611_s2 + $0x9d8] sm:$0xff] %v6675_v43  ;;  %6692 = vpow2.f32 %v4426_v41  ;;  %v4430_v51 = vmul.f32 1.442695, %v3360_v40  ;;  %v3368_v52 = vmul.f32 -10.0, %v2618_v42  ;;  %v1865_v53 = vsub.f32 %v817_v36, %v7797_v8  ;;  %v837_v42 = vpop.permute.xlu0 %836 }
 0x22c   :  { %v6679_v55 = vpop.eup %6678  ;;  %5607 = vst [vmem:[%s11611_s2 + $0x9e0] sm:$0xff] %v6677_v50  ;;  %6694 = vpow2.f32 %v4428_v44  ;;  %v3369_v56 = vmul.f32 -10.0, %v2619_v45  ;;  %v4444_v57 = vmul.f32 1.442695, %v3367_v46  ;;  %v1866_v58 = vsub.f32 %v817_v36, %v7799_v9 }
 0x22d   :  { %v6681_v59 = vpop.eup %6680  ;;  %5608 = vst.msk [vmem:[%s11611_s2 + $0x9e8] sm:$0xff] %vm5292_vm0, %v6679_v55  ;;  %6696 = vpow2.f32 %v4430_v51  ;;  %v4446_v60 = vmul.f32 1.442695, %v3368_v52  ;;  %v2614_v61 = vmul.f32 %v1864_v47, %v1864_v47  ;;  %v2615_v62 = vmul.f32 %v1865_v53, %v1865_v53  ;;  %v852_v55 = vpop.permute.xlu1 %851 }
 0x22e   :  { %v6683_v63 = vpop.eup %6682  ;;  %5603 = vst [vmem:[%s11611_s2 + $0x9c0] sm:$0xff] %v6681_v59  ;;  %6698 = vpow2.f32 %v4444_v57  ;;  %v4448_v0 = vmul.f32 1.442695, %v3369_v56  ;;  %v2616_v1 = vmul.f32 %v1866_v58, %v1866_v58  ;;  %v1873_v2 = vsub.f32 %v832_v54, %v7795_v7 }
 0x22f   :  { %v6685_v4 = vpop.eup %6684  ;;  %5604 = vst [vmem:[%s11611_s2 + $0x9c8] sm:$0xff] %v6683_v63  ;;  %6700 = vpow2.f32 %v4446_v60  ;;  %v3364_v5 = vmul.f32 -10.0, %v2614_v61  ;;  %v3365_v6 = vmul.f32 -10.0, %v2615_v62  ;;  %v1874_v10 = vsub.f32 %v832_v54, %v7797_v8  ;;  %v234_v60 = vld [vmem:[%s11609_s0 + $0x698] sm:$0xff]  ;;  %v233_v61 = vld [vmem:[%s11609_s0 + $0x690] sm:$0xff] }
 0x230   :  { %5605 = vst.msk [vmem:[%s11611_s2 + $0x9d0] sm:$0xff] %vm5292_vm0, %v6685_v4  ;;  %6702 = vpow2.f32 %v4448_v0  ;;  %v3366_v11 = vmul.f32 -10.0, %v2616_v1  ;;  %v1875_v12 = vsub.f32 %v832_v54, %v7799_v9  ;;  %v2623_v13 = vmul.f32 %v1873_v2, %v1873_v2  ;;  %1331 = vperm.xlu1 %6049, %v234_v60   ;;  %1326 = vperm.xlu0 %6048, %v233_v61  }
 0x231   :  { %v6687_v14 = vpop.eup %6686  ;;  %v4438_v15 = vmul.f32 1.442695, %v3364_v5  ;;  %v4440_v16 = vmul.f32 1.442695, %v3365_v6  ;;  %v2624_v17 = vmul.f32 %v1874_v10, %v1874_v10  ;;  %v1870_v18 = vsub.f32 %v827_v3, %v7795_v7 }
 0x232   :  { %v6689_v19 = vpop.eup %6688  ;;  %5612 = vst [vmem:[%s11611_s2 + $0xa08] sm:$0xff] %v6687_v14  ;;  %v4442_v20 = vmul.f32 1.442695, %v3366_v11  ;;  %v2625_v21 = vmul.f32 %v1875_v12, %v1875_v12  ;;  %v3373_v22 = vmul.f32 -10.0, %v2623_v13  ;;  %v1871_v23 = vsub.f32 %v827_v3, %v7797_v8 }
 0x233   :  { %v6691_v26 = vpop.eup %6690  ;;  %5613 = vst [vmem:[%s11611_s2 + $0xa10] sm:$0xff] %v6689_v19  ;;  %6704 = vpow2.f32 %v4438_v15  ;;  %v3374_v27 = vmul.f32 -10.0, %v2624_v17  ;;  %v1872_v28 = vsub.f32 %v827_v3, %v7799_v9  ;;  %v2620_v29 = vmul.f32 %v1870_v18, %v1870_v18  ;;  %v847_v17 = vpop.permute.xlu0 %846 }
 0x234   :  { %5614 = vst.msk [vmem:[%s11611_s2 + $0xa18] sm:$0xff] %vm5292_vm0, %v6691_v26  ;;  %6706 = vpow2.f32 %v4440_v16  ;;  %v3375_v31 = vmul.f32 -10.0, %v2625_v21  ;;  %v4456_v32 = vmul.f32 1.442695, %v3373_v22  ;;  %v2621_v33 = vmul.f32 %v1871_v23, %v1871_v23 }
 0x235   :  { %v6693_v34 = vpop.eup %6692  ;;  %6708 = vpow2.f32 %v4442_v20  ;;  %v4458_v35 = vmul.f32 1.442695, %v3374_v27  ;;  %v2622_v36 = vmul.f32 %v1872_v28, %v1872_v28  ;;  %v3370_v37 = vmul.f32 -10.0, %v2620_v29 }
 0x236   :  { %v6695_v38 = vpop.eup %6694  ;;  %5609 = vst [vmem:[%s11611_s2 + $0x9f0] sm:$0xff] %v6693_v34  ;;  %6710 = vpow2.f32 %v4456_v32  ;;  %v4460_v39 = vmul.f32 1.442695, %v3375_v31  ;;  %v3371_v40 = vmul.f32 -10.0, %v2621_v33  ;;  %v1879_v41 = vsub.f32 %v842_v30, %v7795_v7 }
 0x237   :  { %v6697_v43 = vpop.eup %6696  ;;  %5610 = vst [vmem:[%s11611_s2 + $0x9f8] sm:$0xff] %v6695_v38  ;;  %6712 = vpow2.f32 %v4458_v35  ;;  %v3372_v44 = vmul.f32 -10.0, %v2622_v36  ;;  %v4450_v45 = vmul.f32 1.442695, %v3370_v37  ;;  %v1880_v46 = vsub.f32 %v842_v30, %v7797_v8  ;;  %v236_v35 = vld [vmem:[%s11609_s0 + $0x6a8] sm:$0xff]  ;;  %v235_v36 = vld [vmem:[%s11609_s0 + $0x6a0] sm:$0xff] }
 0x238   :  { %v6699_v47 = vpop.eup %6698  ;;  %5611 = vst.msk [vmem:[%s11611_s2 + $0xa00] sm:$0xff] %vm5292_vm0, %v6697_v43  ;;  %6714 = vpow2.f32 %v4460_v39  ;;  %v4452_v48 = vmul.f32 1.442695, %v3371_v40  ;;  %v1881_v49 = vsub.f32 %v842_v30, %v7799_v9  ;;  %v2629_v50 = vmul.f32 %v1879_v41, %v1879_v41  ;;  %v862_v30 = vpop.permute.xlu1 %861  ;;  %1341 = vperm.xlu1 %6049, %v236_v35   ;;  %1336 = vperm.xlu0 %6048, %v235_v36  }
 0x239   :  { %v6701_v51 = vpop.eup %6700  ;;  %5618 = vst [vmem:[%s11611_s2 + $0xa38] sm:$0xff] %v6699_v47  ;;  %6716 = vpow2.f32 %v4450_v45  ;;  %v4454_v52 = vmul.f32 1.442695, %v3372_v44  ;;  %v2630_v53 = vmul.f32 %v1880_v46, %v1880_v46  ;;  %v1876_v54 = vsub.f32 %v837_v42, %v7795_v7 }
 0x23a   :  { %v6703_v56 = vpop.eup %6702  ;;  %5619 = vst [vmem:[%s11611_s2 + $0xa40] sm:$0xff] %v6701_v51  ;;  %6718 = vpow2.f32 %v4452_v48  ;;  %v2631_v57 = vmul.f32 %v1881_v49, %v1881_v49  ;;  %v3379_v58 = vmul.f32 -10.0, %v2629_v50  ;;  %v1877_v59 = vsub.f32 %v837_v42, %v7797_v8  ;;  %v857_v50 = vpop.permute.xlu0 %856 }
 0x23b   :  { %5620 = vst.msk [vmem:[%s11611_s2 + $0xa48] sm:$0xff] %vm5292_vm0, %v6703_v56  ;;  %6720 = vpow2.f32 %v4454_v52  ;;  %v3380_v62 = vmul.f32 -10.0, %v2630_v53  ;;  %v1878_v63 = vsub.f32 %v837_v42, %v7799_v9  ;;  %v2626_v0 = vmul.f32 %v1876_v54, %v1876_v54 }
 0x23c   :  { %v3381_v1 = vmul.f32 -10.0, %v2631_v57  ;;  %v4468_v2 = vmul.f32 1.442695, %v3379_v58  ;;  %v2627_v3 = vmul.f32 %v1877_v59, %v1877_v59  ;;  %v1885_v4 = vsub.f32 %v852_v55, %v7795_v7 }
 0x23d   :  { %v6705_v5 = vpop.eup %6704  ;;  %v4470_v6 = vmul.f32 1.442695, %v3380_v62  ;;  %v2628_v10 = vmul.f32 %v1878_v63, %v1878_v63  ;;  %v3376_v11 = vmul.f32 -10.0, %v2626_v0  ;;  %v1886_v12 = vsub.f32 %v852_v55, %v7797_v8  ;;  %v238_v62 = vld [vmem:[%s11609_s0 + $0x6b8] sm:$0xff]  ;;  %v237_v63 = vld [vmem:[%s11609_s0 + $0x6b0] sm:$0xff] }
 0x23e   :  { %v6707_v13 = vpop.eup %6706  ;;  %5615 = vst [vmem:[%s11611_s2 + $0xa20] sm:$0xff] %v6705_v5  ;;  %6722 = vpow2.f32 %v4468_v2  ;;  %v4472_v14 = vmul.f32 1.442695, %v3381_v1  ;;  %v3377_v15 = vmul.f32 -10.0, %v2627_v3  ;;  %v1887_v16 = vsub.f32 %v852_v55, %v7799_v9  ;;  %1351 = vperm.xlu1 %6049, %v238_v62   ;;  %1346 = vperm.xlu0 %6048, %v237_v63  }
 0x23f   :  { %v6709_v18 = vpop.eup %6708  ;;  %5616 = vst [vmem:[%s11611_s2 + $0xa28] sm:$0xff] %v6707_v13  ;;  %6724 = vpow2.f32 %v4470_v6  ;;  %v3378_v19 = vmul.f32 -10.0, %v2628_v10  ;;  %v4462_v20 = vmul.f32 1.442695, %v3376_v11  ;;  %v2635_v21 = vmul.f32 %v1885_v4, %v1885_v4  ;;  %v872_v4 = vpop.permute.xlu1 %871 }
 0x240   :  { %v6711_v22 = vpop.eup %6710  ;;  %5617 = vst.msk [vmem:[%s11611_s2 + $0xa30] sm:$0xff] %vm5292_vm0, %v6709_v18  ;;  %6726 = vpow2.f32 %v4472_v14  ;;  %v4464_v23 = vmul.f32 1.442695, %v3377_v15  ;;  %v2636_v24 = vmul.f32 %v1886_v12, %v1886_v12  ;;  %v2637_v25 = vmul.f32 %v1887_v16, %v1887_v16 }
 0x241   :  { %v6713_v26 = vpop.eup %6712  ;;  %5624 = vst [vmem:[%s11611_s2 + $0xa68] sm:$0xff] %v6711_v22  ;;  %6728 = vpow2.f32 %v4462_v20  ;;  %v4466_v27 = vmul.f32 1.442695, %v3378_v19  ;;  %v3385_v28 = vmul.f32 -10.0, %v2635_v21  ;;  %v1882_v29 = vsub.f32 %v847_v17, %v7795_v7  ;;  %v867_v20 = vpop.permute.xlu0 %866 }
 0x242   :  { %v6715_v31 = vpop.eup %6714  ;;  %5625 = vst [vmem:[%s11611_s2 + $0xa70] sm:$0xff] %v6713_v26  ;;  %6730 = vpow2.f32 %v4464_v23  ;;  %v3386_v32 = vmul.f32 -10.0, %v2636_v24  ;;  %v3387_v33 = vmul.f32 -10.0, %v2637_v25  ;;  %v1883_v34 = vsub.f32 %v847_v17, %v7797_v8 }
 0x243   :  { %v6717_v37 = vpop.eup %6716  ;;  %5626 = vst.msk [vmem:[%s11611_s2 + $0xa78] sm:$0xff] %vm5292_vm0, %v6715_v31  ;;  %6732 = vpow2.f32 %v4466_v27  ;;  %v4480_v38 = vmul.f32 1.442695, %v3385_v28  ;;  %v1884_v39 = vsub.f32 %v847_v17, %v7799_v9  ;;  %v2632_v40 = vmul.f32 %v1882_v29, %v1882_v29 }
 0x244   :  { %v6719_v41 = vpop.eup %6718  ;;  %5621 = vst [vmem:[%s11611_s2 + $0xa50] sm:$0xff] %v6717_v37  ;;  %v4482_v42 = vmul.f32 1.442695, %v3386_v32  ;;  %v4484_v43 = vmul.f32 1.442695, %v3387_v33  ;;  %v2633_v44 = vmul.f32 %v1883_v34, %v1883_v34  ;;  %v1891_v45 = vsub.f32 %v862_v30, %v7795_v7 }
 0x245   :  { %v6721_v46 = vpop.eup %6720  ;;  %5622 = vst [vmem:[%s11611_s2 + $0xa58] sm:$0xff] %v6719_v41  ;;  %6734 = vpow2.f32 %v4480_v38  ;;  %v2634_v47 = vmul.f32 %v1884_v39, %v1884_v39  ;;  %v3382_v48 = vmul.f32 -10.0, %v2632_v40  ;;  %v1892_v49 = vsub.f32 %v862_v30, %v7797_v8  ;;  %v240_v38 = vld [vmem:[%s11609_s0 + $0x6c8] sm:$0xff]  ;;  %v239_v39 = vld [vmem:[%s11609_s0 + $0x6c0] sm:$0xff] }
 0x246   :  { %5623 = vst.msk [vmem:[%s11611_s2 + $0xa60] sm:$0xff] %vm5292_vm0, %v6721_v46  ;;  %6736 = vpow2.f32 %v4482_v42  ;;  %v3383_v51 = vmul.f32 -10.0, %v2633_v44  ;;  %v1893_v52 = vsub.f32 %v862_v30, %v7799_v9  ;;  %v2641_v53 = vmul.f32 %v1891_v45, %v1891_v45  ;;  %v882_v44 = vpop.permute.xlu1 %881  ;;  %1361 = vperm.xlu1 %6049, %v240_v38   ;;  %1356 = vperm.xlu0 %6048, %v239_v39  }
 0x247   :  { %6738 = vpow2.f32 %v4484_v43  ;;  %v3384_v54 = vmul.f32 -10.0, %v2634_v47  ;;  %v4474_v55 = vmul.f32 1.442695, %v3382_v48  ;;  %v2642_v56 = vmul.f32 %v1892_v49, %v1892_v49 }
 0x248   :  { %v6723_v57 = vpop.eup %6722  ;;  %v4476_v58 = vmul.f32 1.442695, %v3383_v51  ;;  %v2643_v59 = vmul.f32 %v1893_v52, %v1893_v52  ;;  %v3391_v60 = vmul.f32 -10.0, %v2641_v53  ;;  %v1888_v61 = vsub.f32 %v857_v50, %v7795_v7 }
 0x249   :  { %v6725_v0 = vpop.eup %6724  ;;  %5630 = vst [vmem:[%s11611_s2 + $0xa98] sm:$0xff] %v6723_v57  ;;  %6740 = vpow2.f32 %v4474_v55  ;;  %v4478_v1 = vmul.f32 1.442695, %v3384_v54  ;;  %v3392_v2 = vmul.f32 -10.0, %v2642_v56  ;;  %v1889_v3 = vsub.f32 %v857_v50, %v7797_v8  ;;  %v877_v56 = vpop.permute.xlu0 %876 }
 0x24a   :  { %v6727_v5 = vpop.eup %6726  ;;  %5631 = vst [vmem:[%s11611_s2 + $0xaa0] sm:$0xff] %v6725_v0  ;;  %6742 = vpow2.f32 %v4476_v58  ;;  %v3393_v6 = vmul.f32 -10.0, %v2643_v59  ;;  %v4492_v10 = vmul.f32 1.442695, %v3391_v60  ;;  %v1890_v11 = vsub.f32 %v857_v50, %v7799_v9 }
 0x24b   :  { %v6729_v12 = vpop.eup %6728  ;;  %5632 = vst.msk [vmem:[%s11611_s2 + $0xaa8] sm:$0xff] %vm5292_vm0, %v6727_v5  ;;  %6744 = vpow2.f32 %v4478_v1  ;;  %v4494_v13 = vmul.f32 1.442695, %v3392_v2  ;;  %v2638_v14 = vmul.f32 %v1888_v61, %v1888_v61  ;;  %v2639_v15 = vmul.f32 %v1889_v3, %v1889_v3  ;;  %v892_v5 = vpop.permute.xlu1 %891 }
 0x24c   :  { %v6731_v16 = vpop.eup %6730  ;;  %5627 = vst [vmem:[%s11611_s2 + $0xa80] sm:$0xff] %v6729_v12  ;;  %6746 = vpow2.f32 %v4492_v10  ;;  %v4496_v17 = vmul.f32 1.442695, %v3393_v6  ;;  %v2640_v18 = vmul.f32 %v1890_v11, %v1890_v11  ;;  %v1897_v19 = vsub.f32 %v872_v4, %v7795_v7 }
 0x24d   :  { %v6733_v21 = vpop.eup %6732  ;;  %5628 = vst [vmem:[%s11611_s2 + $0xa88] sm:$0xff] %v6731_v16  ;;  %6748 = vpow2.f32 %v4494_v13  ;;  %v3388_v22 = vmul.f32 -10.0, %v2638_v14  ;;  %v3389_v23 = vmul.f32 -10.0, %v2639_v15  ;;  %v1898_v24 = vsub.f32 %v872_v4, %v7797_v8  ;;  %v242_v13 = vld [vmem:[%s11609_s0 + $0x6d8] sm:$0xff]  ;;  %v241_v14 = vld [vmem:[%s11609_s0 + $0x6d0] sm:$0xff] }
 0x24e   :  { %5629 = vst.msk [vmem:[%s11611_s2 + $0xa90] sm:$0xff] %vm5292_vm0, %v6733_v21  ;;  %6750 = vpow2.f32 %v4496_v17  ;;  %v3390_v25 = vmul.f32 -10.0, %v2640_v18  ;;  %v1899_v26 = vsub.f32 %v872_v4, %v7799_v9  ;;  %v2647_v27 = vmul.f32 %v1897_v19, %v1897_v19  ;;  %1371 = vperm.xlu1 %6049, %v242_v13   ;;  %1366 = vperm.xlu0 %6048, %v241_v14  }
 0x24f   :  { %v6735_v28 = vpop.eup %6734  ;;  %v4486_v29 = vmul.f32 1.442695, %v3388_v22  ;;  %v4488_v30 = vmul.f32 1.442695, %v3389_v23  ;;  %v2648_v31 = vmul.f32 %v1898_v24, %v1898_v24  ;;  %v1894_v32 = vsub.f32 %v867_v20, %v7795_v7 }
 0x250   :  { %v6737_v33 = vpop.eup %6736  ;;  %5636 = vst [vmem:[%s11611_s2 + $0xac8] sm:$0xff] %v6735_v28  ;;  %v4490_v34 = vmul.f32 1.442695, %v3390_v25  ;;  %v2649_v35 = vmul.f32 %v1899_v26, %v1899_v26  ;;  %v3397_v36 = vmul.f32 -10.0, %v2647_v27  ;;  %v1895_v37 = vsub.f32 %v867_v20, %v7797_v8 }
 0x251   :  { %v6739_v40 = vpop.eup %6738  ;;  %5637 = vst [vmem:[%s11611_s2 + $0xad0] sm:$0xff] %v6737_v33  ;;  %6752 = vpow2.f32 %v4486_v29  ;;  %v3398_v41 = vmul.f32 -10.0, %v2648_v31  ;;  %v1896_v42 = vsub.f32 %v867_v20, %v7799_v9  ;;  %v2644_v43 = vmul.f32 %v1894_v32, %v1894_v32  ;;  %v887_v31 = vpop.permute.xlu0 %886 }
 0x252   :  { %5638 = vst.msk [vmem:[%s11611_s2 + $0xad8] sm:$0xff] %vm5292_vm0, %v6739_v40  ;;  %6754 = vpow2.f32 %v4488_v30  ;;  %v3399_v45 = vmul.f32 -10.0, %v2649_v35  ;;  %v4504_v46 = vmul.f32 1.442695, %v3397_v36  ;;  %v2645_v47 = vmul.f32 %v1895_v37, %v1895_v37 }
 0x253   :  { %v6741_v48 = vpop.eup %6740  ;;  %6756 = vpow2.f32 %v4490_v34  ;;  %v4506_v49 = vmul.f32 1.442695, %v3398_v41  ;;  %v2646_v50 = vmul.f32 %v1896_v42, %v1896_v42  ;;  %v3394_v51 = vmul.f32 -10.0, %v2644_v43 }
 0x254   :  { %v6743_v52 = vpop.eup %6742  ;;  %5633 = vst [vmem:[%s11611_s2 + $0xab0] sm:$0xff] %v6741_v48  ;;  %6758 = vpow2.f32 %v4504_v46  ;;  %v4508_v53 = vmul.f32 1.442695, %v3399_v45  ;;  %v3395_v54 = vmul.f32 -10.0, %v2645_v47  ;;  %v1903_v55 = vsub.f32 %v882_v44, %v7795_v7 }
 0x255   :  { %v6745_v57 = vpop.eup %6744  ;;  %5634 = vst [vmem:[%s11611_s2 + $0xab8] sm:$0xff] %v6743_v52  ;;  %6760 = vpow2.f32 %v4506_v49  ;;  %v3396_v58 = vmul.f32 -10.0, %v2646_v50  ;;  %v4498_v59 = vmul.f32 1.442695, %v3394_v51  ;;  %v1904_v60 = vsub.f32 %v882_v44, %v7797_v8  ;;  %v244_v49 = vld [vmem:[%s11609_s0 + $0x6e8] sm:$0xff]  ;;  %v243_v50 = vld [vmem:[%s11609_s0 + $0x6e0] sm:$0xff] }
 0x256   :  { %v6747_v61 = vpop.eup %6746  ;;  %5635 = vst.msk [vmem:[%s11611_s2 + $0xac0] sm:$0xff] %vm5292_vm0, %v6745_v57  ;;  %6762 = vpow2.f32 %v4508_v53  ;;  %v4500_v62 = vmul.f32 1.442695, %v3395_v54  ;;  %v1905_v63 = vsub.f32 %v882_v44, %v7799_v9  ;;  %v2653_v0 = vmul.f32 %v1903_v55, %v1903_v55  ;;  %v902_v44 = vpop.permute.xlu1 %901  ;;  %1381 = vperm.xlu1 %6049, %v244_v49   ;;  %1376 = vperm.xlu0 %6048, %v243_v50  }
 0x257   :  { %v6749_v1 = vpop.eup %6748  ;;  %5642 = vst [vmem:[%s11611_s2 + $0xaf8] sm:$0xff] %v6747_v61  ;;  %6764 = vpow2.f32 %v4498_v59  ;;  %v4502_v2 = vmul.f32 1.442695, %v3396_v58  ;;  %v2654_v3 = vmul.f32 %v1904_v60, %v1904_v60  ;;  %v1900_v4 = vsub.f32 %v877_v56, %v7795_v7 }
 0x258   :  { %v6751_v6 = vpop.eup %6750  ;;  %5643 = vst [vmem:[%s11611_s2 + $0xb00] sm:$0xff] %v6749_v1  ;;  %6766 = vpow2.f32 %v4500_v62  ;;  %v2655_v10 = vmul.f32 %v1905_v63, %v1905_v63  ;;  %v3403_v11 = vmul.f32 -10.0, %v2653_v0  ;;  %v1901_v12 = vsub.f32 %v877_v56, %v7797_v8  ;;  %v897_v0 = vpop.permute.xlu0 %896 }
 0x259   :  { %5644 = vst.msk [vmem:[%s11611_s2 + $0xb08] sm:$0xff] %vm5292_vm0, %v6751_v6  ;;  %6768 = vpow2.f32 %v4502_v2  ;;  %v3404_v15 = vmul.f32 -10.0, %v2654_v3  ;;  %v1902_v16 = vsub.f32 %v877_v56, %v7799_v9  ;;  %v2650_v17 = vmul.f32 %v1900_v4, %v1900_v4 }
 0x25a   :  { %v3405_v18 = vmul.f32 -10.0, %v2655_v10  ;;  %v4516_v19 = vmul.f32 1.442695, %v3403_v11  ;;  %v2651_v20 = vmul.f32 %v1901_v12, %v1901_v12  ;;  %v1909_v21 = vsub.f32 %v892_v5, %v7795_v7 }
 0x25b   :  { %v6753_v22 = vpop.eup %6752  ;;  %v4518_v23 = vmul.f32 1.442695, %v3404_v15  ;;  %v2652_v24 = vmul.f32 %v1902_v16, %v1902_v16  ;;  %v3400_v25 = vmul.f32 -10.0, %v2650_v17  ;;  %v1910_v26 = vsub.f32 %v892_v5, %v7797_v8  ;;  %v246_v15 = vld [vmem:[%s11609_s0 + $0x6f8] sm:$0xff]  ;;  %v245_v16 = vld [vmem:[%s11609_s0 + $0x6f0] sm:$0xff] }
 0x25c   :  { %v6755_v27 = vpop.eup %6754  ;;  %5639 = vst [vmem:[%s11611_s2 + $0xae0] sm:$0xff] %v6753_v22  ;;  %6770 = vpow2.f32 %v4516_v19  ;;  %v4520_v28 = vmul.f32 1.442695, %v3405_v18  ;;  %v3401_v29 = vmul.f32 -10.0, %v2651_v20  ;;  %v1911_v30 = vsub.f32 %v892_v5, %v7799_v9  ;;  %1391 = vperm.xlu1 %6049, %v246_v15   ;;  %1386 = vperm.xlu0 %6048, %v245_v16  }
 0x25d   :  { %v6757_v32 = vpop.eup %6756  ;;  %5640 = vst [vmem:[%s11611_s2 + $0xae8] sm:$0xff] %v6755_v27  ;;  %6772 = vpow2.f32 %v4518_v23  ;;  %v3402_v33 = vmul.f32 -10.0, %v2652_v24  ;;  %v4510_v34 = vmul.f32 1.442695, %v3400_v25  ;;  %v2659_v35 = vmul.f32 %v1909_v21, %v1909_v21  ;;  %v912_v21 = vpop.permute.xlu1 %911 }
 0x25e   :  { %v6759_v36 = vpop.eup %6758  ;;  %5641 = vst.msk [vmem:[%s11611_s2 + $0xaf0] sm:$0xff] %vm5292_vm0, %v6757_v32  ;;  %6774 = vpow2.f32 %v4520_v28  ;;  %v4512_v37 = vmul.f32 1.442695, %v3401_v29  ;;  %v2660_v38 = vmul.f32 %v1910_v26, %v1910_v26  ;;  %v2661_v39 = vmul.f32 %v1911_v30, %v1911_v30 }
 0x25f   :  { %v6761_v40 = vpop.eup %6760  ;;  %5648 = vst [vmem:[%s11611_s2 + $0xb28] sm:$0xff] %v6759_v36  ;;  %6776 = vpow2.f32 %v4510_v34  ;;  %v4514_v41 = vmul.f32 1.442695, %v3402_v33  ;;  %v3409_v42 = vmul.f32 -10.0, %v2659_v35  ;;  %v1906_v43 = vsub.f32 %v887_v31, %v7795_v7  ;;  %v907_v34 = vpop.permute.xlu0 %906 }
 0x260   :  { %v6763_v45 = vpop.eup %6762  ;;  %5649 = vst [vmem:[%s11611_s2 + $0xb30] sm:$0xff] %v6761_v40  ;;  %6778 = vpow2.f32 %v4512_v37  ;;  %v3410_v46 = vmul.f32 -10.0, %v2660_v38  ;;  %v3411_v47 = vmul.f32 -10.0, %v2661_v39  ;;  %v1907_v48 = vsub.f32 %v887_v31, %v7797_v8 }
 0x261   :  { %v6765_v51 = vpop.eup %6764  ;;  %5650 = vst.msk [vmem:[%s11611_s2 + $0xb38] sm:$0xff] %vm5292_vm0, %v6763_v45  ;;  %6780 = vpow2.f32 %v4514_v41  ;;  %v4528_v52 = vmul.f32 1.442695, %v3409_v42  ;;  %v1908_v53 = vsub.f32 %v887_v31, %v7799_v9  ;;  %v2656_v54 = vmul.f32 %v1906_v43, %v1906_v43 }
 0x262   :  { %v6767_v55 = vpop.eup %6766  ;;  %5645 = vst [vmem:[%s11611_s2 + $0xb10] sm:$0xff] %v6765_v51  ;;  %v4530_v56 = vmul.f32 1.442695, %v3410_v46  ;;  %v4532_v57 = vmul.f32 1.442695, %v3411_v47  ;;  %v2657_v58 = vmul.f32 %v1907_v48, %v1907_v48  ;;  %v1915_v59 = vsub.f32 %v902_v44, %v7795_v7 }
 0x263   :  { %v6769_v60 = vpop.eup %6768  ;;  %5646 = vst [vmem:[%s11611_s2 + $0xb18] sm:$0xff] %v6767_v55  ;;  %6782 = vpow2.f32 %v4528_v52  ;;  %v2658_v61 = vmul.f32 %v1908_v53, %v1908_v53  ;;  %v3406_v62 = vmul.f32 -10.0, %v2656_v54  ;;  %v1916_v63 = vsub.f32 %v902_v44, %v7797_v8  ;;  %v248_v52 = vld [vmem:[%s11609_s0 + $0x708] sm:$0xff]  ;;  %v247_v53 = vld [vmem:[%s11609_s0 + $0x700] sm:$0xff] }
 0x264   :  { %5647 = vst.msk [vmem:[%s11611_s2 + $0xb20] sm:$0xff] %vm5292_vm0, %v6769_v60  ;;  %6784 = vpow2.f32 %v4530_v56  ;;  %v3407_v1 = vmul.f32 -10.0, %v2657_v58  ;;  %v1917_v2 = vsub.f32 %v902_v44, %v7799_v9  ;;  %v2665_v3 = vmul.f32 %v1915_v59, %v1915_v59  ;;  %v922_v58 = vpop.permute.xlu1 %921  ;;  %1401 = vperm.xlu1 %6049, %v248_v52   ;;  %1396 = vperm.xlu0 %6048, %v247_v53  }
 0x265   :  { %6786 = vpow2.f32 %v4532_v57  ;;  %v3408_v4 = vmul.f32 -10.0, %v2658_v61  ;;  %v4522_v5 = vmul.f32 1.442695, %v3406_v62  ;;  %v2666_v6 = vmul.f32 %v1916_v63, %v1916_v63 }
 0x266   :  { %v6771_v10 = vpop.eup %6770  ;;  %v4524_v11 = vmul.f32 1.442695, %v3407_v1  ;;  %v2667_v12 = vmul.f32 %v1917_v2, %v1917_v2  ;;  %v3415_v13 = vmul.f32 -10.0, %v2665_v3  ;;  %v1912_v14 = vsub.f32 %v897_v0, %v7795_v7 }
 0x267   :  { %v6773_v17 = vpop.eup %6772  ;;  %5654 = vst [vmem:[%s11611_s2 + $0xb58] sm:$0xff] %v6771_v10  ;;  %6788 = vpow2.f32 %v4522_v5  ;;  %v4526_v18 = vmul.f32 1.442695, %v3408_v4  ;;  %v3416_v19 = vmul.f32 -10.0, %v2666_v6  ;;  %v1913_v20 = vsub.f32 %v897_v0, %v7797_v8  ;;  %v917_v6 = vpop.permute.xlu0 %916 }
 0x268   :  { %v6775_v22 = vpop.eup %6774  ;;  %5655 = vst [vmem:[%s11611_s2 + $0xb60] sm:$0xff] %v6773_v17  ;;  %6790 = vpow2.f32 %v4524_v11  ;;  %v3417_v23 = vmul.f32 -10.0, %v2667_v12  ;;  %v4540_v24 = vmul.f32 1.442695, %v3415_v13  ;;  %v1914_v25 = vsub.f32 %v897_v0, %v7799_v9 }
 0x269   :  { %v6777_v26 = vpop.eup %6776  ;;  %5656 = vst.msk [vmem:[%s11611_s2 + $0xb68] sm:$0xff] %vm5292_vm0, %v6775_v22  ;;  %6792 = vpow2.f32 %v4526_v18  ;;  %v4542_v27 = vmul.f32 1.442695, %v3416_v19  ;;  %v2662_v28 = vmul.f32 %v1912_v14, %v1912_v14  ;;  %v2663_v29 = vmul.f32 %v1913_v20, %v1913_v20  ;;  %v932_v22 = vpop.permute.xlu1 %931 }
 0x26a   :  { %v6779_v30 = vpop.eup %6778  ;;  %5651 = vst [vmem:[%s11611_s2 + $0xb40] sm:$0xff] %v6777_v26  ;;  %6794 = vpow2.f32 %v4540_v24  ;;  %v4544_v31 = vmul.f32 1.442695, %v3417_v23  ;;  %v2664_v32 = vmul.f32 %v1914_v25, %v1914_v25  ;;  %v1921_v33 = vsub.f32 %v912_v21, %v7795_v7 }
 0x26b   :  { %v6781_v35 = vpop.eup %6780  ;;  %5652 = vst [vmem:[%s11611_s2 + $0xb48] sm:$0xff] %v6779_v30  ;;  %6796 = vpow2.f32 %v4542_v27  ;;  %v3412_v36 = vmul.f32 -10.0, %v2662_v28  ;;  %v3413_v37 = vmul.f32 -10.0, %v2663_v29  ;;  %v1922_v38 = vsub.f32 %v912_v21, %v7797_v8  ;;  %v250_v27 = vld [vmem:[%s11609_s0 + $0x718] sm:$0xff]  ;;  %v249_v28 = vld [vmem:[%s11609_s0 + $0x710] sm:$0xff] }
 0x26c   :  { %5653 = vst.msk [vmem:[%s11611_s2 + $0xb50] sm:$0xff] %vm5292_vm0, %v6781_v35  ;;  %6798 = vpow2.f32 %v4544_v31  ;;  %v3414_v39 = vmul.f32 -10.0, %v2664_v32  ;;  %v1923_v40 = vsub.f32 %v912_v21, %v7799_v9  ;;  %v2671_v41 = vmul.f32 %v1921_v33, %v1921_v33  ;;  %1411 = vperm.xlu1 %6049, %v250_v27   ;;  %1406 = vperm.xlu0 %6048, %v249_v28  }
 0x26d   :  { %v6783_v42 = vpop.eup %6782  ;;  %v4534_v43 = vmul.f32 1.442695, %v3412_v36  ;;  %v4536_v44 = vmul.f32 1.442695, %v3413_v37  ;;  %v2672_v45 = vmul.f32 %v1922_v38, %v1922_v38  ;;  %v1918_v46 = vsub.f32 %v907_v34, %v7795_v7 }
 0x26e   :  { %v6785_v47 = vpop.eup %6784  ;;  %5660 = vst [vmem:[%s11611_s2 + $0xb88] sm:$0xff] %v6783_v42  ;;  %v4538_v48 = vmul.f32 1.442695, %v3414_v39  ;;  %v2673_v49 = vmul.f32 %v1923_v40, %v1923_v40  ;;  %v3421_v50 = vmul.f32 -10.0, %v2671_v41  ;;  %v1919_v51 = vsub.f32 %v907_v34, %v7797_v8 }
 0x26f   :  { %v6787_v54 = vpop.eup %6786  ;;  %5661 = vst [vmem:[%s11611_s2 + $0xb90] sm:$0xff] %v6785_v47  ;;  %6800 = vpow2.f32 %v4534_v43  ;;  %v3422_v55 = vmul.f32 -10.0, %v2672_v45  ;;  %v1920_v56 = vsub.f32 %v907_v34, %v7799_v9  ;;  %v2668_v57 = vmul.f32 %v1918_v46, %v1918_v46  ;;  %v927_v45 = vpop.permute.xlu0 %926 }
 0x270   :  { %5662 = vst.msk [vmem:[%s11611_s2 + $0xb98] sm:$0xff] %vm5292_vm0, %v6787_v54  ;;  %6802 = vpow2.f32 %v4536_v44  ;;  %v3423_v59 = vmul.f32 -10.0, %v2673_v49  ;;  %v4552_v60 = vmul.f32 1.442695, %v3421_v50  ;;  %v2669_v61 = vmul.f32 %v1919_v51, %v1919_v51 }
 0x271   :  { %v6789_v62 = vpop.eup %6788  ;;  %6804 = vpow2.f32 %v4538_v48  ;;  %v4554_v63 = vmul.f32 1.442695, %v3422_v55  ;;  %v2670_v0 = vmul.f32 %v1920_v56, %v1920_v56  ;;  %v3418_v1 = vmul.f32 -10.0, %v2668_v57 }
 0x272   :  { %v6791_v2 = vpop.eup %6790  ;;  %5657 = vst [vmem:[%s11611_s2 + $0xb70] sm:$0xff] %v6789_v62  ;;  %6806 = vpow2.f32 %v4552_v60  ;;  %v4556_v3 = vmul.f32 1.442695, %v3423_v59  ;;  %v3419_v4 = vmul.f32 -10.0, %v2669_v61  ;;  %v1927_v5 = vsub.f32 %v922_v58, %v7795_v7 }
 0x273   :  { %v6793_v10 = vpop.eup %6792  ;;  %5658 = vst [vmem:[%s11611_s2 + $0xb78] sm:$0xff] %v6791_v2  ;;  %6808 = vpow2.f32 %v4554_v63  ;;  %v3420_v11 = vmul.f32 -10.0, %v2670_v0  ;;  %v4546_v12 = vmul.f32 1.442695, %v3418_v1  ;;  %v1928_v13 = vsub.f32 %v922_v58, %v7797_v8  ;;  %v252_v63 = vld [vmem:[%s11609_s0 + $0x728] sm:$0xff]  ;;  %v251_v0 = vld [vmem:[%s11609_s0 + $0x720] sm:$0xff] }
 0x274   :  { %v6795_v14 = vpop.eup %6794  ;;  %5659 = vst.msk [vmem:[%s11611_s2 + $0xb80] sm:$0xff] %vm5292_vm0, %v6793_v10  ;;  %6810 = vpow2.f32 %v4556_v3  ;;  %v4548_v15 = vmul.f32 1.442695, %v3419_v4  ;;  %v1929_v16 = vsub.f32 %v922_v58, %v7799_v9  ;;  %v2677_v17 = vmul.f32 %v1927_v5, %v1927_v5  ;;  %v942_v58 = vpop.permute.xlu1 %941  ;;  %1421 = vperm.xlu1 %6049, %v252_v63   ;;  %1416 = vperm.xlu0 %6048, %v251_v0  }
 0x275   :  { %v6797_v18 = vpop.eup %6796  ;;  %5666 = vst [vmem:[%s11611_s2 + $0xbb8] sm:$0xff] %v6795_v14  ;;  %6812 = vpow2.f32 %v4546_v12  ;;  %v4550_v19 = vmul.f32 1.442695, %v3420_v11  ;;  %v2678_v20 = vmul.f32 %v1928_v13, %v1928_v13  ;;  %v1924_v21 = vsub.f32 %v917_v6, %v7795_v7 }
 0x276   :  { %v6799_v23 = vpop.eup %6798  ;;  %5667 = vst [vmem:[%s11611_s2 + $0xbc0] sm:$0xff] %v6797_v18  ;;  %6814 = vpow2.f32 %v4548_v15  ;;  %v2679_v24 = vmul.f32 %v1929_v16, %v1929_v16  ;;  %v3427_v25 = vmul.f32 -10.0, %v2677_v17  ;;  %v1925_v26 = vsub.f32 %v917_v6, %v7797_v8  ;;  %v937_v17 = vpop.permute.xlu0 %936 }
 0x277   :  { %5668 = vst.msk [vmem:[%s11611_s2 + $0xbc8] sm:$0xff] %vm5292_vm0, %v6799_v23  ;;  %6816 = vpow2.f32 %v4550_v19  ;;  %v3428_v29 = vmul.f32 -10.0, %v2678_v20  ;;  %v1926_v30 = vsub.f32 %v917_v6, %v7799_v9  ;;  %v2674_v31 = vmul.f32 %v1924_v21, %v1924_v21 }
 0x278   :  { %v3429_v32 = vmul.f32 -10.0, %v2679_v24  ;;  %v4564_v33 = vmul.f32 1.442695, %v3427_v25  ;;  %v2675_v34 = vmul.f32 %v1925_v26, %v1925_v26  ;;  %v1933_v35 = vsub.f32 %v932_v22, %v7795_v7 }
 0x279   :  { %v6801_v36 = vpop.eup %6800  ;;  %v4566_v37 = vmul.f32 1.442695, %v3428_v29  ;;  %v2676_v38 = vmul.f32 %v1926_v30, %v1926_v30  ;;  %v3424_v39 = vmul.f32 -10.0, %v2674_v31  ;;  %v1934_v40 = vsub.f32 %v932_v22, %v7797_v8  ;;  %v254_v29 = vld [vmem:[%s11609_s0 + $0x738] sm:$0xff]  ;;  %v253_v30 = vld [vmem:[%s11609_s0 + $0x730] sm:$0xff] }
 0x27a   :  { %v6803_v41 = vpop.eup %6802  ;;  %5663 = vst [vmem:[%s11611_s2 + $0xba0] sm:$0xff] %v6801_v36  ;;  %6818 = vpow2.f32 %v4564_v33  ;;  %v4568_v42 = vmul.f32 1.442695, %v3429_v32  ;;  %v3425_v43 = vmul.f32 -10.0, %v2675_v34  ;;  %v1935_v44 = vsub.f32 %v932_v22, %v7799_v9  ;;  %1431 = vperm.xlu1 %6049, %v254_v29   ;;  %1426 = vperm.xlu0 %6048, %v253_v30  }
 0x27b   :  { %v6805_v46 = vpop.eup %6804  ;;  %5664 = vst [vmem:[%s11611_s2 + $0xba8] sm:$0xff] %v6803_v41  ;;  %6820 = vpow2.f32 %v4566_v37  ;;  %v3426_v47 = vmul.f32 -10.0, %v2676_v38  ;;  %v4558_v48 = vmul.f32 1.442695, %v3424_v39  ;;  %v2683_v49 = vmul.f32 %v1933_v35, %v1933_v35  ;;  %v952_v35 = vpop.permute.xlu1 %951 }
 0x27c   :  { %v6807_v50 = vpop.eup %6806  ;;  %5665 = vst.msk [vmem:[%s11611_s2 + $0xbb0] sm:$0xff] %vm5292_vm0, %v6805_v46  ;;  %6822 = vpow2.f32 %v4568_v42  ;;  %v4560_v51 = vmul.f32 1.442695, %v3425_v43  ;;  %v2684_v52 = vmul.f32 %v1934_v40, %v1934_v40  ;;  %v2685_v53 = vmul.f32 %v1935_v44, %v1935_v44 }
 0x27d   :  { %v6809_v54 = vpop.eup %6808  ;;  %5672 = vst [vmem:[%s11611_s2 + $0xbe8] sm:$0xff] %v6807_v50  ;;  %6824 = vpow2.f32 %v4558_v48  ;;  %v4562_v55 = vmul.f32 1.442695, %v3426_v47  ;;  %v3433_v56 = vmul.f32 -10.0, %v2683_v49  ;;  %v1930_v57 = vsub.f32 %v927_v45, %v7795_v7  ;;  %v947_v48 = vpop.permute.xlu0 %946 }
 0x27e   :  { %v6811_v59 = vpop.eup %6810  ;;  %5673 = vst [vmem:[%s11611_s2 + $0xbf0] sm:$0xff] %v6809_v54  ;;  %6826 = vpow2.f32 %v4560_v51  ;;  %v3434_v60 = vmul.f32 -10.0, %v2684_v52  ;;  %v3435_v61 = vmul.f32 -10.0, %v2685_v53  ;;  %v1931_v62 = vsub.f32 %v927_v45, %v7797_v8 }
 0x27f   :  { %v6813_v1 = vpop.eup %6812  ;;  %5674 = vst.msk [vmem:[%s11611_s2 + $0xbf8] sm:$0xff] %vm5292_vm0, %v6811_v59  ;;  %6828 = vpow2.f32 %v4562_v55  ;;  %v4576_v2 = vmul.f32 1.442695, %v3433_v56  ;;  %v1932_v3 = vsub.f32 %v927_v45, %v7799_v9  ;;  %v2680_v4 = vmul.f32 %v1930_v57, %v1930_v57 }
 0x280   :  { %v6815_v5 = vpop.eup %6814  ;;  %5669 = vst [vmem:[%s11611_s2 + $0xbd0] sm:$0xff] %v6813_v1  ;;  %v4578_v6 = vmul.f32 1.442695, %v3434_v60  ;;  %v4580_v10 = vmul.f32 1.442695, %v3435_v61  ;;  %v2681_v11 = vmul.f32 %v1931_v62, %v1931_v62  ;;  %v1939_v12 = vsub.f32 %v942_v58, %v7795_v7 }
 0x281   :  { %v6817_v13 = vpop.eup %6816  ;;  %5670 = vst [vmem:[%s11611_s2 + $0xbd8] sm:$0xff] %v6815_v5  ;;  %6830 = vpow2.f32 %v4576_v2  ;;  %v2682_v14 = vmul.f32 %v1932_v3, %v1932_v3  ;;  %v3430_v15 = vmul.f32 -10.0, %v2680_v4  ;;  %v1940_v16 = vsub.f32 %v942_v58, %v7797_v8  ;;  %v256_v2 = vld [vmem:[%s11609_s0 + $0x748] sm:$0xff]  ;;  %v255_v3 = vld [vmem:[%s11609_s0 + $0x740] sm:$0xff] }
 0x282   :  { %5671 = vst.msk [vmem:[%s11611_s2 + $0xbe0] sm:$0xff] %vm5292_vm0, %v6817_v13  ;;  %6832 = vpow2.f32 %v4578_v6  ;;  %v3431_v18 = vmul.f32 -10.0, %v2681_v11  ;;  %v1941_v19 = vsub.f32 %v942_v58, %v7799_v9  ;;  %v2689_v20 = vmul.f32 %v1939_v12, %v1939_v12  ;;  %v962_v11 = vpop.permute.xlu1 %961  ;;  %1441 = vperm.xlu1 %6049, %v256_v2   ;;  %1436 = vperm.xlu0 %6048, %v255_v3  }
 0x283   :  { %6834 = vpow2.f32 %v4580_v10  ;;  %v3432_v21 = vmul.f32 -10.0, %v2682_v14  ;;  %v4570_v22 = vmul.f32 1.442695, %v3430_v15  ;;  %v2690_v23 = vmul.f32 %v1940_v16, %v1940_v16 }
 0x284   :  { %v6819_v24 = vpop.eup %6818  ;;  %v4572_v25 = vmul.f32 1.442695, %v3431_v18  ;;  %v2691_v26 = vmul.f32 %v1941_v19, %v1941_v19  ;;  %v3439_v27 = vmul.f32 -10.0, %v2689_v20  ;;  %v1936_v28 = vsub.f32 %v937_v17, %v7795_v7 }
 0x285   :  { %v6821_v31 = vpop.eup %6820  ;;  %5678 = vst [vmem:[%s11611_s2 + $0xc18] sm:$0xff] %v6819_v24  ;;  %6836 = vpow2.f32 %v4570_v22  ;;  %v4574_v32 = vmul.f32 1.442695, %v3432_v21  ;;  %v3440_v33 = vmul.f32 -10.0, %v2690_v23  ;;  %v1937_v34 = vsub.f32 %v937_v17, %v7797_v8  ;;  %v957_v23 = vpop.permute.xlu0 %956 }
 0x286   :  { %v6823_v36 = vpop.eup %6822  ;;  %5679 = vst [vmem:[%s11611_s2 + $0xc20] sm:$0xff] %v6821_v31  ;;  %6838 = vpow2.f32 %v4572_v25  ;;  %v3441_v37 = vmul.f32 -10.0, %v2691_v26  ;;  %v4588_v38 = vmul.f32 1.442695, %v3439_v27  ;;  %v1938_v39 = vsub.f32 %v937_v17, %v7799_v9 }
 0x287   :  { %v6825_v40 = vpop.eup %6824  ;;  %5680 = vst.msk [vmem:[%s11611_s2 + $0xc28] sm:$0xff] %vm5292_vm0, %v6823_v36  ;;  %6840 = vpow2.f32 %v4574_v32  ;;  %v4590_v41 = vmul.f32 1.442695, %v3440_v33  ;;  %v2686_v42 = vmul.f32 %v1936_v28, %v1936_v28  ;;  %v2687_v43 = vmul.f32 %v1937_v34, %v1937_v34  ;;  %v972_v36 = vpop.permute.xlu1 %971 }
 0x288   :  { %v6827_v44 = vpop.eup %6826  ;;  %5675 = vst [vmem:[%s11611_s2 + $0xc00] sm:$0xff] %v6825_v40  ;;  %6842 = vpow2.f32 %v4588_v38  ;;  %v4592_v45 = vmul.f32 1.442695, %v3441_v37  ;;  %v2688_v46 = vmul.f32 %v1938_v39, %v1938_v39  ;;  %v1945_v47 = vsub.f32 %v952_v35, %v7795_v7 }
 0x289   :  { %v6829_v49 = vpop.eup %6828  ;;  %5676 = vst [vmem:[%s11611_s2 + $0xc08] sm:$0xff] %v6827_v44  ;;  %6844 = vpow2.f32 %v4590_v41  ;;  %v3436_v50 = vmul.f32 -10.0, %v2686_v42  ;;  %v3437_v51 = vmul.f32 -10.0, %v2687_v43  ;;  %v1946_v52 = vsub.f32 %v952_v35, %v7797_v8  ;;  %v258_v41 = vld [vmem:[%s11609_s0 + $0x758] sm:$0xff]  ;;  %v257_v42 = vld [vmem:[%s11609_s0 + $0x750] sm:$0xff] }
 0x28a   :  { %5677 = vst.msk [vmem:[%s11611_s2 + $0xc10] sm:$0xff] %vm5292_vm0, %v6829_v49  ;;  %6846 = vpow2.f32 %v4592_v45  ;;  %v3438_v53 = vmul.f32 -10.0, %v2688_v46  ;;  %v1947_v54 = vsub.f32 %v952_v35, %v7799_v9  ;;  %v2695_v55 = vmul.f32 %v1945_v47, %v1945_v47  ;;  %1451 = vperm.xlu1 %6049, %v258_v41   ;;  %1446 = vperm.xlu0 %6048, %v257_v42  }
 0x28b   :  { %v6831_v56 = vpop.eup %6830  ;;  %v4582_v57 = vmul.f32 1.442695, %v3436_v50  ;;  %v4584_v58 = vmul.f32 1.442695, %v3437_v51  ;;  %v2696_v59 = vmul.f32 %v1946_v52, %v1946_v52  ;;  %v1942_v60 = vsub.f32 %v947_v48, %v7795_v7 }
 0x28c   :  { %v6833_v61 = vpop.eup %6832  ;;  %5684 = vst [vmem:[%s11611_s2 + $0xc48] sm:$0xff] %v6831_v56  ;;  %v4586_v62 = vmul.f32 1.442695, %v3438_v53  ;;  %v2697_v63 = vmul.f32 %v1947_v54, %v1947_v54  ;;  %v3445_v0 = vmul.f32 -10.0, %v2695_v55  ;;  %v1943_v1 = vsub.f32 %v947_v48, %v7797_v8 }
 0x28d   :  { %v6835_v4 = vpop.eup %6834  ;;  %5685 = vst [vmem:[%s11611_s2 + $0xc50] sm:$0xff] %v6833_v61  ;;  %6848 = vpow2.f32 %v4582_v57  ;;  %v3446_v5 = vmul.f32 -10.0, %v2696_v59  ;;  %v1944_v6 = vsub.f32 %v947_v48, %v7799_v9  ;;  %v2692_v10 = vmul.f32 %v1942_v60, %v1942_v60  ;;  %v967_v59 = vpop.permute.xlu0 %966 }
 0x28e   :  { %5686 = vst.msk [vmem:[%s11611_s2 + $0xc58] sm:$0xff] %vm5292_vm0, %v6835_v4  ;;  %6850 = vpow2.f32 %v4584_v58  ;;  %v3447_v12 = vmul.f32 -10.0, %v2697_v63  ;;  %v4600_v13 = vmul.f32 1.442695, %v3445_v0  ;;  %v2693_v14 = vmul.f32 %v1943_v1, %v1943_v1 }
 0x28f   :  { %v6837_v15 = vpop.eup %6836  ;;  %6852 = vpow2.f32 %v4586_v62  ;;  %v4602_v16 = vmul.f32 1.442695, %v3446_v5  ;;  %v2694_v17 = vmul.f32 %v1944_v6, %v1944_v6  ;;  %v3442_v18 = vmul.f32 -10.0, %v2692_v10 }
 0x290   :  { %v6839_v19 = vpop.eup %6838  ;;  %5681 = vst [vmem:[%s11611_s2 + $0xc30] sm:$0xff] %v6837_v15  ;;  %6854 = vpow2.f32 %v4600_v13  ;;  %v4604_v20 = vmul.f32 1.442695, %v3447_v12  ;;  %v3443_v21 = vmul.f32 -10.0, %v2693_v14  ;;  %v1951_v22 = vsub.f32 %v962_v11, %v7795_v7 }
 0x291   :  { %v6841_v24 = vpop.eup %6840  ;;  %5682 = vst [vmem:[%s11611_s2 + $0xc38] sm:$0xff] %v6839_v19  ;;  %6856 = vpow2.f32 %v4602_v16  ;;  %v3444_v25 = vmul.f32 -10.0, %v2694_v17  ;;  %v4594_v26 = vmul.f32 1.442695, %v3442_v18  ;;  %v1952_v27 = vsub.f32 %v962_v11, %v7797_v8  ;;  %v260_v16 = vld [vmem:[%s11609_s0 + $0x768] sm:$0xff]  ;;  %v259_v17 = vld [vmem:[%s11609_s0 + $0x760] sm:$0xff] }
 0x292   :  { %v6843_v28 = vpop.eup %6842  ;;  %5683 = vst.msk [vmem:[%s11611_s2 + $0xc40] sm:$0xff] %vm5292_vm0, %v6841_v24  ;;  %6858 = vpow2.f32 %v4604_v20  ;;  %v4596_v29 = vmul.f32 1.442695, %v3443_v21  ;;  %v1953_v30 = vsub.f32 %v962_v11, %v7799_v9  ;;  %v2701_v31 = vmul.f32 %v1951_v22, %v1951_v22  ;;  %v982_v11 = vpop.permute.xlu1 %981  ;;  %1461 = vperm.xlu1 %6049, %v260_v16   ;;  %1456 = vperm.xlu0 %6048, %v259_v17  }
 0x293   :  { %v6845_v32 = vpop.eup %6844  ;;  %5690 = vst [vmem:[%s11611_s2 + $0xc78] sm:$0xff] %v6843_v28  ;;  %6860 = vpow2.f32 %v4594_v26  ;;  %v4598_v33 = vmul.f32 1.442695, %v3444_v25  ;;  %v2702_v34 = vmul.f32 %v1952_v27, %v1952_v27  ;;  %v1948_v35 = vsub.f32 %v957_v23, %v7795_v7 }
 0x294   :  { %v6847_v37 = vpop.eup %6846  ;;  %5691 = vst [vmem:[%s11611_s2 + $0xc80] sm:$0xff] %v6845_v32  ;;  %6862 = vpow2.f32 %v4596_v29  ;;  %v2703_v38 = vmul.f32 %v1953_v30, %v1953_v30  ;;  %v3451_v39 = vmul.f32 -10.0, %v2701_v31  ;;  %v1949_v40 = vsub.f32 %v957_v23, %v7797_v8  ;;  %v977_v31 = vpop.permute.xlu0 %976 }
 0x295   :  { %5692 = vst.msk [vmem:[%s11611_s2 + $0xc88] sm:$0xff] %vm5292_vm0, %v6847_v37  ;;  %6864 = vpow2.f32 %v4598_v33  ;;  %v3452_v43 = vmul.f32 -10.0, %v2702_v34  ;;  %v1950_v44 = vsub.f32 %v957_v23, %v7799_v9  ;;  %v2698_v45 = vmul.f32 %v1948_v35, %v1948_v35 }
 0x296   :  { %v3453_v46 = vmul.f32 -10.0, %v2703_v38  ;;  %v4612_v47 = vmul.f32 1.442695, %v3451_v39  ;;  %v2699_v48 = vmul.f32 %v1949_v40, %v1949_v40  ;;  %v1957_v49 = vsub.f32 %v972_v36, %v7795_v7 }
 0x297   :  { %v6849_v50 = vpop.eup %6848  ;;  %v4614_v51 = vmul.f32 1.442695, %v3452_v43  ;;  %v2700_v52 = vmul.f32 %v1950_v44, %v1950_v44  ;;  %v3448_v53 = vmul.f32 -10.0, %v2698_v45  ;;  %v1958_v54 = vsub.f32 %v972_v36, %v7797_v8  ;;  %v262_v43 = vld [vmem:[%s11609_s0 + $0x778] sm:$0xff]  ;;  %v261_v44 = vld [vmem:[%s11609_s0 + $0x770] sm:$0xff] }
 0x298   :  { %v6851_v55 = vpop.eup %6850  ;;  %5687 = vst [vmem:[%s11611_s2 + $0xc60] sm:$0xff] %v6849_v50  ;;  %6866 = vpow2.f32 %v4612_v47  ;;  %v4616_v56 = vmul.f32 1.442695, %v3453_v46  ;;  %v3449_v57 = vmul.f32 -10.0, %v2699_v48  ;;  %v1959_v58 = vsub.f32 %v972_v36, %v7799_v9  ;;  %1471 = vperm.xlu1 %6049, %v262_v43   ;;  %1466 = vperm.xlu0 %6048, %v261_v44  }
 0x299   :  { %v6853_v60 = vpop.eup %6852  ;;  %5688 = vst [vmem:[%s11611_s2 + $0xc68] sm:$0xff] %v6851_v55  ;;  %6868 = vpow2.f32 %v4614_v51  ;;  %v3450_v61 = vmul.f32 -10.0, %v2700_v52  ;;  %v4606_v62 = vmul.f32 1.442695, %v3448_v53  ;;  %v2707_v63 = vmul.f32 %v1957_v49, %v1957_v49  ;;  %v992_v49 = vpop.permute.xlu1 %991 }
 0x29a   :  { %v6855_v0 = vpop.eup %6854  ;;  %5689 = vst.msk [vmem:[%s11611_s2 + $0xc70] sm:$0xff] %vm5292_vm0, %v6853_v60  ;;  %6870 = vpow2.f32 %v4616_v56  ;;  %v4608_v1 = vmul.f32 1.442695, %v3449_v57  ;;  %v2708_v2 = vmul.f32 %v1958_v54, %v1958_v54  ;;  %v2709_v3 = vmul.f32 %v1959_v58, %v1959_v58 }
 0x29b   :  { %v6857_v4 = vpop.eup %6856  ;;  %5696 = vst [vmem:[%s11611_s2 + $0xca8] sm:$0xff] %v6855_v0  ;;  %6872 = vpow2.f32 %v4606_v62  ;;  %v4610_v5 = vmul.f32 1.442695, %v3450_v61  ;;  %v3457_v6 = vmul.f32 -10.0, %v2707_v63  ;;  %v1954_v10 = vsub.f32 %v967_v59, %v7795_v7  ;;  %v987_v62 = vpop.permute.xlu0 %986 }
 0x29c   :  { %v6859_v12 = vpop.eup %6858  ;;  %5697 = vst [vmem:[%s11611_s2 + $0xcb0] sm:$0xff] %v6857_v4  ;;  %6874 = vpow2.f32 %v4608_v1  ;;  %v3458_v13 = vmul.f32 -10.0, %v2708_v2  ;;  %v3459_v14 = vmul.f32 -10.0, %v2709_v3  ;;  %v1955_v15 = vsub.f32 %v967_v59, %v7797_v8 }
 0x29d   :  { %v6861_v18 = vpop.eup %6860  ;;  %5698 = vst.msk [vmem:[%s11611_s2 + $0xcb8] sm:$0xff] %vm5292_vm0, %v6859_v12  ;;  %6876 = vpow2.f32 %v4610_v5  ;;  %v4624_v19 = vmul.f32 1.442695, %v3457_v6  ;;  %v1956_v20 = vsub.f32 %v967_v59, %v7799_v9  ;;  %v2704_v21 = vmul.f32 %v1954_v10, %v1954_v10 }
 0x29e   :  { %v6863_v22 = vpop.eup %6862  ;;  %5693 = vst [vmem:[%s11611_s2 + $0xc90] sm:$0xff] %v6861_v18  ;;  %v4626_v23 = vmul.f32 1.442695, %v3458_v13  ;;  %v4628_v24 = vmul.f32 1.442695, %v3459_v14  ;;  %v2705_v25 = vmul.f32 %v1955_v15, %v1955_v15  ;;  %v1963_v26 = vsub.f32 %v982_v11, %v7795_v7 }
 0x29f   :  { %v6865_v27 = vpop.eup %6864  ;;  %5694 = vst [vmem:[%s11611_s2 + $0xc98] sm:$0xff] %v6863_v22  ;;  %6878 = vpow2.f32 %v4624_v19  ;;  %v2706_v28 = vmul.f32 %v1956_v20, %v1956_v20  ;;  %v3454_v29 = vmul.f32 -10.0, %v2704_v21  ;;  %v1964_v30 = vsub.f32 %v982_v11, %v7797_v8  ;;  %v264_v19 = vld [vmem:[%s11609_s0 + $0x788] sm:$0xff]  ;;  %v263_v20 = vld [vmem:[%s11609_s0 + $0x780] sm:$0xff] }
 0x2a0   :  { %5695 = vst.msk [vmem:[%s11611_s2 + $0xca0] sm:$0xff] %vm5292_vm0, %v6865_v27  ;;  %6880 = vpow2.f32 %v4626_v23  ;;  %v3455_v32 = vmul.f32 -10.0, %v2705_v25  ;;  %v1965_v33 = vsub.f32 %v982_v11, %v7799_v9  ;;  %v2713_v34 = vmul.f32 %v1963_v26, %v1963_v26  ;;  %v1002_v25 = vpop.permute.xlu1 %1001  ;;  %1481 = vperm.xlu1 %6049, %v264_v19   ;;  %1476 = vperm.xlu0 %6048, %v263_v20  }
 0x2a1   :  { %6882 = vpow2.f32 %v4628_v24  ;;  %v3456_v35 = vmul.f32 -10.0, %v2706_v28  ;;  %v4618_v36 = vmul.f32 1.442695, %v3454_v29  ;;  %v2714_v37 = vmul.f32 %v1964_v30, %v1964_v30 }
 0x2a2   :  { %v6867_v38 = vpop.eup %6866  ;;  %v4620_v39 = vmul.f32 1.442695, %v3455_v32  ;;  %v2715_v40 = vmul.f32 %v1965_v33, %v1965_v33  ;;  %v3463_v41 = vmul.f32 -10.0, %v2713_v34  ;;  %v1960_v42 = vsub.f32 %v977_v31, %v7795_v7 }
 0x2a3   :  { %v6869_v45 = vpop.eup %6868  ;;  %5702 = vst [vmem:[%s11611_s2 + $0xcd8] sm:$0xff] %v6867_v38  ;;  %6884 = vpow2.f32 %v4618_v36  ;;  %v4622_v46 = vmul.f32 1.442695, %v3456_v35  ;;  %v3464_v47 = vmul.f32 -10.0, %v2714_v37  ;;  %v1961_v48 = vsub.f32 %v977_v31, %v7797_v8  ;;  %v997_v37 = vpop.permute.xlu0 %996 }
 0x2a4   :  { %v6871_v50 = vpop.eup %6870  ;;  %5703 = vst [vmem:[%s11611_s2 + $0xce0] sm:$0xff] %v6869_v45  ;;  %6886 = vpow2.f32 %v4620_v39  ;;  %v3465_v51 = vmul.f32 -10.0, %v2715_v40  ;;  %v4636_v52 = vmul.f32 1.442695, %v3463_v41  ;;  %v1962_v53 = vsub.f32 %v977_v31, %v7799_v9 }
 0x2a5   :  { %v6873_v54 = vpop.eup %6872  ;;  %5704 = vst.msk [vmem:[%s11611_s2 + $0xce8] sm:$0xff] %vm5292_vm0, %v6871_v50  ;;  %6888 = vpow2.f32 %v4622_v46  ;;  %v4638_v55 = vmul.f32 1.442695, %v3464_v47  ;;  %v2710_v56 = vmul.f32 %v1960_v42, %v1960_v42  ;;  %v2711_v57 = vmul.f32 %v1961_v48, %v1961_v48  ;;  %v1012_v50 = vpop.permute.xlu1 %1011 }
 0x2a6   :  { %v6875_v58 = vpop.eup %6874  ;;  %5699 = vst [vmem:[%s11611_s2 + $0xcc0] sm:$0xff] %v6873_v54  ;;  %6890 = vpow2.f32 %v4636_v52  ;;  %v4640_v59 = vmul.f32 1.442695, %v3465_v51  ;;  %v2712_v60 = vmul.f32 %v1962_v53, %v1962_v53  ;;  %v1969_v61 = vsub.f32 %v992_v49, %v7795_v7 }
 0x2a7   :  { %v6877_v63 = vpop.eup %6876  ;;  %5700 = vst [vmem:[%s11611_s2 + $0xcc8] sm:$0xff] %v6875_v58  ;;  %6892 = vpow2.f32 %v4638_v55  ;;  %v3460_v0 = vmul.f32 -10.0, %v2710_v56  ;;  %v3461_v1 = vmul.f32 -10.0, %v2711_v57  ;;  %v1970_v2 = vsub.f32 %v992_v49, %v7797_v8  ;;  %v266_v55 = vld [vmem:[%s11609_s0 + $0x798] sm:$0xff]  ;;  %v265_v56 = vld [vmem:[%s11609_s0 + $0x790] sm:$0xff] }
 0x2a8   :  { %5701 = vst.msk [vmem:[%s11611_s2 + $0xcd0] sm:$0xff] %vm5292_vm0, %v6877_v63  ;;  %6894 = vpow2.f32 %v4640_v59  ;;  %v3462_v3 = vmul.f32 -10.0, %v2712_v60  ;;  %v1971_v4 = vsub.f32 %v992_v49, %v7799_v9  ;;  %v2719_v5 = vmul.f32 %v1969_v61, %v1969_v61  ;;  %1491 = vperm.xlu1 %6049, %v266_v55   ;;  %1486 = vperm.xlu0 %6048, %v265_v56  }
 0x2a9   :  { %v6879_v6 = vpop.eup %6878  ;;  %v4630_v10 = vmul.f32 1.442695, %v3460_v0  ;;  %v4632_v11 = vmul.f32 1.442695, %v3461_v1  ;;  %v2720_v12 = vmul.f32 %v1970_v2, %v1970_v2  ;;  %v1966_v13 = vsub.f32 %v987_v62, %v7795_v7 }
 0x2aa   :  { %v6881_v14 = vpop.eup %6880  ;;  %5708 = vst [vmem:[%s11611_s2 + $0xd08] sm:$0xff] %v6879_v6  ;;  %v4634_v15 = vmul.f32 1.442695, %v3462_v3  ;;  %v2721_v16 = vmul.f32 %v1971_v4, %v1971_v4  ;;  %v3469_v17 = vmul.f32 -10.0, %v2719_v5  ;;  %v1967_v18 = vsub.f32 %v987_v62, %v7797_v8 }
 0x2ab   :  { %v6883_v21 = vpop.eup %6882  ;;  %5709 = vst [vmem:[%s11611_s2 + $0xd10] sm:$0xff] %v6881_v14  ;;  %6896 = vpow2.f32 %v4630_v10  ;;  %v3470_v22 = vmul.f32 -10.0, %v2720_v12  ;;  %v1968_v23 = vsub.f32 %v987_v62, %v7799_v9  ;;  %v2716_v24 = vmul.f32 %v1966_v13, %v1966_v13  ;;  %v1007_v12 = vpop.permute.xlu0 %1006 }
 0x2ac   :  { %5710 = vst.msk [vmem:[%s11611_s2 + $0xd18] sm:$0xff] %vm5292_vm0, %v6883_v21  ;;  %6898 = vpow2.f32 %v4632_v11  ;;  %v3471_v26 = vmul.f32 -10.0, %v2721_v16  ;;  %v4648_v27 = vmul.f32 1.442695, %v3469_v17  ;;  %v2717_v28 = vmul.f32 %v1967_v18, %v1967_v18 }
 0x2ad   :  { %v6885_v29 = vpop.eup %6884  ;;  %6900 = vpow2.f32 %v4634_v15  ;;  %v4650_v30 = vmul.f32 1.442695, %v3470_v22  ;;  %v2718_v31 = vmul.f32 %v1968_v23, %v1968_v23  ;;  %v3466_v32 = vmul.f32 -10.0, %v2716_v24 }
 0x2ae   :  { %v6887_v33 = vpop.eup %6886  ;;  %5705 = vst [vmem:[%s11611_s2 + $0xcf0] sm:$0xff] %v6885_v29  ;;  %6902 = vpow2.f32 %v4648_v27  ;;  %v4652_v34 = vmul.f32 1.442695, %v3471_v26  ;;  %v3467_v35 = vmul.f32 -10.0, %v2717_v28  ;;  %v1975_v36 = vsub.f32 %v1002_v25, %v7795_v7 }
 0x2af   :  { %v6889_v38 = vpop.eup %6888  ;;  %5706 = vst [vmem:[%s11611_s2 + $0xcf8] sm:$0xff] %v6887_v33  ;;  %6904 = vpow2.f32 %v4650_v30  ;;  %v3468_v39 = vmul.f32 -10.0, %v2718_v31  ;;  %v4642_v40 = vmul.f32 1.442695, %v3466_v32  ;;  %v1976_v41 = vsub.f32 %v1002_v25, %v7797_v8  ;;  %v268_v30 = vld [vmem:[%s11609_s0 + $0x7a8] sm:$0xff]  ;;  %v267_v31 = vld [vmem:[%s11609_s0 + $0x7a0] sm:$0xff] }
 0x2b0   :  { %v6891_v42 = vpop.eup %6890  ;;  %5707 = vst.msk [vmem:[%s11611_s2 + $0xd00] sm:$0xff] %vm5292_vm0, %v6889_v38  ;;  %6906 = vpow2.f32 %v4652_v34  ;;  %v4644_v43 = vmul.f32 1.442695, %v3467_v35  ;;  %v1977_v44 = vsub.f32 %v1002_v25, %v7799_v9  ;;  %v2725_v45 = vmul.f32 %v1975_v36, %v1975_v36  ;;  %v1022_v25 = vpop.permute.xlu1 %1021  ;;  %1501 = vperm.xlu1 %6049, %v268_v30   ;;  %1496 = vperm.xlu0 %6048, %v267_v31  }
 0x2b1   :  { %v6893_v46 = vpop.eup %6892  ;;  %5714 = vst [vmem:[%s11611_s2 + $0xd38] sm:$0xff] %v6891_v42  ;;  %6908 = vpow2.f32 %v4642_v40  ;;  %v4646_v47 = vmul.f32 1.442695, %v3468_v39  ;;  %v2726_v48 = vmul.f32 %v1976_v41, %v1976_v41  ;;  %v1972_v49 = vsub.f32 %v997_v37, %v7795_v7 }
 0x2b2   :  { %v6895_v51 = vpop.eup %6894  ;;  %5715 = vst [vmem:[%s11611_s2 + $0xd40] sm:$0xff] %v6893_v46  ;;  %6910 = vpow2.f32 %v4644_v43  ;;  %v2727_v52 = vmul.f32 %v1977_v44, %v1977_v44  ;;  %v3475_v53 = vmul.f32 -10.0, %v2725_v45  ;;  %v1973_v54 = vsub.f32 %v997_v37, %v7797_v8  ;;  %v1017_v45 = vpop.permute.xlu0 %1016 }
 0x2b3   :  { %5716 = vst.msk [vmem:[%s11611_s2 + $0xd48] sm:$0xff] %vm5292_vm0, %v6895_v51  ;;  %6912 = vpow2.f32 %v4646_v47  ;;  %v3476_v57 = vmul.f32 -10.0, %v2726_v48  ;;  %v1974_v58 = vsub.f32 %v997_v37, %v7799_v9  ;;  %v2722_v59 = vmul.f32 %v1972_v49, %v1972_v49 }
 0x2b4   :  { %v3477_v60 = vmul.f32 -10.0, %v2727_v52  ;;  %v4660_v61 = vmul.f32 1.442695, %v3475_v53  ;;  %v2723_v62 = vmul.f32 %v1973_v54, %v1973_v54  ;;  %v1981_v63 = vsub.f32 %v1012_v50, %v7795_v7 }
 0x2b5   :  { %v6897_v0 = vpop.eup %6896  ;;  %v4662_v1 = vmul.f32 1.442695, %v3476_v57  ;;  %v2724_v2 = vmul.f32 %v1974_v58, %v1974_v58  ;;  %v3472_v3 = vmul.f32 -10.0, %v2722_v59  ;;  %v1982_v4 = vsub.f32 %v1012_v50, %v7797_v8  ;;  %v270_v57 = vld [vmem:[%s11609_s0 + $0x7b8] sm:$0xff]  ;;  %v269_v58 = vld [vmem:[%s11609_s0 + $0x7b0] sm:$0xff] }
 0x2b6   :  { %v6899_v5 = vpop.eup %6898  ;;  %5711 = vst [vmem:[%s11611_s2 + $0xd20] sm:$0xff] %v6897_v0  ;;  %6914 = vpow2.f32 %v4660_v61  ;;  %v4664_v6 = vmul.f32 1.442695, %v3477_v60  ;;  %v3473_v10 = vmul.f32 -10.0, %v2723_v62  ;;  %v1983_v11 = vsub.f32 %v1012_v50, %v7799_v9  ;;  %1511 = vperm.xlu1 %6049, %v270_v57   ;;  %1506 = vperm.xlu0 %6048, %v269_v58  }
 0x2b7   :  { %v6901_v13 = vpop.eup %6900  ;;  %5712 = vst [vmem:[%s11611_s2 + $0xd28] sm:$0xff] %v6899_v5  ;;  %6916 = vpow2.f32 %v4662_v1  ;;  %v3474_v14 = vmul.f32 -10.0, %v2724_v2  ;;  %v4654_v15 = vmul.f32 1.442695, %v3472_v3  ;;  %v2731_v16 = vmul.f32 %v1981_v63, %v1981_v63  ;;  %v1032_v63 = vpop.permute.xlu1 %1031 }
 0x2b8   :  { %v6903_v17 = vpop.eup %6902  ;;  %5713 = vst.msk [vmem:[%s11611_s2 + $0xd30] sm:$0xff] %vm5292_vm0, %v6901_v13  ;;  %6918 = vpow2.f32 %v4664_v6  ;;  %v4656_v18 = vmul.f32 1.442695, %v3473_v10  ;;  %v2732_v19 = vmul.f32 %v1982_v4, %v1982_v4  ;;  %v2733_v20 = vmul.f32 %v1983_v11, %v1983_v11 }
 0x2b9   :  { %v6905_v21 = vpop.eup %6904  ;;  %5720 = vst [vmem:[%s11611_s2 + $0xd68] sm:$0xff] %v6903_v17  ;;  %6920 = vpow2.f32 %v4654_v15  ;;  %v4658_v22 = vmul.f32 1.442695, %v3474_v14  ;;  %v3481_v23 = vmul.f32 -10.0, %v2731_v16  ;;  %v1978_v24 = vsub.f32 %v1007_v12, %v7795_v7  ;;  %v1027_v15 = vpop.permute.xlu0 %1026 }
 0x2ba   :  { %v6907_v26 = vpop.eup %6906  ;;  %5721 = vst [vmem:[%s11611_s2 + $0xd70] sm:$0xff] %v6905_v21  ;;  %6922 = vpow2.f32 %v4656_v18  ;;  %v3482_v27 = vmul.f32 -10.0, %v2732_v19  ;;  %v3483_v28 = vmul.f32 -10.0, %v2733_v20  ;;  %v1979_v29 = vsub.f32 %v1007_v12, %v7797_v8 }
 0x2bb   :  { %v6909_v32 = vpop.eup %6908  ;;  %5722 = vst.msk [vmem:[%s11611_s2 + $0xd78] sm:$0xff] %vm5292_vm0, %v6907_v26  ;;  %6924 = vpow2.f32 %v4658_v22  ;;  %v4672_v33 = vmul.f32 1.442695, %v3481_v23  ;;  %v1980_v34 = vsub.f32 %v1007_v12, %v7799_v9  ;;  %v2728_v35 = vmul.f32 %v1978_v24, %v1978_v24 }
 0x2bc   :  { %v6911_v36 = vpop.eup %6910  ;;  %5717 = vst [vmem:[%s11611_s2 + $0xd50] sm:$0xff] %v6909_v32  ;;  %v4674_v37 = vmul.f32 1.442695, %v3482_v27  ;;  %v4676_v38 = vmul.f32 1.442695, %v3483_v28  ;;  %v2729_v39 = vmul.f32 %v1979_v29, %v1979_v29  ;;  %v1987_v40 = vsub.f32 %v1022_v25, %v7795_v7 }
 0x2bd   :  { %v6913_v41 = vpop.eup %6912  ;;  %5718 = vst [vmem:[%s11611_s2 + $0xd58] sm:$0xff] %v6911_v36  ;;  %6926 = vpow2.f32 %v4672_v33  ;;  %v2730_v42 = vmul.f32 %v1980_v34, %v1980_v34  ;;  %v3478_v43 = vmul.f32 -10.0, %v2728_v35  ;;  %v1988_v44 = vsub.f32 %v1022_v25, %v7797_v8  ;;  %v272_v33 = vld [vmem:[%s11609_s0 + $0x7c8] sm:$0xff]  ;;  %v271_v34 = vld [vmem:[%s11609_s0 + $0x7c0] sm:$0xff] }
 0x2be   :  { %5719 = vst.msk [vmem:[%s11611_s2 + $0xd60] sm:$0xff] %vm5292_vm0, %v6913_v41  ;;  %6928 = vpow2.f32 %v4674_v37  ;;  %v3479_v46 = vmul.f32 -10.0, %v2729_v39  ;;  %v1989_v47 = vsub.f32 %v1022_v25, %v7799_v9  ;;  %v2737_v48 = vmul.f32 %v1987_v40, %v1987_v40  ;;  %v1042_v39 = vpop.permute.xlu1 %1041  ;;  %1521 = vperm.xlu1 %6049, %v272_v33   ;;  %1516 = vperm.xlu0 %6048, %v271_v34  }
 0x2bf   :  { %6930 = vpow2.f32 %v4676_v38  ;;  %v3480_v49 = vmul.f32 -10.0, %v2730_v42  ;;  %v4666_v50 = vmul.f32 1.442695, %v3478_v43  ;;  %v2738_v51 = vmul.f32 %v1988_v44, %v1988_v44 }
 0x2c0   :  { %v6915_v52 = vpop.eup %6914  ;;  %v4668_v53 = vmul.f32 1.442695, %v3479_v46  ;;  %v2739_v54 = vmul.f32 %v1989_v47, %v1989_v47  ;;  %v3487_v55 = vmul.f32 -10.0, %v2737_v48  ;;  %v1984_v56 = vsub.f32 %v1017_v45, %v7795_v7 }
 0x2c1   :  { %v6917_v59 = vpop.eup %6916  ;;  %5726 = vst [vmem:[%s11611_s2 + $0xd98] sm:$0xff] %v6915_v52  ;;  %6932 = vpow2.f32 %v4666_v50  ;;  %v4670_v60 = vmul.f32 1.442695, %v3480_v49  ;;  %v3488_v61 = vmul.f32 -10.0, %v2738_v51  ;;  %v1985_v62 = vsub.f32 %v1017_v45, %v7797_v8  ;;  %v1037_v51 = vpop.permute.xlu0 %1036 }
 0x2c2   :  { %v6919_v0 = vpop.eup %6918  ;;  %5727 = vst [vmem:[%s11611_s2 + $0xda0] sm:$0xff] %v6917_v59  ;;  %6934 = vpow2.f32 %v4668_v53  ;;  %v3489_v1 = vmul.f32 -10.0, %v2739_v54  ;;  %v4684_v2 = vmul.f32 1.442695, %v3487_v55  ;;  %v1986_v3 = vsub.f32 %v1017_v45, %v7799_v9 }
 0x2c3   :  { %v6921_v4 = vpop.eup %6920  ;;  %5728 = vst.msk [vmem:[%s11611_s2 + $0xda8] sm:$0xff] %vm5292_vm0, %v6919_v0  ;;  %6936 = vpow2.f32 %v4670_v60  ;;  %v4686_v5 = vmul.f32 1.442695, %v3488_v61  ;;  %v2734_v6 = vmul.f32 %v1984_v56, %v1984_v56  ;;  %v2735_v10 = vmul.f32 %v1985_v62, %v1985_v62  ;;  %v1052_v0 = vpop.permute.xlu1 %1051 }
 0x2c4   :  { %v6923_v11 = vpop.eup %6922  ;;  %5723 = vst [vmem:[%s11611_s2 + $0xd80] sm:$0xff] %v6921_v4  ;;  %6938 = vpow2.f32 %v4684_v2  ;;  %v4688_v12 = vmul.f32 1.442695, %v3489_v1  ;;  %v2736_v13 = vmul.f32 %v1986_v3, %v1986_v3  ;;  %v1993_v14 = vsub.f32 %v1032_v63, %v7795_v7 }
 0x2c5   :  { %v6925_v16 = vpop.eup %6924  ;;  %5724 = vst [vmem:[%s11611_s2 + $0xd88] sm:$0xff] %v6923_v11  ;;  %6940 = vpow2.f32 %v4686_v5  ;;  %v3484_v17 = vmul.f32 -10.0, %v2734_v6  ;;  %v3485_v18 = vmul.f32 -10.0, %v2735_v10  ;;  %v1994_v19 = vsub.f32 %v1032_v63, %v7797_v8 }
 0x2c6   :  { %5725 = vst.msk [vmem:[%s11611_s2 + $0xd90] sm:$0xff] %vm5292_vm0, %v6925_v16  ;;  %6942 = vpow2.f32 %v4688_v12  ;;  %v3486_v20 = vmul.f32 -10.0, %v2736_v13  ;;  %v1995_v21 = vsub.f32 %v1032_v63, %v7799_v9  ;;  %v2743_v22 = vmul.f32 %v1993_v14, %v1993_v14 }
 0x2c7   :  { %v6927_v23 = vpop.eup %6926  ;;  %v4678_v24 = vmul.f32 1.442695, %v3484_v17  ;;  %v4680_v25 = vmul.f32 1.442695, %v3485_v18  ;;  %v2744_v26 = vmul.f32 %v1994_v19, %v1994_v19  ;;  %v1990_v27 = vsub.f32 %v1027_v15, %v7795_v7 }
 0x2c8   :  { %v6929_v28 = vpop.eup %6928  ;;  %5732 = vst [vmem:[%s11611_s2 + $0xdc8] sm:$0xff] %v6927_v23  ;;  %v4682_v29 = vmul.f32 1.442695, %v3486_v20  ;;  %v2745_v30 = vmul.f32 %v1995_v21, %v1995_v21  ;;  %v3493_v31 = vmul.f32 -10.0, %v2743_v22  ;;  %v1991_v32 = vsub.f32 %v1027_v15, %v7797_v8 }
 0x2c9   :  { %v6931_v35 = vpop.eup %6930  ;;  %5733 = vst [vmem:[%s11611_s2 + $0xdd0] sm:$0xff] %v6929_v28  ;;  %6944 = vpow2.f32 %v4678_v24  ;;  %v3494_v36 = vmul.f32 -10.0, %v2744_v26  ;;  %v1992_v37 = vsub.f32 %v1027_v15, %v7799_v9  ;;  %v2740_v38 = vmul.f32 %v1990_v27, %v1990_v27  ;;  %v1047_v24 = vpop.permute.xlu0 %1046 }
 0x2ca   :  { %5734 = vst.msk [vmem:[%s11611_s2 + $0xdd8] sm:$0xff] %vm5292_vm0, %v6931_v35  ;;  %6946 = vpow2.f32 %v4680_v25  ;;  %v3495_v40 = vmul.f32 -10.0, %v2745_v30  ;;  %v4696_v41 = vmul.f32 1.442695, %v3493_v31  ;;  %v2741_v42 = vmul.f32 %v1991_v32, %v1991_v32 }
 0x2cb   :  { %v6933_v43 = vpop.eup %6932  ;;  %6948 = vpow2.f32 %v4682_v29  ;;  %v4698_v44 = vmul.f32 1.442695, %v3494_v36  ;;  %v2742_v45 = vmul.f32 %v1992_v37, %v1992_v37  ;;  %v3490_v46 = vmul.f32 -10.0, %v2740_v38  ;;  %v1062_v37 = vpop.permute.xlu1 %1061 }
 0x2cc   :  { %v6935_v47 = vpop.eup %6934  ;;  %5729 = vst [vmem:[%s11611_s2 + $0xdb0] sm:$0xff] %v6933_v43  ;;  %6950 = vpow2.f32 %v4696_v41  ;;  %v4700_v48 = vmul.f32 1.442695, %v3495_v40  ;;  %v3491_v49 = vmul.f32 -10.0, %v2741_v42  ;;  %v1999_v50 = vsub.f32 %v1042_v39, %v7795_v7 }
 0x2cd   :  { %v6937_v52 = vpop.eup %6936  ;;  %5730 = vst [vmem:[%s11611_s2 + $0xdb8] sm:$0xff] %v6935_v47  ;;  %6952 = vpow2.f32 %v4698_v44  ;;  %v3492_v53 = vmul.f32 -10.0, %v2742_v45  ;;  %v4690_v54 = vmul.f32 1.442695, %v3490_v46  ;;  %v2000_v55 = vsub.f32 %v1042_v39, %v7797_v8 }
 0x2ce   :  { %v6939_v56 = vpop.eup %6938  ;;  %5731 = vst.msk [vmem:[%s11611_s2 + $0xdc0] sm:$0xff] %vm5292_vm0, %v6937_v52  ;;  %6954 = vpow2.f32 %v4700_v48  ;;  %v4692_v57 = vmul.f32 1.442695, %v3491_v49  ;;  %v2001_v58 = vsub.f32 %v1042_v39, %v7799_v9  ;;  %v2749_v59 = vmul.f32 %v1999_v50, %v1999_v50 }
 0x2cf   :  { %v6941_v60 = vpop.eup %6940  ;;  %5738 = vst [vmem:[%s11611_s2 + $0xdf8] sm:$0xff] %v6939_v56  ;;  %6956 = vpow2.f32 %v4690_v54  ;;  %v4694_v61 = vmul.f32 1.442695, %v3492_v53  ;;  %v2750_v62 = vmul.f32 %v2000_v55, %v2000_v55  ;;  %v1996_v63 = vsub.f32 %v1037_v51, %v7795_v7  ;;  %v1057_v55 = vpop.permute.xlu0 %1056 }
 0x2d0   :  { %v6943_v1 = vpop.eup %6942  ;;  %5739 = vst [vmem:[%s11611_s2 + $0xe00] sm:$0xff] %v6941_v60  ;;  %6958 = vpow2.f32 %v4692_v57  ;;  %v2751_v2 = vmul.f32 %v2001_v58, %v2001_v58  ;;  %v3499_v3 = vmul.f32 -10.0, %v2749_v59  ;;  %v1997_v4 = vsub.f32 %v1037_v51, %v7797_v8 }
 0x2d1   :  { %5740 = vst.msk [vmem:[%s11611_s2 + $0xe08] sm:$0xff] %vm5292_vm0, %v6943_v1  ;;  %6960 = vpow2.f32 %v4694_v61  ;;  %v3500_v5 = vmul.f32 -10.0, %v2750_v62  ;;  %v1998_v6 = vsub.f32 %v1037_v51, %v7799_v9  ;;  %v2746_v10 = vmul.f32 %v1996_v63, %v1996_v63 }
 0x2d2   :  { %v3501_v11 = vmul.f32 -10.0, %v2751_v2  ;;  %v4708_v12 = vmul.f32 1.442695, %v3499_v3  ;;  %v2747_v13 = vmul.f32 %v1997_v4, %v1997_v4  ;;  %v2005_v14 = vsub.f32 %v1052_v0, %v7795_v7 }
 0x2d3   :  { %v6945_v15 = vpop.eup %6944  ;;  %v4710_v16 = vmul.f32 1.442695, %v3500_v5  ;;  %v2748_v17 = vmul.f32 %v1998_v6, %v1998_v6  ;;  %v3496_v18 = vmul.f32 -10.0, %v2746_v10  ;;  %v2006_v19 = vsub.f32 %v1052_v0, %v7797_v8  ;;  %v1072_v10 = vpop.permute.xlu1 %1071 }
 0x2d4   :  { %v6947_v20 = vpop.eup %6946  ;;  %5735 = vst [vmem:[%s11611_s2 + $0xde0] sm:$0xff] %v6945_v15  ;;  %6962 = vpow2.f32 %v4708_v12  ;;  %v4712_v21 = vmul.f32 1.442695, %v3501_v11  ;;  %v3497_v22 = vmul.f32 -10.0, %v2747_v13  ;;  %v2007_v23 = vsub.f32 %v1052_v0, %v7799_v9 }
 0x2d5   :  { %v6949_v25 = vpop.eup %6948  ;;  %5736 = vst [vmem:[%s11611_s2 + $0xde8] sm:$0xff] %v6947_v20  ;;  %6964 = vpow2.f32 %v4710_v16  ;;  %v3498_v26 = vmul.f32 -10.0, %v2748_v17  ;;  %v4702_v27 = vmul.f32 1.442695, %v3496_v18  ;;  %v2755_v28 = vmul.f32 %v2005_v14, %v2005_v14 }
 0x2d6   :  { %v6951_v29 = vpop.eup %6950  ;;  %5737 = vst.msk [vmem:[%s11611_s2 + $0xdf0] sm:$0xff] %vm5292_vm0, %v6949_v25  ;;  %6966 = vpow2.f32 %v4712_v21  ;;  %v4704_v30 = vmul.f32 1.442695, %v3497_v22  ;;  %v2756_v31 = vmul.f32 %v2006_v19, %v2006_v19  ;;  %v2757_v32 = vmul.f32 %v2007_v23, %v2007_v23  ;;  %v1067_v23 = vpop.permute.xlu0 %1066 }
 0x2d7   :  { %v6953_v33 = vpop.eup %6952  ;;  %5744 = vst [vmem:[%s11611_s2 + $0xe28] sm:$0xff] %v6951_v29  ;;  %6968 = vpow2.f32 %v4702_v27  ;;  %v4706_v34 = vmul.f32 1.442695, %v3498_v26  ;;  %v3505_v35 = vmul.f32 -10.0, %v2755_v28  ;;  %v2002_v36 = vsub.f32 %v1047_v24, %v7795_v7 }
 0x2d8   :  { %v6955_v38 = vpop.eup %6954  ;;  %5745 = vst [vmem:[%s11611_s2 + $0xe30] sm:$0xff] %v6953_v33  ;;  %6970 = vpow2.f32 %v4704_v30  ;;  %v3506_v39 = vmul.f32 -10.0, %v2756_v31  ;;  %v3507_v40 = vmul.f32 -10.0, %v2757_v32  ;;  %v2003_v41 = vsub.f32 %v1047_v24, %v7797_v8 }
 0x2d9   :  { %v6957_v42 = vpop.eup %6956  ;;  %5746 = vst.msk [vmem:[%s11611_s2 + $0xe38] sm:$0xff] %vm5292_vm0, %v6955_v38  ;;  %6972 = vpow2.f32 %v4706_v34  ;;  %v4720_v43 = vmul.f32 1.442695, %v3505_v35  ;;  %v2004_v44 = vsub.f32 %v1047_v24, %v7799_v9  ;;  %v2752_v45 = vmul.f32 %v2002_v36, %v2002_v36 }
 0x2da   :  { %v6959_v46 = vpop.eup %6958  ;;  %5741 = vst [vmem:[%s11611_s2 + $0xe10] sm:$0xff] %v6957_v42  ;;  %v4722_v47 = vmul.f32 1.442695, %v3506_v39  ;;  %v4724_v48 = vmul.f32 1.442695, %v3507_v40  ;;  %v2753_v49 = vmul.f32 %v2003_v41, %v2003_v41  ;;  %v2011_v50 = vsub.f32 %v1062_v37, %v7795_v7 }
 0x2db   :  { %v6961_v51 = vpop.eup %6960  ;;  %5742 = vst [vmem:[%s11611_s2 + $0xe18] sm:$0xff] %v6959_v46  ;;  %6974 = vpow2.f32 %v4720_v43  ;;  %v2754_v52 = vmul.f32 %v2004_v44, %v2004_v44  ;;  %v3502_v53 = vmul.f32 -10.0, %v2752_v45  ;;  %v2012_v54 = vsub.f32 %v1062_v37, %v7797_v8  ;;  %v1082_v45 = vpop.permute.xlu1 %1081 }
 0x2dc   :  { %5743 = vst.msk [vmem:[%s11611_s2 + $0xe20] sm:$0xff] %vm5292_vm0, %v6961_v51  ;;  %6976 = vpow2.f32 %v4722_v47  ;;  %v3503_v56 = vmul.f32 -10.0, %v2753_v49  ;;  %v2013_v57 = vsub.f32 %v1062_v37, %v7799_v9  ;;  %v2761_v58 = vmul.f32 %v2011_v50, %v2011_v50 }
 0x2dd   :  { %6978 = vpow2.f32 %v4724_v48  ;;  %v3504_v59 = vmul.f32 -10.0, %v2754_v52  ;;  %v4714_v60 = vmul.f32 1.442695, %v3502_v53  ;;  %v2762_v61 = vmul.f32 %v2012_v54, %v2012_v54 }
 0x2de   :  { %v6963_v62 = vpop.eup %6962  ;;  %v4716_v63 = vmul.f32 1.442695, %v3503_v56  ;;  %v2763_v0 = vmul.f32 %v2013_v57, %v2013_v57  ;;  %v3511_v1 = vmul.f32 -10.0, %v2761_v58  ;;  %v2008_v2 = vsub.f32 %v1057_v55, %v7795_v7  ;;  %v1077_v57 = vpop.permute.xlu0 %1076 }
 0x2df   :  { %v6965_v3 = vpop.eup %6964  ;;  %5750 = vst [vmem:[%s11611_s2 + $0xe58] sm:$0xff] %v6963_v62  ;;  %6980 = vpow2.f32 %v4714_v60  ;;  %v4718_v4 = vmul.f32 1.442695, %v3504_v59  ;;  %v3512_v5 = vmul.f32 -10.0, %v2762_v61  ;;  %v2009_v6 = vsub.f32 %v1057_v55, %v7797_v8 }
 0x2e0   :  { %v6967_v11 = vpop.eup %6966  ;;  %5751 = vst [vmem:[%s11611_s2 + $0xe60] sm:$0xff] %v6965_v3  ;;  %6982 = vpow2.f32 %v4716_v63  ;;  %v3513_v12 = vmul.f32 -10.0, %v2763_v0  ;;  %v4732_v13 = vmul.f32 1.442695, %v3511_v1  ;;  %v2010_v14 = vsub.f32 %v1057_v55, %v7799_v9 }
 0x2e1   :  { %v6969_v15 = vpop.eup %6968  ;;  %5752 = vst.msk [vmem:[%s11611_s2 + $0xe68] sm:$0xff] %vm5292_vm0, %v6967_v11  ;;  %6984 = vpow2.f32 %v4718_v4  ;;  %v4734_v16 = vmul.f32 1.442695, %v3512_v5  ;;  %v2758_v17 = vmul.f32 %v2008_v2, %v2008_v2  ;;  %v2759_v18 = vmul.f32 %v2009_v6, %v2009_v6  ;;  %v1092_v6 = vpop.permute.xlu1 %1091 }
 0x2e2   :  { %v6971_v19 = vpop.eup %6970  ;;  %5747 = vst [vmem:[%s11611_s2 + $0xe40] sm:$0xff] %v6969_v15  ;;  %6986 = vpow2.f32 %v4732_v13  ;;  %v4736_v20 = vmul.f32 1.442695, %v3513_v12  ;;  %v2760_v21 = vmul.f32 %v2010_v14, %v2010_v14  ;;  %v2017_v22 = vsub.f32 %v1072_v10, %v7795_v7 }
 0x2e3   :  { %v6973_v24 = vpop.eup %6972  ;;  %5748 = vst [vmem:[%s11611_s2 + $0xe48] sm:$0xff] %v6971_v19  ;;  %6988 = vpow2.f32 %v4734_v16  ;;  %v3508_v25 = vmul.f32 -10.0, %v2758_v17  ;;  %v3509_v26 = vmul.f32 -10.0, %v2759_v18  ;;  %v2018_v27 = vsub.f32 %v1072_v10, %v7797_v8 }
 0x2e4   :  { %5749 = vst.msk [vmem:[%s11611_s2 + $0xe50] sm:$0xff] %vm5292_vm0, %v6973_v24  ;;  %6990 = vpow2.f32 %v4736_v20  ;;  %v3510_v28 = vmul.f32 -10.0, %v2760_v21  ;;  %v2019_v29 = vsub.f32 %v1072_v10, %v7799_v9  ;;  %v2767_v30 = vmul.f32 %v2017_v22, %v2017_v22 }
 0x2e5   :  { %v6975_v31 = vpop.eup %6974  ;;  %v4726_v32 = vmul.f32 1.442695, %v3508_v25  ;;  %v4728_v33 = vmul.f32 1.442695, %v3509_v26  ;;  %v2768_v34 = vmul.f32 %v2018_v27, %v2018_v27  ;;  %v2014_v35 = vsub.f32 %v1067_v23, %v7795_v7 }
 0x2e6   :  { %v6977_v36 = vpop.eup %6976  ;;  %5756 = vst [vmem:[%s11611_s2 + $0xe88] sm:$0xff] %v6975_v31  ;;  %v4730_v37 = vmul.f32 1.442695, %v3510_v28  ;;  %v2769_v38 = vmul.f32 %v2019_v29, %v2019_v29  ;;  %v3517_v39 = vmul.f32 -10.0, %v2767_v30  ;;  %v2015_v40 = vsub.f32 %v1067_v23, %v7797_v8  ;;  %v1087_v30 = vpop.permute.xlu0 %1086 }
 0x2e7   :  { %v6979_v41 = vpop.eup %6978  ;;  %5757 = vst [vmem:[%s11611_s2 + $0xe90] sm:$0xff] %v6977_v36  ;;  %6992 = vpow2.f32 %v4726_v32  ;;  %v3518_v42 = vmul.f32 -10.0, %v2768_v34  ;;  %v2016_v43 = vsub.f32 %v1067_v23, %v7799_v9  ;;  %v2764_v44 = vmul.f32 %v2014_v35, %v2014_v35 }
 0x2e8   :  { %5758 = vst.msk [vmem:[%s11611_s2 + $0xe98] sm:$0xff] %vm5292_vm0, %v6979_v41  ;;  %6994 = vpow2.f32 %v4728_v33  ;;  %v3519_v46 = vmul.f32 -10.0, %v2769_v38  ;;  %v4744_v47 = vmul.f32 1.442695, %v3517_v39  ;;  %v2765_v48 = vmul.f32 %v2015_v40, %v2015_v40 }
 0x2e9   :  { %v6981_v49 = vpop.eup %6980  ;;  %6996 = vpow2.f32 %v4730_v37  ;;  %v4746_v50 = vmul.f32 1.442695, %v3518_v42  ;;  %v2766_v51 = vmul.f32 %v2016_v43, %v2016_v43  ;;  %v3514_v52 = vmul.f32 -10.0, %v2764_v44  ;;  %v1102_v43 = vpop.permute.xlu1 %1101 }
 0x2ea   :  { %v6983_v53 = vpop.eup %6982  ;;  %5753 = vst [vmem:[%s11611_s2 + $0xe70] sm:$0xff] %v6981_v49  ;;  %6998 = vpow2.f32 %v4744_v47  ;;  %v4748_v54 = vmul.f32 1.442695, %v3519_v46  ;;  %v3515_v55 = vmul.f32 -10.0, %v2765_v48  ;;  %v2023_v56 = vsub.f32 %v1082_v45, %v7795_v7 }
 0x2eb   :  { %v6985_v58 = vpop.eup %6984  ;;  %5754 = vst [vmem:[%s11611_s2 + $0xe78] sm:$0xff] %v6983_v53  ;;  %7000 = vpow2.f32 %v4746_v50  ;;  %v3516_v59 = vmul.f32 -10.0, %v2766_v51  ;;  %v4738_v60 = vmul.f32 1.442695, %v3514_v52  ;;  %v2024_v61 = vsub.f32 %v1082_v45, %v7797_v8 }
 0x2ec   :  { %v6987_v62 = vpop.eup %6986  ;;  %5755 = vst.msk [vmem:[%s11611_s2 + $0xe80] sm:$0xff] %vm5292_vm0, %v6985_v58  ;;  %7002 = vpow2.f32 %v4748_v54  ;;  %v4740_v63 = vmul.f32 1.442695, %v3515_v55  ;;  %v2025_v0 = vsub.f32 %v1082_v45, %v7799_v9  ;;  %v2773_v1 = vmul.f32 %v2023_v56, %v2023_v56 }
 0x2ed   :  { %v6989_v2 = vpop.eup %6988  ;;  %5762 = vst [vmem:[%s11611_s2 + $0xeb8] sm:$0xff] %v6987_v62  ;;  %7004 = vpow2.f32 %v4738_v60  ;;  %v4742_v3 = vmul.f32 1.442695, %v3516_v59  ;;  %v2774_v4 = vmul.f32 %v2024_v61, %v2024_v61  ;;  %v2020_v5 = vsub.f32 %v1077_v57, %v7795_v7  ;;  %v1097_v61 = vpop.permute.xlu0 %1096 }
 0x2ee   :  { %v6991_v10 = vpop.eup %6990  ;;  %5763 = vst [vmem:[%s11611_s2 + $0xec0] sm:$0xff] %v6989_v2  ;;  %7006 = vpow2.f32 %v4740_v63  ;;  %v2775_v11 = vmul.f32 %v2025_v0, %v2025_v0  ;;  %v3523_v12 = vmul.f32 -10.0, %v2773_v1  ;;  %v2021_v13 = vsub.f32 %v1077_v57, %v7797_v8 }
 0x2ef   :  { %5764 = vst.msk [vmem:[%s11611_s2 + $0xec8] sm:$0xff] %vm5292_vm0, %v6991_v10  ;;  %7008 = vpow2.f32 %v4742_v3  ;;  %v3524_v14 = vmul.f32 -10.0, %v2774_v4  ;;  %v2022_v15 = vsub.f32 %v1077_v57, %v7799_v9  ;;  %v2770_v16 = vmul.f32 %v2020_v5, %v2020_v5 }
 0x2f0   :  { %v3525_v17 = vmul.f32 -10.0, %v2775_v11  ;;  %v4756_v18 = vmul.f32 1.442695, %v3523_v12  ;;  %v2771_v19 = vmul.f32 %v2021_v13, %v2021_v13  ;;  %v2029_v20 = vsub.f32 %v1092_v6, %v7795_v7 }
 0x2f1   :  { %v6993_v21 = vpop.eup %6992  ;;  %v4758_v22 = vmul.f32 1.442695, %v3524_v14  ;;  %v2772_v23 = vmul.f32 %v2022_v15, %v2022_v15  ;;  %v3520_v24 = vmul.f32 -10.0, %v2770_v16  ;;  %v2030_v25 = vsub.f32 %v1092_v6, %v7797_v8  ;;  %v1112_v16 = vpop.permute.xlu1 %1111 }
 0x2f2   :  { %v6995_v26 = vpop.eup %6994  ;;  %5759 = vst [vmem:[%s11611_s2 + $0xea0] sm:$0xff] %v6993_v21  ;;  %7010 = vpow2.f32 %v4756_v18  ;;  %v4760_v27 = vmul.f32 1.442695, %v3525_v17  ;;  %v3521_v28 = vmul.f32 -10.0, %v2771_v19  ;;  %v2031_v29 = vsub.f32 %v1092_v6, %v7799_v9 }
 0x2f3   :  { %v6997_v31 = vpop.eup %6996  ;;  %5760 = vst [vmem:[%s11611_s2 + $0xea8] sm:$0xff] %v6995_v26  ;;  %7012 = vpow2.f32 %v4758_v22  ;;  %v3522_v32 = vmul.f32 -10.0, %v2772_v23  ;;  %v4750_v33 = vmul.f32 1.442695, %v3520_v24  ;;  %v2779_v34 = vmul.f32 %v2029_v20, %v2029_v20 }
 0x2f4   :  { %v6999_v35 = vpop.eup %6998  ;;  %5761 = vst.msk [vmem:[%s11611_s2 + $0xeb0] sm:$0xff] %vm5292_vm0, %v6997_v31  ;;  %7014 = vpow2.f32 %v4760_v27  ;;  %v4752_v36 = vmul.f32 1.442695, %v3521_v28  ;;  %v2780_v37 = vmul.f32 %v2030_v25, %v2030_v25  ;;  %v2781_v38 = vmul.f32 %v2031_v29, %v2031_v29  ;;  %v1107_v29 = vpop.permute.xlu0 %1106 }
 0x2f5   :  { %v7001_v39 = vpop.eup %7000  ;;  %5768 = vst [vmem:[%s11611_s2 + $0xee8] sm:$0xff] %v6999_v35  ;;  %7016 = vpow2.f32 %v4750_v33  ;;  %v4754_v40 = vmul.f32 1.442695, %v3522_v32  ;;  %v3529_v41 = vmul.f32 -10.0, %v2779_v34  ;;  %v2026_v42 = vsub.f32 %v1087_v30, %v7795_v7 }
 0x2f6   :  { %v7003_v44 = vpop.eup %7002  ;;  %5769 = vst [vmem:[%s11611_s2 + $0xef0] sm:$0xff] %v7001_v39  ;;  %7018 = vpow2.f32 %v4752_v36  ;;  %v3530_v45 = vmul.f32 -10.0, %v2780_v37  ;;  %v3531_v46 = vmul.f32 -10.0, %v2781_v38  ;;  %v2027_v47 = vsub.f32 %v1087_v30, %v7797_v8 }
 0x2f7   :  { %v7005_v48 = vpop.eup %7004  ;;  %5770 = vst.msk [vmem:[%s11611_s2 + $0xef8] sm:$0xff] %vm5292_vm0, %v7003_v44  ;;  %7020 = vpow2.f32 %v4754_v40  ;;  %v4768_v49 = vmul.f32 1.442695, %v3529_v41  ;;  %v2028_v50 = vsub.f32 %v1087_v30, %v7799_v9  ;;  %v2776_v51 = vmul.f32 %v2026_v42, %v2026_v42 }
 0x2f8   :  { %v7007_v52 = vpop.eup %7006  ;;  %5765 = vst [vmem:[%s11611_s2 + $0xed0] sm:$0xff] %v7005_v48  ;;  %v4770_v53 = vmul.f32 1.442695, %v3530_v45  ;;  %v4772_v54 = vmul.f32 1.442695, %v3531_v46  ;;  %v2777_v55 = vmul.f32 %v2027_v47, %v2027_v47  ;;  %v2035_v56 = vsub.f32 %v1102_v43, %v7795_v7 }
 0x2f9   :  { %v7009_v57 = vpop.eup %7008  ;;  %5766 = vst [vmem:[%s11611_s2 + $0xed8] sm:$0xff] %v7007_v52  ;;  %7022 = vpow2.f32 %v4768_v49  ;;  %v2778_v58 = vmul.f32 %v2028_v50, %v2028_v50  ;;  %v3526_v59 = vmul.f32 -10.0, %v2776_v51  ;;  %v2036_v60 = vsub.f32 %v1102_v43, %v7797_v8  ;;  %v1122_v51 = vpop.permute.xlu1 %1121 }
 0x2fa   :  { %5767 = vst.msk [vmem:[%s11611_s2 + $0xee0] sm:$0xff] %vm5292_vm0, %v7009_v57  ;;  %7024 = vpow2.f32 %v4770_v53  ;;  %v3527_v62 = vmul.f32 -10.0, %v2777_v55  ;;  %v2037_v63 = vsub.f32 %v1102_v43, %v7799_v9  ;;  %v2785_v0 = vmul.f32 %v2035_v56, %v2035_v56 }
 0x2fb   :  { %7026 = vpow2.f32 %v4772_v54  ;;  %v3528_v1 = vmul.f32 -10.0, %v2778_v58  ;;  %v4762_v2 = vmul.f32 1.442695, %v3526_v59  ;;  %v2786_v3 = vmul.f32 %v2036_v60, %v2036_v60 }
 0x2fc   :  { %v7011_v4 = vpop.eup %7010  ;;  %v4764_v5 = vmul.f32 1.442695, %v3527_v62  ;;  %v2787_v6 = vmul.f32 %v2037_v63, %v2037_v63  ;;  %v3535_v10 = vmul.f32 -10.0, %v2785_v0  ;;  %v2032_v11 = vsub.f32 %v1097_v61, %v7795_v7  ;;  %v1117_v63 = vpop.permute.xlu0 %1116 }
 0x2fd   :  { %v7013_v12 = vpop.eup %7012  ;;  %5774 = vst [vmem:[%s11611_s2 + $0xf18] sm:$0xff] %v7011_v4  ;;  %7028 = vpow2.f32 %v4762_v2  ;;  %v4766_v13 = vmul.f32 1.442695, %v3528_v1  ;;  %v3536_v14 = vmul.f32 -10.0, %v2786_v3  ;;  %v2033_v15 = vsub.f32 %v1097_v61, %v7797_v8 }
 0x2fe   :  { %v7015_v17 = vpop.eup %7014  ;;  %5775 = vst [vmem:[%s11611_s2 + $0xf20] sm:$0xff] %v7013_v12  ;;  %7030 = vpow2.f32 %v4764_v5  ;;  %v3537_v18 = vmul.f32 -10.0, %v2787_v6  ;;  %v4780_v19 = vmul.f32 1.442695, %v3535_v10  ;;  %v2034_v20 = vsub.f32 %v1097_v61, %v7799_v9 }
 0x2ff   :  { %v7017_v21 = vpop.eup %7016  ;;  %5776 = vst.msk [vmem:[%s11611_s2 + $0xf28] sm:$0xff] %vm5292_vm0, %v7015_v17  ;;  %7032 = vpow2.f32 %v4766_v13  ;;  %v4782_v22 = vmul.f32 1.442695, %v3536_v14  ;;  %v2782_v23 = vmul.f32 %v2032_v11, %v2032_v11  ;;  %v2783_v24 = vmul.f32 %v2033_v15, %v2033_v15  ;;  %v1132_v15 = vpop.permute.xlu1 %1131 }
 0x300   :  { %v7019_v25 = vpop.eup %7018  ;;  %5771 = vst [vmem:[%s11611_s2 + $0xf00] sm:$0xff] %v7017_v21  ;;  %7034 = vpow2.f32 %v4780_v19  ;;  %v4784_v26 = vmul.f32 1.442695, %v3537_v18  ;;  %v2784_v27 = vmul.f32 %v2034_v20, %v2034_v20  ;;  %v2041_v28 = vsub.f32 %v1112_v16, %v7795_v7 }
 0x301   :  { %v7021_v30 = vpop.eup %7020  ;;  %5772 = vst [vmem:[%s11611_s2 + $0xf08] sm:$0xff] %v7019_v25  ;;  %7036 = vpow2.f32 %v4782_v22  ;;  %v3532_v31 = vmul.f32 -10.0, %v2782_v23  ;;  %v3533_v32 = vmul.f32 -10.0, %v2783_v24  ;;  %v2042_v33 = vsub.f32 %v1112_v16, %v7797_v8 }
 0x302   :  { %5773 = vst.msk [vmem:[%s11611_s2 + $0xf10] sm:$0xff] %vm5292_vm0, %v7021_v30  ;;  %7038 = vpow2.f32 %v4784_v26  ;;  %v3534_v34 = vmul.f32 -10.0, %v2784_v27  ;;  %v2043_v35 = vsub.f32 %v1112_v16, %v7799_v9  ;;  %v2791_v36 = vmul.f32 %v2041_v28, %v2041_v28 }
 0x303   :  { %v7023_v37 = vpop.eup %7022  ;;  %v4774_v38 = vmul.f32 1.442695, %v3532_v31  ;;  %v4776_v39 = vmul.f32 1.442695, %v3533_v32  ;;  %v2792_v40 = vmul.f32 %v2042_v33, %v2042_v33  ;;  %v2038_v41 = vsub.f32 %v1107_v29, %v7795_v7 }
 0x304   :  { %v7025_v42 = vpop.eup %7024  ;;  %5780 = vst [vmem:[%s11611_s2 + $0xf48] sm:$0xff] %v7023_v37  ;;  %v4778_v43 = vmul.f32 1.442695, %v3534_v34  ;;  %v2793_v44 = vmul.f32 %v2043_v35, %v2043_v35  ;;  %v3541_v45 = vmul.f32 -10.0, %v2791_v36  ;;  %v2039_v46 = vsub.f32 %v1107_v29, %v7797_v8  ;;  %v1127_v36 = vpop.permute.xlu0 %1126 }
 0x305   :  { %v7027_v47 = vpop.eup %7026  ;;  %5781 = vst [vmem:[%s11611_s2 + $0xf50] sm:$0xff] %v7025_v42  ;;  %7040 = vpow2.f32 %v4774_v38  ;;  %v3542_v48 = vmul.f32 -10.0, %v2792_v40  ;;  %v2040_v49 = vsub.f32 %v1107_v29, %v7799_v9  ;;  %v2788_v50 = vmul.f32 %v2038_v41, %v2038_v41 }
 0x306   :  { %5782 = vst.msk [vmem:[%s11611_s2 + $0xf58] sm:$0xff] %vm5292_vm0, %v7027_v47  ;;  %7042 = vpow2.f32 %v4776_v39  ;;  %v3543_v52 = vmul.f32 -10.0, %v2793_v44  ;;  %v4792_v53 = vmul.f32 1.442695, %v3541_v45  ;;  %v2789_v54 = vmul.f32 %v2039_v46, %v2039_v46 }
 0x307   :  { %v7029_v55 = vpop.eup %7028  ;;  %7044 = vpow2.f32 %v4778_v43  ;;  %v4794_v56 = vmul.f32 1.442695, %v3542_v48  ;;  %v2790_v57 = vmul.f32 %v2040_v49, %v2040_v49  ;;  %v3538_v58 = vmul.f32 -10.0, %v2788_v50  ;;  %v1142_v49 = vpop.permute.xlu1 %1141 }
 0x308   :  { %v7031_v59 = vpop.eup %7030  ;;  %5777 = vst [vmem:[%s11611_s2 + $0xf30] sm:$0xff] %v7029_v55  ;;  %7046 = vpow2.f32 %v4792_v53  ;;  %v4796_v60 = vmul.f32 1.442695, %v3543_v52  ;;  %v3539_v61 = vmul.f32 -10.0, %v2789_v54  ;;  %v2047_v62 = vsub.f32 %v1122_v51, %v7795_v7 }
 0x309   :  { %v7033_v0 = vpop.eup %7032  ;;  %5778 = vst [vmem:[%s11611_s2 + $0xf38] sm:$0xff] %v7031_v59  ;;  %7048 = vpow2.f32 %v4794_v56  ;;  %v3540_v1 = vmul.f32 -10.0, %v2790_v57  ;;  %v4786_v2 = vmul.f32 1.442695, %v3538_v58  ;;  %v2048_v3 = vsub.f32 %v1122_v51, %v7797_v8 }
 0x30a   :  { %v7035_v4 = vpop.eup %7034  ;;  %5779 = vst.msk [vmem:[%s11611_s2 + $0xf40] sm:$0xff] %vm5292_vm0, %v7033_v0  ;;  %7050 = vpow2.f32 %v4796_v60  ;;  %v4788_v5 = vmul.f32 1.442695, %v3539_v61  ;;  %v2049_v6 = vsub.f32 %v1122_v51, %v7799_v9  ;;  %v2797_v10 = vmul.f32 %v2047_v62, %v2047_v62 }
 0x30b   :  { %v7037_v11 = vpop.eup %7036  ;;  %5786 = vst [vmem:[%s11611_s2 + $0xf78] sm:$0xff] %v7035_v4  ;;  %7052 = vpow2.f32 %v4786_v2  ;;  %v4790_v12 = vmul.f32 1.442695, %v3540_v1  ;;  %v2798_v13 = vmul.f32 %v2048_v3, %v2048_v3  ;;  %v2044_v14 = vsub.f32 %v1117_v63, %v7795_v7  ;;  %v1137_v3 = vpop.permute.xlu0 %1136 }
 0x30c   :  { %v7039_v16 = vpop.eup %7038  ;;  %5787 = vst [vmem:[%s11611_s2 + $0xf80] sm:$0xff] %v7037_v11  ;;  %7054 = vpow2.f32 %v4788_v5  ;;  %v2799_v17 = vmul.f32 %v2049_v6, %v2049_v6  ;;  %v3547_v18 = vmul.f32 -10.0, %v2797_v10  ;;  %v2045_v19 = vsub.f32 %v1117_v63, %v7797_v8 }
 0x30d   :  { %5788 = vst.msk [vmem:[%s11611_s2 + $0xf88] sm:$0xff] %vm5292_vm0, %v7039_v16  ;;  %7056 = vpow2.f32 %v4790_v12  ;;  %v3548_v20 = vmul.f32 -10.0, %v2798_v13  ;;  %v2046_v21 = vsub.f32 %v1117_v63, %v7799_v9  ;;  %v2794_v22 = vmul.f32 %v2044_v14, %v2044_v14 }
 0x30e   :  { %v3549_v23 = vmul.f32 -10.0, %v2799_v17  ;;  %v4804_v24 = vmul.f32 1.442695, %v3547_v18  ;;  %v2795_v25 = vmul.f32 %v2045_v19, %v2045_v19  ;;  %v2053_v26 = vsub.f32 %v1132_v15, %v7795_v7 }
 0x30f   :  { %v7041_v27 = vpop.eup %7040  ;;  %v4806_v28 = vmul.f32 1.442695, %v3548_v20  ;;  %v2796_v29 = vmul.f32 %v2046_v21, %v2046_v21  ;;  %v3544_v30 = vmul.f32 -10.0, %v2794_v22  ;;  %v2054_v31 = vsub.f32 %v1132_v15, %v7797_v8  ;;  %v1152_v22 = vpop.permute.xlu1 %1151 }
 0x310   :  { %v7043_v32 = vpop.eup %7042  ;;  %5783 = vst [vmem:[%s11611_s2 + $0xf60] sm:$0xff] %v7041_v27  ;;  %7058 = vpow2.f32 %v4804_v24  ;;  %v4808_v33 = vmul.f32 1.442695, %v3549_v23  ;;  %v3545_v34 = vmul.f32 -10.0, %v2795_v25  ;;  %v2055_v35 = vsub.f32 %v1132_v15, %v7799_v9 }
 0x311   :  { %v7045_v37 = vpop.eup %7044  ;;  %5784 = vst [vmem:[%s11611_s2 + $0xf68] sm:$0xff] %v7043_v32  ;;  %7060 = vpow2.f32 %v4806_v28  ;;  %v3546_v38 = vmul.f32 -10.0, %v2796_v29  ;;  %v4798_v39 = vmul.f32 1.442695, %v3544_v30  ;;  %v2803_v40 = vmul.f32 %v2053_v26, %v2053_v26 }
 0x312   :  { %v7047_v41 = vpop.eup %7046  ;;  %5785 = vst.msk [vmem:[%s11611_s2 + $0xf70] sm:$0xff] %vm5292_vm0, %v7045_v37  ;;  %7062 = vpow2.f32 %v4808_v33  ;;  %v4800_v42 = vmul.f32 1.442695, %v3545_v34  ;;  %v2804_v43 = vmul.f32 %v2054_v31, %v2054_v31  ;;  %v2805_v44 = vmul.f32 %v2055_v35, %v2055_v35  ;;  %v1147_v35 = vpop.permute.xlu0 %1146 }
 0x313   :  { %v7049_v45 = vpop.eup %7048  ;;  %5792 = vst [vmem:[%s11611_s2 + $0xfa8] sm:$0xff] %v7047_v41  ;;  %7064 = vpow2.f32 %v4798_v39  ;;  %v4802_v46 = vmul.f32 1.442695, %v3546_v38  ;;  %v3553_v47 = vmul.f32 -10.0, %v2803_v40  ;;  %v2050_v48 = vsub.f32 %v1127_v36, %v7795_v7 }
 0x314   :  { %v7051_v50 = vpop.eup %7050  ;;  %5793 = vst [vmem:[%s11611_s2 + $0xfb0] sm:$0xff] %v7049_v45  ;;  %7066 = vpow2.f32 %v4800_v42  ;;  %v3554_v51 = vmul.f32 -10.0, %v2804_v43  ;;  %v3555_v52 = vmul.f32 -10.0, %v2805_v44  ;;  %v2051_v53 = vsub.f32 %v1127_v36, %v7797_v8 }
 0x315   :  { %v7053_v54 = vpop.eup %7052  ;;  %5794 = vst.msk [vmem:[%s11611_s2 + $0xfb8] sm:$0xff] %vm5292_vm0, %v7051_v50  ;;  %7068 = vpow2.f32 %v4802_v46  ;;  %v4816_v55 = vmul.f32 1.442695, %v3553_v47  ;;  %v2052_v56 = vsub.f32 %v1127_v36, %v7799_v9  ;;  %v2800_v57 = vmul.f32 %v2050_v48, %v2050_v48 }
 0x316   :  { %v7055_v58 = vpop.eup %7054  ;;  %5789 = vst [vmem:[%s11611_s2 + $0xf90] sm:$0xff] %v7053_v54  ;;  %v4818_v59 = vmul.f32 1.442695, %v3554_v51  ;;  %v4820_v60 = vmul.f32 1.442695, %v3555_v52  ;;  %v2801_v61 = vmul.f32 %v2051_v53, %v2051_v53  ;;  %v2059_v62 = vsub.f32 %v1142_v49, %v7795_v7 }
 0x317   :  { %v7057_v63 = vpop.eup %7056  ;;  %5790 = vst [vmem:[%s11611_s2 + $0xf98] sm:$0xff] %v7055_v58  ;;  %7070 = vpow2.f32 %v4816_v55  ;;  %v2802_v0 = vmul.f32 %v2052_v56, %v2052_v56  ;;  %v3550_v1 = vmul.f32 -10.0, %v2800_v57  ;;  %v2060_v2 = vsub.f32 %v1142_v49, %v7797_v8  ;;  %v1162_v57 = vpop.permute.xlu1 %1161 }
 0x318   :  { %5791 = vst.msk [vmem:[%s11611_s2 + $0xfa0] sm:$0xff] %vm5292_vm0, %v7057_v63  ;;  %7072 = vpow2.f32 %v4818_v59  ;;  %v3551_v4 = vmul.f32 -10.0, %v2801_v61  ;;  %v2061_v5 = vsub.f32 %v1142_v49, %v7799_v9  ;;  %v2809_v6 = vmul.f32 %v2059_v62, %v2059_v62 }
 0x319   :  { %7074 = vpow2.f32 %v4820_v60  ;;  %v3552_v10 = vmul.f32 -10.0, %v2802_v0  ;;  %v4810_v11 = vmul.f32 1.442695, %v3550_v1  ;;  %v2810_v12 = vmul.f32 %v2060_v2, %v2060_v2 }
 0x31a   :  { %v7059_v13 = vpop.eup %7058  ;;  %v4812_v14 = vmul.f32 1.442695, %v3551_v4  ;;  %v2811_v15 = vmul.f32 %v2061_v5, %v2061_v5  ;;  %v3559_v16 = vmul.f32 -10.0, %v2809_v6  ;;  %v2056_v17 = vsub.f32 %v1137_v3, %v7795_v7  ;;  %v1157_v5 = vpop.permute.xlu0 %1156 }
 0x31b   :  { %v7061_v18 = vpop.eup %7060  ;;  %5798 = vst [vmem:[%s11611_s2 + $0xfd8] sm:$0xff] %v7059_v13  ;;  %7076 = vpow2.f32 %v4810_v11  ;;  %v4814_v19 = vmul.f32 1.442695, %v3552_v10  ;;  %v3560_v20 = vmul.f32 -10.0, %v2810_v12  ;;  %v2057_v21 = vsub.f32 %v1137_v3, %v7797_v8 }
 0x31c   :  { %v7063_v23 = vpop.eup %7062  ;;  %5799 = vst [vmem:[%s11611_s2 + $0xfe0] sm:$0xff] %v7061_v18  ;;  %7078 = vpow2.f32 %v4812_v14  ;;  %v3561_v24 = vmul.f32 -10.0, %v2811_v15  ;;  %v4828_v25 = vmul.f32 1.442695, %v3559_v16  ;;  %v2058_v26 = vsub.f32 %v1137_v3, %v7799_v9 }
 0x31d   :  { %v7065_v27 = vpop.eup %7064  ;;  %5800 = vst.msk [vmem:[%s11611_s2 + $0xfe8] sm:$0xff] %vm5292_vm0, %v7063_v23  ;;  %7080 = vpow2.f32 %v4814_v19  ;;  %v4830_v28 = vmul.f32 1.442695, %v3560_v20  ;;  %v2806_v29 = vmul.f32 %v2056_v17, %v2056_v17  ;;  %v2807_v30 = vmul.f32 %v2057_v21, %v2057_v21  ;;  %v1172_v21 = vpop.permute.xlu1 %1171 }
 0x31e   :  { %v7067_v31 = vpop.eup %7066  ;;  %5795 = vst [vmem:[%s11611_s2 + $0xfc0] sm:$0xff] %v7065_v27  ;;  %7082 = vpow2.f32 %v4828_v25  ;;  %v4832_v32 = vmul.f32 1.442695, %v3561_v24  ;;  %v2808_v33 = vmul.f32 %v2058_v26, %v2058_v26  ;;  %v2065_v34 = vsub.f32 %v1152_v22, %v7795_v7 }
 0x31f   :  { %v7069_v36 = vpop.eup %7068  ;;  %5796 = vst [vmem:[%s11611_s2 + $0xfc8] sm:$0xff] %v7067_v31  ;;  %7084 = vpow2.f32 %v4830_v28  ;;  %v3556_v37 = vmul.f32 -10.0, %v2806_v29  ;;  %v3557_v38 = vmul.f32 -10.0, %v2807_v30  ;;  %v2066_v39 = vsub.f32 %v1152_v22, %v7797_v8 }
 0x320   :  { %5797 = vst.msk [vmem:[%s11611_s2 + $0xfd0] sm:$0xff] %vm5292_vm0, %v7069_v36  ;;  %7086 = vpow2.f32 %v4832_v32  ;;  %v3558_v40 = vmul.f32 -10.0, %v2808_v33  ;;  %v2067_v41 = vsub.f32 %v1152_v22, %v7799_v9  ;;  %v2815_v42 = vmul.f32 %v2065_v34, %v2065_v34 }
 0x321   :  { %v7071_v43 = vpop.eup %7070  ;;  %v4822_v44 = vmul.f32 1.442695, %v3556_v37  ;;  %v4824_v45 = vmul.f32 1.442695, %v3557_v38  ;;  %v2816_v46 = vmul.f32 %v2066_v39, %v2066_v39  ;;  %v2062_v47 = vsub.f32 %v1147_v35, %v7795_v7 }
 0x322   :  { %v7073_v48 = vpop.eup %7072  ;;  %5804 = vst [vmem:[%s11611_s2 + $0x1008] sm:$0xff] %v7071_v43  ;;  %v4826_v49 = vmul.f32 1.442695, %v3558_v40  ;;  %v2817_v50 = vmul.f32 %v2067_v41, %v2067_v41  ;;  %v3565_v51 = vmul.f32 -10.0, %v2815_v42  ;;  %v2063_v52 = vsub.f32 %v1147_v35, %v7797_v8  ;;  %v1167_v42 = vpop.permute.xlu0 %1166 }
 0x323   :  { %v7075_v53 = vpop.eup %7074  ;;  %5805 = vst [vmem:[%s11611_s2 + $0x1010] sm:$0xff] %v7073_v48  ;;  %7088 = vpow2.f32 %v4822_v44  ;;  %v3566_v54 = vmul.f32 -10.0, %v2816_v46  ;;  %v2064_v55 = vsub.f32 %v1147_v35, %v7799_v9  ;;  %v2812_v56 = vmul.f32 %v2062_v47, %v2062_v47 }
 0x324   :  { %5806 = vst.msk [vmem:[%s11611_s2 + $0x1018] sm:$0xff] %vm5292_vm0, %v7075_v53  ;;  %7090 = vpow2.f32 %v4824_v45  ;;  %v3567_v58 = vmul.f32 -10.0, %v2817_v50  ;;  %v4840_v59 = vmul.f32 1.442695, %v3565_v51  ;;  %v2813_v60 = vmul.f32 %v2063_v52, %v2063_v52 }
 0x325   :  { %v7077_v61 = vpop.eup %7076  ;;  %7092 = vpow2.f32 %v4826_v49  ;;  %v4842_v62 = vmul.f32 1.442695, %v3566_v54  ;;  %v2814_v63 = vmul.f32 %v2064_v55, %v2064_v55  ;;  %v3562_v0 = vmul.f32 -10.0, %v2812_v56  ;;  %v1182_v55 = vpop.permute.xlu1 %1181 }
 0x326   :  { %v7079_v1 = vpop.eup %7078  ;;  %5801 = vst [vmem:[%s11611_s2 + $0xff0] sm:$0xff] %v7077_v61  ;;  %7094 = vpow2.f32 %v4840_v59  ;;  %v4844_v2 = vmul.f32 1.442695, %v3567_v58  ;;  %v3563_v3 = vmul.f32 -10.0, %v2813_v60  ;;  %v2071_v4 = vsub.f32 %v1162_v57, %v7795_v7 }
 0x327   :  { %v7081_v6 = vpop.eup %7080  ;;  %5802 = vst [vmem:[%s11611_s2 + $0xff8] sm:$0xff] %v7079_v1  ;;  %7096 = vpow2.f32 %v4842_v62  ;;  %v3564_v10 = vmul.f32 -10.0, %v2814_v63  ;;  %v4834_v11 = vmul.f32 1.442695, %v3562_v0  ;;  %v2072_v12 = vsub.f32 %v1162_v57, %v7797_v8 }
 0x328   :  { %v7083_v13 = vpop.eup %7082  ;;  %5803 = vst.msk [vmem:[%s11611_s2 + $0x1000] sm:$0xff] %vm5292_vm0, %v7081_v6  ;;  %7098 = vpow2.f32 %v4844_v2  ;;  %v4836_v14 = vmul.f32 1.442695, %v3563_v3  ;;  %v2073_v15 = vsub.f32 %v1162_v57, %v7799_v9  ;;  %v2821_v16 = vmul.f32 %v2071_v4, %v2071_v4 }
 0x329   :  { %v7085_v17 = vpop.eup %7084  ;;  %5810 = vst [vmem:[%s11611_s2 + $0x1038] sm:$0xff] %v7083_v13  ;;  %7100 = vpow2.f32 %v4834_v11  ;;  %v4838_v18 = vmul.f32 1.442695, %v3564_v10  ;;  %v2822_v19 = vmul.f32 %v2072_v12, %v2072_v12  ;;  %v2068_v20 = vsub.f32 %v1157_v5, %v7795_v7  ;;  %v1177_v12 = vpop.permute.xlu0 %1176 }
 0x32a   :  { %v7087_v22 = vpop.eup %7086  ;;  %5811 = vst [vmem:[%s11611_s2 + $0x1040] sm:$0xff] %v7085_v17  ;;  %7102 = vpow2.f32 %v4836_v14  ;;  %v2823_v23 = vmul.f32 %v2073_v15, %v2073_v15  ;;  %v3571_v24 = vmul.f32 -10.0, %v2821_v16  ;;  %v2069_v25 = vsub.f32 %v1157_v5, %v7797_v8 }
 0x32b   :  { %5812 = vst.msk [vmem:[%s11611_s2 + $0x1048] sm:$0xff] %vm5292_vm0, %v7087_v22  ;;  %7104 = vpow2.f32 %v4838_v18  ;;  %v3572_v26 = vmul.f32 -10.0, %v2822_v19  ;;  %v2070_v27 = vsub.f32 %v1157_v5, %v7799_v9  ;;  %v2818_v28 = vmul.f32 %v2068_v20, %v2068_v20 }
 0x32c   :  { %v3573_v29 = vmul.f32 -10.0, %v2823_v23  ;;  %v4852_v30 = vmul.f32 1.442695, %v3571_v24  ;;  %v2819_v31 = vmul.f32 %v2069_v25, %v2069_v25  ;;  %v2077_v32 = vsub.f32 %v1172_v21, %v7795_v7 }
 0x32d   :  { %v7089_v33 = vpop.eup %7088  ;;  %v4854_v34 = vmul.f32 1.442695, %v3572_v26  ;;  %v2820_v35 = vmul.f32 %v2070_v27, %v2070_v27  ;;  %v3568_v36 = vmul.f32 -10.0, %v2818_v28  ;;  %v2078_v37 = vsub.f32 %v1172_v21, %v7797_v8  ;;  %v1192_v28 = vpop.permute.xlu1 %1191 }
 0x32e   :  { %v7091_v38 = vpop.eup %7090  ;;  %5807 = vst [vmem:[%s11611_s2 + $0x1020] sm:$0xff] %v7089_v33  ;;  %7106 = vpow2.f32 %v4852_v30  ;;  %v4856_v39 = vmul.f32 1.442695, %v3573_v29  ;;  %v3569_v40 = vmul.f32 -10.0, %v2819_v31  ;;  %v2079_v41 = vsub.f32 %v1172_v21, %v7799_v9 }
 0x32f   :  { %v7093_v43 = vpop.eup %7092  ;;  %5808 = vst [vmem:[%s11611_s2 + $0x1028] sm:$0xff] %v7091_v38  ;;  %7108 = vpow2.f32 %v4854_v34  ;;  %v3570_v44 = vmul.f32 -10.0, %v2820_v35  ;;  %v4846_v45 = vmul.f32 1.442695, %v3568_v36  ;;  %v2827_v46 = vmul.f32 %v2077_v32, %v2077_v32 }
 0x330   :  { %v7095_v47 = vpop.eup %7094  ;;  %5809 = vst.msk [vmem:[%s11611_s2 + $0x1030] sm:$0xff] %vm5292_vm0, %v7093_v43  ;;  %7110 = vpow2.f32 %v4856_v39  ;;  %v4848_v48 = vmul.f32 1.442695, %v3569_v40  ;;  %v2828_v49 = vmul.f32 %v2078_v37, %v2078_v37  ;;  %v2829_v50 = vmul.f32 %v2079_v41, %v2079_v41  ;;  %v1187_v41 = vpop.permute.xlu0 %1186 }
 0x331   :  { %v7097_v51 = vpop.eup %7096  ;;  %5816 = vst [vmem:[%s11611_s2 + $0x1068] sm:$0xff] %v7095_v47  ;;  %7112 = vpow2.f32 %v4846_v45  ;;  %v4850_v52 = vmul.f32 1.442695, %v3570_v44  ;;  %v3577_v53 = vmul.f32 -10.0, %v2827_v46  ;;  %v2074_v54 = vsub.f32 %v1167_v42, %v7795_v7 }
 0x332   :  { %v7099_v56 = vpop.eup %7098  ;;  %5817 = vst [vmem:[%s11611_s2 + $0x1070] sm:$0xff] %v7097_v51  ;;  %7114 = vpow2.f32 %v4848_v48  ;;  %v3578_v57 = vmul.f32 -10.0, %v2828_v49  ;;  %v3579_v58 = vmul.f32 -10.0, %v2829_v50  ;;  %v2075_v59 = vsub.f32 %v1167_v42, %v7797_v8 }
 0x333   :  { %v7101_v60 = vpop.eup %7100  ;;  %5818 = vst.msk [vmem:[%s11611_s2 + $0x1078] sm:$0xff] %vm5292_vm0, %v7099_v56  ;;  %7116 = vpow2.f32 %v4850_v52  ;;  %v4864_v61 = vmul.f32 1.442695, %v3577_v53  ;;  %v2076_v62 = vsub.f32 %v1167_v42, %v7799_v9  ;;  %v2824_v63 = vmul.f32 %v2074_v54, %v2074_v54 }
 0x334   :  { %v7103_v0 = vpop.eup %7102  ;;  %5813 = vst [vmem:[%s11611_s2 + $0x1050] sm:$0xff] %v7101_v60  ;;  %v4866_v1 = vmul.f32 1.442695, %v3578_v57  ;;  %v4868_v2 = vmul.f32 1.442695, %v3579_v58  ;;  %v2825_v3 = vmul.f32 %v2075_v59, %v2075_v59  ;;  %v2083_v4 = vsub.f32 %v1182_v55, %v7795_v7 }
 0x335   :  { %v7105_v5 = vpop.eup %7104  ;;  %5814 = vst [vmem:[%s11611_s2 + $0x1058] sm:$0xff] %v7103_v0  ;;  %7118 = vpow2.f32 %v4864_v61  ;;  %v2826_v6 = vmul.f32 %v2076_v62, %v2076_v62  ;;  %v3574_v10 = vmul.f32 -10.0, %v2824_v63  ;;  %v2084_v11 = vsub.f32 %v1182_v55, %v7797_v8  ;;  %v1202_v63 = vpop.permute.xlu1 %1201 }
 0x336   :  { %5815 = vst.msk [vmem:[%s11611_s2 + $0x1060] sm:$0xff] %vm5292_vm0, %v7105_v5  ;;  %7120 = vpow2.f32 %v4866_v1  ;;  %v3575_v13 = vmul.f32 -10.0, %v2825_v3  ;;  %v2085_v14 = vsub.f32 %v1182_v55, %v7799_v9  ;;  %v2833_v15 = vmul.f32 %v2083_v4, %v2083_v4 }
 0x337   :  { %7122 = vpow2.f32 %v4868_v2  ;;  %v3576_v16 = vmul.f32 -10.0, %v2826_v6  ;;  %v4858_v17 = vmul.f32 1.442695, %v3574_v10  ;;  %v2834_v18 = vmul.f32 %v2084_v11, %v2084_v11 }
 0x338   :  { %v7107_v19 = vpop.eup %7106  ;;  %v4860_v20 = vmul.f32 1.442695, %v3575_v13  ;;  %v2835_v21 = vmul.f32 %v2085_v14, %v2085_v14  ;;  %v3583_v22 = vmul.f32 -10.0, %v2833_v15  ;;  %v2080_v23 = vsub.f32 %v1177_v12, %v7795_v7  ;;  %v1197_v14 = vpop.permute.xlu0 %1196 }
 0x339   :  { %v7109_v24 = vpop.eup %7108  ;;  %5822 = vst [vmem:[%s11611_s2 + $0x1098] sm:$0xff] %v7107_v19  ;;  %7124 = vpow2.f32 %v4858_v17  ;;  %v4862_v25 = vmul.f32 1.442695, %v3576_v16  ;;  %v3584_v26 = vmul.f32 -10.0, %v2834_v18  ;;  %v2081_v27 = vsub.f32 %v1177_v12, %v7797_v8 }
 0x33a   :  { %v7111_v29 = vpop.eup %7110  ;;  %5823 = vst [vmem:[%s11611_s2 + $0x10a0] sm:$0xff] %v7109_v24  ;;  %7126 = vpow2.f32 %v4860_v20  ;;  %v3585_v30 = vmul.f32 -10.0, %v2835_v21  ;;  %v4876_v31 = vmul.f32 1.442695, %v3583_v22  ;;  %v2082_v32 = vsub.f32 %v1177_v12, %v7799_v9 }
 0x33b   :  { %v7113_v33 = vpop.eup %7112  ;;  %5824 = vst.msk [vmem:[%s11611_s2 + $0x10a8] sm:$0xff] %vm5292_vm0, %v7111_v29  ;;  %7128 = vpow2.f32 %v4862_v25  ;;  %v4878_v34 = vmul.f32 1.442695, %v3584_v26  ;;  %v2830_v35 = vmul.f32 %v2080_v23, %v2080_v23  ;;  %v2831_v36 = vmul.f32 %v2081_v27, %v2081_v27  ;;  %v1212_v27 = vpop.permute.xlu1 %1211 }
 0x33c   :  { %v7115_v37 = vpop.eup %7114  ;;  %5819 = vst [vmem:[%s11611_s2 + $0x1080] sm:$0xff] %v7113_v33  ;;  %7130 = vpow2.f32 %v4876_v31  ;;  %v4880_v38 = vmul.f32 1.442695, %v3585_v30  ;;  %v2832_v39 = vmul.f32 %v2082_v32, %v2082_v32  ;;  %v2089_v40 = vsub.f32 %v1192_v28, %v7795_v7 }
 0x33d   :  { %v7117_v42 = vpop.eup %7116  ;;  %5820 = vst [vmem:[%s11611_s2 + $0x1088] sm:$0xff] %v7115_v37  ;;  %7132 = vpow2.f32 %v4878_v34  ;;  %v3580_v43 = vmul.f32 -10.0, %v2830_v35  ;;  %v3581_v44 = vmul.f32 -10.0, %v2831_v36  ;;  %v2090_v45 = vsub.f32 %v1192_v28, %v7797_v8 }
 0x33e   :  { %5821 = vst.msk [vmem:[%s11611_s2 + $0x1090] sm:$0xff] %vm5292_vm0, %v7117_v42  ;;  %7134 = vpow2.f32 %v4880_v38  ;;  %v3582_v46 = vmul.f32 -10.0, %v2832_v39  ;;  %v2091_v47 = vsub.f32 %v1192_v28, %v7799_v9  ;;  %v2839_v48 = vmul.f32 %v2089_v40, %v2089_v40 }
 0x33f   :  { %v7119_v49 = vpop.eup %7118  ;;  %v4870_v50 = vmul.f32 1.442695, %v3580_v43  ;;  %v4872_v51 = vmul.f32 1.442695, %v3581_v44  ;;  %v2840_v52 = vmul.f32 %v2090_v45, %v2090_v45  ;;  %v2086_v53 = vsub.f32 %v1187_v41, %v7795_v7 }
 0x340   :  { %v7121_v54 = vpop.eup %7120  ;;  %5828 = vst [vmem:[%s11611_s2 + $0x10c8] sm:$0xff] %v7119_v49  ;;  %v4874_v55 = vmul.f32 1.442695, %v3582_v46  ;;  %v2841_v56 = vmul.f32 %v2091_v47, %v2091_v47  ;;  %v3589_v57 = vmul.f32 -10.0, %v2839_v48  ;;  %v2087_v58 = vsub.f32 %v1187_v41, %v7797_v8  ;;  %v1207_v48 = vpop.permute.xlu0 %1206 }
 0x341   :  { %v7123_v59 = vpop.eup %7122  ;;  %5829 = vst [vmem:[%s11611_s2 + $0x10d0] sm:$0xff] %v7121_v54  ;;  %7136 = vpow2.f32 %v4870_v50  ;;  %v3590_v60 = vmul.f32 -10.0, %v2840_v52  ;;  %v2088_v61 = vsub.f32 %v1187_v41, %v7799_v9  ;;  %v2836_v62 = vmul.f32 %v2086_v53, %v2086_v53 }
 0x342   :  { %5830 = vst.msk [vmem:[%s11611_s2 + $0x10d8] sm:$0xff] %vm5292_vm0, %v7123_v59  ;;  %7138 = vpow2.f32 %v4872_v51  ;;  %v3591_v0 = vmul.f32 -10.0, %v2841_v56  ;;  %v4888_v1 = vmul.f32 1.442695, %v3589_v57  ;;  %v2837_v2 = vmul.f32 %v2087_v58, %v2087_v58 }
 0x343   :  { %v7125_v3 = vpop.eup %7124  ;;  %7140 = vpow2.f32 %v4874_v55  ;;  %v4890_v4 = vmul.f32 1.442695, %v3590_v60  ;;  %v2838_v5 = vmul.f32 %v2088_v61, %v2088_v61  ;;  %v3586_v6 = vmul.f32 -10.0, %v2836_v62  ;;  %v1222_v61 = vpop.permute.xlu1 %1221 }
 0x344   :  { %v7127_v10 = vpop.eup %7126  ;;  %5825 = vst [vmem:[%s11611_s2 + $0x10b0] sm:$0xff] %v7125_v3  ;;  %7142 = vpow2.f32 %v4888_v1  ;;  %v4892_v11 = vmul.f32 1.442695, %v3591_v0  ;;  %v3587_v12 = vmul.f32 -10.0, %v2837_v2  ;;  %v2095_v13 = vsub.f32 %v1202_v63, %v7795_v7 }
 0x345   :  { %v7129_v15 = vpop.eup %7128  ;;  %5826 = vst [vmem:[%s11611_s2 + $0x10b8] sm:$0xff] %v7127_v10  ;;  %7144 = vpow2.f32 %v4890_v4  ;;  %v3588_v16 = vmul.f32 -10.0, %v2838_v5  ;;  %v4882_v17 = vmul.f32 1.442695, %v3586_v6  ;;  %v2096_v18 = vsub.f32 %v1202_v63, %v7797_v8 }
 0x346   :  { %v7131_v19 = vpop.eup %7130  ;;  %5827 = vst.msk [vmem:[%s11611_s2 + $0x10c0] sm:$0xff] %vm5292_vm0, %v7129_v15  ;;  %7146 = vpow2.f32 %v4892_v11  ;;  %v4884_v20 = vmul.f32 1.442695, %v3587_v12  ;;  %v2097_v21 = vsub.f32 %v1202_v63, %v7799_v9  ;;  %v2845_v22 = vmul.f32 %v2095_v13, %v2095_v13 }
 0x347   :  { %v7133_v23 = vpop.eup %7132  ;;  %5834 = vst [vmem:[%s11611_s2 + $0x10f8] sm:$0xff] %v7131_v19  ;;  %7148 = vpow2.f32 %v4882_v17  ;;  %v4886_v24 = vmul.f32 1.442695, %v3588_v16  ;;  %v2846_v25 = vmul.f32 %v2096_v18, %v2096_v18  ;;  %v2092_v26 = vsub.f32 %v1197_v14, %v7795_v7  ;;  %v1217_v18 = vpop.permute.xlu0 %1216 }
 0x348   :  { %v7135_v28 = vpop.eup %7134  ;;  %5835 = vst [vmem:[%s11611_s2 + $0x1100] sm:$0xff] %v7133_v23  ;;  %7150 = vpow2.f32 %v4884_v20  ;;  %v2847_v29 = vmul.f32 %v2097_v21, %v2097_v21  ;;  %v3595_v30 = vmul.f32 -10.0, %v2845_v22  ;;  %v2093_v31 = vsub.f32 %v1197_v14, %v7797_v8 }
 0x349   :  { %5836 = vst.msk [vmem:[%s11611_s2 + $0x1108] sm:$0xff] %vm5292_vm0, %v7135_v28  ;;  %7152 = vpow2.f32 %v4886_v24  ;;  %v3596_v32 = vmul.f32 -10.0, %v2846_v25  ;;  %v2094_v33 = vsub.f32 %v1197_v14, %v7799_v9  ;;  %v2842_v34 = vmul.f32 %v2092_v26, %v2092_v26 }
 0x34a   :  { %v3597_v35 = vmul.f32 -10.0, %v2847_v29  ;;  %v4900_v36 = vmul.f32 1.442695, %v3595_v30  ;;  %v2843_v37 = vmul.f32 %v2093_v31, %v2093_v31  ;;  %v2101_v38 = vsub.f32 %v1212_v27, %v7795_v7 }
 0x34b   :  { %v7137_v39 = vpop.eup %7136  ;;  %v4902_v40 = vmul.f32 1.442695, %v3596_v32  ;;  %v2844_v41 = vmul.f32 %v2094_v33, %v2094_v33  ;;  %v3592_v42 = vmul.f32 -10.0, %v2842_v34  ;;  %v2102_v43 = vsub.f32 %v1212_v27, %v7797_v8  ;;  %v1232_v34 = vpop.permute.xlu1 %1231 }
 0x34c   :  { %v7139_v44 = vpop.eup %7138  ;;  %5831 = vst [vmem:[%s11611_s2 + $0x10e0] sm:$0xff] %v7137_v39  ;;  %7154 = vpow2.f32 %v4900_v36  ;;  %v4904_v45 = vmul.f32 1.442695, %v3597_v35  ;;  %v3593_v46 = vmul.f32 -10.0, %v2843_v37  ;;  %v2103_v47 = vsub.f32 %v1212_v27, %v7799_v9 }
 0x34d   :  { %v7141_v49 = vpop.eup %7140  ;;  %5832 = vst [vmem:[%s11611_s2 + $0x10e8] sm:$0xff] %v7139_v44  ;;  %7156 = vpow2.f32 %v4902_v40  ;;  %v3594_v50 = vmul.f32 -10.0, %v2844_v41  ;;  %v4894_v51 = vmul.f32 1.442695, %v3592_v42  ;;  %v2851_v52 = vmul.f32 %v2101_v38, %v2101_v38 }
 0x34e   :  { %v7143_v53 = vpop.eup %7142  ;;  %5833 = vst.msk [vmem:[%s11611_s2 + $0x10f0] sm:$0xff] %vm5292_vm0, %v7141_v49  ;;  %7158 = vpow2.f32 %v4904_v45  ;;  %v4896_v54 = vmul.f32 1.442695, %v3593_v46  ;;  %v2852_v55 = vmul.f32 %v2102_v43, %v2102_v43  ;;  %v2853_v56 = vmul.f32 %v2103_v47, %v2103_v47  ;;  %v1227_v47 = vpop.permute.xlu0 %1226 }
 0x34f   :  { %v7145_v57 = vpop.eup %7144  ;;  %5840 = vst [vmem:[%s11611_s2 + $0x1128] sm:$0xff] %v7143_v53  ;;  %7160 = vpow2.f32 %v4894_v51  ;;  %v4898_v58 = vmul.f32 1.442695, %v3594_v50  ;;  %v3601_v59 = vmul.f32 -10.0, %v2851_v52  ;;  %v2098_v60 = vsub.f32 %v1207_v48, %v7795_v7 }
 0x350   :  { %v7147_v62 = vpop.eup %7146  ;;  %5841 = vst [vmem:[%s11611_s2 + $0x1130] sm:$0xff] %v7145_v57  ;;  %7162 = vpow2.f32 %v4896_v54  ;;  %v3602_v63 = vmul.f32 -10.0, %v2852_v55  ;;  %v3603_v0 = vmul.f32 -10.0, %v2853_v56  ;;  %v2099_v1 = vsub.f32 %v1207_v48, %v7797_v8 }
 0x351   :  { %v7149_v2 = vpop.eup %7148  ;;  %5842 = vst.msk [vmem:[%s11611_s2 + $0x1138] sm:$0xff] %vm5292_vm0, %v7147_v62  ;;  %7164 = vpow2.f32 %v4898_v58  ;;  %v4912_v3 = vmul.f32 1.442695, %v3601_v59  ;;  %v2100_v4 = vsub.f32 %v1207_v48, %v7799_v9  ;;  %v2848_v5 = vmul.f32 %v2098_v60, %v2098_v60 }
 0x352   :  { %v7151_v6 = vpop.eup %7150  ;;  %5837 = vst [vmem:[%s11611_s2 + $0x1110] sm:$0xff] %v7149_v2  ;;  %v4914_v10 = vmul.f32 1.442695, %v3602_v63  ;;  %v4916_v11 = vmul.f32 1.442695, %v3603_v0  ;;  %v2849_v12 = vmul.f32 %v2099_v1, %v2099_v1  ;;  %v2107_v13 = vsub.f32 %v1222_v61, %v7795_v7 }
 0x353   :  { %v7153_v14 = vpop.eup %7152  ;;  %5838 = vst [vmem:[%s11611_s2 + $0x1118] sm:$0xff] %v7151_v6  ;;  %7166 = vpow2.f32 %v4912_v3  ;;  %v2850_v15 = vmul.f32 %v2100_v4, %v2100_v4  ;;  %v3598_v16 = vmul.f32 -10.0, %v2848_v5  ;;  %v2108_v17 = vsub.f32 %v1222_v61, %v7797_v8  ;;  %v1242_v5 = vpop.permute.xlu1 %1241 }
 0x354   :  { %5839 = vst.msk [vmem:[%s11611_s2 + $0x1120] sm:$0xff] %vm5292_vm0, %v7153_v14  ;;  %7168 = vpow2.f32 %v4914_v10  ;;  %v3599_v19 = vmul.f32 -10.0, %v2849_v12  ;;  %v2109_v20 = vsub.f32 %v1222_v61, %v7799_v9  ;;  %v2857_v21 = vmul.f32 %v2107_v13, %v2107_v13 }
 0x355   :  { %7170 = vpow2.f32 %v4916_v11  ;;  %v3600_v22 = vmul.f32 -10.0, %v2850_v15  ;;  %v4906_v23 = vmul.f32 1.442695, %v3598_v16  ;;  %v2858_v24 = vmul.f32 %v2108_v17, %v2108_v17 }
 0x356   :  { %v7155_v25 = vpop.eup %7154  ;;  %v4908_v26 = vmul.f32 1.442695, %v3599_v19  ;;  %v2859_v27 = vmul.f32 %v2109_v20, %v2109_v20  ;;  %v3607_v28 = vmul.f32 -10.0, %v2857_v21  ;;  %v2104_v29 = vsub.f32 %v1217_v18, %v7795_v7  ;;  %v1237_v20 = vpop.permute.xlu0 %1236 }
 0x357   :  { %v7157_v30 = vpop.eup %7156  ;;  %5846 = vst [vmem:[%s11611_s2 + $0x1158] sm:$0xff] %v7155_v25  ;;  %7172 = vpow2.f32 %v4906_v23  ;;  %v4910_v31 = vmul.f32 1.442695, %v3600_v22  ;;  %v3608_v32 = vmul.f32 -10.0, %v2858_v24  ;;  %v2105_v33 = vsub.f32 %v1217_v18, %v7797_v8 }
 0x358   :  { %v7159_v35 = vpop.eup %7158  ;;  %5847 = vst [vmem:[%s11611_s2 + $0x1160] sm:$0xff] %v7157_v30  ;;  %7174 = vpow2.f32 %v4908_v26  ;;  %v3609_v36 = vmul.f32 -10.0, %v2859_v27  ;;  %v4924_v37 = vmul.f32 1.442695, %v3607_v28  ;;  %v2106_v38 = vsub.f32 %v1217_v18, %v7799_v9 }
 0x359   :  { %v7161_v39 = vpop.eup %7160  ;;  %5848 = vst.msk [vmem:[%s11611_s2 + $0x1168] sm:$0xff] %vm5292_vm0, %v7159_v35  ;;  %7176 = vpow2.f32 %v4910_v31  ;;  %v4926_v40 = vmul.f32 1.442695, %v3608_v32  ;;  %v2854_v41 = vmul.f32 %v2104_v29, %v2104_v29  ;;  %v2855_v42 = vmul.f32 %v2105_v33, %v2105_v33  ;;  %v1252_v33 = vpop.permute.xlu1 %1251 }
 0x35a   :  { %v7163_v43 = vpop.eup %7162  ;;  %5843 = vst [vmem:[%s11611_s2 + $0x1140] sm:$0xff] %v7161_v39  ;;  %7178 = vpow2.f32 %v4924_v37  ;;  %v4928_v44 = vmul.f32 1.442695, %v3609_v36  ;;  %v2856_v45 = vmul.f32 %v2106_v38, %v2106_v38  ;;  %v2113_v46 = vsub.f32 %v1232_v34, %v7795_v7 }
 0x35b   :  { %v7165_v48 = vpop.eup %7164  ;;  %5844 = vst [vmem:[%s11611_s2 + $0x1148] sm:$0xff] %v7163_v43  ;;  %7180 = vpow2.f32 %v4926_v40  ;;  %v3604_v49 = vmul.f32 -10.0, %v2854_v41  ;;  %v3605_v50 = vmul.f32 -10.0, %v2855_v42  ;;  %v2114_v51 = vsub.f32 %v1232_v34, %v7797_v8 }
 0x35c   :  { %5845 = vst.msk [vmem:[%s11611_s2 + $0x1150] sm:$0xff] %vm5292_vm0, %v7165_v48  ;;  %7182 = vpow2.f32 %v4928_v44  ;;  %v3606_v52 = vmul.f32 -10.0, %v2856_v45  ;;  %v2115_v53 = vsub.f32 %v1232_v34, %v7799_v9  ;;  %v2863_v54 = vmul.f32 %v2113_v46, %v2113_v46 }
 0x35d   :  { %v7167_v55 = vpop.eup %7166  ;;  %v4918_v56 = vmul.f32 1.442695, %v3604_v49  ;;  %v4920_v57 = vmul.f32 1.442695, %v3605_v50  ;;  %v2864_v58 = vmul.f32 %v2114_v51, %v2114_v51  ;;  %v2110_v59 = vsub.f32 %v1227_v47, %v7795_v7 }
 0x35e   :  { %v7169_v60 = vpop.eup %7168  ;;  %5852 = vst [vmem:[%s11611_s2 + $0x1188] sm:$0xff] %v7167_v55  ;;  %v4922_v61 = vmul.f32 1.442695, %v3606_v52  ;;  %v2865_v62 = vmul.f32 %v2115_v53, %v2115_v53  ;;  %v3613_v63 = vmul.f32 -10.0, %v2863_v54  ;;  %v2111_v0 = vsub.f32 %v1227_v47, %v7797_v8  ;;  %v1247_v54 = vpop.permute.xlu0 %1246 }
 0x35f   :  { %v7171_v1 = vpop.eup %7170  ;;  %5853 = vst [vmem:[%s11611_s2 + $0x1190] sm:$0xff] %v7169_v60  ;;  %7184 = vpow2.f32 %v4918_v56  ;;  %v3614_v2 = vmul.f32 -10.0, %v2864_v58  ;;  %v2112_v3 = vsub.f32 %v1227_v47, %v7799_v9  ;;  %v2860_v4 = vmul.f32 %v2110_v59, %v2110_v59 }
 0x360   :  { %5854 = vst.msk [vmem:[%s11611_s2 + $0x1198] sm:$0xff] %vm5292_vm0, %v7171_v1  ;;  %7186 = vpow2.f32 %v4920_v57  ;;  %v3615_v6 = vmul.f32 -10.0, %v2865_v62  ;;  %v4936_v10 = vmul.f32 1.442695, %v3613_v63  ;;  %v2861_v11 = vmul.f32 %v2111_v0, %v2111_v0 }
 0x361   :  { %v7173_v12 = vpop.eup %7172  ;;  %7188 = vpow2.f32 %v4922_v61  ;;  %v4938_v13 = vmul.f32 1.442695, %v3614_v2  ;;  %v2862_v14 = vmul.f32 %v2112_v3, %v2112_v3  ;;  %v3610_v15 = vmul.f32 -10.0, %v2860_v4  ;;  %v1262_v3 = vpop.permute.xlu1 %1261 }
 0x362   :  { %v7175_v16 = vpop.eup %7174  ;;  %5849 = vst [vmem:[%s11611_s2 + $0x1170] sm:$0xff] %v7173_v12  ;;  %7190 = vpow2.f32 %v4936_v10  ;;  %v4940_v17 = vmul.f32 1.442695, %v3615_v6  ;;  %v3611_v18 = vmul.f32 -10.0, %v2861_v11  ;;  %v2119_v19 = vsub.f32 %v1242_v5, %v7795_v7 }
 0x363   :  { %v7177_v21 = vpop.eup %7176  ;;  %5850 = vst [vmem:[%s11611_s2 + $0x1178] sm:$0xff] %v7175_v16  ;;  %7192 = vpow2.f32 %v4938_v13  ;;  %v3612_v22 = vmul.f32 -10.0, %v2862_v14  ;;  %v4930_v23 = vmul.f32 1.442695, %v3610_v15  ;;  %v2120_v24 = vsub.f32 %v1242_v5, %v7797_v8 }
 0x364   :  { %v7179_v25 = vpop.eup %7178  ;;  %5851 = vst.msk [vmem:[%s11611_s2 + $0x1180] sm:$0xff] %vm5292_vm0, %v7177_v21  ;;  %7194 = vpow2.f32 %v4940_v17  ;;  %v4932_v26 = vmul.f32 1.442695, %v3611_v18  ;;  %v2121_v27 = vsub.f32 %v1242_v5, %v7799_v9  ;;  %v2869_v28 = vmul.f32 %v2119_v19, %v2119_v19 }
 0x365   :  { %v7181_v29 = vpop.eup %7180  ;;  %5858 = vst [vmem:[%s11611_s2 + $0x11b8] sm:$0xff] %v7179_v25  ;;  %7196 = vpow2.f32 %v4930_v23  ;;  %v4934_v30 = vmul.f32 1.442695, %v3612_v22  ;;  %v2870_v31 = vmul.f32 %v2120_v24, %v2120_v24  ;;  %v2116_v32 = vsub.f32 %v1237_v20, %v7795_v7  ;;  %v1257_v24 = vpop.permute.xlu0 %1256 }
 0x366   :  { %v7183_v34 = vpop.eup %7182  ;;  %5859 = vst [vmem:[%s11611_s2 + $0x11c0] sm:$0xff] %v7181_v29  ;;  %7198 = vpow2.f32 %v4932_v26  ;;  %v2871_v35 = vmul.f32 %v2121_v27, %v2121_v27  ;;  %v3619_v36 = vmul.f32 -10.0, %v2869_v28  ;;  %v2117_v37 = vsub.f32 %v1237_v20, %v7797_v8 }
 0x367   :  { %5860 = vst.msk [vmem:[%s11611_s2 + $0x11c8] sm:$0xff] %vm5292_vm0, %v7183_v34  ;;  %7200 = vpow2.f32 %v4934_v30  ;;  %v3620_v38 = vmul.f32 -10.0, %v2870_v31  ;;  %v2118_v39 = vsub.f32 %v1237_v20, %v7799_v9  ;;  %v2866_v40 = vmul.f32 %v2116_v32, %v2116_v32 }
 0x368   :  { %v3621_v41 = vmul.f32 -10.0, %v2871_v35  ;;  %v4948_v42 = vmul.f32 1.442695, %v3619_v36  ;;  %v2867_v43 = vmul.f32 %v2117_v37, %v2117_v37  ;;  %v2125_v44 = vsub.f32 %v1252_v33, %v7795_v7 }
 0x369   :  { %v7185_v45 = vpop.eup %7184  ;;  %v4950_v46 = vmul.f32 1.442695, %v3620_v38  ;;  %v2868_v47 = vmul.f32 %v2118_v39, %v2118_v39  ;;  %v3616_v48 = vmul.f32 -10.0, %v2866_v40  ;;  %v2126_v49 = vsub.f32 %v1252_v33, %v7797_v8  ;;  %v1272_v40 = vpop.permute.xlu1 %1271 }
 0x36a   :  { %v7187_v50 = vpop.eup %7186  ;;  %5855 = vst [vmem:[%s11611_s2 + $0x11a0] sm:$0xff] %v7185_v45  ;;  %7202 = vpow2.f32 %v4948_v42  ;;  %v4952_v51 = vmul.f32 1.442695, %v3621_v41  ;;  %v3617_v52 = vmul.f32 -10.0, %v2867_v43  ;;  %v2127_v53 = vsub.f32 %v1252_v33, %v7799_v9 }
 0x36b   :  { %v7189_v55 = vpop.eup %7188  ;;  %5856 = vst [vmem:[%s11611_s2 + $0x11a8] sm:$0xff] %v7187_v50  ;;  %7204 = vpow2.f32 %v4950_v46  ;;  %v3618_v56 = vmul.f32 -10.0, %v2868_v47  ;;  %v4942_v57 = vmul.f32 1.442695, %v3616_v48  ;;  %v2875_v58 = vmul.f32 %v2125_v44, %v2125_v44 }
 0x36c   :  { %v7191_v59 = vpop.eup %7190  ;;  %5857 = vst.msk [vmem:[%s11611_s2 + $0x11b0] sm:$0xff] %vm5292_vm0, %v7189_v55  ;;  %7206 = vpow2.f32 %v4952_v51  ;;  %v4944_v60 = vmul.f32 1.442695, %v3617_v52  ;;  %v2876_v61 = vmul.f32 %v2126_v49, %v2126_v49  ;;  %v2877_v62 = vmul.f32 %v2127_v53, %v2127_v53  ;;  %v1267_v53 = vpop.permute.xlu0 %1266 }
 0x36d   :  { %v7193_v63 = vpop.eup %7192  ;;  %5864 = vst [vmem:[%s11611_s2 + $0x11e8] sm:$0xff] %v7191_v59  ;;  %7208 = vpow2.f32 %v4942_v57  ;;  %v4946_v0 = vmul.f32 1.442695, %v3618_v56  ;;  %v3625_v1 = vmul.f32 -10.0, %v2875_v58  ;;  %v2122_v2 = vsub.f32 %v1247_v54, %v7795_v7 }
 0x36e   :  { %v7195_v4 = vpop.eup %7194  ;;  %5865 = vst [vmem:[%s11611_s2 + $0x11f0] sm:$0xff] %v7193_v63  ;;  %7210 = vpow2.f32 %v4944_v60  ;;  %v3626_v5 = vmul.f32 -10.0, %v2876_v61  ;;  %v3627_v6 = vmul.f32 -10.0, %v2877_v62  ;;  %v2123_v10 = vsub.f32 %v1247_v54, %v7797_v8 }
 0x36f   :  { %v7197_v11 = vpop.eup %7196  ;;  %5866 = vst.msk [vmem:[%s11611_s2 + $0x11f8] sm:$0xff] %vm5292_vm0, %v7195_v4  ;;  %7212 = vpow2.f32 %v4946_v0  ;;  %v4960_v12 = vmul.f32 1.442695, %v3625_v1  ;;  %v2124_v13 = vsub.f32 %v1247_v54, %v7799_v9  ;;  %v2872_v14 = vmul.f32 %v2122_v2, %v2122_v2 }
 0x370   :  { %v7199_v15 = vpop.eup %7198  ;;  %5861 = vst [vmem:[%s11611_s2 + $0x11d0] sm:$0xff] %v7197_v11  ;;  %v4962_v16 = vmul.f32 1.442695, %v3626_v5  ;;  %v4964_v17 = vmul.f32 1.442695, %v3627_v6  ;;  %v2873_v18 = vmul.f32 %v2123_v10, %v2123_v10  ;;  %v2131_v19 = vsub.f32 %v1262_v3, %v7795_v7 }
 0x371   :  { %v7201_v20 = vpop.eup %7200  ;;  %5862 = vst [vmem:[%s11611_s2 + $0x11d8] sm:$0xff] %v7199_v15  ;;  %7214 = vpow2.f32 %v4960_v12  ;;  %v2874_v21 = vmul.f32 %v2124_v13, %v2124_v13  ;;  %v3622_v22 = vmul.f32 -10.0, %v2872_v14  ;;  %v2132_v23 = vsub.f32 %v1262_v3, %v7797_v8  ;;  %v1282_v14 = vpop.permute.xlu1 %1281 }
 0x372   :  { %5863 = vst.msk [vmem:[%s11611_s2 + $0x11e0] sm:$0xff] %vm5292_vm0, %v7201_v20  ;;  %7216 = vpow2.f32 %v4962_v16  ;;  %v3623_v25 = vmul.f32 -10.0, %v2873_v18  ;;  %v2133_v26 = vsub.f32 %v1262_v3, %v7799_v9  ;;  %v2881_v27 = vmul.f32 %v2131_v19, %v2131_v19 }
 0x373   :  { %7218 = vpow2.f32 %v4964_v17  ;;  %v3624_v28 = vmul.f32 -10.0, %v2874_v21  ;;  %v4954_v29 = vmul.f32 1.442695, %v3622_v22  ;;  %v2882_v30 = vmul.f32 %v2132_v23, %v2132_v23 }
 0x374   :  { %v7203_v31 = vpop.eup %7202  ;;  %v4956_v32 = vmul.f32 1.442695, %v3623_v25  ;;  %v2883_v33 = vmul.f32 %v2133_v26, %v2133_v26  ;;  %v3631_v34 = vmul.f32 -10.0, %v2881_v27  ;;  %v2128_v35 = vsub.f32 %v1257_v24, %v7795_v7  ;;  %v1277_v26 = vpop.permute.xlu0 %1276 }
 0x375   :  { %v7205_v36 = vpop.eup %7204  ;;  %5870 = vst [vmem:[%s11611_s2 + $0x1218] sm:$0xff] %v7203_v31  ;;  %7220 = vpow2.f32 %v4954_v29  ;;  %v4958_v37 = vmul.f32 1.442695, %v3624_v28  ;;  %v3632_v38 = vmul.f32 -10.0, %v2882_v30  ;;  %v2129_v39 = vsub.f32 %v1257_v24, %v7797_v8 }
 0x376   :  { %v7207_v41 = vpop.eup %7206  ;;  %5871 = vst [vmem:[%s11611_s2 + $0x1220] sm:$0xff] %v7205_v36  ;;  %7222 = vpow2.f32 %v4956_v32  ;;  %v3633_v42 = vmul.f32 -10.0, %v2883_v33  ;;  %v4972_v43 = vmul.f32 1.442695, %v3631_v34  ;;  %v2130_v44 = vsub.f32 %v1257_v24, %v7799_v9 }
 0x377   :  { %v7209_v45 = vpop.eup %7208  ;;  %5872 = vst.msk [vmem:[%s11611_s2 + $0x1228] sm:$0xff] %vm5292_vm0, %v7207_v41  ;;  %7224 = vpow2.f32 %v4958_v37  ;;  %v4974_v46 = vmul.f32 1.442695, %v3632_v38  ;;  %v2878_v47 = vmul.f32 %v2128_v35, %v2128_v35  ;;  %v2879_v48 = vmul.f32 %v2129_v39, %v2129_v39  ;;  %v1292_v39 = vpop.permute.xlu1 %1291 }
 0x378   :  { %v7211_v49 = vpop.eup %7210  ;;  %5867 = vst [vmem:[%s11611_s2 + $0x1200] sm:$0xff] %v7209_v45  ;;  %7226 = vpow2.f32 %v4972_v43  ;;  %v4976_v50 = vmul.f32 1.442695, %v3633_v42  ;;  %v2880_v51 = vmul.f32 %v2130_v44, %v2130_v44  ;;  %v2137_v52 = vsub.f32 %v1272_v40, %v7795_v7 }
 0x379   :  { %v7213_v54 = vpop.eup %7212  ;;  %5868 = vst [vmem:[%s11611_s2 + $0x1208] sm:$0xff] %v7211_v49  ;;  %7228 = vpow2.f32 %v4974_v46  ;;  %v3628_v55 = vmul.f32 -10.0, %v2878_v47  ;;  %v3629_v56 = vmul.f32 -10.0, %v2879_v48  ;;  %v2138_v57 = vsub.f32 %v1272_v40, %v7797_v8 }
 0x37a   :  { %5869 = vst.msk [vmem:[%s11611_s2 + $0x1210] sm:$0xff] %vm5292_vm0, %v7213_v54  ;;  %7230 = vpow2.f32 %v4976_v50  ;;  %v3630_v58 = vmul.f32 -10.0, %v2880_v51  ;;  %v2139_v59 = vsub.f32 %v1272_v40, %v7799_v9  ;;  %v2887_v60 = vmul.f32 %v2137_v52, %v2137_v52 }
 0x37b   :  { %v7215_v61 = vpop.eup %7214  ;;  %v4966_v62 = vmul.f32 1.442695, %v3628_v55  ;;  %v4968_v63 = vmul.f32 1.442695, %v3629_v56  ;;  %v2888_v0 = vmul.f32 %v2138_v57, %v2138_v57  ;;  %v2134_v1 = vsub.f32 %v1267_v53, %v7795_v7 }
 0x37c   :  { %v7217_v2 = vpop.eup %7216  ;;  %5876 = vst [vmem:[%s11611_s2 + $0x1248] sm:$0xff] %v7215_v61  ;;  %v4970_v3 = vmul.f32 1.442695, %v3630_v58  ;;  %v2889_v4 = vmul.f32 %v2139_v59, %v2139_v59  ;;  %v3637_v5 = vmul.f32 -10.0, %v2887_v60  ;;  %v2135_v6 = vsub.f32 %v1267_v53, %v7797_v8  ;;  %v1287_v60 = vpop.permute.xlu0 %1286 }
 0x37d   :  { %v7219_v10 = vpop.eup %7218  ;;  %5877 = vst [vmem:[%s11611_s2 + $0x1250] sm:$0xff] %v7217_v2  ;;  %7232 = vpow2.f32 %v4966_v62  ;;  %v3638_v11 = vmul.f32 -10.0, %v2888_v0  ;;  %v2136_v12 = vsub.f32 %v1267_v53, %v7799_v9  ;;  %v2884_v13 = vmul.f32 %v2134_v1, %v2134_v1 }
 0x37e   :  { %5878 = vst.msk [vmem:[%s11611_s2 + $0x1258] sm:$0xff] %vm5292_vm0, %v7219_v10  ;;  %7234 = vpow2.f32 %v4968_v63  ;;  %v3639_v15 = vmul.f32 -10.0, %v2889_v4  ;;  %v4984_v16 = vmul.f32 1.442695, %v3637_v5  ;;  %v2885_v17 = vmul.f32 %v2135_v6, %v2135_v6 }
 0x37f   :  { %v7221_v18 = vpop.eup %7220  ;;  %7236 = vpow2.f32 %v4970_v3  ;;  %v4986_v19 = vmul.f32 1.442695, %v3638_v11  ;;  %v2886_v20 = vmul.f32 %v2136_v12, %v2136_v12  ;;  %v3634_v21 = vmul.f32 -10.0, %v2884_v13  ;;  %v1302_v12 = vpop.permute.xlu1 %1301 }
 0x380   :  { %v7223_v22 = vpop.eup %7222  ;;  %5873 = vst [vmem:[%s11611_s2 + $0x1230] sm:$0xff] %v7221_v18  ;;  %7238 = vpow2.f32 %v4984_v16  ;;  %v4988_v23 = vmul.f32 1.442695, %v3639_v15  ;;  %v3635_v24 = vmul.f32 -10.0, %v2885_v17  ;;  %v2143_v25 = vsub.f32 %v1282_v14, %v7795_v7 }
 0x381   :  { %v7225_v27 = vpop.eup %7224  ;;  %5874 = vst [vmem:[%s11611_s2 + $0x1238] sm:$0xff] %v7223_v22  ;;  %7240 = vpow2.f32 %v4986_v19  ;;  %v3636_v28 = vmul.f32 -10.0, %v2886_v20  ;;  %v4978_v29 = vmul.f32 1.442695, %v3634_v21  ;;  %v2144_v30 = vsub.f32 %v1282_v14, %v7797_v8 }
 0x382   :  { %v7227_v31 = vpop.eup %7226  ;;  %5875 = vst.msk [vmem:[%s11611_s2 + $0x1240] sm:$0xff] %vm5292_vm0, %v7225_v27  ;;  %7242 = vpow2.f32 %v4988_v23  ;;  %v4980_v32 = vmul.f32 1.442695, %v3635_v24  ;;  %v2145_v33 = vsub.f32 %v1282_v14, %v7799_v9  ;;  %v2893_v34 = vmul.f32 %v2143_v25, %v2143_v25 }
 0x383   :  { %v7229_v35 = vpop.eup %7228  ;;  %5882 = vst [vmem:[%s11611_s2 + $0x1278] sm:$0xff] %v7227_v31  ;;  %7244 = vpow2.f32 %v4978_v29  ;;  %v4982_v36 = vmul.f32 1.442695, %v3636_v28  ;;  %v2894_v37 = vmul.f32 %v2144_v30, %v2144_v30  ;;  %v2140_v38 = vsub.f32 %v1277_v26, %v7795_v7  ;;  %v1297_v30 = vpop.permute.xlu0 %1296 }
 0x384   :  { %v7231_v40 = vpop.eup %7230  ;;  %5883 = vst [vmem:[%s11611_s2 + $0x1280] sm:$0xff] %v7229_v35  ;;  %7246 = vpow2.f32 %v4980_v32  ;;  %v2895_v41 = vmul.f32 %v2145_v33, %v2145_v33  ;;  %v3643_v42 = vmul.f32 -10.0, %v2893_v34  ;;  %v2141_v43 = vsub.f32 %v1277_v26, %v7797_v8 }
 0x385   :  { %5884 = vst.msk [vmem:[%s11611_s2 + $0x1288] sm:$0xff] %vm5292_vm0, %v7231_v40  ;;  %7248 = vpow2.f32 %v4982_v36  ;;  %v3644_v44 = vmul.f32 -10.0, %v2894_v37  ;;  %v2142_v45 = vsub.f32 %v1277_v26, %v7799_v9  ;;  %v2890_v46 = vmul.f32 %v2140_v38, %v2140_v38 }
 0x386   :  { %v3645_v47 = vmul.f32 -10.0, %v2895_v41  ;;  %v4996_v48 = vmul.f32 1.442695, %v3643_v42  ;;  %v2891_v49 = vmul.f32 %v2141_v43, %v2141_v43  ;;  %v2149_v50 = vsub.f32 %v1292_v39, %v7795_v7 }
 0x387   :  { %v7233_v51 = vpop.eup %7232  ;;  %v4998_v52 = vmul.f32 1.442695, %v3644_v44  ;;  %v2892_v53 = vmul.f32 %v2142_v45, %v2142_v45  ;;  %v3640_v54 = vmul.f32 -10.0, %v2890_v46  ;;  %v2150_v55 = vsub.f32 %v1292_v39, %v7797_v8  ;;  %v1312_v46 = vpop.permute.xlu1 %1311 }
 0x388   :  { %v7235_v56 = vpop.eup %7234  ;;  %5879 = vst [vmem:[%s11611_s2 + $0x1260] sm:$0xff] %v7233_v51  ;;  %7250 = vpow2.f32 %v4996_v48  ;;  %v5000_v57 = vmul.f32 1.442695, %v3645_v47  ;;  %v3641_v58 = vmul.f32 -10.0, %v2891_v49  ;;  %v2151_v59 = vsub.f32 %v1292_v39, %v7799_v9 }
 0x389   :  { %v7237_v61 = vpop.eup %7236  ;;  %5880 = vst [vmem:[%s11611_s2 + $0x1268] sm:$0xff] %v7235_v56  ;;  %7252 = vpow2.f32 %v4998_v52  ;;  %v3642_v62 = vmul.f32 -10.0, %v2892_v53  ;;  %v4990_v63 = vmul.f32 1.442695, %v3640_v54  ;;  %v2899_v0 = vmul.f32 %v2149_v50, %v2149_v50 }
 0x38a   :  { %v7239_v1 = vpop.eup %7238  ;;  %5881 = vst.msk [vmem:[%s11611_s2 + $0x1270] sm:$0xff] %vm5292_vm0, %v7237_v61  ;;  %7254 = vpow2.f32 %v5000_v57  ;;  %v4992_v2 = vmul.f32 1.442695, %v3641_v58  ;;  %v2900_v3 = vmul.f32 %v2150_v55, %v2150_v55  ;;  %v2901_v4 = vmul.f32 %v2151_v59, %v2151_v59  ;;  %v1307_v59 = vpop.permute.xlu0 %1306 }
 0x38b   :  { %v7241_v5 = vpop.eup %7240  ;;  %5888 = vst [vmem:[%s11611_s2 + $0x12a8] sm:$0xff] %v7239_v1  ;;  %7256 = vpow2.f32 %v4990_v63  ;;  %v4994_v6 = vmul.f32 1.442695, %v3642_v62  ;;  %v3649_v10 = vmul.f32 -10.0, %v2899_v0  ;;  %v2146_v11 = vsub.f32 %v1287_v60, %v7795_v7 }
 0x38c   :  { %v7243_v13 = vpop.eup %7242  ;;  %5889 = vst [vmem:[%s11611_s2 + $0x12b0] sm:$0xff] %v7241_v5  ;;  %7258 = vpow2.f32 %v4992_v2  ;;  %v3650_v14 = vmul.f32 -10.0, %v2900_v3  ;;  %v3651_v15 = vmul.f32 -10.0, %v2901_v4  ;;  %v2147_v16 = vsub.f32 %v1287_v60, %v7797_v8 }
 0x38d   :  { %v7245_v17 = vpop.eup %7244  ;;  %5890 = vst.msk [vmem:[%s11611_s2 + $0x12b8] sm:$0xff] %vm5292_vm0, %v7243_v13  ;;  %7260 = vpow2.f32 %v4994_v6  ;;  %v5008_v18 = vmul.f32 1.442695, %v3649_v10  ;;  %v2148_v19 = vsub.f32 %v1287_v60, %v7799_v9  ;;  %v2896_v20 = vmul.f32 %v2146_v11, %v2146_v11 }
 0x38e   :  { %v7247_v21 = vpop.eup %7246  ;;  %5885 = vst [vmem:[%s11611_s2 + $0x1290] sm:$0xff] %v7245_v17  ;;  %v5010_v22 = vmul.f32 1.442695, %v3650_v14  ;;  %v5012_v23 = vmul.f32 1.442695, %v3651_v15  ;;  %v2897_v24 = vmul.f32 %v2147_v16, %v2147_v16  ;;  %v2155_v25 = vsub.f32 %v1302_v12, %v7795_v7 }
 0x38f   :  { %v7249_v26 = vpop.eup %7248  ;;  %5886 = vst [vmem:[%s11611_s2 + $0x1298] sm:$0xff] %v7247_v21  ;;  %7262 = vpow2.f32 %v5008_v18  ;;  %v2898_v27 = vmul.f32 %v2148_v19, %v2148_v19  ;;  %v3646_v28 = vmul.f32 -10.0, %v2896_v20  ;;  %v2156_v29 = vsub.f32 %v1302_v12, %v7797_v8  ;;  %v1322_v20 = vpop.permute.xlu1 %1321 }
 0x390   :  { %5887 = vst.msk [vmem:[%s11611_s2 + $0x12a0] sm:$0xff] %vm5292_vm0, %v7249_v26  ;;  %7264 = vpow2.f32 %v5010_v22  ;;  %v3647_v31 = vmul.f32 -10.0, %v2897_v24  ;;  %v2157_v32 = vsub.f32 %v1302_v12, %v7799_v9  ;;  %v2905_v33 = vmul.f32 %v2155_v25, %v2155_v25 }
 0x391   :  { %7266 = vpow2.f32 %v5012_v23  ;;  %v3648_v34 = vmul.f32 -10.0, %v2898_v27  ;;  %v5002_v35 = vmul.f32 1.442695, %v3646_v28  ;;  %v2906_v36 = vmul.f32 %v2156_v29, %v2156_v29 }
 0x392   :  { %v7251_v37 = vpop.eup %7250  ;;  %v5004_v38 = vmul.f32 1.442695, %v3647_v31  ;;  %v2907_v39 = vmul.f32 %v2157_v32, %v2157_v32  ;;  %v3655_v40 = vmul.f32 -10.0, %v2905_v33  ;;  %v2152_v41 = vsub.f32 %v1297_v30, %v7795_v7  ;;  %v1317_v32 = vpop.permute.xlu0 %1316 }
 0x393   :  { %v7253_v42 = vpop.eup %7252  ;;  %5894 = vst [vmem:[%s11611_s2 + $0x12d8] sm:$0xff] %v7251_v37  ;;  %7268 = vpow2.f32 %v5002_v35  ;;  %v5006_v43 = vmul.f32 1.442695, %v3648_v34  ;;  %v3656_v44 = vmul.f32 -10.0, %v2906_v36  ;;  %v2153_v45 = vsub.f32 %v1297_v30, %v7797_v8 }
 0x394   :  { %v7255_v47 = vpop.eup %7254  ;;  %5895 = vst [vmem:[%s11611_s2 + $0x12e0] sm:$0xff] %v7253_v42  ;;  %7270 = vpow2.f32 %v5004_v38  ;;  %v3657_v48 = vmul.f32 -10.0, %v2907_v39  ;;  %v5020_v49 = vmul.f32 1.442695, %v3655_v40  ;;  %v2154_v50 = vsub.f32 %v1297_v30, %v7799_v9 }
 0x395   :  { %v7257_v51 = vpop.eup %7256  ;;  %5896 = vst.msk [vmem:[%s11611_s2 + $0x12e8] sm:$0xff] %vm5292_vm0, %v7255_v47  ;;  %7272 = vpow2.f32 %v5006_v43  ;;  %v5022_v52 = vmul.f32 1.442695, %v3656_v44  ;;  %v2902_v53 = vmul.f32 %v2152_v41, %v2152_v41  ;;  %v2903_v54 = vmul.f32 %v2153_v45, %v2153_v45  ;;  %v1332_v45 = vpop.permute.xlu1 %1331 }
 0x396   :  { %v7259_v55 = vpop.eup %7258  ;;  %5891 = vst [vmem:[%s11611_s2 + $0x12c0] sm:$0xff] %v7257_v51  ;;  %7274 = vpow2.f32 %v5020_v49  ;;  %v5024_v56 = vmul.f32 1.442695, %v3657_v48  ;;  %v2904_v57 = vmul.f32 %v2154_v50, %v2154_v50  ;;  %v2161_v58 = vsub.f32 %v1312_v46, %v7795_v7 }
 0x397   :  { %v7261_v60 = vpop.eup %7260  ;;  %5892 = vst [vmem:[%s11611_s2 + $0x12c8] sm:$0xff] %v7259_v55  ;;  %7276 = vpow2.f32 %v5022_v52  ;;  %v3652_v61 = vmul.f32 -10.0, %v2902_v53  ;;  %v3653_v62 = vmul.f32 -10.0, %v2903_v54  ;;  %v2162_v63 = vsub.f32 %v1312_v46, %v7797_v8 }
 0x398   :  { %5893 = vst.msk [vmem:[%s11611_s2 + $0x12d0] sm:$0xff] %vm5292_vm0, %v7261_v60  ;;  %7278 = vpow2.f32 %v5024_v56  ;;  %v3654_v0 = vmul.f32 -10.0, %v2904_v57  ;;  %v2163_v1 = vsub.f32 %v1312_v46, %v7799_v9  ;;  %v2911_v2 = vmul.f32 %v2161_v58, %v2161_v58 }
 0x399   :  { %v7263_v3 = vpop.eup %7262  ;;  %v5014_v4 = vmul.f32 1.442695, %v3652_v61  ;;  %v5016_v5 = vmul.f32 1.442695, %v3653_v62  ;;  %v2912_v6 = vmul.f32 %v2162_v63, %v2162_v63  ;;  %v2158_v10 = vsub.f32 %v1307_v59, %v7795_v7 }
 0x39a   :  { %v7265_v11 = vpop.eup %7264  ;;  %5900 = vst [vmem:[%s11611_s2 + $0x1308] sm:$0xff] %v7263_v3  ;;  %v5018_v12 = vmul.f32 1.442695, %v3654_v0  ;;  %v2913_v13 = vmul.f32 %v2163_v1, %v2163_v1  ;;  %v3661_v14 = vmul.f32 -10.0, %v2911_v2  ;;  %v2159_v15 = vsub.f32 %v1307_v59, %v7797_v8  ;;  %v1327_v2 = vpop.permute.xlu0 %1326 }
 0x39b   :  { %v7267_v16 = vpop.eup %7266  ;;  %5901 = vst [vmem:[%s11611_s2 + $0x1310] sm:$0xff] %v7265_v11  ;;  %7280 = vpow2.f32 %v5014_v4  ;;  %v3662_v17 = vmul.f32 -10.0, %v2912_v6  ;;  %v2160_v18 = vsub.f32 %v1307_v59, %v7799_v9  ;;  %v2908_v19 = vmul.f32 %v2158_v10, %v2158_v10 }
 0x39c   :  { %5902 = vst.msk [vmem:[%s11611_s2 + $0x1318] sm:$0xff] %vm5292_vm0, %v7267_v16  ;;  %7282 = vpow2.f32 %v5016_v5  ;;  %v3663_v21 = vmul.f32 -10.0, %v2913_v13  ;;  %v5032_v22 = vmul.f32 1.442695, %v3661_v14  ;;  %v2909_v23 = vmul.f32 %v2159_v15, %v2159_v15 }
 0x39d   :  { %v7269_v24 = vpop.eup %7268  ;;  %7284 = vpow2.f32 %v5018_v12  ;;  %v5034_v25 = vmul.f32 1.442695, %v3662_v17  ;;  %v2910_v26 = vmul.f32 %v2160_v18, %v2160_v18  ;;  %v3658_v27 = vmul.f32 -10.0, %v2908_v19  ;;  %v1342_v18 = vpop.permute.xlu1 %1341 }
 0x39e   :  { %v7271_v28 = vpop.eup %7270  ;;  %5897 = vst [vmem:[%s11611_s2 + $0x12f0] sm:$0xff] %v7269_v24  ;;  %7286 = vpow2.f32 %v5032_v22  ;;  %v5036_v29 = vmul.f32 1.442695, %v3663_v21  ;;  %v3659_v30 = vmul.f32 -10.0, %v2909_v23  ;;  %v2167_v31 = vsub.f32 %v1322_v20, %v7795_v7 }
 0x39f   :  { %v7273_v33 = vpop.eup %7272  ;;  %5898 = vst [vmem:[%s11611_s2 + $0x12f8] sm:$0xff] %v7271_v28  ;;  %7288 = vpow2.f32 %v5034_v25  ;;  %v3660_v34 = vmul.f32 -10.0, %v2910_v26  ;;  %v5026_v35 = vmul.f32 1.442695, %v3658_v27  ;;  %v2168_v36 = vsub.f32 %v1322_v20, %v7797_v8 }
 0x3a0   :  { %v7275_v37 = vpop.eup %7274  ;;  %5899 = vst.msk [vmem:[%s11611_s2 + $0x1300] sm:$0xff] %vm5292_vm0, %v7273_v33  ;;  %7290 = vpow2.f32 %v5036_v29  ;;  %v5028_v38 = vmul.f32 1.442695, %v3659_v30  ;;  %v2169_v39 = vsub.f32 %v1322_v20, %v7799_v9  ;;  %v2917_v40 = vmul.f32 %v2167_v31, %v2167_v31 }
 0x3a1   :  { %v7277_v41 = vpop.eup %7276  ;;  %5906 = vst [vmem:[%s11611_s2 + $0x1338] sm:$0xff] %v7275_v37  ;;  %7292 = vpow2.f32 %v5026_v35  ;;  %v5030_v42 = vmul.f32 1.442695, %v3660_v34  ;;  %v2918_v43 = vmul.f32 %v2168_v36, %v2168_v36  ;;  %v2164_v44 = vsub.f32 %v1317_v32, %v7795_v7  ;;  %v1337_v36 = vpop.permute.xlu0 %1336 }
 0x3a2   :  { %v7279_v46 = vpop.eup %7278  ;;  %5907 = vst [vmem:[%s11611_s2 + $0x1340] sm:$0xff] %v7277_v41  ;;  %7294 = vpow2.f32 %v5028_v38  ;;  %v2919_v47 = vmul.f32 %v2169_v39, %v2169_v39  ;;  %v3667_v48 = vmul.f32 -10.0, %v2917_v40  ;;  %v2165_v49 = vsub.f32 %v1317_v32, %v7797_v8 }
 0x3a3   :  { %5908 = vst.msk [vmem:[%s11611_s2 + $0x1348] sm:$0xff] %vm5292_vm0, %v7279_v46  ;;  %7296 = vpow2.f32 %v5030_v42  ;;  %v3668_v50 = vmul.f32 -10.0, %v2918_v43  ;;  %v2166_v51 = vsub.f32 %v1317_v32, %v7799_v9  ;;  %v2914_v52 = vmul.f32 %v2164_v44, %v2164_v44 }
 0x3a4   :  { %v3669_v53 = vmul.f32 -10.0, %v2919_v47  ;;  %v5044_v54 = vmul.f32 1.442695, %v3667_v48  ;;  %v2915_v55 = vmul.f32 %v2165_v49, %v2165_v49  ;;  %v2173_v56 = vsub.f32 %v1332_v45, %v7795_v7 }
 0x3a5   :  { %v7281_v57 = vpop.eup %7280  ;;  %v5046_v58 = vmul.f32 1.442695, %v3668_v50  ;;  %v2916_v59 = vmul.f32 %v2166_v51, %v2166_v51  ;;  %v3664_v60 = vmul.f32 -10.0, %v2914_v52  ;;  %v2174_v61 = vsub.f32 %v1332_v45, %v7797_v8  ;;  %v1352_v52 = vpop.permute.xlu1 %1351 }
 0x3a6   :  { %v7283_v62 = vpop.eup %7282  ;;  %5903 = vst [vmem:[%s11611_s2 + $0x1320] sm:$0xff] %v7281_v57  ;;  %7298 = vpow2.f32 %v5044_v54  ;;  %v5048_v63 = vmul.f32 1.442695, %v3669_v53  ;;  %v3665_v0 = vmul.f32 -10.0, %v2915_v55  ;;  %v2175_v1 = vsub.f32 %v1332_v45, %v7799_v9 }
 0x3a7   :  { %v7285_v3 = vpop.eup %7284  ;;  %5904 = vst [vmem:[%s11611_s2 + $0x1328] sm:$0xff] %v7283_v62  ;;  %7300 = vpow2.f32 %v5046_v58  ;;  %v3666_v4 = vmul.f32 -10.0, %v2916_v59  ;;  %v5038_v5 = vmul.f32 1.442695, %v3664_v60  ;;  %v2923_v6 = vmul.f32 %v2173_v56, %v2173_v56 }
 0x3a8   :  { %v7287_v10 = vpop.eup %7286  ;;  %5905 = vst.msk [vmem:[%s11611_s2 + $0x1330] sm:$0xff] %vm5292_vm0, %v7285_v3  ;;  %7302 = vpow2.f32 %v5048_v63  ;;  %v5040_v11 = vmul.f32 1.442695, %v3665_v0  ;;  %v2924_v12 = vmul.f32 %v2174_v61, %v2174_v61  ;;  %v2925_v13 = vmul.f32 %v2175_v1, %v2175_v1  ;;  %v1347_v1 = vpop.permute.xlu0 %1346 }
 0x3a9   :  { %v7289_v14 = vpop.eup %7288  ;;  %5912 = vst [vmem:[%s11611_s2 + $0x1368] sm:$0xff] %v7287_v10  ;;  %7304 = vpow2.f32 %v5038_v5  ;;  %v5042_v15 = vmul.f32 1.442695, %v3666_v4  ;;  %v3673_v16 = vmul.f32 -10.0, %v2923_v6  ;;  %v2170_v17 = vsub.f32 %v1327_v2, %v7795_v7 }
 0x3aa   :  { %v7291_v19 = vpop.eup %7290  ;;  %5913 = vst [vmem:[%s11611_s2 + $0x1370] sm:$0xff] %v7289_v14  ;;  %7306 = vpow2.f32 %v5040_v11  ;;  %v3674_v20 = vmul.f32 -10.0, %v2924_v12  ;;  %v3675_v21 = vmul.f32 -10.0, %v2925_v13  ;;  %v2171_v22 = vsub.f32 %v1327_v2, %v7797_v8 }
 0x3ab   :  { %v7293_v23 = vpop.eup %7292  ;;  %5914 = vst.msk [vmem:[%s11611_s2 + $0x1378] sm:$0xff] %vm5292_vm0, %v7291_v19  ;;  %7308 = vpow2.f32 %v5042_v15  ;;  %v5056_v24 = vmul.f32 1.442695, %v3673_v16  ;;  %v2172_v25 = vsub.f32 %v1327_v2, %v7799_v9  ;;  %v2920_v26 = vmul.f32 %v2170_v17, %v2170_v17 }
 0x3ac   :  { %v7295_v27 = vpop.eup %7294  ;;  %5909 = vst [vmem:[%s11611_s2 + $0x1350] sm:$0xff] %v7293_v23  ;;  %v5058_v28 = vmul.f32 1.442695, %v3674_v20  ;;  %v5060_v29 = vmul.f32 1.442695, %v3675_v21  ;;  %v2921_v30 = vmul.f32 %v2171_v22, %v2171_v22  ;;  %v2179_v31 = vsub.f32 %v1342_v18, %v7795_v7 }
 0x3ad   :  { %v7297_v32 = vpop.eup %7296  ;;  %5910 = vst [vmem:[%s11611_s2 + $0x1358] sm:$0xff] %v7295_v27  ;;  %7310 = vpow2.f32 %v5056_v24  ;;  %v2922_v33 = vmul.f32 %v2172_v25, %v2172_v25  ;;  %v3670_v34 = vmul.f32 -10.0, %v2920_v26  ;;  %v2180_v35 = vsub.f32 %v1342_v18, %v7797_v8  ;;  %v1362_v26 = vpop.permute.xlu1 %1361 }
 0x3ae   :  { %5911 = vst.msk [vmem:[%s11611_s2 + $0x1360] sm:$0xff] %vm5292_vm0, %v7297_v32  ;;  %7312 = vpow2.f32 %v5058_v28  ;;  %v3671_v37 = vmul.f32 -10.0, %v2921_v30  ;;  %v2181_v38 = vsub.f32 %v1342_v18, %v7799_v9  ;;  %v2929_v39 = vmul.f32 %v2179_v31, %v2179_v31 }
 0x3af   :  { %7314 = vpow2.f32 %v5060_v29  ;;  %v3672_v40 = vmul.f32 -10.0, %v2922_v33  ;;  %v5050_v41 = vmul.f32 1.442695, %v3670_v34  ;;  %v2930_v42 = vmul.f32 %v2180_v35, %v2180_v35 }
 0x3b0   :  { %v7299_v43 = vpop.eup %7298  ;;  %v5052_v44 = vmul.f32 1.442695, %v3671_v37  ;;  %v2931_v45 = vmul.f32 %v2181_v38, %v2181_v38  ;;  %v3679_v46 = vmul.f32 -10.0, %v2929_v39  ;;  %v2176_v47 = vsub.f32 %v1337_v36, %v7795_v7  ;;  %v1357_v38 = vpop.permute.xlu0 %1356 }
 0x3b1   :  { %v7301_v48 = vpop.eup %7300  ;;  %5918 = vst [vmem:[%s11611_s2 + $0x1398] sm:$0xff] %v7299_v43  ;;  %7316 = vpow2.f32 %v5050_v41  ;;  %v5054_v49 = vmul.f32 1.442695, %v3672_v40  ;;  %v3680_v50 = vmul.f32 -10.0, %v2930_v42  ;;  %v2177_v51 = vsub.f32 %v1337_v36, %v7797_v8 }
 0x3b2   :  { %v7303_v53 = vpop.eup %7302  ;;  %5919 = vst [vmem:[%s11611_s2 + $0x13a0] sm:$0xff] %v7301_v48  ;;  %7318 = vpow2.f32 %v5052_v44  ;;  %v3681_v54 = vmul.f32 -10.0, %v2931_v45  ;;  %v5068_v55 = vmul.f32 1.442695, %v3679_v46  ;;  %v2178_v56 = vsub.f32 %v1337_v36, %v7799_v9 }
 0x3b3   :  { %v7305_v57 = vpop.eup %7304  ;;  %5920 = vst.msk [vmem:[%s11611_s2 + $0x13a8] sm:$0xff] %vm5292_vm0, %v7303_v53  ;;  %7320 = vpow2.f32 %v5054_v49  ;;  %v5070_v58 = vmul.f32 1.442695, %v3680_v50  ;;  %v2926_v59 = vmul.f32 %v2176_v47, %v2176_v47  ;;  %v2927_v60 = vmul.f32 %v2177_v51, %v2177_v51  ;;  %v1372_v51 = vpop.permute.xlu1 %1371 }
 0x3b4   :  { %v7307_v61 = vpop.eup %7306  ;;  %5915 = vst [vmem:[%s11611_s2 + $0x1380] sm:$0xff] %v7305_v57  ;;  %7322 = vpow2.f32 %v5068_v55  ;;  %v5072_v62 = vmul.f32 1.442695, %v3681_v54  ;;  %v2928_v63 = vmul.f32 %v2178_v56, %v2178_v56  ;;  %v2185_v0 = vsub.f32 %v1352_v52, %v7795_v7 }
 0x3b5   :  { %v7309_v2 = vpop.eup %7308  ;;  %5916 = vst [vmem:[%s11611_s2 + $0x1388] sm:$0xff] %v7307_v61  ;;  %7324 = vpow2.f32 %v5070_v58  ;;  %v3676_v3 = vmul.f32 -10.0, %v2926_v59  ;;  %v3677_v4 = vmul.f32 -10.0, %v2927_v60  ;;  %v2186_v5 = vsub.f32 %v1352_v52, %v7797_v8 }
 0x3b6   :  { %5917 = vst.msk [vmem:[%s11611_s2 + $0x1390] sm:$0xff] %vm5292_vm0, %v7309_v2  ;;  %7326 = vpow2.f32 %v5072_v62  ;;  %v3678_v6 = vmul.f32 -10.0, %v2928_v63  ;;  %v2187_v10 = vsub.f32 %v1352_v52, %v7799_v9  ;;  %v2935_v11 = vmul.f32 %v2185_v0, %v2185_v0 }
 0x3b7   :  { %v7311_v12 = vpop.eup %7310  ;;  %v5062_v13 = vmul.f32 1.442695, %v3676_v3  ;;  %v5064_v14 = vmul.f32 1.442695, %v3677_v4  ;;  %v2936_v15 = vmul.f32 %v2186_v5, %v2186_v5  ;;  %v2182_v16 = vsub.f32 %v1347_v1, %v7795_v7 }
 0x3b8   :  { %v7313_v17 = vpop.eup %7312  ;;  %5924 = vst [vmem:[%s11611_s2 + $0x13c8] sm:$0xff] %v7311_v12  ;;  %v5066_v18 = vmul.f32 1.442695, %v3678_v6  ;;  %v2937_v19 = vmul.f32 %v2187_v10, %v2187_v10  ;;  %v3685_v20 = vmul.f32 -10.0, %v2935_v11  ;;  %v2183_v21 = vsub.f32 %v1347_v1, %v7797_v8  ;;  %v1367_v11 = vpop.permute.xlu0 %1366 }
 0x3b9   :  { %v7315_v22 = vpop.eup %7314  ;;  %5925 = vst [vmem:[%s11611_s2 + $0x13d0] sm:$0xff] %v7313_v17  ;;  %7328 = vpow2.f32 %v5062_v13  ;;  %v3686_v23 = vmul.f32 -10.0, %v2936_v15  ;;  %v2184_v24 = vsub.f32 %v1347_v1, %v7799_v9  ;;  %v2932_v25 = vmul.f32 %v2182_v16, %v2182_v16 }
 0x3ba   :  { %5926 = vst.msk [vmem:[%s11611_s2 + $0x13d8] sm:$0xff] %vm5292_vm0, %v7315_v22  ;;  %7330 = vpow2.f32 %v5064_v14  ;;  %v3687_v27 = vmul.f32 -10.0, %v2937_v19  ;;  %v5080_v28 = vmul.f32 1.442695, %v3685_v20  ;;  %v2933_v29 = vmul.f32 %v2183_v21, %v2183_v21 }
 0x3bb   :  { %v7317_v30 = vpop.eup %7316  ;;  %7332 = vpow2.f32 %v5066_v18  ;;  %v5082_v31 = vmul.f32 1.442695, %v3686_v23  ;;  %v2934_v32 = vmul.f32 %v2184_v24, %v2184_v24  ;;  %v3682_v33 = vmul.f32 -10.0, %v2932_v25  ;;  %v1382_v24 = vpop.permute.xlu1 %1381 }
 0x3bc   :  { %v7319_v34 = vpop.eup %7318  ;;  %5921 = vst [vmem:[%s11611_s2 + $0x13b0] sm:$0xff] %v7317_v30  ;;  %7334 = vpow2.f32 %v5080_v28  ;;  %v5084_v35 = vmul.f32 1.442695, %v3687_v27  ;;  %v3683_v36 = vmul.f32 -10.0, %v2933_v29  ;;  %v2191_v37 = vsub.f32 %v1362_v26, %v7795_v7 }
 0x3bd   :  { %v7321_v39 = vpop.eup %7320  ;;  %5922 = vst [vmem:[%s11611_s2 + $0x13b8] sm:$0xff] %v7319_v34  ;;  %7336 = vpow2.f32 %v5082_v31  ;;  %v3684_v40 = vmul.f32 -10.0, %v2934_v32  ;;  %v5074_v41 = vmul.f32 1.442695, %v3682_v33  ;;  %v2192_v42 = vsub.f32 %v1362_v26, %v7797_v8 }
 0x3be   :  { %v7323_v43 = vpop.eup %7322  ;;  %5923 = vst.msk [vmem:[%s11611_s2 + $0x13c0] sm:$0xff] %vm5292_vm0, %v7321_v39  ;;  %7338 = vpow2.f32 %v5084_v35  ;;  %v5076_v44 = vmul.f32 1.442695, %v3683_v36  ;;  %v2193_v45 = vsub.f32 %v1362_v26, %v7799_v9  ;;  %v2941_v46 = vmul.f32 %v2191_v37, %v2191_v37 }
 0x3bf   :  { %v7325_v47 = vpop.eup %7324  ;;  %5930 = vst [vmem:[%s11611_s2 + $0x13f8] sm:$0xff] %v7323_v43  ;;  %7340 = vpow2.f32 %v5074_v41  ;;  %v5078_v48 = vmul.f32 1.442695, %v3684_v40  ;;  %v2942_v49 = vmul.f32 %v2192_v42, %v2192_v42  ;;  %v2188_v50 = vsub.f32 %v1357_v38, %v7795_v7  ;;  %v1377_v42 = vpop.permute.xlu0 %1376 }
 0x3c0   :  { %v7327_v52 = vpop.eup %7326  ;;  %5931 = vst [vmem:[%s11611_s2 + $0x1400] sm:$0xff] %v7325_v47  ;;  %7342 = vpow2.f32 %v5076_v44  ;;  %v2943_v53 = vmul.f32 %v2193_v45, %v2193_v45  ;;  %v3691_v54 = vmul.f32 -10.0, %v2941_v46  ;;  %v2189_v55 = vsub.f32 %v1357_v38, %v7797_v8 }
 0x3c1   :  { %5932 = vst.msk [vmem:[%s11611_s2 + $0x1408] sm:$0xff] %vm5292_vm0, %v7327_v52  ;;  %7344 = vpow2.f32 %v5078_v48  ;;  %v3692_v56 = vmul.f32 -10.0, %v2942_v49  ;;  %v2190_v57 = vsub.f32 %v1357_v38, %v7799_v9  ;;  %v2938_v58 = vmul.f32 %v2188_v50, %v2188_v50 }
 0x3c2   :  { %v3693_v59 = vmul.f32 -10.0, %v2943_v53  ;;  %v5092_v60 = vmul.f32 1.442695, %v3691_v54  ;;  %v2939_v61 = vmul.f32 %v2189_v55, %v2189_v55  ;;  %v2197_v62 = vsub.f32 %v1372_v51, %v7795_v7 }
 0x3c3   :  { %v7329_v63 = vpop.eup %7328  ;;  %v5094_v0 = vmul.f32 1.442695, %v3692_v56  ;;  %v2940_v1 = vmul.f32 %v2190_v57, %v2190_v57  ;;  %v3688_v2 = vmul.f32 -10.0, %v2938_v58  ;;  %v2198_v3 = vsub.f32 %v1372_v51, %v7797_v8  ;;  %v1392_v58 = vpop.permute.xlu1 %1391 }
 0x3c4   :  { %v7331_v4 = vpop.eup %7330  ;;  %5927 = vst [vmem:[%s11611_s2 + $0x13e0] sm:$0xff] %v7329_v63  ;;  %7346 = vpow2.f32 %v5092_v60  ;;  %v5096_v5 = vmul.f32 1.442695, %v3693_v59  ;;  %v3689_v6 = vmul.f32 -10.0, %v2939_v61  ;;  %v2199_v10 = vsub.f32 %v1372_v51, %v7799_v9 }
 0x3c5   :  { %v7333_v12 = vpop.eup %7332  ;;  %5928 = vst [vmem:[%s11611_s2 + $0x13e8] sm:$0xff] %v7331_v4  ;;  %7348 = vpow2.f32 %v5094_v0  ;;  %v3690_v13 = vmul.f32 -10.0, %v2940_v1  ;;  %v5086_v14 = vmul.f32 1.442695, %v3688_v2  ;;  %v2947_v15 = vmul.f32 %v2197_v62, %v2197_v62 }
 0x3c6   :  { %v7335_v16 = vpop.eup %7334  ;;  %5929 = vst.msk [vmem:[%s11611_s2 + $0x13f0] sm:$0xff] %vm5292_vm0, %v7333_v12  ;;  %7350 = vpow2.f32 %v5096_v5  ;;  %v5088_v17 = vmul.f32 1.442695, %v3689_v6  ;;  %v2948_v18 = vmul.f32 %v2198_v3, %v2198_v3  ;;  %v2949_v19 = vmul.f32 %v2199_v10, %v2199_v10  ;;  %v1387_v10 = vpop.permute.xlu0 %1386 }
 0x3c7   :  { %v7337_v20 = vpop.eup %7336  ;;  %5936 = vst [vmem:[%s11611_s2 + $0x1428] sm:$0xff] %v7335_v16  ;;  %7352 = vpow2.f32 %v5086_v14  ;;  %v5090_v21 = vmul.f32 1.442695, %v3690_v13  ;;  %v3697_v22 = vmul.f32 -10.0, %v2947_v15  ;;  %v2194_v23 = vsub.f32 %v1367_v11, %v7795_v7 }
 0x3c8   :  { %v7339_v25 = vpop.eup %7338  ;;  %5937 = vst [vmem:[%s11611_s2 + $0x1430] sm:$0xff] %v7337_v20  ;;  %7354 = vpow2.f32 %v5088_v17  ;;  %v3698_v26 = vmul.f32 -10.0, %v2948_v18  ;;  %v3699_v27 = vmul.f32 -10.0, %v2949_v19  ;;  %v2195_v28 = vsub.f32 %v1367_v11, %v7797_v8 }
 0x3c9   :  { %v7341_v29 = vpop.eup %7340  ;;  %5938 = vst.msk [vmem:[%s11611_s2 + $0x1438] sm:$0xff] %vm5292_vm0, %v7339_v25  ;;  %7356 = vpow2.f32 %v5090_v21  ;;  %v5104_v30 = vmul.f32 1.442695, %v3697_v22  ;;  %v2196_v31 = vsub.f32 %v1367_v11, %v7799_v9  ;;  %v2944_v32 = vmul.f32 %v2194_v23, %v2194_v23 }
 0x3ca   :  { %v7343_v33 = vpop.eup %7342  ;;  %5933 = vst [vmem:[%s11611_s2 + $0x1410] sm:$0xff] %v7341_v29  ;;  %v5106_v34 = vmul.f32 1.442695, %v3698_v26  ;;  %v5108_v35 = vmul.f32 1.442695, %v3699_v27  ;;  %v2945_v36 = vmul.f32 %v2195_v28, %v2195_v28  ;;  %v2203_v37 = vsub.f32 %v1382_v24, %v7795_v7 }
 0x3cb   :  { %v7345_v38 = vpop.eup %7344  ;;  %5934 = vst [vmem:[%s11611_s2 + $0x1418] sm:$0xff] %v7343_v33  ;;  %7358 = vpow2.f32 %v5104_v30  ;;  %v2946_v39 = vmul.f32 %v2196_v31, %v2196_v31  ;;  %v3694_v40 = vmul.f32 -10.0, %v2944_v32  ;;  %v2204_v41 = vsub.f32 %v1382_v24, %v7797_v8  ;;  %v1402_v32 = vpop.permute.xlu1 %1401 }
 0x3cc   :  { %5935 = vst.msk [vmem:[%s11611_s2 + $0x1420] sm:$0xff] %vm5292_vm0, %v7345_v38  ;;  %7360 = vpow2.f32 %v5106_v34  ;;  %v3695_v43 = vmul.f32 -10.0, %v2945_v36  ;;  %v2205_v44 = vsub.f32 %v1382_v24, %v7799_v9  ;;  %v2953_v45 = vmul.f32 %v2203_v37, %v2203_v37 }
 0x3cd   :  { %7362 = vpow2.f32 %v5108_v35  ;;  %v3696_v46 = vmul.f32 -10.0, %v2946_v39  ;;  %v5098_v47 = vmul.f32 1.442695, %v3694_v40  ;;  %v2954_v48 = vmul.f32 %v2204_v41, %v2204_v41 }
 0x3ce   :  { %v7347_v49 = vpop.eup %7346  ;;  %v5100_v50 = vmul.f32 1.442695, %v3695_v43  ;;  %v2955_v51 = vmul.f32 %v2205_v44, %v2205_v44  ;;  %v3703_v52 = vmul.f32 -10.0, %v2953_v45  ;;  %v2200_v53 = vsub.f32 %v1377_v42, %v7795_v7  ;;  %v1397_v44 = vpop.permute.xlu0 %1396 }
 0x3cf   :  { %v7349_v54 = vpop.eup %7348  ;;  %5942 = vst [vmem:[%s11611_s2 + $0x1458] sm:$0xff] %v7347_v49  ;;  %7364 = vpow2.f32 %v5098_v47  ;;  %v5102_v55 = vmul.f32 1.442695, %v3696_v46  ;;  %v3704_v56 = vmul.f32 -10.0, %v2954_v48  ;;  %v2201_v57 = vsub.f32 %v1377_v42, %v7797_v8 }
 0x3d0   :  { %v7351_v59 = vpop.eup %7350  ;;  %5943 = vst [vmem:[%s11611_s2 + $0x1460] sm:$0xff] %v7349_v54  ;;  %7366 = vpow2.f32 %v5100_v50  ;;  %v3705_v60 = vmul.f32 -10.0, %v2955_v51  ;;  %v5116_v61 = vmul.f32 1.442695, %v3703_v52  ;;  %v2202_v62 = vsub.f32 %v1377_v42, %v7799_v9 }
 0x3d1   :  { %v7353_v63 = vpop.eup %7352  ;;  %5944 = vst.msk [vmem:[%s11611_s2 + $0x1468] sm:$0xff] %vm5292_vm0, %v7351_v59  ;;  %7368 = vpow2.f32 %v5102_v55  ;;  %v5118_v0 = vmul.f32 1.442695, %v3704_v56  ;;  %v2950_v1 = vmul.f32 %v2200_v53, %v2200_v53  ;;  %v2951_v2 = vmul.f32 %v2201_v57, %v2201_v57  ;;  %v1412_v57 = vpop.permute.xlu1 %1411 }
 0x3d2   :  { %v7355_v3 = vpop.eup %7354  ;;  %5939 = vst [vmem:[%s11611_s2 + $0x1440] sm:$0xff] %v7353_v63  ;;  %7370 = vpow2.f32 %v5116_v61  ;;  %v5120_v4 = vmul.f32 1.442695, %v3705_v60  ;;  %v2952_v5 = vmul.f32 %v2202_v62, %v2202_v62  ;;  %v2209_v6 = vsub.f32 %v1392_v58, %v7795_v7 }
 0x3d3   :  { %v7357_v11 = vpop.eup %7356  ;;  %5940 = vst [vmem:[%s11611_s2 + $0x1448] sm:$0xff] %v7355_v3  ;;  %7372 = vpow2.f32 %v5118_v0  ;;  %v3700_v12 = vmul.f32 -10.0, %v2950_v1  ;;  %v3701_v13 = vmul.f32 -10.0, %v2951_v2  ;;  %v2210_v14 = vsub.f32 %v1392_v58, %v7797_v8 }
 0x3d4   :  { %5941 = vst.msk [vmem:[%s11611_s2 + $0x1450] sm:$0xff] %vm5292_vm0, %v7357_v11  ;;  %7374 = vpow2.f32 %v5120_v4  ;;  %v3702_v15 = vmul.f32 -10.0, %v2952_v5  ;;  %v2211_v16 = vsub.f32 %v1392_v58, %v7799_v9  ;;  %v2959_v17 = vmul.f32 %v2209_v6, %v2209_v6 }
 0x3d5   :  { %v7359_v18 = vpop.eup %7358  ;;  %v5110_v19 = vmul.f32 1.442695, %v3700_v12  ;;  %v5112_v20 = vmul.f32 1.442695, %v3701_v13  ;;  %v2960_v21 = vmul.f32 %v2210_v14, %v2210_v14  ;;  %v2206_v22 = vsub.f32 %v1387_v10, %v7795_v7 }
 0x3d6   :  { %v7361_v23 = vpop.eup %7360  ;;  %5948 = vst [vmem:[%s11611_s2 + $0x1488] sm:$0xff] %v7359_v18  ;;  %v5114_v24 = vmul.f32 1.442695, %v3702_v15  ;;  %v2961_v25 = vmul.f32 %v2211_v16, %v2211_v16  ;;  %v3709_v26 = vmul.f32 -10.0, %v2959_v17  ;;  %v2207_v27 = vsub.f32 %v1387_v10, %v7797_v8  ;;  %v1407_v17 = vpop.permute.xlu0 %1406 }
 0x3d7   :  { %v7363_v28 = vpop.eup %7362  ;;  %5949 = vst [vmem:[%s11611_s2 + $0x1490] sm:$0xff] %v7361_v23  ;;  %7376 = vpow2.f32 %v5110_v19  ;;  %v3710_v29 = vmul.f32 -10.0, %v2960_v21  ;;  %v2208_v30 = vsub.f32 %v1387_v10, %v7799_v9  ;;  %v2956_v31 = vmul.f32 %v2206_v22, %v2206_v22 }
 0x3d8   :  { %5950 = vst.msk [vmem:[%s11611_s2 + $0x1498] sm:$0xff] %vm5292_vm0, %v7363_v28  ;;  %7378 = vpow2.f32 %v5112_v20  ;;  %v3711_v33 = vmul.f32 -10.0, %v2961_v25  ;;  %v5128_v34 = vmul.f32 1.442695, %v3709_v26  ;;  %v2957_v35 = vmul.f32 %v2207_v27, %v2207_v27 }
 0x3d9   :  { %v7365_v36 = vpop.eup %7364  ;;  %7380 = vpow2.f32 %v5114_v24  ;;  %v5130_v37 = vmul.f32 1.442695, %v3710_v29  ;;  %v2958_v38 = vmul.f32 %v2208_v30, %v2208_v30  ;;  %v3706_v39 = vmul.f32 -10.0, %v2956_v31  ;;  %v1422_v30 = vpop.permute.xlu1 %1421 }
 0x3da   :  { %v7367_v40 = vpop.eup %7366  ;;  %5945 = vst [vmem:[%s11611_s2 + $0x1470] sm:$0xff] %v7365_v36  ;;  %7382 = vpow2.f32 %v5128_v34  ;;  %v5132_v41 = vmul.f32 1.442695, %v3711_v33  ;;  %v3707_v42 = vmul.f32 -10.0, %v2957_v35  ;;  %v2215_v43 = vsub.f32 %v1402_v32, %v7795_v7 }
 0x3db   :  { %v7369_v45 = vpop.eup %7368  ;;  %5946 = vst [vmem:[%s11611_s2 + $0x1478] sm:$0xff] %v7367_v40  ;;  %7384 = vpow2.f32 %v5130_v37  ;;  %v3708_v46 = vmul.f32 -10.0, %v2958_v38  ;;  %v5122_v47 = vmul.f32 1.442695, %v3706_v39  ;;  %v2216_v48 = vsub.f32 %v1402_v32, %v7797_v8 }
 0x3dc   :  { %v7371_v49 = vpop.eup %7370  ;;  %5947 = vst.msk [vmem:[%s11611_s2 + $0x1480] sm:$0xff] %vm5292_vm0, %v7369_v45  ;;  %7386 = vpow2.f32 %v5132_v41  ;;  %v5124_v50 = vmul.f32 1.442695, %v3707_v42  ;;  %v2217_v51 = vsub.f32 %v1402_v32, %v7799_v9  ;;  %v2965_v52 = vmul.f32 %v2215_v43, %v2215_v43 }
 0x3dd   :  { %v7373_v53 = vpop.eup %7372  ;;  %5954 = vst [vmem:[%s11611_s2 + $0x14b8] sm:$0xff] %v7371_v49  ;;  %7388 = vpow2.f32 %v5122_v47  ;;  %v5126_v54 = vmul.f32 1.442695, %v3708_v46  ;;  %v2966_v55 = vmul.f32 %v2216_v48, %v2216_v48  ;;  %v2212_v56 = vsub.f32 %v1397_v44, %v7795_v7  ;;  %v1417_v48 = vpop.permute.xlu0 %1416 }
 0x3de   :  { %v7375_v58 = vpop.eup %7374  ;;  %5955 = vst [vmem:[%s11611_s2 + $0x14c0] sm:$0xff] %v7373_v53  ;;  %7390 = vpow2.f32 %v5124_v50  ;;  %v2967_v59 = vmul.f32 %v2217_v51, %v2217_v51  ;;  %v3715_v60 = vmul.f32 -10.0, %v2965_v52  ;;  %v2213_v61 = vsub.f32 %v1397_v44, %v7797_v8 }
 0x3df   :  { %5956 = vst.msk [vmem:[%s11611_s2 + $0x14c8] sm:$0xff] %vm5292_vm0, %v7375_v58  ;;  %7392 = vpow2.f32 %v5126_v54  ;;  %v3716_v62 = vmul.f32 -10.0, %v2966_v55  ;;  %v2214_v63 = vsub.f32 %v1397_v44, %v7799_v9  ;;  %v2962_v0 = vmul.f32 %v2212_v56, %v2212_v56 }
 0x3e0   :  { %v3717_v1 = vmul.f32 -10.0, %v2967_v59  ;;  %v5140_v2 = vmul.f32 1.442695, %v3715_v60  ;;  %v2963_v3 = vmul.f32 %v2213_v61, %v2213_v61  ;;  %v2221_v4 = vsub.f32 %v1412_v57, %v7795_v7 }
 0x3e1   :  { %v7377_v5 = vpop.eup %7376  ;;  %v5142_v6 = vmul.f32 1.442695, %v3716_v62  ;;  %v2964_v10 = vmul.f32 %v2214_v63, %v2214_v63  ;;  %v3712_v11 = vmul.f32 -10.0, %v2962_v0  ;;  %v2222_v12 = vsub.f32 %v1412_v57, %v7797_v8  ;;  %v1432_v0 = vpop.permute.xlu1 %1431 }
 0x3e2   :  { %v7379_v13 = vpop.eup %7378  ;;  %5951 = vst [vmem:[%s11611_s2 + $0x14a0] sm:$0xff] %v7377_v5  ;;  %7394 = vpow2.f32 %v5140_v2  ;;  %v5144_v14 = vmul.f32 1.442695, %v3717_v1  ;;  %v3713_v15 = vmul.f32 -10.0, %v2963_v3  ;;  %v2223_v16 = vsub.f32 %v1412_v57, %v7799_v9 }
 0x3e3   :  { %v7381_v18 = vpop.eup %7380  ;;  %5952 = vst [vmem:[%s11611_s2 + $0x14a8] sm:$0xff] %v7379_v13  ;;  %7396 = vpow2.f32 %v5142_v6  ;;  %v3714_v19 = vmul.f32 -10.0, %v2964_v10  ;;  %v5134_v20 = vmul.f32 1.442695, %v3712_v11  ;;  %v2971_v21 = vmul.f32 %v2221_v4, %v2221_v4 }
 0x3e4   :  { %v7383_v22 = vpop.eup %7382  ;;  %5953 = vst.msk [vmem:[%s11611_s2 + $0x14b0] sm:$0xff] %vm5292_vm0, %v7381_v18  ;;  %7398 = vpow2.f32 %v5144_v14  ;;  %v5136_v23 = vmul.f32 1.442695, %v3713_v15  ;;  %v2972_v24 = vmul.f32 %v2222_v12, %v2222_v12  ;;  %v2973_v25 = vmul.f32 %v2223_v16, %v2223_v16  ;;  %v1427_v16 = vpop.permute.xlu0 %1426 }
 0x3e5   :  { %v7385_v26 = vpop.eup %7384  ;;  %5960 = vst [vmem:[%s11611_s2 + $0x14e8] sm:$0xff] %v7383_v22  ;;  %7400 = vpow2.f32 %v5134_v20  ;;  %v5138_v27 = vmul.f32 1.442695, %v3714_v19  ;;  %v3721_v28 = vmul.f32 -10.0, %v2971_v21  ;;  %v2218_v29 = vsub.f32 %v1407_v17, %v7795_v7 }
 0x3e6   :  { %v7387_v31 = vpop.eup %7386  ;;  %5961 = vst [vmem:[%s11611_s2 + $0x14f0] sm:$0xff] %v7385_v26  ;;  %7402 = vpow2.f32 %v5136_v23  ;;  %v3722_v32 = vmul.f32 -10.0, %v2972_v24  ;;  %v3723_v33 = vmul.f32 -10.0, %v2973_v25  ;;  %v2219_v34 = vsub.f32 %v1407_v17, %v7797_v8 }
 0x3e7   :  { %v7389_v35 = vpop.eup %7388  ;;  %5962 = vst.msk [vmem:[%s11611_s2 + $0x14f8] sm:$0xff] %vm5292_vm0, %v7387_v31  ;;  %7404 = vpow2.f32 %v5138_v27  ;;  %v5152_v36 = vmul.f32 1.442695, %v3721_v28  ;;  %v2220_v37 = vsub.f32 %v1407_v17, %v7799_v9  ;;  %v2968_v38 = vmul.f32 %v2218_v29, %v2218_v29 }
 0x3e8   :  { %v7391_v39 = vpop.eup %7390  ;;  %5957 = vst [vmem:[%s11611_s2 + $0x14d0] sm:$0xff] %v7389_v35  ;;  %v5154_v40 = vmul.f32 1.442695, %v3722_v32  ;;  %v5156_v41 = vmul.f32 1.442695, %v3723_v33  ;;  %v2969_v42 = vmul.f32 %v2219_v34, %v2219_v34  ;;  %v2227_v43 = vsub.f32 %v1422_v30, %v7795_v7 }
 0x3e9   :  { %v7393_v44 = vpop.eup %7392  ;;  %5958 = vst [vmem:[%s11611_s2 + $0x14d8] sm:$0xff] %v7391_v39  ;;  %7406 = vpow2.f32 %v5152_v36  ;;  %v2970_v45 = vmul.f32 %v2220_v37, %v2220_v37  ;;  %v3718_v46 = vmul.f32 -10.0, %v2968_v38  ;;  %v2228_v47 = vsub.f32 %v1422_v30, %v7797_v8  ;;  %v1442_v38 = vpop.permute.xlu1 %1441 }
 0x3ea   :  { %5959 = vst.msk [vmem:[%s11611_s2 + $0x14e0] sm:$0xff] %vm5292_vm0, %v7393_v44  ;;  %7408 = vpow2.f32 %v5154_v40  ;;  %v3719_v49 = vmul.f32 -10.0, %v2969_v42  ;;  %v2229_v50 = vsub.f32 %v1422_v30, %v7799_v9  ;;  %v2977_v51 = vmul.f32 %v2227_v43, %v2227_v43 }
 0x3eb   :  { %7410 = vpow2.f32 %v5156_v41  ;;  %v3720_v52 = vmul.f32 -10.0, %v2970_v45  ;;  %v5146_v53 = vmul.f32 1.442695, %v3718_v46  ;;  %v2978_v54 = vmul.f32 %v2228_v47, %v2228_v47 }
 0x3ec   :  { %v7395_v55 = vpop.eup %7394  ;;  %v5148_v56 = vmul.f32 1.442695, %v3719_v49  ;;  %v2979_v57 = vmul.f32 %v2229_v50, %v2229_v50  ;;  %v3727_v58 = vmul.f32 -10.0, %v2977_v51  ;;  %v2224_v59 = vsub.f32 %v1417_v48, %v7795_v7  ;;  %v1437_v50 = vpop.permute.xlu0 %1436 }
 0x3ed   :  { %v7397_v60 = vpop.eup %7396  ;;  %5966 = vst [vmem:[%s11611_s2 + $0x1518] sm:$0xff] %v7395_v55  ;;  %7412 = vpow2.f32 %v5146_v53  ;;  %v5150_v61 = vmul.f32 1.442695, %v3720_v52  ;;  %v3728_v62 = vmul.f32 -10.0, %v2978_v54  ;;  %v2225_v63 = vsub.f32 %v1417_v48, %v7797_v8 }
 0x3ee   :  { %v7399_v1 = vpop.eup %7398  ;;  %5967 = vst [vmem:[%s11611_s2 + $0x1520] sm:$0xff] %v7397_v60  ;;  %7414 = vpow2.f32 %v5148_v56  ;;  %v3729_v2 = vmul.f32 -10.0, %v2979_v57  ;;  %v5164_v3 = vmul.f32 1.442695, %v3727_v58  ;;  %v2226_v4 = vsub.f32 %v1417_v48, %v7799_v9 }
 0x3ef   :  { %v7401_v5 = vpop.eup %7400  ;;  %5968 = vst.msk [vmem:[%s11611_s2 + $0x1528] sm:$0xff] %vm5292_vm0, %v7399_v1  ;;  %7416 = vpow2.f32 %v5150_v61  ;;  %v5166_v6 = vmul.f32 1.442695, %v3728_v62  ;;  %v2974_v10 = vmul.f32 %v2224_v59, %v2224_v59  ;;  %v2975_v11 = vmul.f32 %v2225_v63, %v2225_v63  ;;  %v1452_v63 = vpop.permute.xlu1 %1451 }
 0x3f0   :  { %v7403_v12 = vpop.eup %7402  ;;  %5963 = vst [vmem:[%s11611_s2 + $0x1500] sm:$0xff] %v7401_v5  ;;  %7418 = vpow2.f32 %v5164_v3  ;;  %v5168_v13 = vmul.f32 1.442695, %v3729_v2  ;;  %v2976_v14 = vmul.f32 %v2226_v4, %v2226_v4  ;;  %v2233_v15 = vsub.f32 %v1432_v0, %v7795_v7 }
 0x3f1   :  { %v7405_v17 = vpop.eup %7404  ;;  %5964 = vst [vmem:[%s11611_s2 + $0x1508] sm:$0xff] %v7403_v12  ;;  %7420 = vpow2.f32 %v5166_v6  ;;  %v3724_v18 = vmul.f32 -10.0, %v2974_v10  ;;  %v3725_v19 = vmul.f32 -10.0, %v2975_v11  ;;  %v2234_v20 = vsub.f32 %v1432_v0, %v7797_v8 }
 0x3f2   :  { %5965 = vst.msk [vmem:[%s11611_s2 + $0x1510] sm:$0xff] %vm5292_vm0, %v7405_v17  ;;  %7422 = vpow2.f32 %v5168_v13  ;;  %v3726_v21 = vmul.f32 -10.0, %v2976_v14  ;;  %v2235_v22 = vsub.f32 %v1432_v0, %v7799_v9  ;;  %v2983_v23 = vmul.f32 %v2233_v15, %v2233_v15 }
 0x3f3   :  { %v7407_v24 = vpop.eup %7406  ;;  %v5158_v25 = vmul.f32 1.442695, %v3724_v18  ;;  %v5160_v26 = vmul.f32 1.442695, %v3725_v19  ;;  %v2984_v27 = vmul.f32 %v2234_v20, %v2234_v20  ;;  %v2230_v28 = vsub.f32 %v1427_v16, %v7795_v7 }
 0x3f4   :  { %v7409_v29 = vpop.eup %7408  ;;  %5972 = vst [vmem:[%s11611_s2 + $0x1548] sm:$0xff] %v7407_v24  ;;  %v5162_v30 = vmul.f32 1.442695, %v3726_v21  ;;  %v2985_v31 = vmul.f32 %v2235_v22, %v2235_v22  ;;  %v3733_v32 = vmul.f32 -10.0, %v2983_v23  ;;  %v2231_v33 = vsub.f32 %v1427_v16, %v7797_v8  ;;  %v1447_v23 = vpop.permute.xlu0 %1446 }
 0x3f5   :  { %v7411_v34 = vpop.eup %7410  ;;  %5973 = vst [vmem:[%s11611_s2 + $0x1550] sm:$0xff] %v7409_v29  ;;  %7424 = vpow2.f32 %v5158_v25  ;;  %v3734_v35 = vmul.f32 -10.0, %v2984_v27  ;;  %v2232_v36 = vsub.f32 %v1427_v16, %v7799_v9  ;;  %v2980_v37 = vmul.f32 %v2230_v28, %v2230_v28 }
 0x3f6   :  { %5974 = vst.msk [vmem:[%s11611_s2 + $0x1558] sm:$0xff] %vm5292_vm0, %v7411_v34  ;;  %7426 = vpow2.f32 %v5160_v26  ;;  %v3735_v39 = vmul.f32 -10.0, %v2985_v31  ;;  %v5176_v40 = vmul.f32 1.442695, %v3733_v32  ;;  %v2981_v41 = vmul.f32 %v2231_v33, %v2231_v33 }
 0x3f7   :  { %v7413_v42 = vpop.eup %7412  ;;  %7428 = vpow2.f32 %v5162_v30  ;;  %v5178_v43 = vmul.f32 1.442695, %v3734_v35  ;;  %v2982_v44 = vmul.f32 %v2232_v36, %v2232_v36  ;;  %v3730_v45 = vmul.f32 -10.0, %v2980_v37  ;;  %v1462_v36 = vpop.permute.xlu1 %1461 }
 0x3f8   :  { %v7415_v46 = vpop.eup %7414  ;;  %5969 = vst [vmem:[%s11611_s2 + $0x1530] sm:$0xff] %v7413_v42  ;;  %7430 = vpow2.f32 %v5176_v40  ;;  %v5180_v47 = vmul.f32 1.442695, %v3735_v39  ;;  %v3731_v48 = vmul.f32 -10.0, %v2981_v41  ;;  %v2239_v49 = vsub.f32 %v1442_v38, %v7795_v7 }
 0x3f9   :  { %v7417_v51 = vpop.eup %7416  ;;  %5970 = vst [vmem:[%s11611_s2 + $0x1538] sm:$0xff] %v7415_v46  ;;  %7432 = vpow2.f32 %v5178_v43  ;;  %v3732_v52 = vmul.f32 -10.0, %v2982_v44  ;;  %v5170_v53 = vmul.f32 1.442695, %v3730_v45  ;;  %v2240_v54 = vsub.f32 %v1442_v38, %v7797_v8 }
 0x3fa   :  { %v7419_v55 = vpop.eup %7418  ;;  %5971 = vst.msk [vmem:[%s11611_s2 + $0x1540] sm:$0xff] %vm5292_vm0, %v7417_v51  ;;  %7434 = vpow2.f32 %v5180_v47  ;;  %v5172_v56 = vmul.f32 1.442695, %v3731_v48  ;;  %v2241_v57 = vsub.f32 %v1442_v38, %v7799_v9  ;;  %v2989_v58 = vmul.f32 %v2239_v49, %v2239_v49 }
 0x3fb   :  { %v7421_v59 = vpop.eup %7420  ;;  %5978 = vst [vmem:[%s11611_s2 + $0x1578] sm:$0xff] %v7419_v55  ;;  %7436 = vpow2.f32 %v5170_v53  ;;  %v5174_v60 = vmul.f32 1.442695, %v3732_v52  ;;  %v2990_v61 = vmul.f32 %v2240_v54, %v2240_v54  ;;  %v2236_v62 = vsub.f32 %v1437_v50, %v7795_v7  ;;  %v1457_v54 = vpop.permute.xlu0 %1456 }
 0x3fc   :  { %v7423_v0 = vpop.eup %7422  ;;  %5979 = vst [vmem:[%s11611_s2 + $0x1580] sm:$0xff] %v7421_v59  ;;  %7438 = vpow2.f32 %v5172_v56  ;;  %v2991_v1 = vmul.f32 %v2241_v57, %v2241_v57  ;;  %v3739_v2 = vmul.f32 -10.0, %v2989_v58  ;;  %v2237_v3 = vsub.f32 %v1437_v50, %v7797_v8 }
 0x3fd   :  { %5980 = vst.msk [vmem:[%s11611_s2 + $0x1588] sm:$0xff] %vm5292_vm0, %v7423_v0  ;;  %7440 = vpow2.f32 %v5174_v60  ;;  %v3740_v4 = vmul.f32 -10.0, %v2990_v61  ;;  %v2238_v5 = vsub.f32 %v1437_v50, %v7799_v9  ;;  %v2986_v6 = vmul.f32 %v2236_v62, %v2236_v62 }
 0x3fe   :  { %v3741_v10 = vmul.f32 -10.0, %v2991_v1  ;;  %v5188_v11 = vmul.f32 1.442695, %v3739_v2  ;;  %v2987_v12 = vmul.f32 %v2237_v3, %v2237_v3  ;;  %v2245_v13 = vsub.f32 %v1452_v63, %v7795_v7 }
 0x3ff   :  { %v7425_v14 = vpop.eup %7424  ;;  %v5190_v15 = vmul.f32 1.442695, %v3740_v4  ;;  %v2988_v16 = vmul.f32 %v2238_v5, %v2238_v5  ;;  %v3736_v17 = vmul.f32 -10.0, %v2986_v6  ;;  %v2246_v18 = vsub.f32 %v1452_v63, %v7797_v8  ;;  %v1472_v6 = vpop.permute.xlu1 %1471 }
 0x400   :  { %v7427_v19 = vpop.eup %7426  ;;  %5975 = vst [vmem:[%s11611_s2 + $0x1560] sm:$0xff] %v7425_v14  ;;  %7442 = vpow2.f32 %v5188_v11  ;;  %v5192_v20 = vmul.f32 1.442695, %v3741_v10  ;;  %v3737_v21 = vmul.f32 -10.0, %v2987_v12  ;;  %v2247_v22 = vsub.f32 %v1452_v63, %v7799_v9 }
 0x401   :  { %v7429_v24 = vpop.eup %7428  ;;  %5976 = vst [vmem:[%s11611_s2 + $0x1568] sm:$0xff] %v7427_v19  ;;  %7444 = vpow2.f32 %v5190_v15  ;;  %v3738_v25 = vmul.f32 -10.0, %v2988_v16  ;;  %v5182_v26 = vmul.f32 1.442695, %v3736_v17  ;;  %v2995_v27 = vmul.f32 %v2245_v13, %v2245_v13 }
 0x402   :  { %v7431_v28 = vpop.eup %7430  ;;  %5977 = vst.msk [vmem:[%s11611_s2 + $0x1570] sm:$0xff] %vm5292_vm0, %v7429_v24  ;;  %7446 = vpow2.f32 %v5192_v20  ;;  %v5184_v29 = vmul.f32 1.442695, %v3737_v21  ;;  %v2996_v30 = vmul.f32 %v2246_v18, %v2246_v18  ;;  %v2997_v31 = vmul.f32 %v2247_v22, %v2247_v22  ;;  %v1467_v22 = vpop.permute.xlu0 %1466 }
 0x403   :  { %v7433_v32 = vpop.eup %7432  ;;  %5984 = vst [vmem:[%s11611_s2 + $0x15a8] sm:$0xff] %v7431_v28  ;;  %7448 = vpow2.f32 %v5182_v26  ;;  %v5186_v33 = vmul.f32 1.442695, %v3738_v25  ;;  %v3745_v34 = vmul.f32 -10.0, %v2995_v27  ;;  %v2242_v35 = vsub.f32 %v1447_v23, %v7795_v7 }
 0x404   :  { %v7435_v37 = vpop.eup %7434  ;;  %5985 = vst [vmem:[%s11611_s2 + $0x15b0] sm:$0xff] %v7433_v32  ;;  %7450 = vpow2.f32 %v5184_v29  ;;  %v3746_v38 = vmul.f32 -10.0, %v2996_v30  ;;  %v3747_v39 = vmul.f32 -10.0, %v2997_v31  ;;  %v2243_v40 = vsub.f32 %v1447_v23, %v7797_v8 }
 0x405   :  { %v7437_v41 = vpop.eup %7436  ;;  %5986 = vst.msk [vmem:[%s11611_s2 + $0x15b8] sm:$0xff] %vm5292_vm0, %v7435_v37  ;;  %7452 = vpow2.f32 %v5186_v33  ;;  %v5200_v42 = vmul.f32 1.442695, %v3745_v34  ;;  %v2244_v43 = vsub.f32 %v1447_v23, %v7799_v9  ;;  %v2992_v44 = vmul.f32 %v2242_v35, %v2242_v35 }
 0x406   :  { %v7439_v45 = vpop.eup %7438  ;;  %5981 = vst [vmem:[%s11611_s2 + $0x1590] sm:$0xff] %v7437_v41  ;;  %v5202_v46 = vmul.f32 1.442695, %v3746_v38  ;;  %v5204_v47 = vmul.f32 1.442695, %v3747_v39  ;;  %v2993_v48 = vmul.f32 %v2243_v40, %v2243_v40  ;;  %v2251_v49 = vsub.f32 %v1462_v36, %v7795_v7 }
 0x407   :  { %v7441_v50 = vpop.eup %7440  ;;  %5982 = vst [vmem:[%s11611_s2 + $0x1598] sm:$0xff] %v7439_v45  ;;  %7454 = vpow2.f32 %v5200_v42  ;;  %v2994_v51 = vmul.f32 %v2244_v43, %v2244_v43  ;;  %v3742_v52 = vmul.f32 -10.0, %v2992_v44  ;;  %v2252_v53 = vsub.f32 %v1462_v36, %v7797_v8  ;;  %v1482_v44 = vpop.permute.xlu1 %1481 }
 0x408   :  { %5983 = vst.msk [vmem:[%s11611_s2 + $0x15a0] sm:$0xff] %vm5292_vm0, %v7441_v50  ;;  %7456 = vpow2.f32 %v5202_v46  ;;  %v3743_v55 = vmul.f32 -10.0, %v2993_v48  ;;  %v2253_v56 = vsub.f32 %v1462_v36, %v7799_v9  ;;  %v3001_v57 = vmul.f32 %v2251_v49, %v2251_v49 }
 0x409   :  { %7458 = vpow2.f32 %v5204_v47  ;;  %v3744_v58 = vmul.f32 -10.0, %v2994_v51  ;;  %v5194_v59 = vmul.f32 1.442695, %v3742_v52  ;;  %v3002_v60 = vmul.f32 %v2252_v53, %v2252_v53 }
 0x40a   :  { %v7443_v61 = vpop.eup %7442  ;;  %v5196_v62 = vmul.f32 1.442695, %v3743_v55  ;;  %v3003_v63 = vmul.f32 %v2253_v56, %v2253_v56  ;;  %v3751_v0 = vmul.f32 -10.0, %v3001_v57  ;;  %v2248_v1 = vsub.f32 %v1457_v54, %v7795_v7  ;;  %v1477_v56 = vpop.permute.xlu0 %1476 }
 0x40b   :  { %v7445_v2 = vpop.eup %7444  ;;  %5990 = vst [vmem:[%s11611_s2 + $0x15d8] sm:$0xff] %v7443_v61  ;;  %7460 = vpow2.f32 %v5194_v59  ;;  %v5198_v3 = vmul.f32 1.442695, %v3744_v58  ;;  %v3752_v4 = vmul.f32 -10.0, %v3002_v60  ;;  %v2249_v5 = vsub.f32 %v1457_v54, %v7797_v8 }
 0x40c   :  { %v7447_v10 = vpop.eup %7446  ;;  %5991 = vst [vmem:[%s11611_s2 + $0x15e0] sm:$0xff] %v7445_v2  ;;  %7462 = vpow2.f32 %v5196_v62  ;;  %v3753_v11 = vmul.f32 -10.0, %v3003_v63  ;;  %v5212_v12 = vmul.f32 1.442695, %v3751_v0  ;;  %v2250_v13 = vsub.f32 %v1457_v54, %v7799_v9 }
 0x40d   :  { %v7449_v14 = vpop.eup %7448  ;;  %5992 = vst.msk [vmem:[%s11611_s2 + $0x15e8] sm:$0xff] %vm5292_vm0, %v7447_v10  ;;  %7464 = vpow2.f32 %v5198_v3  ;;  %v5214_v15 = vmul.f32 1.442695, %v3752_v4  ;;  %v2998_v16 = vmul.f32 %v2248_v1, %v2248_v1  ;;  %v2999_v17 = vmul.f32 %v2249_v5, %v2249_v5  ;;  %v1492_v5 = vpop.permute.xlu1 %1491 }
 0x40e   :  { %v7451_v18 = vpop.eup %7450  ;;  %5987 = vst [vmem:[%s11611_s2 + $0x15c0] sm:$0xff] %v7449_v14  ;;  %7466 = vpow2.f32 %v5212_v12  ;;  %v5216_v19 = vmul.f32 1.442695, %v3753_v11  ;;  %v3000_v20 = vmul.f32 %v2250_v13, %v2250_v13  ;;  %v2257_v21 = vsub.f32 %v1472_v6, %v7795_v7 }
 0x40f   :  { %v7453_v23 = vpop.eup %7452  ;;  %5988 = vst [vmem:[%s11611_s2 + $0x15c8] sm:$0xff] %v7451_v18  ;;  %7468 = vpow2.f32 %v5214_v15  ;;  %v3748_v24 = vmul.f32 -10.0, %v2998_v16  ;;  %v3749_v25 = vmul.f32 -10.0, %v2999_v17  ;;  %v2258_v26 = vsub.f32 %v1472_v6, %v7797_v8 }
 0x410   :  { %5989 = vst.msk [vmem:[%s11611_s2 + $0x15d0] sm:$0xff] %vm5292_vm0, %v7453_v23  ;;  %7470 = vpow2.f32 %v5216_v19  ;;  %v3750_v27 = vmul.f32 -10.0, %v3000_v20  ;;  %v2259_v28 = vsub.f32 %v1472_v6, %v7799_v9  ;;  %v3007_v29 = vmul.f32 %v2257_v21, %v2257_v21 }
 0x411   :  { %v7455_v30 = vpop.eup %7454  ;;  %v5206_v31 = vmul.f32 1.442695, %v3748_v24  ;;  %v5208_v32 = vmul.f32 1.442695, %v3749_v25  ;;  %v3008_v33 = vmul.f32 %v2258_v26, %v2258_v26  ;;  %v2254_v34 = vsub.f32 %v1467_v22, %v7795_v7 }
 0x412   :  { %v7457_v35 = vpop.eup %7456  ;;  %5996 = vst [vmem:[%s11611_s2 + $0x1608] sm:$0xff] %v7455_v30  ;;  %v5210_v36 = vmul.f32 1.442695, %v3750_v27  ;;  %v3009_v37 = vmul.f32 %v2259_v28, %v2259_v28  ;;  %v3757_v38 = vmul.f32 -10.0, %v3007_v29  ;;  %v2255_v39 = vsub.f32 %v1467_v22, %v7797_v8  ;;  %v1487_v29 = vpop.permute.xlu0 %1486 }
 0x413   :  { %v7459_v40 = vpop.eup %7458  ;;  %5997 = vst [vmem:[%s11611_s2 + $0x1610] sm:$0xff] %v7457_v35  ;;  %7472 = vpow2.f32 %v5206_v31  ;;  %v3758_v41 = vmul.f32 -10.0, %v3008_v33  ;;  %v2256_v42 = vsub.f32 %v1467_v22, %v7799_v9  ;;  %v3004_v43 = vmul.f32 %v2254_v34, %v2254_v34 }
 0x414   :  { %5998 = vst.msk [vmem:[%s11611_s2 + $0x1618] sm:$0xff] %vm5292_vm0, %v7459_v40  ;;  %7474 = vpow2.f32 %v5208_v32  ;;  %v3759_v45 = vmul.f32 -10.0, %v3009_v37  ;;  %v5224_v46 = vmul.f32 1.442695, %v3757_v38  ;;  %v3005_v47 = vmul.f32 %v2255_v39, %v2255_v39 }
 0x415   :  { %v7461_v48 = vpop.eup %7460  ;;  %7476 = vpow2.f32 %v5210_v36  ;;  %v5226_v49 = vmul.f32 1.442695, %v3758_v41  ;;  %v3006_v50 = vmul.f32 %v2256_v42, %v2256_v42  ;;  %v3754_v51 = vmul.f32 -10.0, %v3004_v43  ;;  %v1502_v42 = vpop.permute.xlu1 %1501 }
 0x416   :  { %v7463_v52 = vpop.eup %7462  ;;  %5993 = vst [vmem:[%s11611_s2 + $0x15f0] sm:$0xff] %v7461_v48  ;;  %7478 = vpow2.f32 %v5224_v46  ;;  %v5228_v53 = vmul.f32 1.442695, %v3759_v45  ;;  %v3755_v54 = vmul.f32 -10.0, %v3005_v47  ;;  %v2263_v55 = vsub.f32 %v1482_v44, %v7795_v7 }
 0x417   :  { %v7465_v57 = vpop.eup %7464  ;;  %5994 = vst [vmem:[%s11611_s2 + $0x15f8] sm:$0xff] %v7463_v52  ;;  %7480 = vpow2.f32 %v5226_v49  ;;  %v3756_v58 = vmul.f32 -10.0, %v3006_v50  ;;  %v5218_v59 = vmul.f32 1.442695, %v3754_v51  ;;  %v2264_v60 = vsub.f32 %v1482_v44, %v7797_v8 }
 0x418   :  { %v7467_v61 = vpop.eup %7466  ;;  %5995 = vst.msk [vmem:[%s11611_s2 + $0x1600] sm:$0xff] %vm5292_vm0, %v7465_v57  ;;  %7482 = vpow2.f32 %v5228_v53  ;;  %v5220_v62 = vmul.f32 1.442695, %v3755_v54  ;;  %v2265_v63 = vsub.f32 %v1482_v44, %v7799_v9  ;;  %v3013_v0 = vmul.f32 %v2263_v55, %v2263_v55 }
 0x419   :  { %v7469_v1 = vpop.eup %7468  ;;  %6002 = vst [vmem:[%s11611_s2 + $0x1638] sm:$0xff] %v7467_v61  ;;  %7484 = vpow2.f32 %v5218_v59  ;;  %v5222_v2 = vmul.f32 1.442695, %v3756_v58  ;;  %v3014_v3 = vmul.f32 %v2264_v60, %v2264_v60  ;;  %v2260_v4 = vsub.f32 %v1477_v56, %v7795_v7  ;;  %v1497_v60 = vpop.permute.xlu0 %1496 }
 0x41a   :  { %v7471_v6 = vpop.eup %7470  ;;  %6003 = vst [vmem:[%s11611_s2 + $0x1640] sm:$0xff] %v7469_v1  ;;  %7486 = vpow2.f32 %v5220_v62  ;;  %v3015_v10 = vmul.f32 %v2265_v63, %v2265_v63  ;;  %v3763_v11 = vmul.f32 -10.0, %v3013_v0  ;;  %v2261_v12 = vsub.f32 %v1477_v56, %v7797_v8 }
 0x41b   :  { %6004 = vst.msk [vmem:[%s11611_s2 + $0x1648] sm:$0xff] %vm5292_vm0, %v7471_v6  ;;  %7488 = vpow2.f32 %v5222_v2  ;;  %v3764_v13 = vmul.f32 -10.0, %v3014_v3  ;;  %v2262_v14 = vsub.f32 %v1477_v56, %v7799_v9  ;;  %v3010_v15 = vmul.f32 %v2260_v4, %v2260_v4 }
 0x41c   :  { %v3765_v16 = vmul.f32 -10.0, %v3015_v10  ;;  %v5236_v17 = vmul.f32 1.442695, %v3763_v11  ;;  %v3011_v18 = vmul.f32 %v2261_v12, %v2261_v12  ;;  %v2269_v19 = vsub.f32 %v1492_v5, %v7795_v7 }
 0x41d   :  { %v7473_v20 = vpop.eup %7472  ;;  %v5238_v21 = vmul.f32 1.442695, %v3764_v13  ;;  %v3012_v22 = vmul.f32 %v2262_v14, %v2262_v14  ;;  %v3760_v23 = vmul.f32 -10.0, %v3010_v15  ;;  %v2270_v24 = vsub.f32 %v1492_v5, %v7797_v8  ;;  %v1512_v15 = vpop.permute.xlu1 %1511 }
 0x41e   :  { %v7475_v25 = vpop.eup %7474  ;;  %5999 = vst [vmem:[%s11611_s2 + $0x1620] sm:$0xff] %v7473_v20  ;;  %7490 = vpow2.f32 %v5236_v17  ;;  %v5240_v26 = vmul.f32 1.442695, %v3765_v16  ;;  %v3761_v27 = vmul.f32 -10.0, %v3011_v18  ;;  %v2271_v28 = vsub.f32 %v1492_v5, %v7799_v9 }
 0x41f   :  { %v7477_v30 = vpop.eup %7476  ;;  %6000 = vst [vmem:[%s11611_s2 + $0x1628] sm:$0xff] %v7475_v25  ;;  %7492 = vpow2.f32 %v5238_v21  ;;  %v3762_v31 = vmul.f32 -10.0, %v3012_v22  ;;  %v5230_v32 = vmul.f32 1.442695, %v3760_v23  ;;  %v3019_v33 = vmul.f32 %v2269_v19, %v2269_v19 }
 0x420   :  { %v7479_v34 = vpop.eup %7478  ;;  %6001 = vst.msk [vmem:[%s11611_s2 + $0x1630] sm:$0xff] %vm5292_vm0, %v7477_v30  ;;  %7494 = vpow2.f32 %v5240_v26  ;;  %v5232_v35 = vmul.f32 1.442695, %v3761_v27  ;;  %v3020_v36 = vmul.f32 %v2270_v24, %v2270_v24  ;;  %v3021_v37 = vmul.f32 %v2271_v28, %v2271_v28  ;;  %v1507_v28 = vpop.permute.xlu0 %1506 }
 0x421   :  { %v7481_v38 = vpop.eup %7480  ;;  %6008 = vst [vmem:[%s11611_s2 + $0x1668] sm:$0xff] %v7479_v34  ;;  %7496 = vpow2.f32 %v5230_v32  ;;  %v5234_v39 = vmul.f32 1.442695, %v3762_v31  ;;  %v3769_v40 = vmul.f32 -10.0, %v3019_v33  ;;  %v2266_v41 = vsub.f32 %v1487_v29, %v7795_v7 }
 0x422   :  { %v7483_v43 = vpop.eup %7482  ;;  %6009 = vst [vmem:[%s11611_s2 + $0x1670] sm:$0xff] %v7481_v38  ;;  %7498 = vpow2.f32 %v5232_v35  ;;  %v3770_v44 = vmul.f32 -10.0, %v3020_v36  ;;  %v3771_v45 = vmul.f32 -10.0, %v3021_v37  ;;  %v2267_v46 = vsub.f32 %v1487_v29, %v7797_v8 }
 0x423   :  { %v7485_v47 = vpop.eup %7484  ;;  %6010 = vst.msk [vmem:[%s11611_s2 + $0x1678] sm:$0xff] %vm5292_vm0, %v7483_v43  ;;  %7500 = vpow2.f32 %v5234_v39  ;;  %v5248_v48 = vmul.f32 1.442695, %v3769_v40  ;;  %v2268_v49 = vsub.f32 %v1487_v29, %v7799_v9  ;;  %v3016_v50 = vmul.f32 %v2266_v41, %v2266_v41 }
 0x424   :  { %v7487_v51 = vpop.eup %7486  ;;  %6005 = vst [vmem:[%s11611_s2 + $0x1650] sm:$0xff] %v7485_v47  ;;  %v5250_v52 = vmul.f32 1.442695, %v3770_v44  ;;  %v5252_v53 = vmul.f32 1.442695, %v3771_v45  ;;  %v3017_v54 = vmul.f32 %v2267_v46, %v2267_v46  ;;  %v2275_v55 = vsub.f32 %v1502_v42, %v7795_v7 }
 0x425   :  { %v7489_v56 = vpop.eup %7488  ;;  %6006 = vst [vmem:[%s11611_s2 + $0x1658] sm:$0xff] %v7487_v51  ;;  %7502 = vpow2.f32 %v5248_v48  ;;  %v3018_v57 = vmul.f32 %v2268_v49, %v2268_v49  ;;  %v3766_v58 = vmul.f32 -10.0, %v3016_v50  ;;  %v2276_v59 = vsub.f32 %v1502_v42, %v7797_v8  ;;  %v1522_v50 = vpop.permute.xlu1 %1521 }
 0x426   :  { %6007 = vst.msk [vmem:[%s11611_s2 + $0x1660] sm:$0xff] %vm5292_vm0, %v7489_v56  ;;  %7504 = vpow2.f32 %v5250_v52  ;;  %v3767_v61 = vmul.f32 -10.0, %v3017_v54  ;;  %v2277_v62 = vsub.f32 %v1502_v42, %v7799_v9  ;;  %v3025_v63 = vmul.f32 %v2275_v55, %v2275_v55 }
 0x427   :  { %7506 = vpow2.f32 %v5252_v53  ;;  %v3768_v0 = vmul.f32 -10.0, %v3018_v57  ;;  %v5242_v1 = vmul.f32 1.442695, %v3766_v58  ;;  %v3026_v2 = vmul.f32 %v2276_v59, %v2276_v59 }
 0x428   :  { %v7491_v3 = vpop.eup %7490  ;;  %v5244_v4 = vmul.f32 1.442695, %v3767_v61  ;;  %v3027_v5 = vmul.f32 %v2277_v62, %v2277_v62  ;;  %v3775_v6 = vmul.f32 -10.0, %v3025_v63  ;;  %v2272_v10 = vsub.f32 %v1497_v60, %v7795_v7  ;;  %v1517_v62 = vpop.permute.xlu0 %1516 }
 0x429   :  { %v7493_v11 = vpop.eup %7492  ;;  %6014 = vst [vmem:[%s11611_s2 + $0x1698] sm:$0xff] %v7491_v3  ;;  %7508 = vpow2.f32 %v5242_v1  ;;  %v5246_v12 = vmul.f32 1.442695, %v3768_v0  ;;  %v3776_v13 = vmul.f32 -10.0, %v3026_v2  ;;  %v2273_v14 = vsub.f32 %v1497_v60, %v7797_v8 }
 0x42a   :  { %v7495_v16 = vpop.eup %7494  ;;  %6015 = vst [vmem:[%s11611_s2 + $0x16a0] sm:$0xff] %v7493_v11  ;;  %7510 = vpow2.f32 %v5244_v4  ;;  %v3777_v17 = vmul.f32 -10.0, %v3027_v5  ;;  %v5260_v18 = vmul.f32 1.442695, %v3775_v6  ;;  %v2274_v19 = vsub.f32 %v1497_v60, %v7799_v9 }
 0x42b   :  { %v7497_v20 = vpop.eup %7496  ;;  %6016 = vst.msk [vmem:[%s11611_s2 + $0x16a8] sm:$0xff] %vm5292_vm0, %v7495_v16  ;;  %7512 = vpow2.f32 %v5246_v12  ;;  %v5262_v21 = vmul.f32 1.442695, %v3776_v13  ;;  %v3022_v22 = vmul.f32 %v2272_v10, %v2272_v10  ;;  %v3023_v23 = vmul.f32 %v2273_v14, %v2273_v14 }
 0x42c   :  { %v7499_v24 = vpop.eup %7498  ;;  %6011 = vst [vmem:[%s11611_s2 + $0x1680] sm:$0xff] %v7497_v20  ;;  %7514 = vpow2.f32 %v5260_v18  ;;  %v5264_v25 = vmul.f32 1.442695, %v3777_v17  ;;  %v3024_v26 = vmul.f32 %v2274_v19, %v2274_v19  ;;  %v2281_v27 = vsub.f32 %v1512_v15, %v7795_v7 }
 0x42d   :  { %v7501_v29 = vpop.eup %7500  ;;  %6012 = vst [vmem:[%s11611_s2 + $0x1688] sm:$0xff] %v7499_v24  ;;  %7516 = vpow2.f32 %v5262_v21  ;;  %v3772_v30 = vmul.f32 -10.0, %v3022_v22  ;;  %v3773_v31 = vmul.f32 -10.0, %v3023_v23  ;;  %v2282_v32 = vsub.f32 %v1512_v15, %v7797_v8 }
 0x42e   :  { %6013 = vst.msk [vmem:[%s11611_s2 + $0x1690] sm:$0xff] %vm5292_vm0, %v7501_v29  ;;  %7518 = vpow2.f32 %v5264_v25  ;;  %v3774_v33 = vmul.f32 -10.0, %v3024_v26  ;;  %v2283_v34 = vsub.f32 %v1512_v15, %v7799_v9  ;;  %v3031_v35 = vmul.f32 %v2281_v27, %v2281_v27 }
 0x42f   :  { %v7503_v36 = vpop.eup %7502  ;;  %v5254_v37 = vmul.f32 1.442695, %v3772_v30  ;;  %v5256_v38 = vmul.f32 1.442695, %v3773_v31  ;;  %v3032_v39 = vmul.f32 %v2282_v32, %v2282_v32  ;;  %v2278_v40 = vsub.f32 %v1507_v28, %v7795_v7 }
 0x430   :  { %v7505_v41 = vpop.eup %7504  ;;  %6020 = vst [vmem:[%s11611_s2 + $0x16c8] sm:$0xff] %v7503_v36  ;;  %v5258_v42 = vmul.f32 1.442695, %v3774_v33  ;;  %v3033_v43 = vmul.f32 %v2283_v34, %v2283_v34  ;;  %v3781_v44 = vmul.f32 -10.0, %v3031_v35  ;;  %v2279_v45 = vsub.f32 %v1507_v28, %v7797_v8 }
 0x431   :  { %v7507_v46 = vpop.eup %7506  ;;  %6021 = vst [vmem:[%s11611_s2 + $0x16d0] sm:$0xff] %v7505_v41  ;;  %7520 = vpow2.f32 %v5254_v37  ;;  %v3782_v47 = vmul.f32 -10.0, %v3032_v39  ;;  %v2280_v48 = vsub.f32 %v1507_v28, %v7799_v9  ;;  %v3028_v49 = vmul.f32 %v2278_v40, %v2278_v40 }
 0x432   :  { %6022 = vst.msk [vmem:[%s11611_s2 + $0x16d8] sm:$0xff] %vm5292_vm0, %v7507_v46  ;;  %7522 = vpow2.f32 %v5256_v38  ;;  %v3783_v51 = vmul.f32 -10.0, %v3033_v43  ;;  %v5272_v52 = vmul.f32 1.442695, %v3781_v44  ;;  %v3029_v53 = vmul.f32 %v2279_v45, %v2279_v45 }
 0x433   :  { %v7509_v54 = vpop.eup %7508  ;;  %7524 = vpow2.f32 %v5258_v42  ;;  %v5274_v55 = vmul.f32 1.442695, %v3782_v47  ;;  %v3030_v56 = vmul.f32 %v2280_v48, %v2280_v48  ;;  %v3778_v57 = vmul.f32 -10.0, %v3028_v49 }
 0x434   :  { %v7511_v58 = vpop.eup %7510  ;;  %6017 = vst [vmem:[%s11611_s2 + $0x16b0] sm:$0xff] %v7509_v54  ;;  %7526 = vpow2.f32 %v5272_v52  ;;  %v5276_v59 = vmul.f32 1.442695, %v3783_v51  ;;  %v3779_v60 = vmul.f32 -10.0, %v3029_v53  ;;  %v2287_v61 = vsub.f32 %v1522_v50, %v7795_v7 }
 0x435   :  { %v7513_v63 = vpop.eup %7512  ;;  %6018 = vst [vmem:[%s11611_s2 + $0x16b8] sm:$0xff] %v7511_v58  ;;  %7528 = vpow2.f32 %v5274_v55  ;;  %v3780_v0 = vmul.f32 -10.0, %v3030_v56  ;;  %v5266_v1 = vmul.f32 1.442695, %v3778_v57  ;;  %v2288_v2 = vsub.f32 %v1522_v50, %v7797_v8 }
 0x436   :  { %v7515_v3 = vpop.eup %7514  ;;  %6019 = vst.msk [vmem:[%s11611_s2 + $0x16c0] sm:$0xff] %vm5292_vm0, %v7513_v63  ;;  %7530 = vpow2.f32 %v5276_v59  ;;  %v5268_v4 = vmul.f32 1.442695, %v3779_v60  ;;  %v2289_v5 = vsub.f32 %v1522_v50, %v7799_v9  ;;  %v3037_v6 = vmul.f32 %v2287_v61, %v2287_v61 }
 0x437   :  { %v7517_v10 = vpop.eup %7516  ;;  %6026 = vst [vmem:[%s11611_s2 + $0x16f8] sm:$0xff] %v7515_v3  ;;  %7532 = vpow2.f32 %v5266_v1  ;;  %v5270_v11 = vmul.f32 1.442695, %v3780_v0  ;;  %v3038_v12 = vmul.f32 %v2288_v2, %v2288_v2  ;;  %v2284_v13 = vsub.f32 %v1517_v62, %v7795_v7 }
 0x438   :  { %v7519_v14 = vpop.eup %7518  ;;  %6027 = vst [vmem:[%s11611_s2 + $0x1700] sm:$0xff] %v7517_v10  ;;  %7534 = vpow2.f32 %v5268_v4  ;;  %v3039_v15 = vmul.f32 %v2289_v5, %v2289_v5  ;;  %v3787_v16 = vmul.f32 -10.0, %v3037_v6  ;;  %v2285_v17 = vsub.f32 %v1517_v62, %v7797_v8 }
 0x439   :  { %6028 = vst.msk [vmem:[%s11611_s2 + $0x1708] sm:$0xff] %vm5292_vm0, %v7519_v14  ;;  %7536 = vpow2.f32 %v5270_v11  ;;  %v3788_v18 = vmul.f32 -10.0, %v3038_v12  ;;  %v2286_v19 = vsub.f32 %v1517_v62, %v7799_v9  ;;  %v3034_v7 = vmul.f32 %v2284_v13, %v2284_v13 }
 0x43a   :  { %v3789_v20 = vmul.f32 -10.0, %v3039_v15  ;;  %v5284_v21 = vmul.f32 1.442695, %v3787_v16  ;;  %v3035_v22 = vmul.f32 %v2285_v17, %v2285_v17 }
 0x43b   :  { %v7521_v23 = vpop.eup %7520  ;;  %v5286_v24 = vmul.f32 1.442695, %v3788_v18  ;;  %v3036_v25 = vmul.f32 %v2286_v19, %v2286_v19  ;;  %v3784_v26 = vmul.f32 -10.0, %v3034_v7 }
 0x43c   :  { %v7523_v27 = vpop.eup %7522  ;;  %6023 = vst [vmem:[%s11611_s2 + $0x16e0] sm:$0xff] %v7521_v23  ;;  %7538 = vpow2.f32 %v5284_v21  ;;  %v5288_v8 = vmul.f32 1.442695, %v3789_v20  ;;  %v3785_v28 = vmul.f32 -10.0, %v3035_v22 }
 0x43d   :  { %v7525_v29 = vpop.eup %7524  ;;  %6024 = vst [vmem:[%s11611_s2 + $0x16e8] sm:$0xff] %v7523_v27  ;;  %7540 = vpow2.f32 %v5286_v24  ;;  %v3786_v9 = vmul.f32 -10.0, %v3036_v25  ;;  %v5278_v30 = vmul.f32 1.442695, %v3784_v26 }
 0x43e   :  { %v7527_v31 = vpop.eup %7526  ;;  %6025 = vst.msk [vmem:[%s11611_s2 + $0x16f0] sm:$0xff] %vm5292_vm0, %v7525_v29  ;;  %7542 = vpow2.f32 %v5288_v8  ;;  %v5280_v32 = vmul.f32 1.442695, %v3785_v28 }
 0x43f   :  { %v7529_v33 = vpop.eup %7528  ;;  %6032 = vst [vmem:[%s11611_s2 + $0x1728] sm:$0xff] %v7527_v31  ;;  %7544 = vpow2.f32 %v5278_v30  ;;  %v5282_v34 = vmul.f32 1.442695, %v3786_v9 }
 0x440   :  { %v7531_v35 = vpop.eup %7530  ;;  %6033 = vst [vmem:[%s11611_s2 + $0x1730] sm:$0xff] %v7529_v33  ;;  %7546 = vpow2.f32 %v5280_v32 }
 0x441   :  { %v7533_v36 = vpop.eup %7532  ;;  %6034 = vst.msk [vmem:[%s11611_s2 + $0x1738] sm:$0xff] %vm5292_vm0, %v7531_v35  ;;  %7548 = vpow2.f32 %v5282_v34 }
 0x442   :  { %v7535_v37 = vpop.eup %7534  ;;  %6029 = vst [vmem:[%s11611_s2 + $0x1710] sm:$0xff] %v7533_v36 }
 0x443   :  { %v7537_v38 = vpop.eup %7536  ;;  %6030 = vst [vmem:[%s11611_s2 + $0x1718] sm:$0xff] %v7535_v37 }
 0x444   :  { %6031 = vst.msk [vmem:[%s11611_s2 + $0x1720] sm:$0xff] %vm5292_vm0, %v7537_v38 }
 0x446   :  { %v7539_v39 = vpop.eup %7538 }
 0x447   :  { %v7541_v40 = vpop.eup %7540  ;;  %6038 = vst [vmem:[%s11611_s2 + $0x1758] sm:$0xff] %v7539_v39 }
 0x448   :  { %v7543_v41 = vpop.eup %7542  ;;  %6039 = vst [vmem:[%s11611_s2 + $0x1760] sm:$0xff] %v7541_v40 }
 0x449   :  { %v7545_v42 = vpop.eup %7544  ;;  %6040 = vst.msk [vmem:[%s11611_s2 + $0x1768] sm:$0xff] %vm5292_vm0, %v7543_v41 }
 0x44a   :  { %v7547_v43 = vpop.eup %7546  ;;  %6035 = vst [vmem:[%s11611_s2 + $0x1740] sm:$0xff] %v7545_v42 }
 0x44b   :  { %v7549_v44 = vpop.eup %7548  ;;  %6036 = vst [vmem:[%s11611_s2 + $0x1748] sm:$0xff] %v7547_v43 }
 0x44c   :  { %6037 = vst.msk [vmem:[%s11611_s2 + $0x1750] sm:$0xff] %vm5292_vm0, %v7549_v44 }
 0x44d   :  { %6045 = vsyncpa [#allocation3], 1 }

</bundles_post_ra>
